<compile_context>
chip_gen: v7x
topology: tpu7x:2x2x1
jax: 0.10.0
libtpu: 0.0.40
codegen_flags: <defaults>
</compile_context>

<pallas_src>
import functools

import jax
import jax.numpy as jnp
from jax.experimental import pallas as pl
from jax.experimental.pallas import tpu as pltpu


# ----------------------------------------------------------------------------
# In-kernel helpers (operate on VMEM-resident values)
# ----------------------------------------------------------------------------
def _dilated_conv3x3_relu(t, w_folded, b, d):
    """'Same' 3x3 conv with dilation d (+bias +ReLU) on a VMEM tile.

    t:        (H, W, Cin) f32
    w_folded: (9*Cin, Cout) f32 with row index (dy*3 + dx)*Cin + cin, i.e. the
              PyTorch weight (Cout, Cin, 3, 3) transposed to (3, 3, Cin, Cout)
              and flattened.
    b:        (1, Cout) f32
    """
    h, w, c = t.shape
    # Zero-pad spatially by d (matches nn.Conv2d(padding=d)).
    zr = jnp.zeros((d, w, c), t.dtype)
    tp = jnp.concatenate([zr, t, zr], axis=0)            # (h+2d, w, c)
    zc = jnp.zeros((h + 2 * d, d, c), t.dtype)
    tp = jnp.concatenate([zc, tp, zc], axis=1)           # (h+2d, w+2d, c)

    # Fold the 9 taps into the contraction dim: (H*W, 9*Cin).
    taps = []
    for dy in range(3):
        for dx in range(3):
            taps.append(tp[dy * d:dy * d + h, dx * d:dx * d + w, :])
    xc = jnp.concatenate(taps, axis=-1).reshape(h * w, 9 * c)

    y = jnp.dot(xc, w_folded, preferred_element_type=jnp.float32) + b
    y = jnp.maximum(y, 0.0)                              # ReLU, f32 epilogue
    return y.reshape(h, w, -1)


def _rdb_kernel(*refs, d_list):
    """Fused RDB: dense block + 1x1 conv_post + residual, one batch element."""
    n_layers = len(d_list)
    x_ref = refs[0]
    layer_refs = refs[1:1 + 2 * n_layers]                # (w, b) per layer
    wp_ref = refs[1 + 2 * n_layers]
    bp_ref = refs[2 + 2 * n_layers]
    o_ref = refs[3 + 2 * n_layers]

    x = x_ref[...]                                       # (H, W, C0) f32
    h, w, c0 = x.shape

    # Dense block: activation stays resident in VMEM; channels grow each layer
    # (torch.cat([_t, t], dim=channels)).
    t = x
    for i, d in enumerate(d_list):
        wt = layer_refs[2 * i][...]
        bt = layer_refs[2 * i + 1][...]
        _t = _dilated_conv3x3_relu(t, wt, bt, d)
        t = jnp.concatenate([_t, t], axis=-1)

    # conv_post (1x1) with the residual add fused into the epilogue.
    cf = t.shape[-1]
    y = jnp.dot(t.reshape(h * w, cf), wp_ref[...],
                preferred_element_type=jnp.float32) + bp_ref[...]
    y = y + x.reshape(h * w, c0)
    o_ref[...] = y.reshape(h, w, c0).astype(o_ref.dtype)


# ----------------------------------------------------------------------------
# Wrapper: NCHW in/out like the PyTorch module, NHWC inside
# ----------------------------------------------------------------------------
def rdb_forward(params, x_nchw, *, d_list):
    d_list = tuple(int(d) for d in d_list)               # static config
    n, c0, hh, ww = x_nchw.shape
    x = jnp.transpose(x_nchw, (0, 2, 3, 1))              # NHWC

    operands = [x]
    in_specs = [pl.BlockSpec((None, hh, ww, c0), lambda b: (b, 0, 0, 0))]
    for layer in params["layers"]:
        for name in ("w", "b"):
            a = layer[name]
            operands.append(a)
            in_specs.append(pl.BlockSpec(a.shape, lambda b: (0, 0)))
    for name in ("w", "b"):
        a = params["post"][name]
        operands.append(a)
        in_specs.append(pl.BlockSpec(a.shape, lambda b: (0, 0)))

    out = pl.pallas_call(
        functools.partial(_rdb_kernel, d_list=d_list),
        out_shape=jax.ShapeDtypeStruct((n, hh, ww, c0), jnp.float32),
        grid_spec=pltpu.PrefetchScalarGridSpec(
            num_scalar_prefetch=0,
            grid=(n,),
            in_specs=in_specs,
            out_specs=pl.BlockSpec((None, hh, ww, c0),
                                   lambda b: (b, 0, 0, 0)),
        ),
        compiler_params=pltpu.CompilerParams(
            dimension_semantics=("parallel",)),
    )(*operands)
    return jnp.transpose(out, (0, 3, 1, 2))              # back to NCHW


# ----------------------------------------------------------------------------
# Synthetic parameter init (tap-folded conv weights)
# ----------------------------------------------------------------------------
def init_conv_folded(key, cin, cout, k):
    kw, kb = jax.random.split(key)
    scale = 0.1 / (k * k * cin) ** 0.5
    w = jax.random.normal(kw, (k * k * cin, cout), jnp.float32) * scale
    b = jax.random.normal(kb, (1, cout), jnp.float32) * 0.01
    return {"w": w, "b": b}


def init_rdb(key, in_channel, d_list, inter_num):
    keys = jax.random.split(key, len(d_list) + 1)
    layers = []
    c = in_channel
    for i in range(len(d_list)):
        layers.append(init_conv_folded(keys[i], c, inter_num, 3))
        c += inter_num
    post = init_conv_folded(keys[-1], c, in_channel, 1)
    return {"layers": layers, "post": post}


# ----------------------------------------------------------------------------
# Pure-JAX reference (lax.conv_general_dilated) for correctness checking
# ----------------------------------------------------------------------------
def rdb_reference(params, x_nchw, *, d_list):
    x = jnp.transpose(x_nchw, (0, 2, 3, 1))
    t = x
    for layer, d in zip(params["layers"], d_list):
        cin = t.shape[-1]
        w = layer["w"].reshape(3, 3, cin, -1)            # HWIO
        y = jax.lax.conv_general_dilated(
            t, w, window_strides=(1, 1), padding=((d, d), (d, d)),
            rhs_dilation=(d, d),
            dimension_numbers=("NHWC", "HWIO", "NHWC"),
            precision=jax.lax.Precision.HIGHEST)
        y = jnp.maximum(y + layer["b"].reshape(1, 1, 1, -1), 0.0)
        t = jnp.concatenate([y, t], axis=-1)
    y = jnp.einsum("nhwc,cd->nhwd", t, params["post"]["w"],
                   precision=jax.lax.Precision.HIGHEST)
    y = y + params["post"]["b"].reshape(1, 1, 1, -1) + x
    return jnp.transpose(y, (0, 3, 1, 2))


# ----------------------------------------------------------------------------
if __name__ == "__main__":
    key = jax.random.PRNGKey(0)
    kx, kp = jax.random.split(key)

    N, C, H, W = 2, 8, 16, 16
    inter_num = 8
    d_list = (1, 2, 1)

    x = jax.random.normal(kx, (N, C, H, W), jnp.float32)
    params = init_rdb(kp, C, d_list, inter_num)

    fwd = jax.jit(functools.partial(rdb_forward, d_list=d_list))
    out = fwd(params, x)
    jax.block_until_ready(out)

    assert out.shape == (N, C, H, W), out.shape
    assert out.dtype == jnp.float32

    ref = rdb_reference(params, x, d_list=d_list)
    rel_err = float(jnp.max(jnp.abs(out - ref)) /
                    (jnp.max(jnp.abs(ref)) + 1e-8))
    assert rel_err < 3e-2, f"mismatch vs reference: rel_err={rel_err}"

    print("KERNEL_OK")
</pallas_src>

<mosaic_0001>
module attributes {stable_mosaic.version = 11 : i64} {
  func.func @_rdb_kernel(%arg0: i32, %arg1: memref<1x16x16x8xf32, #tpu.memory_space<vmem>>, %arg2: memref<72x8xf32, #tpu.memory_space<vmem>>, %arg3: memref<1x8xf32, #tpu.memory_space<vmem>>, %arg4: memref<144x8xf32, #tpu.memory_space<vmem>>, %arg5: memref<1x8xf32, #tpu.memory_space<vmem>>, %arg6: memref<216x8xf32, #tpu.memory_space<vmem>>, %arg7: memref<1x8xf32, #tpu.memory_space<vmem>>, %arg8: memref<32x8xf32, #tpu.memory_space<vmem>>, %arg9: memref<1x8xf32, #tpu.memory_space<vmem>>, %arg10: memref<1x16x16x8xf32, #tpu.memory_space<vmem>>) attributes {dimension_semantics = [#tpu.dimension_semantics<parallel>], iteration_bounds = array<i64: 2>, scalar_prefetch = 0 : i64, scratch_operands = 0 : i64, tpu.core_type = #tpu.core_type<tc>, window_params = [{transform_indices = @transform_0, window_bounds = array<i64: 1, 16, 16, 8>}, {pipeline_mode = #tpu.pipeline_mode<synchronous>, transform_indices = @transform_1, window_bounds = array<i64: 72, 8>}, {pipeline_mode = #tpu.pipeline_mode<synchronous>, transform_indices = @transform_2, window_bounds = array<i64: 1, 8>}, {pipeline_mode = #tpu.pipeline_mode<synchronous>, transform_indices = @transform_3, window_bounds = array<i64: 144, 8>}, {pipeline_mode = #tpu.pipeline_mode<synchronous>, transform_indices = @transform_4, window_bounds = array<i64: 1, 8>}, {pipeline_mode = #tpu.pipeline_mode<synchronous>, transform_indices = @transform_5, window_bounds = array<i64: 216, 8>}, {pipeline_mode = #tpu.pipeline_mode<synchronous>, transform_indices = @transform_6, window_bounds = array<i64: 1, 8>}, {pipeline_mode = #tpu.pipeline_mode<synchronous>, transform_indices = @transform_7, window_bounds = array<i64: 32, 8>}, {pipeline_mode = #tpu.pipeline_mode<synchronous>, transform_indices = @transform_8, window_bounds = array<i64: 1, 8>}, {transform_indices = @transform_9, window_bounds = array<i64: 1, 16, 16, 8>}]} {
    %c0 = arith.constant 0 : index
    %c0_0 = arith.constant 0 : index
    %c0_1 = arith.constant 0 : index
    %c0_2 = arith.constant 0 : index
    %0 = vector.load %arg1[%c0, %c0_0, %c0_1, %c0_2] : memref<1x16x16x8xf32, #tpu.memory_space<vmem>>, vector<1x16x16x8xf32>
    %1 = vector.shape_cast %0 : vector<1x16x16x8xf32> to vector<16x16x8xf32>
    %c0_3 = arith.constant 0 : index
    %c0_4 = arith.constant 0 : index
    %2 = vector.load %arg2[%c0_3, %c0_4] : memref<72x8xf32, #tpu.memory_space<vmem>>, vector<72x8xf32>
    %c0_5 = arith.constant 0 : index
    %c0_6 = arith.constant 0 : index
    %3 = vector.load %arg3[%c0_5, %c0_6] : memref<1x8xf32, #tpu.memory_space<vmem>>, vector<1x8xf32>
    %cst = arith.constant 0.000000e+00 : f32
    %4 = vector.broadcast %cst : f32 to vector<1x16x8xf32>
    %5 = tpu.concatenate %4, %1, %4 in 0 : vector<1x16x8xf32>, vector<16x16x8xf32>, vector<1x16x8xf32> -> vector<18x16x8xf32>
    %cst_7 = arith.constant 0.000000e+00 : f32
    %6 = vector.broadcast %cst_7 : f32 to vector<18x1x8xf32>
    %7 = tpu.concatenate %6, %5, %6 in 1 : vector<18x1x8xf32>, vector<18x16x8xf32>, vector<18x1x8xf32> -> vector<18x18x8xf32>
    %8 = vector.extract_strided_slice %7 {offsets = [0, 0, 0], sizes = [16, 16, 8], strides = [1, 1, 1]} : vector<18x18x8xf32> to vector<16x16x8xf32>
    %9 = vector.extract_strided_slice %7 {offsets = [0, 1, 0], sizes = [16, 16, 8], strides = [1, 1, 1]} : vector<18x18x8xf32> to vector<16x16x8xf32>
    %10 = vector.extract_strided_slice %7 {offsets = [0, 2, 0], sizes = [16, 16, 8], strides = [1, 1, 1]} : vector<18x18x8xf32> to vector<16x16x8xf32>
    %11 = vector.extract_strided_slice %7 {offsets = [1, 0, 0], sizes = [16, 16, 8], strides = [1, 1, 1]} : vector<18x18x8xf32> to vector<16x16x8xf32>
    %12 = vector.extract_strided_slice %7 {offsets = [1, 1, 0], sizes = [16, 16, 8], strides = [1, 1, 1]} : vector<18x18x8xf32> to vector<16x16x8xf32>
    %13 = vector.extract_strided_slice %7 {offsets = [1, 2, 0], sizes = [16, 16, 8], strides = [1, 1, 1]} : vector<18x18x8xf32> to vector<16x16x8xf32>
    %14 = vector.extract_strided_slice %7 {offsets = [2, 0, 0], sizes = [16, 16, 8], strides = [1, 1, 1]} : vector<18x18x8xf32> to vector<16x16x8xf32>
    %15 = vector.extract_strided_slice %7 {offsets = [2, 1, 0], sizes = [16, 16, 8], strides = [1, 1, 1]} : vector<18x18x8xf32> to vector<16x16x8xf32>
    %16 = vector.extract_strided_slice %7 {offsets = [2, 2, 0], sizes = [16, 16, 8], strides = [1, 1, 1]} : vector<18x18x8xf32> to vector<16x16x8xf32>
    %17 = tpu.concatenate %8, %9, %10, %11, %12, %13, %14, %15, %16 in 2 : vector<16x16x8xf32>, vector<16x16x8xf32>, vector<16x16x8xf32>, vector<16x16x8xf32>, vector<16x16x8xf32>, vector<16x16x8xf32>, vector<16x16x8xf32>, vector<16x16x8xf32>, vector<16x16x8xf32> -> vector<16x16x72xf32>
    %18 = vector.shape_cast %17 : vector<16x16x72xf32> to vector<256x72xf32>
    %cst_8 = arith.constant dense<0.000000e+00> : vector<256x8xf32>
    %19 = tpu.matmul %18, %2, %cst_8 {dimension_numbers = #tpu.dot_dimension_numbers<[1], [0], [0], [1], [0, 0, 1, 1], [], []>} : vector<256x72xf32>, vector<72x8xf32>, vector<256x8xf32> -> vector<256x8xf32>
    %20 = vector.broadcast %3 : vector<1x8xf32> to vector<256x8xf32>
    %21 = arith.addf %19, %20 : vector<256x8xf32>
    %cst_9 = arith.constant 0.000000e+00 : f32
    %22 = vector.broadcast %cst_9 : f32 to vector<256x8xf32>
    %23 = arith.maximumf %21, %22 : vector<256x8xf32>
    %24 = vector.shape_cast %23 : vector<256x8xf32> to vector<16x16x8xf32>
    %25 = tpu.concatenate %24, %1 in 2 : vector<16x16x8xf32>, vector<16x16x8xf32> -> vector<16x16x16xf32>
    %c0_10 = arith.constant 0 : index
    %c0_11 = arith.constant 0 : index
    %26 = vector.load %arg4[%c0_10, %c0_11] : memref<144x8xf32, #tpu.memory_space<vmem>>, vector<144x8xf32>
    %c0_12 = arith.constant 0 : index
    %c0_13 = arith.constant 0 : index
    %27 = vector.load %arg5[%c0_12, %c0_13] : memref<1x8xf32, #tpu.memory_space<vmem>>, vector<1x8xf32>
    %cst_14 = arith.constant 0.000000e+00 : f32
    %28 = vector.broadcast %cst_14 : f32 to vector<2x16x16xf32>
    %29 = tpu.concatenate %28, %25, %28 in 0 : vector<2x16x16xf32>, vector<16x16x16xf32>, vector<2x16x16xf32> -> vector<20x16x16xf32>
    %cst_15 = arith.constant 0.000000e+00 : f32
    %30 = vector.broadcast %cst_15 : f32 to vector<20x2x16xf32>
    %31 = tpu.concatenate %30, %29, %30 in 1 : vector<20x2x16xf32>, vector<20x16x16xf32>, vector<20x2x16xf32> -> vector<20x20x16xf32>
    %32 = vector.extract_strided_slice %31 {offsets = [0, 0, 0], sizes = [16, 16, 16], strides = [1, 1, 1]} : vector<20x20x16xf32> to vector<16x16x16xf32>
    %33 = vector.extract_strided_slice %31 {offsets = [0, 2, 0], sizes = [16, 16, 16], strides = [1, 1, 1]} : vector<20x20x16xf32> to vector<16x16x16xf32>
    %34 = vector.extract_strided_slice %31 {offsets = [0, 4, 0], sizes = [16, 16, 16], strides = [1, 1, 1]} : vector<20x20x16xf32> to vector<16x16x16xf32>
    %35 = vector.extract_strided_slice %31 {offsets = [2, 0, 0], sizes = [16, 16, 16], strides = [1, 1, 1]} : vector<20x20x16xf32> to vector<16x16x16xf32>
    %36 = vector.extract_strided_slice %31 {offsets = [2, 2, 0], sizes = [16, 16, 16], strides = [1, 1, 1]} : vector<20x20x16xf32> to vector<16x16x16xf32>
    %37 = vector.extract_strided_slice %31 {offsets = [2, 4, 0], sizes = [16, 16, 16], strides = [1, 1, 1]} : vector<20x20x16xf32> to vector<16x16x16xf32>
    %38 = vector.extract_strided_slice %31 {offsets = [4, 0, 0], sizes = [16, 16, 16], strides = [1, 1, 1]} : vector<20x20x16xf32> to vector<16x16x16xf32>
    %39 = vector.extract_strided_slice %31 {offsets = [4, 2, 0], sizes = [16, 16, 16], strides = [1, 1, 1]} : vector<20x20x16xf32> to vector<16x16x16xf32>
    %40 = vector.extract_strided_slice %31 {offsets = [4, 4, 0], sizes = [16, 16, 16], strides = [1, 1, 1]} : vector<20x20x16xf32> to vector<16x16x16xf32>
    %41 = tpu.concatenate %32, %33, %34, %35, %36, %37, %38, %39, %40 in 2 : vector<16x16x16xf32>, vector<16x16x16xf32>, vector<16x16x16xf32>, vector<16x16x16xf32>, vector<16x16x16xf32>, vector<16x16x16xf32>, vector<16x16x16xf32>, vector<16x16x16xf32>, vector<16x16x16xf32> -> vector<16x16x144xf32>
    %42 = vector.shape_cast %41 : vector<16x16x144xf32> to vector<256x144xf32>
    %cst_16 = arith.constant dense<0.000000e+00> : vector<256x8xf32>
    %43 = tpu.matmul %42, %26, %cst_16 {dimension_numbers = #tpu.dot_dimension_numbers<[1], [0], [0], [1], [0, 0, 1, 1], [], []>} : vector<256x144xf32>, vector<144x8xf32>, vector<256x8xf32> -> vector<256x8xf32>
    %44 = vector.broadcast %27 : vector<1x8xf32> to vector<256x8xf32>
    %45 = arith.addf %43, %44 : vector<256x8xf32>
    %cst_17 = arith.constant 0.000000e+00 : f32
    %46 = vector.broadcast %cst_17 : f32 to vector<256x8xf32>
    %47 = arith.maximumf %45, %46 : vector<256x8xf32>
    %48 = vector.shape_cast %47 : vector<256x8xf32> to vector<16x16x8xf32>
    %49 = tpu.concatenate %48, %25 in 2 : vector<16x16x8xf32>, vector<16x16x16xf32> -> vector<16x16x24xf32>
    %c0_18 = arith.constant 0 : index
    %c0_19 = arith.constant 0 : index
    %50 = vector.load %arg6[%c0_18, %c0_19] : memref<216x8xf32, #tpu.memory_space<vmem>>, vector<216x8xf32>
    %c0_20 = arith.constant 0 : index
    %c0_21 = arith.constant 0 : index
    %51 = vector.load %arg7[%c0_20, %c0_21] : memref<1x8xf32, #tpu.memory_space<vmem>>, vector<1x8xf32>
    %cst_22 = arith.constant 0.000000e+00 : f32
    %52 = vector.broadcast %cst_22 : f32 to vector<1x16x24xf32>
    %53 = tpu.concatenate %52, %49, %52 in 0 : vector<1x16x24xf32>, vector<16x16x24xf32>, vector<1x16x24xf32> -> vector<18x16x24xf32>
    %cst_23 = arith.constant 0.000000e+00 : f32
    %54 = vector.broadcast %cst_23 : f32 to vector<18x1x24xf32>
    %55 = tpu.concatenate %54, %53, %54 in 1 : vector<18x1x24xf32>, vector<18x16x24xf32>, vector<18x1x24xf32> -> vector<18x18x24xf32>
    %56 = vector.extract_strided_slice %55 {offsets = [0, 0, 0], sizes = [16, 16, 24], strides = [1, 1, 1]} : vector<18x18x24xf32> to vector<16x16x24xf32>
    %57 = vector.extract_strided_slice %55 {offsets = [0, 1, 0], sizes = [16, 16, 24], strides = [1, 1, 1]} : vector<18x18x24xf32> to vector<16x16x24xf32>
    %58 = vector.extract_strided_slice %55 {offsets = [0, 2, 0], sizes = [16, 16, 24], strides = [1, 1, 1]} : vector<18x18x24xf32> to vector<16x16x24xf32>
    %59 = vector.extract_strided_slice %55 {offsets = [1, 0, 0], sizes = [16, 16, 24], strides = [1, 1, 1]} : vector<18x18x24xf32> to vector<16x16x24xf32>
    %60 = vector.extract_strided_slice %55 {offsets = [1, 1, 0], sizes = [16, 16, 24], strides = [1, 1, 1]} : vector<18x18x24xf32> to vector<16x16x24xf32>
    %61 = vector.extract_strided_slice %55 {offsets = [1, 2, 0], sizes = [16, 16, 24], strides = [1, 1, 1]} : vector<18x18x24xf32> to vector<16x16x24xf32>
    %62 = vector.extract_strided_slice %55 {offsets = [2, 0, 0], sizes = [16, 16, 24], strides = [1, 1, 1]} : vector<18x18x24xf32> to vector<16x16x24xf32>
    %63 = vector.extract_strided_slice %55 {offsets = [2, 1, 0], sizes = [16, 16, 24], strides = [1, 1, 1]} : vector<18x18x24xf32> to vector<16x16x24xf32>
    %64 = vector.extract_strided_slice %55 {offsets = [2, 2, 0], sizes = [16, 16, 24], strides = [1, 1, 1]} : vector<18x18x24xf32> to vector<16x16x24xf32>
    %65 = tpu.concatenate %56, %57, %58, %59, %60, %61, %62, %63, %64 in 2 : vector<16x16x24xf32>, vector<16x16x24xf32>, vector<16x16x24xf32>, vector<16x16x24xf32>, vector<16x16x24xf32>, vector<16x16x24xf32>, vector<16x16x24xf32>, vector<16x16x24xf32>, vector<16x16x24xf32> -> vector<16x16x216xf32>
    %66 = vector.shape_cast %65 : vector<16x16x216xf32> to vector<256x216xf32>
    %cst_24 = arith.constant dense<0.000000e+00> : vector<256x8xf32>
    %67 = tpu.matmul %66, %50, %cst_24 {dimension_numbers = #tpu.dot_dimension_numbers<[1], [0], [0], [1], [0, 0, 1, 1], [], []>} : vector<256x216xf32>, vector<216x8xf32>, vector<256x8xf32> -> vector<256x8xf32>
    %68 = vector.broadcast %51 : vector<1x8xf32> to vector<256x8xf32>
    %69 = arith.addf %67, %68 : vector<256x8xf32>
    %cst_25 = arith.constant 0.000000e+00 : f32
    %70 = vector.broadcast %cst_25 : f32 to vector<256x8xf32>
    %71 = arith.maximumf %69, %70 : vector<256x8xf32>
    %72 = vector.shape_cast %71 : vector<256x8xf32> to vector<16x16x8xf32>
    %73 = tpu.concatenate %72, %49 in 2 : vector<16x16x8xf32>, vector<16x16x24xf32> -> vector<16x16x32xf32>
    %74 = vector.shape_cast %73 : vector<16x16x32xf32> to vector<256x32xf32>
    %c0_26 = arith.constant 0 : index
    %c0_27 = arith.constant 0 : index
    %75 = vector.load %arg8[%c0_26, %c0_27] : memref<32x8xf32, #tpu.memory_space<vmem>>, vector<32x8xf32>
    %cst_28 = arith.constant dense<0.000000e+00> : vector<256x8xf32>
    %76 = tpu.matmul %74, %75, %cst_28 {dimension_numbers = #tpu.dot_dimension_numbers<[1], [0], [0], [1], [0, 0, 1, 1], [], []>} : vector<256x32xf32>, vector<32x8xf32>, vector<256x8xf32> -> vector<256x8xf32>
    %c0_29 = arith.constant 0 : index
    %c0_30 = arith.constant 0 : index
    %77 = vector.load %arg9[%c0_29, %c0_30] : memref<1x8xf32, #tpu.memory_space<vmem>>, vector<1x8xf32>
    %78 = vector.broadcast %77 : vector<1x8xf32> to vector<256x8xf32>
    %79 = arith.addf %76, %78 : vector<256x8xf32>
    %80 = vector.shape_cast %1 : vector<16x16x8xf32> to vector<256x8xf32>
    %81 = arith.addf %79, %80 : vector<256x8xf32>
    %82 = vector.shape_cast %81 : vector<256x8xf32> to vector<16x16x8xf32>
    %c0_31 = arith.constant 0 : index
    %c0_32 = arith.constant 0 : index
    %c0_33 = arith.constant 0 : index
    %c0_34 = arith.constant 0 : index
    %83 = vector.load %arg10[%c0_31, %c0_32, %c0_33, %c0_34] : memref<1x16x16x8xf32, #tpu.memory_space<vmem>>, vector<1x16x16x8xf32>
    %84 = vector.shape_cast %83 : vector<1x16x16x8xf32> to vector<16x16x8xf32>
    %85 = vector.shape_cast %82 : vector<16x16x8xf32> to vector<1x16x16x8xf32>
    tpu.vector_store %arg10[%c0_31, %c0_32, %c0_33, %c0_34], %85 {strides = array<i32>} : memref<1x16x16x8xf32, #tpu.memory_space<vmem>>, vector<1x16x16x8xf32>,
    return
  }
  func.func @transform_0(%arg0: i32) -> (i32, i32, i32, i32) {
    %c0_i32 = arith.constant 0 : i32
    %c0_i32_0 = arith.constant 0 : i32
    %c0_i32_1 = arith.constant 0 : i32
    %c0_i32_2 = arith.constant 0 : i32
    return %arg0, %c0_i32, %c0_i32_0, %c0_i32_1 : i32, i32, i32, i32
  }
  func.func @transform_1(%arg0: i32) -> (i32, i32) {
    %c0_i32 = arith.constant 0 : i32
    %c0_i32_0 = arith.constant 0 : i32
    %c0_i32_1 = arith.constant 0 : i32
    return %c0_i32, %c0_i32_0 : i32, i32
  }
  func.func @transform_2(%arg0: i32) -> (i32, i32) {
    %c0_i32 = arith.constant 0 : i32
    %c0_i32_0 = arith.constant 0 : i32
    %c0_i32_1 = arith.constant 0 : i32
    return %c0_i32, %c0_i32_0 : i32, i32
  }
  func.func @transform_3(%arg0: i32) -> (i32, i32) {
    %c0_i32 = arith.constant 0 : i32
    %c0_i32_0 = arith.constant 0 : i32
    %c0_i32_1 = arith.constant 0 : i32
    return %c0_i32, %c0_i32_0 : i32, i32
  }
  func.func @transform_4(%arg0: i32) -> (i32, i32) {
    %c0_i32 = arith.constant 0 : i32
    %c0_i32_0 = arith.constant 0 : i32
    %c0_i32_1 = arith.constant 0 : i32
    return %c0_i32, %c0_i32_0 : i32, i32
  }
  func.func @transform_5(%arg0: i32) -> (i32, i32) {
    %c0_i32 = arith.constant 0 : i32
    %c0_i32_0 = arith.constant 0 : i32
    %c0_i32_1 = arith.constant 0 : i32
    return %c0_i32, %c0_i32_0 : i32, i32
  }
  func.func @transform_6(%arg0: i32) -> (i32, i32) {
    %c0_i32 = arith.constant 0 : i32
    %c0_i32_0 = arith.constant 0 : i32
    %c0_i32_1 = arith.constant 0 : i32
    return %c0_i32, %c0_i32_0 : i32, i32
  }
  func.func @transform_7(%arg0: i32) -> (i32, i32) {
    %c0_i32 = arith.constant 0 : i32
    %c0_i32_0 = arith.constant 0 : i32
    %c0_i32_1 = arith.constant 0 : i32
    return %c0_i32, %c0_i32_0 : i32, i32
  }
  func.func @transform_8(%arg0: i32) -> (i32, i32) {
    %c0_i32 = arith.constant 0 : i32
    %c0_i32_0 = arith.constant 0 : i32
    %c0_i32_1 = arith.constant 0 : i32
    return %c0_i32, %c0_i32_0 : i32, i32
  }
  func.func @transform_9(%arg0: i32) -> (i32, i32, i32, i32) {
    %c0_i32 = arith.constant 0 : i32
    %c0_i32_0 = arith.constant 0 : i32
    %c0_i32_1 = arith.constant 0 : i32
    %c0_i32_2 = arith.constant 0 : i32
    return %arg0, %c0_i32, %c0_i32_0, %c0_i32_1 : i32, i32, i32, i32
  }
}

</mosaic_0001>

<bundles_post_ra>
// kernel: rdb_forward.1
= control target key start
LH: loop header
LB: loop body
LE: loop exit
PB: predicated region body
PF: predicated region fallthrough
CT: control target
= control target key end

     0   :  { %s7800_s30 = smov 0   ;;  %s13214_s0 = inlined_call_operand.vmem [shape: f32[2,16,16,8], index: 0, kind: input, shape index: {}]   ;;  %s13215_s1 = inlined_call_operand.vmem [shape: f32[72,8], index: 1, kind: input, shape index: {}]   ;;  %s13216_s2 = inlined_call_operand.vmem [shape: f32[1,8], index: 2, kind: input, shape index: {}]   ;;  %s13217_s3 = inlined_call_operand.vmem [shape: f32[144,8], index: 3, kind: input, shape index: {}]   ;;  %s13218_s4 = inlined_call_operand.vmem [shape: f32[1,8], index: 4, kind: input, shape index: {}]   ;;  %s13219_s5 = inlined_call_operand.vmem [shape: f32[216,8], index: 5, kind: input, shape index: {}]   ;;  %s13220_s6 = inlined_call_operand.vmem [shape: f32[1,8], index: 6, kind: input, shape index: {}]   ;;  %s13221_s7 = inlined_call_operand.vmem [shape: f32[32,8], index: 7, kind: input, shape index: {}]   ;;  %s13222_s8 = inlined_call_operand.vmem [shape: f32[1,8], index: 8, kind: input, shape index: {}]   ;;  %s13223_s9 = inlined_call_operand.vmem [shape: f32[2,16,16,8], index: 9, kind: output, shape index: {}]  }
   0x1 LB: > { %s6316_s10 = sadd.s32 4294967295, %s7733_s30   ;;  %p6320_p0 = scmp.ge.s32.totalorder %s7733_s30, 1  ;;  %s7733_s30 = sphi %s7800_s30, %s19_s30  }
   0x2   : > { %p287_p1 = scmp.lt.s32.totalorder %s7733_s30, 3 }
   0x4   : > { %p288_p2 = pnand %p6320_p0, %p287_p1 }
   0x6   : > { %291 = sbr.rel (%p288_p2) target bundleno = 2219 (0x8ab), region = 56 }
   0xd   : > { %vm408_vm0 = vcmask 1040384   ;;  %p323_p3 = scmp.lt.s32.totalorder %s6316_s10, 1  ;;  %v13224_v0 = vmov 0.0   ;;  %vm574_vm1 = vcmask 1046528   ;;  %s7736_s15 = smov 8   ;;  %vm751_vm2 = vcmask 1045504  }
   0xe   : > { %v7809_v1 = vrot.slane %v13224_v0, 7  ;;  %s7737_s16 = smov 16   ;;  %s7738_s17 = smov 24   ;;  %vm1516_vm3 = vcmask 64512   ;;  %vm1549_vm4 = vcmask 130048   ;;  %vm1582_vm5 = vcmask 195584  }
   0xf   : > { %s14274_s10 = smov (!%p323_p3, %s6316_s10), 1  ;;  %s7739_s18 = smov 32   ;;  %vm1615_vm6 = vcmask 261120   ;;  %vm1648_vm7 = vcmask 326656   ;;  %vm1681_vm8 = vcmask 392192   ;;  %vm1714_vm9 = vcmask 457728  }
  0x10   : > { %13478 = vst [vmem:[#allocation2_spill] sm:$0xff] %v7809_v1  ;;  %v7815_v2 = vsel %vm408_vm0, 0.0, %v7809_v1  ;;  %v7819_v3 = vsel %vm408_vm0, %v7809_v1, 0.0  ;;  %v576_v4 = vrot.slane %v7809_v1, 1  ;;  %s6459_s11 = sshll.u32 %s14274_s10, 8  ;;  %s7740_s19 = smov 40  }
  0x11   : > { %13479 = vst [vmem:[#allocation3_spill] sm:$0xff] %v7815_v2  ;;  %v575_v5 = vrot.slane %v7815_v2, 1  ;;  %v578_v6 = vrot.slane %v7819_v3, 1  ;;  %s7830_s14 = scalar_lea.vmem %s13214_s0, %s6459_s11  ;;  %s7741_s20 = smov 48   ;;  %vm1747_vm10 = vcmask 523264   ;;  %vm1786_vm11 = vcmask 588800  }
  0x12   : > { %v333_v9 = vld [vmem:[%s7830_s14] sm:$0xff]  ;;  %v334_v10 = vld [vmem:[%s7830_s14 + $0x8] sm:$0xff]  ;;  %v335_v11 = vld [vmem:[%s7830_s14 + $0x10] sm:$0xff]  ;;  %s7742_s21 = smov 56   ;;  %s7743_s12 = smov 64   ;;  %vm2319_vm12 = vcmask 1041408  }
  0x13   : > { %v7833_v7 = vsel %vm574_vm1, %v575_v5, %v576_v4  ;;  %v7836_v8 = vsel %vm574_vm1, %v576_v4, %v578_v6  ;;  %v411_v13 = vrot.slane %v333_v9, 7  ;;  %v412_v14 = vrot.slane %v334_v10, 7  ;;  %v336_v15 = vld [vmem:[%s7830_s14 + $0x18] sm:$0xff]  ;;  %v337_v17 = vld [vmem:[%s7830_s14 + $0x20] sm:$0xff]  ;;  %v338_v18 = vld [vmem:[%s7830_s14 + $0x28] sm:$0xff]  ;;  %s7745_s22 = smov 80  }
  0x14   : > { %13480 = vst [vmem:[#allocation4_spill] sm:$0xff] %v7833_v7  ;;  %13481 = vst [vmem:[#allocation5_spill] sm:$0xff] %v7836_v8  ;;  %v7843_v12 = vpack.i.bf16 %v7836_v8, %v7833_v7  ;;  %v414_v16 = vrot.slane %v335_v11, 7  ;;  %v415_v19 = vrot.slane %v336_v15, 7  ;;  %v417_v20 = vrot.slane %v337_v17, 7  ;;  %v339_v34 = vld [vmem:[%s7830_s14 + $0x30] sm:$0xff] }
  0x15   : > { %v418_v21 = vrot.slane %v338_v18, 7  ;;  %v7851_v22 = vsel %vm408_vm0, %v411_v13, %v412_v14  ;;  %v7854_v23 = vsel %vm408_vm0, %v412_v14, 0.0  ;;  %v7857_v24 = vsel %vm408_vm0, 0.0, %v411_v13  ;;  %v340_v35 = vld [vmem:[%s7830_s14 + $0x38] sm:$0xff]  ;;  %v341_v40 = vld [vmem:[%s7830_s14 + $0x40] sm:$0xff]  ;;  %v342_v41 = vld [vmem:[%s7830_s14 + $0x48] sm:$0xff] }
  0x16   : > { %13482 = vst [vmem:[#allocation6_spill] sm:$0xff] %v7843_v12  ;;  %6778 = vrot.lane.b32.xlu0 %v7843_v12, %s7736_s15  ;;  %13483 = vst [vmem:[#allocation7_spill] sm:$0xff] %v7851_v22  ;;  %v7860_v25 = vsel %vm408_vm0, 0.0, %v414_v16  ;;  %v581_v26 = vrot.slane %v7851_v22, 1  ;;  %v583_v27 = vrot.slane %v7854_v23, 1  ;;  %v580_v28 = vrot.slane %v7857_v24, 1 }
  0x17   : > { %13484 = vst [vmem:[#allocation8_spill] sm:$0xff] %v7857_v24  ;;  %v7866_v29 = vsel %vm408_vm0, %v414_v16, %v415_v19  ;;  %v585_v30 = vrot.slane %v7860_v25, 1  ;;  %v7871_v32 = vsel %vm408_vm0, %v415_v19, 0.0  ;;  %v7874_v33 = vsel %vm408_vm0, %v417_v20, %v418_v21  ;;  %v343_v50 = vld [vmem:[%s7830_s14 + $0x50] sm:$0xff]  ;;  %v344_v57 = vld [vmem:[%s7830_s14 + $0x58] sm:$0xff]  ;;  %v345_v6 = vld [vmem:[%s7830_s14 + $0x60] sm:$0xff] }
  0x18   : > { %v586_v31 = vrot.slane %v7866_v29, 1  ;;  %v7879_v36 = vsel %vm574_vm1, %v581_v26, %v583_v27  ;;  %v7882_v37 = vsel %vm574_vm1, %v580_v28, %v581_v26  ;;  %v588_v38 = vrot.slane %v7871_v32, 1  ;;  %v346_v10 = vld [vmem:[%s7830_s14 + $0x68] sm:$0xff]  ;;  %v347_v16 = vld [vmem:[%s7830_s14 + $0x70] sm:$0xff]  ;;  %s7746_s27 = smov 112   ;;  %s7748_s24 = smov 120  }
  0x19   : > { %v7886_v39 = vsel %vm408_vm0, 0.0, %v417_v20  ;;  %661 = vrot.lane.b32.xlu1 %v7879_v36, %s7736_s15  ;;  %v591_v44 = vrot.slane %v7874_v33, 1  ;;  %v7900_v45 = vsel %vm408_vm0, %v418_v21, 0.0  ;;  %v420_v48 = vrot.slane %v339_v34, 7  ;;  %v348_v21 = vld [vmem:[%s7830_s14 + $0x78] sm:$0xff] }
  0x1a   : > { %659 = vrot.lane.b32.xlu0 %v7882_v37, %s7736_s15  ;;  %v7895_v42 = vsel %vm574_vm1, %v585_v30, %v586_v31  ;;  %v590_v43 = vrot.slane %v7886_v39, 1  ;;  %v7903_v46 = vsel %vm574_vm1, %v586_v31, %v588_v38  ;;  %v593_v47 = vrot.slane %v7900_v45, 1 }
  0x1b   : > { %v421_v49 = vrot.slane %v340_v35, 7  ;;  %v423_v51 = vrot.slane %v341_v40, 7  ;;  %v424_v52 = vrot.slane %v342_v41, 7  ;;  %v7914_v55 = vsel %vm408_vm0, 0.0, %v420_v48  ;;  %v349_v40 = vld [vmem:[%s7830_s14 + $0x80] sm:$0xff] }
  0x1c   : > { %v7908_v53 = vsel %vm574_vm1, %v590_v43, %v591_v44  ;;  %v7925_v58 = vsel %vm574_vm1, %v591_v44, %v593_v47  ;;  %v595_v59 = vrot.slane %v7914_v55, 1  ;;  %v426_v61 = vrot.slane %v343_v50, 7 }
  0x1d   : > { %13485 = vst [vmem:[#allocation9_spill] sm:$0xff] %v7908_v53  ;;  %v7911_v54 = vsel %vm408_vm0, %v420_v48, %v421_v49  ;;  %v7917_v56 = vsel %vm408_vm0, %v421_v49, 0.0  ;;  %663 = vrot.lane.b32.xlu1 %v7895_v42, %s7736_s15  ;;  %13486 = vst [vmem:[#allocation10_spill] sm:$0xff] %v7925_v58  ;;  %v7929_v60 = vsel %vm408_vm0, %v423_v51, %v424_v52  ;;  %v7934_v4 = vsel %vm408_vm0, 0.0, %v423_v51  ;;  %v350_v48 = vld [vmem:[%s7830_s14 + $0x88] sm:$0xff] }
  0x1e   : > { %665 = vrot.lane.b32.xlu0 %v7903_v46, %s7736_s15  ;;  %v596_v62 = vrot.slane %v7911_v54, 1  ;;  %v598_v63 = vrot.slane %v7917_v56, 1  ;;  %v7937_v5 = vsel %vm408_vm0, %v424_v52, 0.0  ;;  %v427_v9 = vrot.slane %v344_v57, 7 }
  0x1f   : > { %v600_v11 = vrot.slane %v7934_v4, 1  ;;  %v601_v13 = vrot.slane %v7929_v60, 1  ;;  %v603_v14 = vrot.slane %v7937_v5, 1  ;;  %v429_v15 = vrot.slane %v345_v6, 7 }
  0x20   : > { %v7950_v17 = vsel %vm574_vm1, %v595_v59, %v596_v62  ;;  %v7953_v18 = vsel %vm574_vm1, %v596_v62, %v598_v63  ;;  %v7956_v19 = vsel %vm408_vm0, 0.0, %v426_v61  ;;  %v430_v20 = vrot.slane %v346_v10, 7  ;;  %v352_v10 = vld [vmem:[%s7830_s14 + $0x98] sm:$0xff] }
  0x21   : > { %667 = vrot.lane.b32.xlu1 %v7908_v53, %s7736_s15  ;;  %13487 = vst [vmem:[#allocation11_spill] sm:$0xff] %v7950_v17  ;;  %13488 = vst [vmem:[#allocation12_spill] sm:$0xff] %v7953_v18  ;;  %v7960_v26 = vsel %vm408_vm0, %v426_v61, %v427_v9  ;;  %v7963_v27 = vsel %vm408_vm0, %v427_v9, 0.0  ;;  %v7966_v28 = vsel %vm574_vm1, %v600_v11, %v601_v13  ;;  %v432_v30 = vrot.slane %v347_v16, 7  ;;  %v351_v9 = vld [vmem:[%s7830_s14 + $0x90] sm:$0xff] }
  0x22   : > { %669 = vrot.lane.b32.xlu0 %v7925_v58, %s7736_s15  ;;  %13489 = vst [vmem:[#allocation13_spill] sm:$0xff] %v7966_v28  ;;  %v7973_v31 = vsel %vm574_vm1, %v601_v13, %v603_v14  ;;  %v605_v34 = vrot.slane %v7956_v19, 1  ;;  %v7977_v35 = vsel %vm408_vm0, 0.0, %v429_v15  ;;  %v433_v38 = vrot.slane %v348_v21, 7 }
  0x23   : > { %13490 = vst [vmem:[#allocation14_spill] sm:$0xff] %v7973_v31  ;;  %v606_v41 = vrot.slane %v7960_v26, 1  ;;  %v608_v43 = vrot.slane %v7963_v27, 1  ;;  %v7983_v44 = vsel %vm408_vm0, %v429_v15, %v430_v20  ;;  %v7986_v47 = vsel %vm408_vm0, %v430_v20, 0.0 }
  0x24   : > { %13491 = vst [vmem:[#allocation15_spill] sm:$0xff] %v7983_v44  ;;  %v610_v49 = vrot.slane %v7977_v35, 1  ;;  %v7991_v50 = vsel %vm408_vm0, 0.0, %v432_v30  ;;  %v435_v51 = vrot.slane %v349_v40, 7  ;;  %v611_v52 = vrot.slane %v7983_v44, 1  ;;  %v353_v40 = vld [vmem:[%s7830_s14 + $0xa0] sm:$0xff] }
  0x25   : > { %671 = vrot.lane.b32.xlu1 %v7950_v17, %s7736_s15  ;;  %13492 = vst [vmem:[#allocation16_spill] sm:$0xff] %v7991_v50  ;;  %v613_v57 = vrot.slane %v7986_v47, 1  ;;  %v8000_v59 = vsel %vm408_vm0, %v432_v30, %v433_v38  ;;  %v436_v61 = vrot.slane %v350_v48, 7  ;;  %v8003_v62 = vsel %vm574_vm1, %v605_v34, %v606_v41 }
  0x26   : > { %673 = vrot.lane.b32.xlu0 %v7953_v18, %s7736_s15  ;;  %13493 = vst [vmem:[#allocation17_spill] sm:$0xff] %v8000_v59  ;;  %13494 = vst [vmem:[#allocation18_spill] sm:$0xff] %v8003_v62  ;;  %v8006_v63 = vsel %vm574_vm1, %v606_v41, %v608_v43  ;;  %v8009_v6 = vsel %vm408_vm0, %v433_v38, 0.0  ;;  %v615_v11 = vrot.slane %v7991_v50, 1  ;;  %v616_v13 = vrot.slane %v8000_v59, 1  ;;  %v354_v41 = vld [vmem:[%s7830_s14 + $0xa8] sm:$0xff] }
  0x27   : > { %13495 = vst [vmem:[#allocation19_spill] sm:$0xff] %v8006_v63  ;;  %v8020_v14 = vsel %vm574_vm1, %v610_v49, %v611_v52  ;;  %v8023_v15 = vsel %vm574_vm1, %v611_v52, %v613_v57  ;;  %v8026_v16 = vsel %vm408_vm0, %v435_v51, %v436_v61  ;;  %v8029_v20 = vsel %vm408_vm0, 0.0, %v435_v51  ;;  %v355_v57 = vld [vmem:[%s7830_s14 + $0xb0] sm:$0xff]  ;;  %v362_v18 = vld [vmem:[%s7830_s14 + $0xe8] sm:$0xff] }
  0x28   : > { %13496 = vst [vmem:[#allocation20_spill] sm:$0xff] %v8020_v14  ;;  %13497 = vst [vmem:[#allocation21_spill] sm:$0xff] %v8023_v15  ;;  %v618_v21 = vrot.slane %v8009_v6, 1  ;;  %v8033_v30 = vsel %vm408_vm0, %v436_v61, 0.0  ;;  %v438_v34 = vrot.slane %v351_v9, 7  ;;  %v439_v38 = vrot.slane %v352_v10, 7 }
  0x29   : > { %675 = vrot.lane.b32.xlu1 %v7966_v28, %s7736_s15  ;;  %13498 = vst [vmem:[#allocation22_spill] sm:$0xff] %v8026_v16  ;;  %13499 = vst [vmem:[#allocation23_spill] sm:$0xff] %v8029_v20  ;;  %v620_v43 = vrot.slane %v8029_v20, 1  ;;  %v621_v48 = vrot.slane %v8026_v16, 1  ;;  %v8044_v49 = vsel %vm574_vm1, %v615_v11, %v616_v13  ;;  %v623_v51 = vrot.slane %v8033_v30, 1  ;;  %v356_v11 = vld [vmem:[%s7830_s14 + $0xb8] sm:$0xff] }
  0x2a   : > { %677 = vrot.lane.b32.xlu0 %v7973_v31, %s7736_s15  ;;  %13500 = vst [vmem:[#allocation24_spill] sm:$0xff] %v8044_v49  ;;  %v441_v52 = vrot.slane %v353_v40, 7  ;;  %v8049_v61 = vsel %vm574_vm1, %v616_v13, %v618_v21  ;;  %v8052_v9 = vsel %vm408_vm0, %v438_v34, %v439_v38  ;;  %v8055_v10 = vsel %vm408_vm0, 0.0, %v438_v34 }
  0x2b   : > { %13501 = vst [vmem:[#allocation25_spill] sm:$0xff] %v8049_v61  ;;  %13502 = vst [vmem:[#allocation26_spill] sm:$0xff] %v8052_v9  ;;  %v442_v0 = vrot.slane %v354_v41, 7  ;;  %v8058_v8 = vsel %vm408_vm0, %v439_v38, 0.0  ;;  %v8062_v7 = vsel %vm574_vm1, %v620_v43, %v621_v48  ;;  %v444_v40 = vrot.slane %v355_v57, 7 }
  0x2c   : > { %13503 = vst [vmem:[#allocation27_spill] sm:$0xff] %v8055_v10  ;;  %13504 = vst [vmem:[#allocation28_spill] sm:$0xff] %v8062_v7  ;;  %v8069_v13 = vsel %vm574_vm1, %v621_v48, %v623_v51  ;;  %v625_v21 = vrot.slane %v8055_v10, 1  ;;  %v626_v34 = vrot.slane %v8052_v9, 1  ;;  %v8074_v38 = vsel %vm408_vm0, 0.0, %v441_v52  ;;  %v357_v48 = vld [vmem:[%s7830_s14 + $0xc0] sm:$0xff] }
  0x2d   : > { %679 = vrot.lane.b32.xlu1 %v8003_v62, %s7736_s15  ;;  %13505 = vst [vmem:[#allocation29_spill] sm:$0xff] %v8069_v13  ;;  %13506 = vst [vmem:[#allocation30_spill] sm:$0xff] %v8074_v38  ;;  %v628_v41 = vrot.slane %v8058_v8, 1  ;;  %v8078_v43 = vsel %vm408_vm0, %v441_v52, %v442_v0  ;;  %v8081_v57 = vsel %vm408_vm0, %v442_v0, 0.0  ;;  %v445_v12 = vrot.slane %v356_v11, 7  ;;  %v360_v62 = vld [vmem:[%s7830_s14 + $0xd8] sm:$0xff] }
  0x2e   : > { %681 = vrot.lane.b32.xlu0 %v8006_v63, %s7736_s15  ;;  %13507 = vst [vmem:[#allocation31_spill] sm:$0xff] %v8078_v43  ;;  %v630_v51 = vrot.slane %v8074_v38, 1  ;;  %v631_v52 = vrot.slane %v8078_v43, 1  ;;  %v633_v0 = vrot.slane %v8081_v57, 1  ;;  %v8096_v11 = vsel %vm408_vm0, 0.0, %v444_v40  ;;  %v359_v63 = vld [vmem:[%s7830_s14 + $0xd0] sm:$0xff] }
  0x2f   : > { %13509 = vst [vmem:[#allocation33_spill] sm:$0xff] %v8096_v11  ;;  %v450_v31 = vrot.slane %v359_v63, 7  ;;  %v454_v17 = vrot.slane %v362_v18, 7  ;;  %vm2647_vm13 = vcmask 1043456   ;;  %vm3429_vm14 = vcmask 654336  }
  0x30   : > { %vm3462_vm15 = vcmask 785408  }
  0x31   : > { %683 = vrot.lane.b32.xlu1 %v8020_v14, %s7736_s15  ;;  %v8102_v14 = vsel %vm408_vm0, %v444_v40, %v445_v12  ;;  %v635_v40 = vrot.slane %v8096_v11, 1 }
  0x32   : > { %685 = vrot.lane.b32.xlu0 %v8023_v15, %s7736_s15  ;;  %v8099_v15 = vsel %vm574_vm1, %v626_v34, %v628_v41  ;;  %13511 = vst [vmem:[#allocation35_spill] sm:$0xff] %v8102_v14 }
  0x33   : > { %13510 = vst [vmem:[#allocation34_spill] sm:$0xff] %v8099_v15 }
  0x35   : > { %687 = vrot.lane.b32.xlu1 %v8044_v49, %s7736_s15  ;;  %v8091_v49 = vsel %vm574_vm1, %v625_v21, %v626_v34  ;;  %v8114_v34 = vsel %vm574_vm1, %v630_v51, %v631_v52 }
  0x36   : > { %689 = vrot.lane.b32.xlu0 %v8049_v61, %s7736_s15  ;;  %v358_v61 = vld [vmem:[%s7830_s14 + $0xc8] sm:$0xff]  ;;  %13508 = vst [vmem:[#allocation32_spill] sm:$0xff] %v8091_v49  ;;  %13512 = vst [vmem:[#allocation36_spill] sm:$0xff] %v8114_v34 }
  0x37   : > { %v448_v21 = vrot.slane %v358_v61, 7  ;;  %v8120_v61 = vsel %vm574_vm1, %v631_v52, %v633_v0 }
  0x38   : > { %13513 = vst [vmem:[#allocation37_spill] sm:$0xff] %v8120_v61 }
  0x39   : > { %691 = vrot.lane.b32.xlu1 %v8062_v7, %s7736_s15  ;;  %v8105_v7 = vsel %vm408_vm0, %v445_v12, 0.0  ;;  %v636_v12 = vrot.slane %v8102_v14, 1  ;;  %v8129_v51 = vsel %vm408_vm0, %v448_v21, 0.0 }
  0x3a   : > { %693 = vrot.lane.b32.xlu0 %v8069_v13, %s7736_s15  ;;  %v447_v13 = vrot.slane %v357_v48, 7  ;;  %v638_v41 = vrot.slane %v8105_v7, 1  ;;  %v643_v0 = vrot.slane %v8129_v51, 1 }
  0x3b   : > { %v8138_v52 = vsel %vm574_vm1, %v635_v40, %v636_v12 }
  0x3c   : > { %v8123_v48 = vsel %vm408_vm0, 0.0, %v447_v13  ;;  %v8126_v28 = vsel %vm408_vm0, %v447_v13, %v448_v21  ;;  %13516 = vst [vmem:[#allocation40_spill] sm:$0xff] %v8138_v52  ;;  %v8141_v63 = vsel %vm574_vm1, %v636_v12, %v638_v41 }
  0x3d   : > { %695 = vrot.lane.b32.xlu1 %v8091_v49, %s7736_s15  ;;  %13514 = vst [vmem:[#allocation38_spill] sm:$0xff] %v8123_v48  ;;  %v451_v49 = vrot.slane %v360_v62, 7  ;;  %13515 = vst [vmem:[#allocation39_spill] sm:$0xff] %v8126_v28  ;;  %v640_v62 = vrot.slane %v8123_v48, 1  ;;  %v641_v13 = vrot.slane %v8126_v28, 1 }
  0x3e   : > { %697 = vrot.lane.b32.xlu0 %v8099_v15, %s7736_s15  ;;  %v361_v15 = vld [vmem:[%s7830_s14 + $0xe0] sm:$0xff]  ;;  %13517 = vst [vmem:[#allocation41_spill] sm:$0xff] %v8141_v63 }
  0x3f   : > { %v8147_v21 = vsel %vm408_vm0, %v450_v31, %v451_v49  ;;  %v453_v40 = vrot.slane %v361_v15, 7  ;;  %v8162_v58 = vsel %vm574_vm1, %v640_v62, %v641_v13 }
  0x40   : > { %13518 = vst [vmem:[#allocation42_spill] sm:$0xff] %v8147_v21  ;;  %v646_v41 = vrot.slane %v8147_v21, 1  ;;  %13520 = vst [vmem:[#allocation44_spill] sm:$0xff] %v8162_v58 }
  0x41   : > { %699 = vrot.lane.b32.xlu1 %v8114_v34, %s7736_s15  ;;  %v8150_v34 = vsel %vm408_vm0, 0.0, %v450_v31  ;;  %v8165_v31 = vsel %vm574_vm1, %v641_v13, %v643_v0  ;;  %v8169_v18 = vsel %vm408_vm0, %v453_v40, %v454_v17  ;;  %v8172_v15 = vsel %vm408_vm0, 0.0, %v453_v40 }
  0x42   : > { %701 = vrot.lane.b32.xlu0 %v8120_v61, %s7736_s15  ;;  %13519 = vst [vmem:[#allocation43_spill] sm:$0xff] %v8150_v34  ;;  %v8153_v61 = vsel %vm408_vm0, %v451_v49, 0.0  ;;  %v645_v12 = vrot.slane %v8150_v34, 1  ;;  %13521 = vst [vmem:[#allocation45_spill] sm:$0xff] %v8165_v31  ;;  %v752_v13 = vrot.slane %v7815_v2, 2  ;;  %v753_v0 = vrot.slane %v7809_v1, 2 }
  0x43   : > { %v648_v49 = vrot.slane %v8153_v61, 1  ;;  %13522 = vst [vmem:[#allocation46_spill] sm:$0xff] %v8169_v18  ;;  %13523 = vst [vmem:[#allocation47_spill] sm:$0xff] %v8172_v15  ;;  %v755_v40 = vrot.slane %v7819_v3, 2  ;;  %v651_v53 = vrot.slane %v8169_v18, 1  ;;  %v758_v2 = vrot.slane %v7851_v22, 2 }
  0x44   : > { %v8182_v62 = vsel %vm574_vm1, %v645_v12, %v646_v41  ;;  %v754_v12 = vsel %vm751_vm2, %v752_v13, %v753_v0  ;;  %v760_v13 = vrot.slane %v7854_v23, 2  ;;  %v765_v23 = vrot.slane %v7871_v32, 2 }
  0x45   : > { %703 = vrot.lane.b32.xlu1 %v8138_v52, %s7736_s15  ;;  %13524 = vst [vmem:[#allocation48_spill] sm:$0xff] %v8182_v62  ;;  %v8188_v52 = vsel %vm574_vm1, %v646_v41, %v648_v49  ;;  %v756_v1 = vsel %vm751_vm2, %v753_v0, %v755_v40  ;;  %v757_v49 = vrot.slane %v7857_v24, 2  ;;  %v772_v32 = vrot.slane %v7914_v55, 2 }
  0x46   : > { %705 = vrot.lane.b32.xlu0 %v8141_v63, %s7736_s15  ;;  %v8175_v63 = vsel %vm408_vm0, %v454_v17, 0.0  ;;  %13525 = vst [vmem:[#allocation49_spill] sm:$0xff] %v8188_v52  ;;  %v650_v17 = vrot.slane %v8172_v15, 1  ;;  %v8224_v40 = vsel %vm751_vm2, %v758_v2, %v760_v13 }
  0x47   : > { %v8215_v0 = vsel %vm751_vm2, %v757_v49, %v758_v2  ;;  %v770_v49 = vrot.slane %v7900_v45, 2 }
  0x48   : > { %v8200_v3 = vsel %vm574_vm1, %v650_v17, %v651_v53  ;;  %v767_v17 = vrot.slane %v7886_v39, 2 }
  0x49   : > { %707 = vrot.lane.b32.xlu1 %v8162_v58, %s7736_s15  ;;  %v653_v58 = vrot.slane %v8175_v63, 1 }
  0x4a   : > { %709 = vrot.lane.b32.xlu0 %v8165_v31, %s7736_s15 }
  0x4b   : > { %v8203_v41 = vsel %vm574_vm1, %v651_v53, %v653_v58  ;;  %v762_v53 = vrot.slane %v7860_v25, 2  ;;  %v763_v58 = vrot.slane %v7866_v29, 2 }
  0x4d   : > { %711 = vrot.lane.b32.xlu1 %v8182_v62, %s7736_s15  ;;  %v8238_v2 = vsel %vm751_vm2, %v763_v58, %v765_v23  ;;  %v777_v23 = vrot.slane %v7934_v4, 2 }
  0x4e   : > { %713 = vrot.lane.b32.xlu0 %v8188_v52, %s7736_s15  ;;  %v8211_v52 = vpack.i.bf16 %v756_v1, %v754_v12  ;;  %v8227_v1 = vsel %vm751_vm2, %v762_v53, %v763_v58  ;;  %v768_v12 = vrot.slane %v7874_v33, 2  ;;  %v773_v53 = vrot.slane %v7911_v54, 2 }
  0x4f   : > { %v775_v58 = vrot.slane %v7917_v56, 2  ;;  %v782_v56 = vrot.slane %v7956_v19, 2 }
  0x50   : > { %13526 = vst [vmem:[#allocation50_spill] sm:$0xff] %v8211_v52  ;;  %v8241_v13 = vsel %vm751_vm2, %v767_v17, %v768_v12  ;;  %v8253_v45 = vsel %vm751_vm2, %v772_v32, %v773_v53  ;;  %v778_v17 = vrot.slane %v7929_v60, 2  ;;  %v783_v32 = vrot.slane %v7960_v26, 2 }
  0x51   : > { %715 = vrot.lane.b32.xlu1 %v8200_v3, %s7736_s15  ;;  %13527 = vst [vmem:[#allocation51_spill] sm:$0xff] %v8241_v13  ;;  %13528 = vst [vmem:[#allocation52_spill] sm:$0xff] %v8253_v45 }
  0x52   : > { %717 = vrot.lane.b32.xlu0 %v8203_v41, %s7736_s15 }
  0x55   : > { %6783 = vrot.lane.b32.xlu1 %v8211_v52, %s7737_s16  ;;  %v8250_v52 = vsel %vm751_vm2, %v768_v12, %v770_v49  ;;  %v8264_v12 = vsel %vm751_vm2, %v773_v53, %v775_v58  ;;  %v8267_v49 = vsel %vm751_vm2, %v777_v23, %v778_v17  ;;  %v8280_v53 = vsel %vm751_vm2, %v782_v56, %v783_v32 }
  0x56   : > { %836 = vrot.lane.b32.xlu0 %v8215_v0, %s7737_s16  ;;  %13529 = vst [vmem:[#allocation53_spill] sm:$0xff] %v8267_v49  ;;  %13530 = vst [vmem:[#allocation54_spill] sm:$0xff] %v8280_v53  ;;  %v787_v58 = vrot.slane %v7977_v35, 2  ;;  %v788_v23 = vrot.slane %v7983_v44, 2  ;;  %v793_v56 = vrot.slane %v8000_v59, 2 }
  0x59   : > { %838 = vrot.lane.b32.xlu1 %v8224_v40, %s7737_s16 }
  0x5a   : > { %840 = vrot.lane.b32.xlu0 %v8227_v1, %s7737_s16 }
  0x5d   : > { %842 = vrot.lane.b32.xlu1 %v8238_v2, %s7737_s16 }
  0x5e   : > { %844 = vrot.lane.b32.xlu0 %v8241_v13, %s7737_s16  ;;  %v780_v13 = vrot.slane %v7937_v5, 2 }
  0x60   : > { %v8277_v5 = vsel %vm751_vm2, %v778_v17, %v780_v13  ;;  %v8293_v13 = vsel %vm751_vm2, %v787_v58, %v788_v23  ;;  %v792_v17 = vrot.slane %v7991_v50, 2  ;;  %v798_v58 = vrot.slane %v8026_v16, 2 }
  0x61   : > { %846 = vrot.lane.b32.xlu1 %v8250_v52, %s7737_s16  ;;  %13531 = vst [vmem:[#allocation55_spill] sm:$0xff] %v8293_v13 }
  0x62   : > { %848 = vrot.lane.b32.xlu0 %v8253_v45, %s7737_s16  ;;  %v785_v45 = vrot.slane %v7963_v27, 2 }
  0x64   : > { %v8290_v27 = vsel %vm751_vm2, %v783_v32, %v785_v45  ;;  %v8306_v45 = vsel %vm751_vm2, %v792_v17, %v793_v56  ;;  %v797_v32 = vrot.slane %v8029_v20, 2  ;;  %v803_v17 = vrot.slane %v8052_v9, 2 }
  0x65   : > { %850 = vrot.lane.b32.xlu1 %v8264_v12, %s7737_s16  ;;  %13532 = vst [vmem:[#allocation56_spill] sm:$0xff] %v8306_v45 }
  0x66   : > { %852 = vrot.lane.b32.xlu0 %v8267_v49, %s7737_s16  ;;  %v790_v49 = vrot.slane %v7986_v47, 2 }
  0x68   : > { %v8303_v47 = vsel %vm751_vm2, %v788_v23, %v790_v49  ;;  %v800_v49 = vrot.slane %v8033_v30, 2  ;;  %v802_v23 = vrot.slane %v8055_v10, 2  ;;  %v807_v30 = vrot.slane %v8074_v38, 2 }
  0x69   : > { %854 = vrot.lane.b32.xlu1 %v8277_v5, %s7737_s16 }
  0x6a   : > { %856 = vrot.lane.b32.xlu0 %v8280_v53, %s7737_s16  ;;  %v795_v53 = vrot.slane %v8009_v6, 2  ;;  %v8318_v6 = vsel %vm751_vm2, %v797_v32, %v798_v58  ;;  %v808_v32 = vrot.slane %v8078_v43, 2 }
  0x6b   : > { %13533 = vst [vmem:[#allocation57_spill] sm:$0xff] %v8318_v6 }
  0x6d   : > { %858 = vrot.lane.b32.xlu1 %v8290_v27, %s7737_s16 }
  0x6e   : > { %860 = vrot.lane.b32.xlu0 %v8293_v13, %s7737_s16  ;;  %v8315_v13 = vsel %vm751_vm2, %v793_v56, %v795_v53  ;;  %v8329_v53 = vsel %vm751_vm2, %v798_v58, %v800_v49  ;;  %v8332_v56 = vsel %vm751_vm2, %v802_v23, %v803_v17  ;;  %v8345_v58 = vsel %vm751_vm2, %v807_v30, %v808_v32 }
  0x6f   : > { %13534 = vst [vmem:[#allocation58_spill] sm:$0xff] %v8329_v53  ;;  %13535 = vst [vmem:[#allocation59_spill] sm:$0xff] %v8332_v56  ;;  %v812_v49 = vrot.slane %v8096_v11, 2  ;;  %v813_v23 = vrot.slane %v8102_v14, 2  ;;  %v818_v30 = vrot.slane %v8126_v28, 2 }
  0x70   : > { %13536 = vst [vmem:[#allocation60_spill] sm:$0xff] %v8345_v58 }
  0x71   : > { %862 = vrot.lane.b32.xlu1 %v8303_v47, %s7737_s16 }
  0x72   : > { %864 = vrot.lane.b32.xlu0 %v8306_v45, %s7737_s16  ;;  %v805_v45 = vrot.slane %v8058_v8, 2 }
  0x74   : > { %v8342_v8 = vsel %vm751_vm2, %v803_v17, %v805_v45  ;;  %v8358_v45 = vsel %vm751_vm2, %v812_v49, %v813_v23  ;;  %v817_v17 = vrot.slane %v8123_v48, 2  ;;  %v823_v49 = vrot.slane %v8147_v21, 2 }
  0x75   : > { %866 = vrot.lane.b32.xlu1 %v8315_v13, %s7737_s16  ;;  %13538 = vst [vmem:[#allocation62_spill] sm:$0xff] %v8358_v45 }
  0x76   : > { %868 = vrot.lane.b32.xlu0 %v8318_v6, %s7737_s16  ;;  %v810_v6 = vrot.slane %v8081_v57, 2 }
  0x78   : > { %v8355_v57 = vsel %vm751_vm2, %v808_v32, %v810_v6  ;;  %v820_v6 = vrot.slane %v8129_v51, 2  ;;  %v822_v32 = vrot.slane %v8150_v34, 2  ;;  %v827_v51 = vrot.slane %v8172_v15, 2 }
  0x79   : > { %870 = vrot.lane.b32.xlu1 %v8329_v53, %s7737_s16  ;;  %13537 = vst [vmem:[#allocation61_spill] sm:$0xff] %v8355_v57 }
  0x7a   : > { %872 = vrot.lane.b32.xlu0 %v8332_v56, %s7737_s16  ;;  %v815_v56 = vrot.slane %v8105_v7, 2  ;;  %v8370_v7 = vsel %vm751_vm2, %v817_v17, %v818_v30  ;;  %v828_v17 = vrot.slane %v8169_v18, 2 }
  0x7b   : > { %13540 = vst [vmem:[#allocation64_spill] sm:$0xff] %v8370_v7 }
  0x7d   : > { %874 = vrot.lane.b32.xlu1 %v8342_v8, %s7737_s16 }
  0x7e   : > { %876 = vrot.lane.b32.xlu0 %v8345_v58, %s7737_s16  ;;  %v8367_v58 = vsel %vm751_vm2, %v813_v23, %v815_v56  ;;  %v8381_v56 = vsel %vm751_vm2, %v818_v30, %v820_v6  ;;  %v8384_v23 = vsel %vm751_vm2, %v822_v32, %v823_v49  ;;  %v8398_v30 = vsel %vm751_vm2, %v827_v51, %v828_v17 }
  0x7f   : > { %13539 = vst [vmem:[#allocation63_spill] sm:$0xff] %v8367_v58  ;;  %13541 = vst [vmem:[#allocation65_spill] sm:$0xff] %v8381_v56  ;;  %v830_v6 = vrot.slane %v8175_v63, 2 }
  0x80   : > { %13542 = vst [vmem:[#allocation66_spill] sm:$0xff] %v8384_v23  ;;  %13544 = vst [vmem:[#allocation68_spill] sm:$0xff] %v8398_v30 }
  0x81   : > { %878 = vrot.lane.b32.xlu1 %v8355_v57, %s7737_s16 }
  0x82   : > { %880 = vrot.lane.b32.xlu0 %v8358_v45, %s7737_s16  ;;  %v825_v45 = vrot.slane %v8153_v61, 2 }
  0x84   : > { %v8395_v61 = vsel %vm751_vm2, %v823_v49, %v825_v45 }
  0x85   : > { %882 = vrot.lane.b32.xlu1 %v8367_v58, %s7737_s16 }
  0x86   : > { %884 = vrot.lane.b32.xlu0 %v8370_v7, %s7737_s16 }
  0x88   : > { %v8388_v57 = vpop.permute.xlu0 %6778 }
  0x89   : > { %13543 = vst [vmem:[#allocation67_spill] sm:$0xff] %v8388_v57  ;;  %886 = vrot.lane.b32.xlu1 %v8381_v56, %s7737_s16  ;;  %v8410_v57 = vsel %vm751_vm2, %v828_v17, %v830_v6 }
  0x8a   : > { %888 = vrot.lane.b32.xlu0 %v8384_v23, %s7737_s16 }
  0x8b   : > { %v8401_v32 = vpop.permute.xlu1 %661 }
  0x8c   : > { %13545 = vst [vmem:[#allocation69_spill] sm:$0xff] %v8401_v32  ;;  %v8403_v7 = vpop.permute.xlu0 %659 }
  0x8d   : > { %13546 = vst [vmem:[#allocation70_spill] sm:$0xff] %v8403_v7  ;;  %890 = vrot.lane.b32.xlu1 %v8395_v61, %s7737_s16 }
  0x8e   : > { %892 = vrot.lane.b32.xlu0 %v8398_v30, %s7737_s16 }
  0x8f   : > { %v8412_v45 = vpop.permute.xlu1 %663 }
  0x90   : > { %13547 = vst [vmem:[#allocation71_spill] sm:$0xff] %v8412_v45  ;;  %v8414_v49 = vpop.permute.xlu0 %665 }
  0x91   : > { %13548 = vst [vmem:[#allocation72_spill] sm:$0xff] %v8414_v49  ;;  %894 = vrot.lane.b32.xlu1 %v8410_v57, %s7737_s16 }
  0x92   : > { %929 = vrot.lane.b32.xlu0 %v7857_v24, %s7738_s17  ;;  %v8530_v24 = vld [vmem:[%s7830_s14 + $0xf8] sm:$0xff] }
  0x93   : > { %v8420_v63 = vpop.permute.xlu1 %667  ;;  %13577 = vst [vmem:[#allocation101_spill] sm:$0xff] %v8530_v24 }
  0x94   : > { %13549 = vst [vmem:[#allocation73_spill] sm:$0xff] %v8420_v63  ;;  %v8422_v51 = vpop.permute.xlu0 %669 }
  0x95   : > { %13550 = vst [vmem:[#allocation74_spill] sm:$0xff] %v8422_v51  ;;  %931 = vrot.lane.b32.xlu1 %v7851_v22, %s7738_s17 }
  0x96   : > { %933 = vrot.lane.b32.xlu0 %v7860_v25, %s7738_s17 }
  0x97   : > { %v8428_v17 = vpop.permute.xlu1 %671 }
  0x98   : > { %13551 = vst [vmem:[#allocation75_spill] sm:$0xff] %v8428_v17  ;;  %v8430_v6 = vpop.permute.xlu0 %673 }
  0x99   : > { %13552 = vst [vmem:[#allocation76_spill] sm:$0xff] %v8430_v6  ;;  %935 = vrot.lane.b32.xlu1 %v7866_v29, %s7738_s17 }
  0x9a   : > { %937 = vrot.lane.b32.xlu0 %v7886_v39, %s7738_s17 }
  0x9b   : > { %v8436_v49 = vpop.permute.xlu1 %675 }
  0x9c   : > { %13553 = vst [vmem:[#allocation77_spill] sm:$0xff] %v8436_v49  ;;  %v8438_v63 = vpop.permute.xlu0 %677 }
  0x9d   : > { %13554 = vst [vmem:[#allocation78_spill] sm:$0xff] %v8438_v63  ;;  %939 = vrot.lane.b32.xlu1 %v7874_v33, %s7738_s17 }
  0x9e   : > { %941 = vrot.lane.b32.xlu0 %v7914_v55, %s7738_s17 }
  0x9f   : > { %v8444_v51 = vpop.permute.xlu1 %679 }
  0xa0   : > { %13555 = vst [vmem:[#allocation79_spill] sm:$0xff] %v8444_v51  ;;  %v8446_v17 = vpop.permute.xlu0 %681 }
  0xa1   : > { %13556 = vst [vmem:[#allocation80_spill] sm:$0xff] %v8446_v17  ;;  %943 = vrot.lane.b32.xlu1 %v7911_v54, %s7738_s17 }
  0xa2   : > { %945 = vrot.lane.b32.xlu0 %v7934_v4, %s7738_s17 }
  0xa3   : > { %v8452_v6 = vpop.permute.xlu1 %683 }
  0xa4   : > { %13557 = vst [vmem:[#allocation81_spill] sm:$0xff] %v8452_v6  ;;  %v8454_v49 = vpop.permute.xlu0 %685 }
  0xa5   : > { %13558 = vst [vmem:[#allocation82_spill] sm:$0xff] %v8454_v49  ;;  %947 = vrot.lane.b32.xlu1 %v7929_v60, %s7738_s17 }
  0xa6   : > { %949 = vrot.lane.b32.xlu0 %v7956_v19, %s7738_s17 }
  0xa7   : > { %v8460_v63 = vpop.permute.xlu1 %687 }
  0xa8   : > { %13559 = vst [vmem:[#allocation83_spill] sm:$0xff] %v8460_v63  ;;  %v8462_v51 = vpop.permute.xlu0 %689 }
  0xa9   : > { %13560 = vst [vmem:[#allocation84_spill] sm:$0xff] %v8462_v51  ;;  %951 = vrot.lane.b32.xlu1 %v7960_v26, %s7738_s17 }
  0xaa   : > { %953 = vrot.lane.b32.xlu0 %v7977_v35, %s7738_s17 }
  0xab   : > { %v8468_v17 = vpop.permute.xlu1 %691 }
  0xac   : > { %13561 = vst [vmem:[#allocation85_spill] sm:$0xff] %v8468_v17  ;;  %v8470_v6 = vpop.permute.xlu0 %693 }
  0xad   : > { %13562 = vst [vmem:[#allocation86_spill] sm:$0xff] %v8470_v6  ;;  %955 = vrot.lane.b32.xlu1 %v7983_v44, %s7738_s17 }
  0xae   : > { %957 = vrot.lane.b32.xlu0 %v7991_v50, %s7738_s17 }
  0xaf   : > { %v8476_v49 = vpop.permute.xlu1 %695 }
  0xb0   : > { %13563 = vst [vmem:[#allocation87_spill] sm:$0xff] %v8476_v49  ;;  %v8478_v63 = vpop.permute.xlu0 %697 }
  0xb1   : > { %13564 = vst [vmem:[#allocation88_spill] sm:$0xff] %v8478_v63  ;;  %959 = vrot.lane.b32.xlu1 %v8000_v59, %s7738_s17 }
  0xb2   : > { %961 = vrot.lane.b32.xlu0 %v8029_v20, %s7738_s17 }
  0xb3   : > { %v8484_v51 = vpop.permute.xlu1 %699 }
  0xb4   : > { %13565 = vst [vmem:[#allocation89_spill] sm:$0xff] %v8484_v51  ;;  %v8486_v17 = vpop.permute.xlu0 %701 }
  0xb5   : > { %13566 = vst [vmem:[#allocation90_spill] sm:$0xff] %v8486_v17  ;;  %963 = vrot.lane.b32.xlu1 %v8026_v16, %s7738_s17 }
  0xb6   : > { %965 = vrot.lane.b32.xlu0 %v8055_v10, %s7738_s17 }
  0xb7   : > { %v8492_v49 = vpop.permute.xlu1 %703 }
  0xb8   : > { %13567 = vst [vmem:[#allocation91_spill] sm:$0xff] %v8492_v49  ;;  %v8494_v63 = vpop.permute.xlu0 %705 }
  0xb9   : > { %13568 = vst [vmem:[#allocation92_spill] sm:$0xff] %v8494_v63  ;;  %967 = vrot.lane.b32.xlu1 %v8052_v9, %s7738_s17 }
  0xba   : > { %969 = vrot.lane.b32.xlu0 %v8074_v38, %s7738_s17 }
  0xbb   : > { %v8500_v51 = vpop.permute.xlu1 %707 }
  0xbc   : > { %13569 = vst [vmem:[#allocation93_spill] sm:$0xff] %v8500_v51  ;;  %v8502_v17 = vpop.permute.xlu0 %709 }
  0xbd   : > { %13570 = vst [vmem:[#allocation94_spill] sm:$0xff] %v8502_v17  ;;  %971 = vrot.lane.b32.xlu1 %v8078_v43, %s7738_s17  ;;  %v363_v17 = vld [vmem:[%s7830_s14 + $0xf0] sm:$0xff] }
  0xbe   : > { %973 = vrot.lane.b32.xlu0 %v8096_v11, %s7738_s17 }
  0xbf   : > { %v8508_v49 = vpop.permute.xlu1 %711 }
  0xc0   : > { %13571 = vst [vmem:[#allocation95_spill] sm:$0xff] %v8508_v49  ;;  %v8510_v63 = vpop.permute.xlu0 %713  ;;  %v456_v49 = vrot.slane %v363_v17, 7 }
  0xc1   : > { %13572 = vst [vmem:[#allocation96_spill] sm:$0xff] %v8510_v63  ;;  %975 = vrot.lane.b32.xlu1 %v8102_v14, %s7738_s17 }
  0xc2   : > { %977 = vrot.lane.b32.xlu0 %v8123_v48, %s7738_s17 }
  0xc3   : > { %v8516_v51 = vpop.permute.xlu1 %715 }
  0xc4   : > { %13573 = vst [vmem:[#allocation97_spill] sm:$0xff] %v8516_v51  ;;  %v8518_v6 = vpop.permute.xlu0 %717  ;;  %v13307_v51 = vrot.slane %v8530_v24, 7 }
  0xc5   : > { %13574 = vst [vmem:[#allocation98_spill] sm:$0xff] %v8518_v6  ;;  %979 = vrot.lane.b32.xlu1 %v8126_v28, %s7738_s17  ;;  %v8537_v6 = vsel %vm408_vm0, 0.0, %v456_v49 }
  0xc6   : > { %981 = vrot.lane.b32.xlu0 %v8150_v34, %s7738_s17 }
  0xc7   : > { %v8525_v45 = vpop.permute.xlu1 %6783 }
  0xc8   : > { %13575 = vst [vmem:[#allocation99_spill] sm:$0xff] %v8525_v45  ;;  %v8527_v63 = vpop.permute.xlu0 %836  ;;  %v13594_v45 = vld [vmem:[#allocation13_spill] sm:$0xff] }
  0xc9   : > { %13576 = vst [vmem:[#allocation100_spill] sm:$0xff] %v8527_v63  ;;  %983 = vrot.lane.b32.xlu1 %v8147_v21, %s7738_s17  ;;  %v8551_v63 = vsel %vm408_vm0, %v456_v49, %v13307_v51 }
  0xca   : > { %985 = vrot.lane.b32.xlu0 %v8172_v15, %s7738_s17 }
  0xcb   : > { %v8540_v7 = vpop.permute.xlu1 %838 }
  0xcc   : > { %13578 = vst [vmem:[#allocation102_spill] sm:$0xff] %v8540_v7  ;;  %v8542_v17 = vpop.permute.xlu0 %840 }
  0xcd   : > { %13579 = vst [vmem:[#allocation103_spill] sm:$0xff] %v8542_v17  ;;  %987 = vrot.lane.b32.xlu1 %v8169_v18, %s7738_s17 }
  0xce   : > { %989 = vrot.lane.b32.xlu0 %v8537_v6, %s7738_s17 }
  0xcf   : > { %v8553_v22 = vpop.permute.xlu1 %842 }
  0xd0   : > { %13580 = vst [vmem:[#allocation104_spill] sm:$0xff] %v8553_v22  ;;  %v8555_v32 = vpop.permute.xlu0 %844 }
  0xd1   : > { %13581 = vst [vmem:[#allocation105_spill] sm:$0xff] %v8555_v32  ;;  %991 = vrot.lane.b32.xlu1 %v8551_v63, %s7738_s17  ;;  %v13586_v32 = vld [vmem:[#allocation9_spill] sm:$0xff] }
  0xd2   : > { %1031 = vrot.lane.b32.xlu0 %v7882_v37, %s7739_s18 }
  0xd3   : > { %v8561_v17 = vpop.permute.xlu1 %846 }
  0xd4   : > { %13582 = vst [vmem:[#allocation106_spill] sm:$0xff] %v8561_v17  ;;  %v8563_v7 = vpop.permute.xlu0 %848 }
  0xd5   : > { %13583 = vst [vmem:[#allocation107_spill] sm:$0xff] %v8563_v7  ;;  %1033 = vrot.lane.b32.xlu1 %v7879_v36, %s7739_s18  ;;  %v13589_v7 = vld [vmem:[#allocation10_spill] sm:$0xff]  ;;  %v13590_v36 = vld [vmem:[#allocation11_spill] sm:$0xff] }
  0xd6   : > { %1035 = vrot.lane.b32.xlu0 %v7895_v42, %s7739_s18 }
  0xd7   : > { %v8569_v49 = vpop.permute.xlu1 %850 }
  0xd8   : > { %13584 = vst [vmem:[#allocation108_spill] sm:$0xff] %v8569_v49  ;;  %v8571_v51 = vpop.permute.xlu0 %852 }
  0xd9   : > { %13585 = vst [vmem:[#allocation109_spill] sm:$0xff] %v8571_v51  ;;  %1037 = vrot.lane.b32.xlu1 %v7903_v46, %s7739_s18  ;;  %v13593_v51 = vld [vmem:[#allocation12_spill] sm:$0xff] }
  0xda   : > { %1039 = vrot.lane.b32.xlu0 %v13586_v32, %s7739_s18 }
  0xdb   : > { %v8577_v37 = vpop.permute.xlu1 %854 }
  0xdc   : > { %13587 = vst [vmem:[#allocation110_spill] sm:$0xff] %v8577_v37  ;;  %v8579_v17 = vpop.permute.xlu0 %856 }
  0xdd   : > { %13588 = vst [vmem:[#allocation111_spill] sm:$0xff] %v8579_v17  ;;  %1041 = vrot.lane.b32.xlu1 %v13589_v7, %s7739_s18  ;;  %v13597_v17 = vld [vmem:[#allocation14_spill] sm:$0xff] }
  0xde   : > { %1043 = vrot.lane.b32.xlu0 %v13590_v36, %s7739_s18  ;;  %v13598_v7 = vld [vmem:[#allocation18_spill] sm:$0xff] }
  0xdf   : > { %v8585_v22 = vpop.permute.xlu1 %858 }
  0xe0   : > { %13591 = vst [vmem:[#allocation112_spill] sm:$0xff] %v8585_v22  ;;  %v8587_v49 = vpop.permute.xlu0 %860 }
  0xe1   : > { %13592 = vst [vmem:[#allocation113_spill] sm:$0xff] %v8587_v49  ;;  %1045 = vrot.lane.b32.xlu1 %v13593_v51, %s7739_s18  ;;  %v13601_v49 = vld [vmem:[#allocation19_spill] sm:$0xff]  ;;  %v13602_v51 = vld [vmem:[#allocation20_spill] sm:$0xff] }
  0xe2   : > { %1047 = vrot.lane.b32.xlu0 %v13594_v45, %s7739_s18 }
  0xe3   : > { %v8593_v32 = vpop.permute.xlu1 %862 }
  0xe4   : > { %13595 = vst [vmem:[#allocation114_spill] sm:$0xff] %v8593_v32  ;;  %v8595_v37 = vpop.permute.xlu0 %864 }
  0xe5   : > { %13596 = vst [vmem:[#allocation115_spill] sm:$0xff] %v8595_v37  ;;  %1049 = vrot.lane.b32.xlu1 %v13597_v17, %s7739_s18  ;;  %v13605_v37 = vld [vmem:[#allocation21_spill] sm:$0xff]  ;;  %v13606_v17 = vld [vmem:[#allocation24_spill] sm:$0xff] }
  0xe6   : > { %1051 = vrot.lane.b32.xlu0 %v13598_v7, %s7739_s18 }
  0xe7   : > { %v8601_v36 = vpop.permute.xlu1 %866 }
  0xe8   : > { %13599 = vst [vmem:[#allocation116_spill] sm:$0xff] %v8601_v36  ;;  %v8603_v22 = vpop.permute.xlu0 %868 }
  0xe9   : > { %13600 = vst [vmem:[#allocation117_spill] sm:$0xff] %v8603_v22  ;;  %1053 = vrot.lane.b32.xlu1 %v13601_v49, %s7739_s18  ;;  %v13609_v22 = vld [vmem:[#allocation25_spill] sm:$0xff]  ;;  %v13610_v49 = vld [vmem:[#allocation28_spill] sm:$0xff] }
  0xea   : > { %1055 = vrot.lane.b32.xlu0 %v13602_v51, %s7739_s18 }
  0xeb   : > { %v8609_v45 = vpop.permute.xlu1 %870 }
  0xec   : > { %13603 = vst [vmem:[#allocation118_spill] sm:$0xff] %v8609_v45  ;;  %v8611_v32 = vpop.permute.xlu0 %872 }
  0xed   : > { %13604 = vst [vmem:[#allocation119_spill] sm:$0xff] %v8611_v32  ;;  %1057 = vrot.lane.b32.xlu1 %v13605_v37, %s7739_s18  ;;  %v13613_v32 = vld [vmem:[#allocation29_spill] sm:$0xff]  ;;  %v13614_v37 = vld [vmem:[#allocation32_spill] sm:$0xff] }
  0xee   : > { %1059 = vrot.lane.b32.xlu0 %v13606_v17, %s7739_s18 }
  0xef   : > { %v8617_v7 = vpop.permute.xlu1 %874 }
  0xf0   : > { %13607 = vst [vmem:[#allocation120_spill] sm:$0xff] %v8617_v7  ;;  %v8619_v36 = vpop.permute.xlu0 %876 }
  0xf1   : > { %13608 = vst [vmem:[#allocation121_spill] sm:$0xff] %v8619_v36  ;;  %1061 = vrot.lane.b32.xlu1 %v13609_v22, %s7739_s18  ;;  %v13617_v36 = vld [vmem:[#allocation34_spill] sm:$0xff]  ;;  %v13618_v22 = vld [vmem:[#allocation36_spill] sm:$0xff] }
  0xf2   : > { %1063 = vrot.lane.b32.xlu0 %v13610_v49, %s7739_s18 }
  0xf3   : > { %v8625_v51 = vpop.permute.xlu1 %878 }
  0xf4   : > { %13611 = vst [vmem:[#allocation122_spill] sm:$0xff] %v8625_v51  ;;  %v8627_v45 = vpop.permute.xlu0 %880 }
  0xf5   : > { %13612 = vst [vmem:[#allocation123_spill] sm:$0xff] %v8627_v45  ;;  %1065 = vrot.lane.b32.xlu1 %v13613_v32, %s7739_s18  ;;  %v13621_v45 = vld [vmem:[#allocation37_spill] sm:$0xff]  ;;  %v13622_v32 = vld [vmem:[#allocation40_spill] sm:$0xff] }
  0xf6   : > { %1067 = vrot.lane.b32.xlu0 %v13614_v37, %s7739_s18 }
  0xf7   : > { %v8633_v17 = vpop.permute.xlu1 %882 }
  0xf8   : > { %13615 = vst [vmem:[#allocation124_spill] sm:$0xff] %v8633_v17  ;;  %v8635_v7 = vpop.permute.xlu0 %884 }
  0xf9   : > { %13616 = vst [vmem:[#allocation125_spill] sm:$0xff] %v8635_v7  ;;  %1069 = vrot.lane.b32.xlu1 %v13617_v36, %s7739_s18  ;;  %v13625_v7 = vld [vmem:[#allocation41_spill] sm:$0xff]  ;;  %v13626_v36 = vld [vmem:[#allocation44_spill] sm:$0xff] }
  0xfa   : > { %1071 = vrot.lane.b32.xlu0 %v13618_v22, %s7739_s18 }
  0xfb   : > { %v8641_v49 = vpop.permute.xlu1 %886 }
  0xfc   : > { %13619 = vst [vmem:[#allocation126_spill] sm:$0xff] %v8641_v49  ;;  %v8643_v51 = vpop.permute.xlu0 %888 }
  0xfd   : > { %13620 = vst [vmem:[#allocation127_spill] sm:$0xff] %v8643_v51  ;;  %1073 = vrot.lane.b32.xlu1 %v13621_v45, %s7739_s18 }
  0xfe   : > { %1075 = vrot.lane.b32.xlu0 %v13622_v32, %s7739_s18 }
  0xff   : > { %v8649_v37 = vpop.permute.xlu1 %890 }
 0x100   : > { %13623 = vst [vmem:[#allocation37_spill] sm:$0xff] %v8649_v37  ;;  %v8651_v17 = vpop.permute.xlu0 %892  ;;  %v1026_v37 = vrot.slane %v8537_v6, 1 }
 0x101   : > { %13624 = vst [vmem:[#allocation128_spill] sm:$0xff] %v8651_v17  ;;  %1077 = vrot.lane.b32.xlu1 %v13625_v7, %s7739_s18  ;;  %v1027_v17 = vrot.slane %v8551_v63, 1 }
 0x102   : > { %1079 = vrot.lane.b32.xlu0 %v13626_v36, %s7739_s18  ;;  %v13631_v36 = vrot.slane %v8530_v24, 7 }
 0x103   : > { %v8657_v22 = vpop.permute.xlu1 %894 }
 0x104   : > { %13627 = vst [vmem:[#allocation129_spill] sm:$0xff] %v8657_v22  ;;  %v8659_v49 = vpop.permute.xlu0 %929  ;;  %v8674_v22 = vsel %vm408_vm0, %v13631_v36, 0.0 }
 0x105   : > { %13628 = vst [vmem:[#allocation130_spill] sm:$0xff] %v8659_v49  ;;  %1081 = vrot.lane.b32.xlu1 %v8165_v31, %s7739_s18  ;;  %v13632_v49 = vld [vmem:[#allocation49_spill] sm:$0xff]  ;;  %v1029_v31 = vrot.slane %v8674_v22, 1 }
 0x106   : > { %1083 = vrot.lane.b32.xlu0 %v8182_v62, %s7739_s18  ;;  %v8681_v62 = vsel %vm574_vm1, %v1026_v37, %v1027_v17 }
 0x107   : > { %v8667_v51 = vpop.permute.xlu1 %931  ;;  %v8693_v36 = vsel %vm574_vm1, %v1027_v17, %v1029_v31 }
 0x108   : > { %13629 = vst [vmem:[#allocation131_spill] sm:$0xff] %v8667_v51  ;;  %v8669_v7 = vpop.permute.xlu0 %933 }
 0x109   : > { %13630 = vst [vmem:[#allocation132_spill] sm:$0xff] %v8669_v7  ;;  %1085 = vrot.lane.b32.xlu1 %v13632_v49, %s7739_s18 }
 0x10a   : > { %1087 = vrot.lane.b32.xlu0 %v8200_v3, %s7739_s18 }
 0x10b   : > { %v8684_v32 = vpop.permute.xlu1 %935 }
 0x10c   : > { %13633 = vst [vmem:[#allocation49_spill] sm:$0xff] %v8684_v32  ;;  %v8686_v51 = vpop.permute.xlu0 %937 }
 0x10d   : > { %13634 = vst [vmem:[#allocation133_spill] sm:$0xff] %v8686_v51  ;;  %1089 = vrot.lane.b32.xlu1 %v8203_v41, %s7739_s18 }
 0x10e   : > { %1091 = vrot.lane.b32.xlu0 %v8681_v62, %s7739_s18 }
 0x10f   : > { %v8695_v24 = vpop.permute.xlu1 %939 }
 0x110   : > { %13635 = vst [vmem:[#allocation134_spill] sm:$0xff] %v8695_v24  ;;  %v8697_v7 = vpop.permute.xlu0 %941 }
 0x111   : > { %13636 = vst [vmem:[#allocation135_spill] sm:$0xff] %v8697_v7  ;;  %1093 = vrot.lane.b32.xlu1 %v8693_v36, %s7739_s18  ;;  %v13641_v7 = vld [vmem:[#allocation51_spill] sm:$0xff] }
 0x112   : > { %1132 = vrot.lane.b32.xlu0 %v8215_v0, %s7740_s19 }
 0x113   : > { %v8703_v37 = vpop.permute.xlu1 %943 }
 0x114   : > { %13637 = vst [vmem:[#allocation136_spill] sm:$0xff] %v8703_v37  ;;  %v8705_v51 = vpop.permute.xlu0 %945 }
 0x115   : > { %13638 = vst [vmem:[#allocation137_spill] sm:$0xff] %v8705_v51  ;;  %1134 = vrot.lane.b32.xlu1 %v8224_v40, %s7740_s19  ;;  %v13644_v40 = vld [vmem:[#allocation52_spill] sm:$0xff] }
 0x116   : > { %1136 = vrot.lane.b32.xlu0 %v8227_v1, %s7740_s19 }
 0x117   : > { %v8711_v31 = vpop.permute.xlu1 %947 }
 0x118   : > { %13639 = vst [vmem:[#allocation138_spill] sm:$0xff] %v8711_v31  ;;  %v8713_v17 = vpop.permute.xlu0 %949 }
 0x119   : > { %13640 = vst [vmem:[#allocation139_spill] sm:$0xff] %v8713_v17  ;;  %1138 = vrot.lane.b32.xlu1 %v8238_v2, %s7740_s19  ;;  %v13647_v17 = vld [vmem:[#allocation53_spill] sm:$0xff] }
 0x11a   : > { %1140 = vrot.lane.b32.xlu0 %v13641_v7, %s7740_s19 }
 0x11b   : > { %v8719_v0 = vpop.permute.xlu1 %951 }
 0x11c   : > { %13642 = vst [vmem:[#allocation51_spill] sm:$0xff] %v8719_v0  ;;  %v8721_v37 = vpop.permute.xlu0 %953 }
 0x11d   : > { %13643 = vst [vmem:[#allocation140_spill] sm:$0xff] %v8721_v37  ;;  %1142 = vrot.lane.b32.xlu1 %v8250_v52, %s7740_s19  ;;  %v13650_v37 = vld [vmem:[#allocation54_spill] sm:$0xff] }
 0x11e   : > { %1144 = vrot.lane.b32.xlu0 %v13644_v40, %s7740_s19 }
 0x11f   : > { %v8727_v51 = vpop.permute.xlu1 %955 }
 0x120   : > { %13645 = vst [vmem:[#allocation52_spill] sm:$0xff] %v8727_v51  ;;  %v8729_v31 = vpop.permute.xlu0 %957 }
 0x121   : > { %13646 = vst [vmem:[#allocation141_spill] sm:$0xff] %v8729_v31  ;;  %1146 = vrot.lane.b32.xlu1 %v8264_v12, %s7740_s19  ;;  %v13653_v31 = vld [vmem:[#allocation55_spill] sm:$0xff] }
 0x122   : > { %1148 = vrot.lane.b32.xlu0 %v13647_v17, %s7740_s19 }
 0x123   : > { %v8735_v24 = vpop.permute.xlu1 %959 }
 0x124   : > { %13648 = vst [vmem:[#allocation142_spill] sm:$0xff] %v8735_v24  ;;  %v8737_v0 = vpop.permute.xlu0 %961 }
 0x125   : > { %13649 = vst [vmem:[#allocation143_spill] sm:$0xff] %v8737_v0  ;;  %1150 = vrot.lane.b32.xlu1 %v8277_v5, %s7740_s19  ;;  %v13656_v0 = vld [vmem:[#allocation56_spill] sm:$0xff] }
 0x126   : > { %1152 = vrot.lane.b32.xlu0 %v13650_v37, %s7740_s19 }
 0x127   : > { %v8743_v32 = vpop.permute.xlu1 %963 }
 0x128   : > { %13651 = vst [vmem:[#allocation144_spill] sm:$0xff] %v8743_v32  ;;  %v8745_v51 = vpop.permute.xlu0 %965 }
 0x129   : > { %13652 = vst [vmem:[#allocation145_spill] sm:$0xff] %v8745_v51  ;;  %1154 = vrot.lane.b32.xlu1 %v8290_v27, %s7740_s19  ;;  %v13659_v51 = vld [vmem:[#allocation57_spill] sm:$0xff] }
 0x12a   : > { %1156 = vrot.lane.b32.xlu0 %v13653_v31, %s7740_s19 }
 0x12b   : > { %v8751_v17 = vpop.permute.xlu1 %967 }
 0x12c   : > { %13654 = vst [vmem:[#allocation146_spill] sm:$0xff] %v8751_v17  ;;  %v8753_v24 = vpop.permute.xlu0 %969 }
 0x12d   : > { %13655 = vst [vmem:[#allocation147_spill] sm:$0xff] %v8753_v24  ;;  %1158 = vrot.lane.b32.xlu1 %v8303_v47, %s7740_s19  ;;  %v13662_v24 = vld [vmem:[#allocation59_spill] sm:$0xff] }
 0x12e   : > { %1160 = vrot.lane.b32.xlu0 %v13656_v0, %s7740_s19 }
 0x12f   : > { %v8759_v37 = vpop.permute.xlu1 %971 }
 0x130   : > { %13657 = vst [vmem:[#allocation148_spill] sm:$0xff] %v8759_v37  ;;  %v8761_v32 = vpop.permute.xlu0 %973 }
 0x131   : > { %13658 = vst [vmem:[#allocation149_spill] sm:$0xff] %v8761_v32  ;;  %1162 = vrot.lane.b32.xlu1 %v8315_v13, %s7740_s19  ;;  %v13665_v32 = vld [vmem:[#allocation60_spill] sm:$0xff] }
 0x132   : > { %1164 = vrot.lane.b32.xlu0 %v13659_v51, %s7740_s19 }
 0x133   : > { %v8767_v31 = vpop.permute.xlu1 %975 }
 0x134   : > { %13660 = vst [vmem:[#allocation150_spill] sm:$0xff] %v8767_v31  ;;  %v8769_v17 = vpop.permute.xlu0 %977 }
 0x135   : > { %13661 = vst [vmem:[#allocation151_spill] sm:$0xff] %v8769_v17  ;;  %1166 = vrot.lane.b32.xlu1 %v8329_v53, %s7740_s19  ;;  %v13668_v17 = vld [vmem:[#allocation61_spill] sm:$0xff]  ;;  %v13669_v53 = vld [vmem:[#allocation62_spill] sm:$0xff] }
 0x136   : > { %1168 = vrot.lane.b32.xlu0 %v13662_v24, %s7740_s19 }
 0x137   : > { %v8775_v0 = vpop.permute.xlu1 %979 }
 0x138   : > { %13663 = vst [vmem:[#allocation152_spill] sm:$0xff] %v8775_v0  ;;  %v8777_v37 = vpop.permute.xlu0 %981 }
 0x139   : > { %13664 = vst [vmem:[#allocation153_spill] sm:$0xff] %v8777_v37  ;;  %1170 = vrot.lane.b32.xlu1 %v8342_v8, %s7740_s19  ;;  %v13672_v37 = vld [vmem:[#allocation64_spill] sm:$0xff] }
 0x13a   : > { %1172 = vrot.lane.b32.xlu0 %v13665_v32, %s7740_s19 }
 0x13b   : > { %v8783_v51 = vpop.permute.xlu1 %983 }
 0x13c   : > { %13666 = vst [vmem:[#allocation154_spill] sm:$0xff] %v8783_v51  ;;  %v8785_v31 = vpop.permute.xlu0 %985 }
 0x13d   : > { %13667 = vst [vmem:[#allocation155_spill] sm:$0xff] %v8785_v31  ;;  %1174 = vrot.lane.b32.xlu1 %v13668_v17, %s7740_s19 }
 0x13e   : > { %1176 = vrot.lane.b32.xlu0 %v13669_v53, %s7740_s19 }
 0x13f   : > { %v8791_v24 = vpop.permute.xlu1 %987 }
 0x140   : > { %13670 = vst [vmem:[#allocation61_spill] sm:$0xff] %v8791_v24  ;;  %v8793_v0 = vpop.permute.xlu0 %989  ;;  %v1127_v24 = vrot.slane %v8537_v6, 2 }
 0x141   : > { %13671 = vst [vmem:[#allocation62_spill] sm:$0xff] %v8793_v0  ;;  %1178 = vrot.lane.b32.xlu1 %v8367_v58, %s7740_s19  ;;  %v1128_v0 = vrot.slane %v8551_v63, 2 }
 0x142   : > { %1180 = vrot.lane.b32.xlu0 %v13672_v37, %s7740_s19 }
 0x143   : > { %v8799_v32 = vpop.permute.xlu1 %991 }
 0x144   : > { %13673 = vst [vmem:[#allocation64_spill] sm:$0xff] %v8799_v32  ;;  %v8801_v51 = vpop.permute.xlu0 %1031  ;;  %v8818_v32 = vsel %vm751_vm2, %v1127_v24, %v1128_v0 }
 0x145   : > { %13674 = vst [vmem:[#allocation156_spill] sm:$0xff] %v8801_v51  ;;  %1182 = vrot.lane.b32.xlu1 %v8381_v56, %s7740_s19  ;;  %v1130_v51 = vrot.slane %v8674_v22, 2 }
 0x146   : > { %1184 = vrot.lane.b32.xlu0 %v8384_v23, %s7740_s19 }
 0x147   : > { %v8809_v31 = vpop.permute.xlu1 %1033 }
 0x148   : > { %13675 = vst [vmem:[#allocation157_spill] sm:$0xff] %v8809_v31  ;;  %v8811_v58 = vpop.permute.xlu0 %1035 }
 0x149   : > { %13676 = vst [vmem:[#allocation158_spill] sm:$0xff] %v8811_v58  ;;  %1186 = vrot.lane.b32.xlu1 %v8395_v61, %s7740_s19  ;;  %v8830_v58 = vsel %vm751_vm2, %v1128_v0, %v1130_v51 }
 0x14a   : > { %1188 = vrot.lane.b32.xlu0 %v8398_v30, %s7740_s19 }
 0x14b   : > { %v8821_v23 = vpop.permute.xlu1 %1037 }
 0x14c   : > { %v8823_v56 = vpop.permute.xlu0 %1039 }
 0x14d   : > { %1190 = vrot.lane.b32.xlu1 %v8410_v57, %s7740_s19 }
 0x14e   : > { %1192 = vrot.lane.b32.xlu0 %v8818_v32, %s7740_s19 }
 0x14f   : > { %v8832_v31 = vpop.permute.xlu1 %1041 }
 0x150   : > { %v8834_v30 = vpop.permute.xlu0 %1043 }
 0x151   : > { %13677 = vst [vmem:[#allocation159_spill] sm:$0xff] %v8834_v30  ;;  %1194 = vrot.lane.b32.xlu1 %v8830_v58, %s7740_s19 }
 0x152   : > { %1228 = vrot.lane.b32.xlu0 %v7860_v25, %s7741_s20 }
 0x153   : > { %v8840_v22 = vpop.permute.xlu1 %1045 }
 0x154   : > { %13678 = vst [vmem:[#allocation160_spill] sm:$0xff] %v8840_v22  ;;  %v8842_v24 = vpop.permute.xlu0 %1047 }
 0x155   : > { %13679 = vst [vmem:[#allocation161_spill] sm:$0xff] %v8842_v24  ;;  %1230 = vrot.lane.b32.xlu1 %v7866_v29, %s7741_s20 }
 0x156   : > { %1232 = vrot.lane.b32.xlu0 %v7886_v39, %s7741_s20 }
 0x157   : > { %v8848_v51 = vpop.permute.xlu1 %1049 }
 0x158   : > { %13680 = vst [vmem:[#allocation162_spill] sm:$0xff] %v8848_v51  ;;  %v8850_v0 = vpop.permute.xlu0 %1051 }
 0x159   : > { %13681 = vst [vmem:[#allocation163_spill] sm:$0xff] %v8850_v0  ;;  %1234 = vrot.lane.b32.xlu1 %v7874_v33, %s7741_s20 }
 0x15a   : > { %1236 = vrot.lane.b32.xlu0 %v7914_v55, %s7741_s20 }
 0x15b   : > { %v8856_v30 = vpop.permute.xlu1 %1053 }
 0x15c   : > { %13682 = vst [vmem:[#allocation164_spill] sm:$0xff] %v8856_v30  ;;  %v8858_v22 = vpop.permute.xlu0 %1055 }
 0x15d   : > { %13683 = vst [vmem:[#allocation165_spill] sm:$0xff] %v8858_v22  ;;  %1238 = vrot.lane.b32.xlu1 %v7911_v54, %s7741_s20 }
 0x15e   : > { %1240 = vrot.lane.b32.xlu0 %v7934_v4, %s7741_s20 }
 0x15f   : > { %v8864_v24 = vpop.permute.xlu1 %1057 }
 0x160   : > { %13684 = vst [vmem:[#allocation166_spill] sm:$0xff] %v8864_v24  ;;  %v8866_v51 = vpop.permute.xlu0 %1059 }
 0x161   : > { %13685 = vst [vmem:[#allocation167_spill] sm:$0xff] %v8866_v51  ;;  %1242 = vrot.lane.b32.xlu1 %v7929_v60, %s7741_s20 }
 0x162   : > { %1244 = vrot.lane.b32.xlu0 %v7956_v19, %s7741_s20 }
 0x163   : > { %v8872_v0 = vpop.permute.xlu1 %1061 }
 0x164   : > { %13686 = vst [vmem:[#allocation168_spill] sm:$0xff] %v8872_v0  ;;  %v8874_v30 = vpop.permute.xlu0 %1063 }
 0x165   : > { %13687 = vst [vmem:[#allocation169_spill] sm:$0xff] %v8874_v30  ;;  %1246 = vrot.lane.b32.xlu1 %v7960_v26, %s7741_s20 }
 0x166   : > { %1248 = vrot.lane.b32.xlu0 %v7977_v35, %s7741_s20 }
 0x167   : > { %v8880_v22 = vpop.permute.xlu1 %1065 }
 0x168   : > { %13688 = vst [vmem:[#allocation170_spill] sm:$0xff] %v8880_v22  ;;  %v8882_v24 = vpop.permute.xlu0 %1067 }
 0x169   : > { %13689 = vst [vmem:[#allocation171_spill] sm:$0xff] %v8882_v24  ;;  %1250 = vrot.lane.b32.xlu1 %v7983_v44, %s7741_s20  ;;  %v13796_v44 = vld [vmem:[#allocation67_spill] sm:$0xff] }
 0x16a   : > { %1252 = vrot.lane.b32.xlu0 %v7991_v50, %s7741_s20  ;;  %v7674_v50 = vld [vmem:[%s7830_s14 + $0x68] sm:$0xff] }
 0x16b   : > { %v8888_v51 = vpop.permute.xlu1 %1069 }
 0x16c   : > { %13690 = vst [vmem:[#allocation172_spill] sm:$0xff] %v8888_v51  ;;  %v8890_v0 = vpop.permute.xlu0 %1071 }
 0x16d   : > { %13691 = vst [vmem:[#allocation173_spill] sm:$0xff] %v8890_v0  ;;  %1254 = vrot.lane.b32.xlu1 %v8000_v59, %s7741_s20  ;;  %v13720_v59 = vld [vmem:[#allocation20_spill] sm:$0xff] }
 0x16e   : > { %1256 = vrot.lane.b32.xlu0 %v8029_v20, %s7741_s20 }
 0x16f   : > { %v8896_v30 = vpop.permute.xlu1 %1073 }
 0x170   : > { %13692 = vst [vmem:[#allocation174_spill] sm:$0xff] %v8896_v30  ;;  %v8898_v22 = vpop.permute.xlu0 %1075 }
 0x171   : > { %13693 = vst [vmem:[#allocation175_spill] sm:$0xff] %v8898_v22  ;;  %1258 = vrot.lane.b32.xlu1 %v8026_v16, %s7741_s20  ;;  %v13716_v16 = vld [vmem:[#allocation18_spill] sm:$0xff] }
 0x172   : > { %1260 = vrot.lane.b32.xlu0 %v8055_v10, %s7741_s20 }
 0x173   : > { %v8904_v24 = vpop.permute.xlu1 %1077 }
 0x174   : > { %13694 = vst [vmem:[#allocation176_spill] sm:$0xff] %v8904_v24  ;;  %v8906_v51 = vpop.permute.xlu0 %1079 }
 0x175   : > { %13695 = vst [vmem:[#allocation177_spill] sm:$0xff] %v8906_v51  ;;  %1262 = vrot.lane.b32.xlu1 %v8052_v9, %s7741_s20  ;;  %v13712_v9 = vld [vmem:[#allocation13_spill] sm:$0xff] }
 0x176   : > { %1264 = vrot.lane.b32.xlu0 %v8074_v38, %s7741_s20 }
 0x177   : > { %v8912_v0 = vpop.permute.xlu1 %1081 }
 0x178   : > { %13696 = vst [vmem:[#allocation178_spill] sm:$0xff] %v8912_v0  ;;  %v8914_v30 = vpop.permute.xlu0 %1083 }
 0x179   : > { %13697 = vst [vmem:[#allocation179_spill] sm:$0xff] %v8914_v30  ;;  %1266 = vrot.lane.b32.xlu1 %v8078_v43, %s7741_s20  ;;  %v13708_v43 = vld [vmem:[#allocation11_spill] sm:$0xff] }
 0x17a   : > { %1268 = vrot.lane.b32.xlu0 %v8096_v11, %s7741_s20 }
 0x17b   : > { %v8920_v22 = vpop.permute.xlu1 %1085 }
 0x17c   : > { %13698 = vst [vmem:[#allocation180_spill] sm:$0xff] %v8920_v22  ;;  %v8922_v24 = vpop.permute.xlu0 %1087 }
 0x17d   : > { %13699 = vst [vmem:[#allocation181_spill] sm:$0xff] %v8922_v24  ;;  %1270 = vrot.lane.b32.xlu1 %v8102_v14, %s7741_s20 }
 0x17e   : > { %1272 = vrot.lane.b32.xlu0 %v8123_v48, %s7741_s20 }
 0x17f   : > { %v8928_v51 = vpop.permute.xlu1 %1089 }
 0x180   : > { %13700 = vst [vmem:[#allocation182_spill] sm:$0xff] %v8928_v51  ;;  %v8930_v0 = vpop.permute.xlu0 %1091 }
 0x181   : > { %13701 = vst [vmem:[#allocation183_spill] sm:$0xff] %v8930_v0  ;;  %1274 = vrot.lane.b32.xlu1 %v8126_v28, %s7741_s20  ;;  %v13703_v0 = vld [vmem:[#allocation3_spill] sm:$0xff] }
 0x182   : > { %1276 = vrot.lane.b32.xlu0 %v8150_v34, %s7741_s20 }
 0x183   : > { %v8936_v30 = vpop.permute.xlu1 %1093 }
 0x184   : > { %13702 = vst [vmem:[#allocation184_spill] sm:$0xff] %v8936_v30  ;;  %v8938_v22 = vpop.permute.xlu0 %1132  ;;  %v13704_v30 = vld [vmem:[#allocation2_spill] sm:$0xff] }
 0x185   : > { %1278 = vrot.lane.b32.xlu1 %v8147_v21, %s7741_s20  ;;  %v8954_v34 = vpack.i.bf16 %v13704_v30, %v13703_v0 }
 0x186   : > { %1280 = vrot.lane.b32.xlu0 %v8172_v15, %s7741_s20 }
 0x187   : > { %v8944_v24 = vpop.permute.xlu1 %1134  ;;  %13705 = vst [vmem:[#allocation185_spill] sm:$0xff] %v8954_v34 }
 0x188   : > { %v8946_v51 = vpop.permute.xlu0 %1136 }
 0x189   : > { %1282 = vrot.lane.b32.xlu1 %v8169_v18, %s7741_s20 }
 0x18a   : > { %1284 = vrot.lane.b32.xlu0 %v8537_v6, %s7741_s20 }
 0x18b   : > { %v8956_v28 = vpop.permute.xlu1 %1138 }
 0x18c   : > { %v8958_v21 = vpop.permute.xlu0 %1140 }
 0x18d   : > { %1286 = vrot.lane.b32.xlu1 %v8551_v63, %s7741_s20  ;;  %v13706_v63 = vld [vmem:[#allocation9_spill] sm:$0xff] }
 0x18e   : > { %6788 = vrot.lane.b32.xlu0 %v8954_v34, %s7741_s20  ;;  %v13707_v34 = vld [vmem:[#allocation10_spill] sm:$0xff] }
 0x18f   : > { %v8964_v15 = vpop.permute.xlu1 %1142 }
 0x190   : > { %v8966_v18 = vpop.permute.xlu0 %1144 }
 0x191   : > { %1324 = vrot.lane.b32.xlu1 %v7895_v42, %s7742_s21  ;;  %v13709_v42 = vld [vmem:[#allocation12_spill] sm:$0xff] }
 0x192   : > { %1326 = vrot.lane.b32.xlu0 %v7903_v46, %s7742_s21 }
 0x193   : > { %v8972_v6 = vpop.permute.xlu1 %1146 }
 0x194   : > { %v8974_v48 = vpop.permute.xlu0 %1148 }
 0x195   : > { %1328 = vrot.lane.b32.xlu1 %v13706_v63, %s7742_s21  ;;  %v13713_v63 = vld [vmem:[#allocation14_spill] sm:$0xff] }
 0x196   : > { %1330 = vrot.lane.b32.xlu0 %v13707_v34, %s7742_s21 }
 0x197   : > { %v8980_v14 = vpop.permute.xlu1 %1150 }
 0x198   : > { %v8982_v11 = vpop.permute.xlu0 %1152 }
 0x199   : > { %1332 = vrot.lane.b32.xlu1 %v13708_v43, %s7742_s21  ;;  %v13717_v43 = vld [vmem:[#allocation19_spill] sm:$0xff] }
 0x19a   : > { %1334 = vrot.lane.b32.xlu0 %v13709_v42, %s7742_s21 }
 0x19b   : > { %v8988_v46 = vpop.permute.xlu1 %1154 }
 0x19c   : > { %13710 = vst [vmem:[#allocation9_spill] sm:$0xff] %v8988_v46  ;;  %v8990_v38 = vpop.permute.xlu0 %1156 }
 0x19d   : > { %13711 = vst [vmem:[#allocation10_spill] sm:$0xff] %v8990_v38  ;;  %1336 = vrot.lane.b32.xlu1 %v13712_v9, %s7742_s21  ;;  %v13721_v9 = vld [vmem:[#allocation21_spill] sm:$0xff] }
 0x19e   : > { %1338 = vrot.lane.b32.xlu0 %v13713_v63, %s7742_s21 }
 0x19f   : > { %v8996_v34 = vpop.permute.xlu1 %1158 }
 0x1a0   : > { %13714 = vst [vmem:[#allocation11_spill] sm:$0xff] %v8996_v34  ;;  %v8998_v10 = vpop.permute.xlu0 %1160 }
 0x1a1   : > { %13715 = vst [vmem:[#allocation12_spill] sm:$0xff] %v8998_v10  ;;  %1340 = vrot.lane.b32.xlu1 %v13716_v16, %s7742_s21  ;;  %v13724_v10 = vld [vmem:[#allocation24_spill] sm:$0xff]  ;;  %v13725_v16 = vld [vmem:[#allocation25_spill] sm:$0xff] }
 0x1a2   : > { %1342 = vrot.lane.b32.xlu0 %v13717_v43, %s7742_s21  ;;  %v365_v43 = vld [vmem:[%s13215_s1] sm:$0xff] }
 0x1a3   : > { %v9004_v42 = vpop.permute.xlu1 %1162 }
 0x1a4   : > { %13718 = vst [vmem:[#allocation13_spill] sm:$0xff] %v9004_v42  ;;  %v9006_v20 = vpop.permute.xlu0 %1164  ;;  %v368_v42 = vld [vmem:[%s13215_s1 + $0x18] sm:$0xff] }
 0x1a5   : > { %13719 = vst [vmem:[#allocation14_spill] sm:$0xff] %v9006_v20  ;;  %1344 = vrot.lane.b32.xlu1 %v13720_v59, %s7742_s21  ;;  %v366_v59 = vld [vmem:[%s13215_s1 + $0x8] sm:$0xff] }
 0x1a6   : > { %1346 = vrot.lane.b32.xlu0 %v13721_v9, %s7742_s21  ;;  %v6660_v20 = vpack.c.bf16 %v366_v59, %v365_v43 }
 0x1a7   : > { %v9012_v63 = vpop.permute.xlu1 %1166 }
 0x1a8   : > { %13722 = vst [vmem:[#allocation18_spill] sm:$0xff] %v9012_v63  ;;  %v9014_v34 = vpop.permute.xlu0 %1168  ;;  %6661 = vmatprep.subr.bf16.mxu0 %v6660_v20 }
 0x1a9   : > { %13723 = vst [vmem:[#allocation19_spill] sm:$0xff] %v9014_v34  ;;  %1348 = vrot.lane.b32.xlu1 %v13724_v10, %s7742_s21  ;;  %v13728_v34 = vld [vmem:[#allocation28_spill] sm:$0xff]  ;;  %v13729_v10 = vld [vmem:[#allocation29_spill] sm:$0xff]  ;;  %6663 = vmatpush3.bf16.msra.mxu0 %v6660_v20  ;;  %v370_v20 = vld [vmem:[%s13215_s1 + $0x28] sm:$0xff] }
 0x1aa   : > { %1350 = vrot.lane.b32.xlu0 %v13725_v16, %s7742_s21  ;;  %v367_v16 = vld [vmem:[%s13215_s1 + $0x10] sm:$0xff] }
 0x1ab   : > { %v9026_v9 = vpop.permute.xlu1 %1170  ;;  %v6664_v43 = vpack.c.bf16 %v368_v42, %v367_v16 }
 0x1ac   : > { %13726 = vst [vmem:[#allocation20_spill] sm:$0xff] %v9026_v9  ;;  %v9028_v63 = vpop.permute.xlu0 %1172  ;;  %v369_v9 = vld [vmem:[%s13215_s1 + $0x20] sm:$0xff] }
 0x1ad   : > { %13727 = vst [vmem:[#allocation21_spill] sm:$0xff] %v9028_v63  ;;  %1352 = vrot.lane.b32.xlu1 %v13728_v34, %s7742_s21  ;;  %6665 = vmatprep.subr.bf16.mxu0 %v6664_v43  ;;  %v13732_v34 = vld [vmem:[#allocation32_spill] sm:$0xff]  ;;  %v6668_v42 = vpack.c.bf16 %v370_v20, %v369_v9 }
 0x1ae   : > { %1354 = vrot.lane.b32.xlu0 %v13729_v10, %s7742_s21  ;;  %v13733_v10 = vld [vmem:[#allocation34_spill] sm:$0xff]  ;;  %6667 = vmatpush3.bf16.msra.mxu0 %v6664_v43  ;;  %v372_v43 = vld [vmem:[%s13215_s1 + $0x38] sm:$0xff] }
 0x1af   : > { %v9040_v59 = vpop.permute.xlu1 %1174  ;;  %6669 = vmatprep.subr.bf16.mxu0 %v6668_v42 }
 0x1b0   : > { %13730 = vst [vmem:[#allocation24_spill] sm:$0xff] %v9040_v59  ;;  %v9042_v63 = vpop.permute.xlu0 %1176 }
 0x1b1   : > { %13731 = vst [vmem:[#allocation25_spill] sm:$0xff] %v9042_v63  ;;  %1356 = vrot.lane.b32.xlu1 %v13732_v34, %s7742_s21  ;;  %v13736_v34 = vld [vmem:[#allocation36_spill] sm:$0xff] }
 0x1b2   : > { %1358 = vrot.lane.b32.xlu0 %v13733_v10, %s7742_s21  ;;  %v371_v10 = vld [vmem:[%s13215_s1 + $0x30] sm:$0xff]  ;;  %6671 = vmatpush3.bf16.msra.mxu0 %v6668_v42  ;;  %v373_v42 = vld [vmem:[%s13215_s1 + $0x40] sm:$0xff] }
 0x1b3   : > { %v9054_v16 = vpop.permute.xlu1 %1178  ;;  %v6672_v9 = vpack.c.bf16 %v372_v43, %v371_v10  ;;  %v13743_v10 = vld [vmem:[#allocation44_spill] sm:$0xff]  ;;  %v13744_v43 = vld [vmem:[#allocation45_spill] sm:$0xff] }
 0x1b4   : > { %13734 = vst [vmem:[#allocation28_spill] sm:$0xff] %v9054_v16  ;;  %v9056_v63 = vpop.permute.xlu0 %1180 }
 0x1b5   : > { %13735 = vst [vmem:[#allocation29_spill] sm:$0xff] %v9056_v63  ;;  %1360 = vrot.lane.b32.xlu1 %v13736_v34, %s7742_s21  ;;  %6673 = vmatprep.subr.bf16.mxu0 %v6672_v9  ;;  %v13739_v34 = vld [vmem:[#allocation40_spill] sm:$0xff] }
 0x1b6   : > { %1362 = vrot.lane.b32.xlu0 %v13621_v45, %s7742_s21  ;;  %v13740_v45 = vld [vmem:[#allocation41_spill] sm:$0xff]  ;;  %6675 = vmatpush3.bf16.msra.mxu0 %v6672_v9  ;;  %v13747_v9 = vld [vmem:[#allocation48_spill] sm:$0xff] }
 0x1b7   : > { %v9068_v20 = vpop.permute.xlu1 %1182  ;;  %6554 = vmatprep.subr.mxu0 %v373_v42 }
 0x1b8   : > { %13737 = vst [vmem:[#allocation32_spill] sm:$0xff] %v9068_v20  ;;  %v9070_v63 = vpop.permute.xlu0 %1184 }
 0x1b9   : > { %13738 = vst [vmem:[#allocation34_spill] sm:$0xff] %v9070_v63  ;;  %1364 = vrot.lane.b32.xlu1 %v13739_v34, %s7742_s21 }
 0x1ba   : > { %1366 = vrot.lane.b32.xlu0 %v13740_v45, %s7742_s21  ;;  %6555 = vmatpush3.msra.mxu0 %v373_v42 }
 0x1bb   : > { %v9076_v16 = vpop.permute.xlu1 %1186 }
 0x1bc   : > { %13741 = vst [vmem:[#allocation36_spill] sm:$0xff] %v9076_v16  ;;  %v9078_v59 = vpop.permute.xlu0 %1188 }
 0x1bd   : > { %13742 = vst [vmem:[#allocation40_spill] sm:$0xff] %v9078_v59  ;;  %1368 = vrot.lane.b32.xlu1 %v13743_v10, %s7742_s21 }
 0x1be   : > { %1370 = vrot.lane.b32.xlu0 %v13744_v43, %s7742_s21 }
 0x1bf   : > { %v9087_v34 = vpop.permute.xlu1 %1190 }
 0x1c0   : > { %13745 = vst [vmem:[#allocation41_spill] sm:$0xff] %v9087_v34  ;;  %v9089_v45 = vpop.permute.xlu0 %1192 }
 0x1c1   : > { %13746 = vst [vmem:[#allocation44_spill] sm:$0xff] %v9089_v45  ;;  %1372 = vrot.lane.b32.xlu1 %v13747_v9, %s7742_s21  ;;  %v13749_v9 = vld [vmem:[#allocation53_spill] sm:$0xff] }
 0x1c2   : > { %1374 = vrot.lane.b32.xlu0 %v13632_v49, %s7742_s21 }
 0x1c3   : > { %v9095_v59 = vpop.permute.xlu1 %1194 }
 0x1c4   : > { %13748 = vst [vmem:[#allocation45_spill] sm:$0xff] %v9095_v59  ;;  %v9097_v16 = vpop.permute.xlu0 %1228  ;;  %v13752_v59 = vld [vmem:[#allocation6_spill] sm:$0xff] }
 0x1c5   : > { %1376 = vrot.lane.b32.xlu1 %v8200_v3, %s7742_s21 }
 0x1c6   : > { %1378 = vrot.lane.b32.xlu0 %v8203_v41, %s7742_s21 }
 0x1c7   : > { %v9103_v42 = vpop.permute.xlu1 %1230 }
 0x1c8   : > { %v9105_v10 = vpop.permute.xlu0 %1232 }
 0x1c9   : > { %1420 = vrot.lane.b32.xlu1 %v8227_v1, %s7743_s12 }
 0x1ca   : > { %1422 = vrot.lane.b32.xlu0 %v8238_v2, %s7743_s12 }
 0x1cb   : > { %v9111_v49 = vpop.permute.xlu1 %1234 }
 0x1cc   : > { %v9113_v43 = vpop.permute.xlu0 %1236 }
 0x1cd   : > { %1424 = vrot.lane.b32.xlu1 %v13641_v7, %s7743_s12 }
 0x1ce   : > { %1426 = vrot.lane.b32.xlu0 %v8250_v52, %s7743_s12 }
 0x1cf   : > { %v9119_v3 = vpop.permute.xlu1 %1238 }
 0x1d0   : > { %v9121_v41 = vpop.permute.xlu0 %1240 }
 0x1d1   : > { %1428 = vrot.lane.b32.xlu1 %v13644_v40, %s7743_s12 }
 0x1d2   : > { %1430 = vrot.lane.b32.xlu0 %v8264_v12, %s7743_s12 }
 0x1d3   : > { %v9127_v1 = vpop.permute.xlu1 %1242 }
 0x1d4   : > { %v9129_v2 = vpop.permute.xlu0 %1244 }
 0x1d5   : > { %1380 = vrot.lane.b32.xlu1 %v8681_v62, %s7742_s21  ;;  %v13753_v62 = vld [vmem:[#allocation54_spill] sm:$0xff] }
 0x1d6   : > { %1382 = vrot.lane.b32.xlu0 %v8693_v36, %s7742_s21 }
 0x1d7   : > { %v9135_v52 = vpop.permute.xlu1 %1246 }
 0x1d8   : > { %v9137_v7 = vpop.permute.xlu0 %1248 }
 0x1d9   : > { %1432 = vrot.lane.b32.xlu1 %v13749_v9, %s7743_s12  ;;  %v13756_v9 = vld [vmem:[#allocation55_spill] sm:$0xff] }
 0x1da   : > { %1434 = vrot.lane.b32.xlu0 %v8277_v5, %s7743_s12 }
 0x1db   : > { %v9143_v12 = vpop.permute.xlu1 %1250 }
 0x1dc   : > { %13750 = vst [vmem:[#allocation48_spill] sm:$0xff] %v9143_v12  ;;  %v9145_v40 = vpop.permute.xlu0 %1252  ;;  %v7682_v12 = vld [vmem:[%s7830_s14 + $0xa8] sm:$0xff] }
 0x1dd   : > { %13751 = vst [vmem:[#allocation53_spill] sm:$0xff] %v9145_v40  ;;  %6793 = vrot.lane.b32.xlu1 %v13752_v59, %s7742_s21  ;;  %v13759_v59 = vld [vmem:[#allocation56_spill] sm:$0xff] }
 0x1de   : > { %1436 = vrot.lane.b32.xlu0 %v13753_v62, %s7743_s12 }
 0x1df   : > { %v9151_v36 = vpop.permute.xlu1 %1254 }
 0x1e0   : > { %13754 = vst [vmem:[#allocation54_spill] sm:$0xff] %v9151_v36  ;;  %v9153_v45 = vpop.permute.xlu0 %1256  ;;  %v7672_v36 = vld [vmem:[%s7830_s14 + $0x58] sm:$0xff] }
 0x1e1   : > { %13755 = vst [vmem:[#allocation186_spill] sm:$0xff] %v9153_v45  ;;  %1438 = vrot.lane.b32.xlu1 %v8290_v27, %s7743_s12  ;;  %v13762_v27 = vld [vmem:[#allocation57_spill] sm:$0xff] }
 0x1e2   : > { %1440 = vrot.lane.b32.xlu0 %v13756_v9, %s7743_s12 }
 0x1e3   : > { %v9159_v5 = vpop.permute.xlu1 %1258 }
 0x1e4   : > { %13757 = vst [vmem:[#allocation55_spill] sm:$0xff] %v9159_v5  ;;  %v9161_v34 = vpop.permute.xlu0 %1260  ;;  %v7670_v5 = vld [vmem:[%s7830_s14 + $0x48] sm:$0xff] }
 0x1e5   : > { %13758 = vst [vmem:[#allocation187_spill] sm:$0xff] %v9161_v34  ;;  %1442 = vrot.lane.b32.xlu1 %v8303_v47, %s7743_s12  ;;  %v13765_v34 = vld [vmem:[#allocation58_spill] sm:$0xff]  ;;  %v13766_v47 = vld [vmem:[#allocation59_spill] sm:$0xff] }
 0x1e6   : > { %1444 = vrot.lane.b32.xlu0 %v13759_v59, %s7743_s12 }
 0x1e7   : > { %v9167_v62 = vpop.permute.xlu1 %1262 }
 0x1e8   : > { %13760 = vst [vmem:[#allocation56_spill] sm:$0xff] %v9167_v62  ;;  %v9169_v63 = vpop.permute.xlu0 %1264 }
 0x1e9   : > { %13761 = vst [vmem:[#allocation188_spill] sm:$0xff] %v9169_v63  ;;  %1446 = vrot.lane.b32.xlu1 %v8315_v13, %s7743_s12  ;;  %v13769_v13 = vld [vmem:[#allocation60_spill] sm:$0xff] }
 0x1ea   : > { %1448 = vrot.lane.b32.xlu0 %v13762_v27, %s7743_s12 }
 0x1eb   : > { %v9175_v9 = vpop.permute.xlu1 %1266 }
 0x1ec   : > { %13763 = vst [vmem:[#allocation57_spill] sm:$0xff] %v9175_v9  ;;  %v9177_v20 = vpop.permute.xlu0 %1268 }
 0x1ed   : > { %13764 = vst [vmem:[#allocation189_spill] sm:$0xff] %v9177_v20  ;;  %1450 = vrot.lane.b32.xlu1 %v13765_v34, %s7743_s12  ;;  %v7668_v20 = vld [vmem:[%s7830_s14 + $0x38] sm:$0xff] }
 0x1ee   : > { %1452 = vrot.lane.b32.xlu0 %v13766_v47, %s7743_s12 }
 0x1ef   : > { %v9183_v59 = vpop.permute.xlu1 %1270 }
 0x1f0   : > { %13767 = vst [vmem:[#allocation58_spill] sm:$0xff] %v9183_v59  ;;  %v9185_v62 = vpop.permute.xlu0 %1272 }
 0x1f1   : > { %13768 = vst [vmem:[#allocation59_spill] sm:$0xff] %v9185_v62  ;;  %1454 = vrot.lane.b32.xlu1 %v8342_v8, %s7743_s12  ;;  %v13774_v62 = vld [vmem:[#allocation63_spill] sm:$0xff] }
 0x1f2   : > { %1456 = vrot.lane.b32.xlu0 %v13769_v13, %s7743_s12 }
 0x1f3   : > { %v9191_v27 = vpop.permute.xlu1 %1274 }
 0x1f4   : > { %13770 = vst [vmem:[#allocation60_spill] sm:$0xff] %v9191_v27  ;;  %v9193_v9 = vpop.permute.xlu0 %1276  ;;  %v7666_v27 = vld [vmem:[%s7830_s14 + $0x28] sm:$0xff] }
 0x1f5   : > { %13771 = vst [vmem:[#allocation190_spill] sm:$0xff] %v9193_v9  ;;  %1458 = vrot.lane.b32.xlu1 %v13668_v17, %s7743_s12  ;;  %v13777_v9 = vld [vmem:[#allocation65_spill] sm:$0xff]  ;;  %v13778_v17 = vld [vmem:[#allocation66_spill] sm:$0xff] }
 0x1f6   : > { %1460 = vrot.lane.b32.xlu0 %v13669_v53, %s7743_s12 }
 0x1f7   : > { %v9199_v34 = vpop.permute.xlu1 %1278 }
 0x1f8   : > { %13772 = vst [vmem:[#allocation191_spill] sm:$0xff] %v9199_v34  ;;  %v9201_v47 = vpop.permute.xlu0 %1280 }
 0x1f9   : > { %13773 = vst [vmem:[#allocation192_spill] sm:$0xff] %v9201_v47  ;;  %1462 = vrot.lane.b32.xlu1 %v13774_v62, %s7743_s12 }
 0x1fa   : > { %1464 = vrot.lane.b32.xlu0 %v13672_v37, %s7743_s12  ;;  %v13781_v37 = vld [vmem:[#allocation68_spill] sm:$0xff] }
 0x1fb   : > { %v9207_v8 = vpop.permute.xlu1 %1282 }
 0x1fc   : > { %13775 = vst [vmem:[#allocation63_spill] sm:$0xff] %v9207_v8  ;;  %v9209_v13 = vpop.permute.xlu0 %1284  ;;  %v7664_v8 = vld [vmem:[%s7830_s14 + $0x18] sm:$0xff] }
 0x1fd   : > { %13776 = vst [vmem:[#allocation193_spill] sm:$0xff] %v9209_v13  ;;  %1466 = vrot.lane.b32.xlu1 %v13777_v9, %s7743_s12 }
 0x1fe   : > { %1468 = vrot.lane.b32.xlu0 %v13778_v17, %s7743_s12 }
 0x1ff   : > { %v9215_v53 = vpop.permute.xlu1 %1286 }
 0x200   : > { %13779 = vst [vmem:[#allocation65_spill] sm:$0xff] %v9215_v53  ;;  %v9217_v47 = vpop.permute.xlu0 %6788 }
 0x201   : > { %13780 = vst [vmem:[#allocation66_spill] sm:$0xff] %v9217_v47  ;;  %1470 = vrot.lane.b32.xlu1 %v8395_v61, %s7743_s12  ;;  %v13782_v61 = vld [vmem:[#allocation50_spill] sm:$0xff] }
 0x202   : > { %1472 = vrot.lane.b32.xlu0 %v13781_v37, %s7743_s12 }
 0x203   : > { %v9223_v62 = vpop.permute.xlu1 %1324 }
 0x204   : > { %v9225_v13 = vpop.permute.xlu0 %1326 }
 0x205   : > { %1474 = vrot.lane.b32.xlu1 %v8410_v57, %s7743_s12  ;;  %v7662_v57 = vld [vmem:[%s7830_s14 + $0x8] sm:$0xff] }
 0x206   : > { %1476 = vrot.lane.b32.xlu0 %v8818_v32, %s7743_s12  ;;  %v7663_v32 = vld [vmem:[%s7830_s14] sm:$0xff] }
 0x207   : > { %v9231_v9 = vpop.permute.xlu1 %1328 }
 0x208   : > { %v9233_v17 = vpop.permute.xlu0 %1330 }
 0x209   : > { %1478 = vrot.lane.b32.xlu1 %v8830_v58, %s7743_s12 }
 0x20a   : > { %6798 = vrot.lane.b32.xlu0 %v13782_v61, %s7743_s12  ;;  %v7665_v61 = vld [vmem:[%s7830_s14 + $0x10] sm:$0xff] }
 0x20b   : > { %v9239_v37 = vpop.permute.xlu1 %1332 }
 0x20c   : > { %v9241_v53 = vpop.permute.xlu0 %1334 }
 0x20d   : > { %2140 = vrot.lane.b32.xlu1 %v7663_v32, %s7736_s15  ;;  %v7667_v32 = vld [vmem:[%s7830_s14 + $0x20] sm:$0xff] }
 0x20e   : > { %2142 = vrot.lane.b32.xlu0 %v7662_v57, %s7736_s15 }
 0x20f   : > { %v9247_v47 = vpop.permute.xlu1 %1336 }
 0x210   : > { %v9249_v58 = vpop.permute.xlu0 %1338 }
 0x211   : > { %2144 = vrot.lane.b32.xlu1 %v7665_v61, %s7736_s15  ;;  %v7669_v61 = vld [vmem:[%s7830_s14 + $0x30] sm:$0xff] }
 0x212   : > { %2146 = vrot.lane.b32.xlu0 %v7664_v8, %s7736_s15 }
 0x213   : > { %v9255_v34 = vpop.permute.xlu1 %1340 }
 0x214   : > { %v9257_v57 = vpop.permute.xlu0 %1342 }
 0x215   : > { %2148 = vrot.lane.b32.xlu1 %v7667_v32, %s7736_s15  ;;  %v7671_v32 = vld [vmem:[%s7830_s14 + $0x40] sm:$0xff] }
 0x216   : > { %2150 = vrot.lane.b32.xlu0 %v7666_v27, %s7736_s15 }
 0x217   : > { %v9263_v59 = vpop.permute.xlu1 %1344 }
 0x218   : > { %v9265_v8 = vpop.permute.xlu0 %1346 }
 0x219   : > { %13783 = vst [vmem:[#allocation68_spill] sm:$0xff] %v9265_v8  ;;  %2152 = vrot.lane.b32.xlu1 %v7669_v61, %s7736_s15  ;;  %v7673_v61 = vld [vmem:[%s7830_s14 + $0x50] sm:$0xff]  ;;  %v13801_v8 = vld [vmem:[#allocation7_spill] sm:$0xff] }
 0x21a   : > { %2154 = vrot.lane.b32.xlu0 %v7668_v20, %s7736_s15 }
 0x21b   : > { %v9271_v63 = vpop.permute.xlu1 %1348 }
 0x21c   : > { %13784 = vst [vmem:[#allocation194_spill] sm:$0xff] %v9271_v63  ;;  %v9273_v27 = vpop.permute.xlu0 %1350  ;;  %v6781_v63 = vunpack.i.h.bf16 %v13796_v44 }
 0x21d   : > { %13785 = vst [vmem:[#allocation195_spill] sm:$0xff] %v9273_v27  ;;  %2156 = vrot.lane.b32.xlu1 %v7671_v32, %s7736_s15  ;;  %v7675_v32 = vld [vmem:[%s7830_s14 + $0x60] sm:$0xff] }
 0x21e   : > { %2158 = vrot.lane.b32.xlu0 %v7670_v5, %s7736_s15 }
 0x21f   : > { %v9279_v45 = vpop.permute.xlu1 %1352 }
 0x220   : > { %13786 = vst [vmem:[#allocation196_spill] sm:$0xff] %v9279_v45  ;;  %v9281_v20 = vpop.permute.xlu0 %1354 }
 0x221   : > { %13787 = vst [vmem:[#allocation197_spill] sm:$0xff] %v9281_v20  ;;  %2160 = vrot.lane.b32.xlu1 %v7673_v61, %s7736_s15  ;;  %v7677_v61 = vld [vmem:[%s7830_s14 + $0x70] sm:$0xff] }
 0x222   : > { %2162 = vrot.lane.b32.xlu0 %v7672_v36, %s7736_s15  ;;  %v7676_v36 = vld [vmem:[%s7830_s14 + $0x78] sm:$0xff] }
 0x223   : > { %v9287_v27 = vpop.permute.xlu1 %1356 }
 0x224   : > { %13788 = vst [vmem:[#allocation198_spill] sm:$0xff] %v9287_v27  ;;  %v9289_v5 = vpop.permute.xlu0 %1358 }
 0x225   : > { %13789 = vst [vmem:[#allocation199_spill] sm:$0xff] %v9289_v5  ;;  %2164 = vrot.lane.b32.xlu1 %v7675_v32, %s7736_s15  ;;  %v7679_v32 = vld [vmem:[%s7830_s14 + $0x80] sm:$0xff] }
 0x226   : > { %2166 = vrot.lane.b32.xlu0 %v7674_v50, %s7736_s15  ;;  %v7678_v50 = vld [vmem:[%s7830_s14 + $0x88] sm:$0xff] }
 0x227   : > { %v9295_v45 = vpop.permute.xlu1 %1360 }
 0x228   : > { %13790 = vst [vmem:[#allocation200_spill] sm:$0xff] %v9295_v45  ;;  %v9297_v20 = vpop.permute.xlu0 %1362 }
 0x229   : > { %13791 = vst [vmem:[#allocation201_spill] sm:$0xff] %v9297_v20  ;;  %2168 = vrot.lane.b32.xlu1 %v7677_v61, %s7736_s15  ;;  %v7680_v61 = vld [vmem:[%s7830_s14 + $0x98] sm:$0xff] }
 0x22a   : > { %2170 = vrot.lane.b32.xlu0 %v7676_v36, %s7736_s15  ;;  %v6780_v36 = vunpack.i.l.bf16 %v13796_v44  ;;  %v13800_v44 = vld [vmem:[#allocation69_spill] sm:$0xff] }
 0x22b   : > { %v9303_v27 = vpop.permute.xlu1 %1364  ;;  %v1520_v40 = vsel %vm1516_vm3, %v13801_v8, %v13800_v44  ;;  %v13805_v44 = vld [vmem:[#allocation130_spill] sm:$0xff] }
 0x22c   : > { %13792 = vst [vmem:[#allocation202_spill] sm:$0xff] %v9303_v27  ;;  %v9305_v5 = vpop.permute.xlu0 %1366 }
 0x22d   : > { %13793 = vst [vmem:[#allocation203_spill] sm:$0xff] %v9305_v5  ;;  %2172 = vrot.lane.b32.xlu1 %v7679_v32, %s7736_s15  ;;  %v7681_v5 = vld [vmem:[%s7830_s14 + $0x90] sm:$0xff] }
 0x22e   : > { %2174 = vrot.lane.b32.xlu0 %v7678_v50, %s7736_s15  ;;  %v13797_v50 = vld [vmem:[#allocation99_spill] sm:$0xff] }
 0x22f   : > { %v9311_v45 = vpop.permute.xlu1 %1368  ;;  %v6786_v27 = vunpack.i.h.bf16 %v13797_v50  ;;  %v6785_v32 = vunpack.i.l.bf16 %v13797_v50  ;;  %v7683_v50 = vld [vmem:[%s7830_s14 + $0xa0] sm:$0xff] }
 0x230   : > { %13794 = vst [vmem:[#allocation204_spill] sm:$0xff] %v9311_v45  ;;  %v9313_v20 = vpop.permute.xlu0 %1370 }
 0x231   : > { %13795 = vst [vmem:[#allocation205_spill] sm:$0xff] %v9313_v20  ;;  %2176 = vrot.lane.b32.xlu1 %v7681_v5, %s7736_s15  ;;  %v1518_v5 = vsel %vm1516_vm3, %v13704_v30, %v6781_v63  ;;  %v13806_v30 = vld [vmem:[#allocation131_spill] sm:$0xff] }
 0x232   : > { %2178 = vrot.lane.b32.xlu0 %v7680_v61, %s7736_s15  ;;  %v1517_v61 = vsel %vm1516_vm3, %v13703_v0, %v6780_v36  ;;  %v1551_v8 = vsel %vm1549_vm4, %v1518_v5, %v6786_v27  ;;  %v13804_v36 = vld [vmem:[#allocation71_spill] sm:$0xff] }
 0x233   : > { %v9323_v45 = vpop.permute.xlu1 %1372  ;;  %v1550_v46 = vsel %vm1549_vm4, %v1517_v61, %v6785_v32  ;;  %v1521_v63 = vsel %vm1516_vm3, %v7860_v25, %v13804_v36  ;;  %v13808_v32 = vld [vmem:[#allocation156_spill] sm:$0xff]  ;;  %v13809_v25 = vld [vmem:[#allocation157_spill] sm:$0xff] }
 0x234   : > { %13798 = vst [vmem:[#allocation67_spill] sm:$0xff] %v9323_v45  ;;  %v9325_v20 = vpop.permute.xlu0 %1374  ;;  %v13803_v45 = vld [vmem:[#allocation8_spill] sm:$0xff] }
 0x235   : > { %13799 = vst [vmem:[#allocation99_spill] sm:$0xff] %v9325_v20  ;;  %2180 = vrot.lane.b32.xlu1 %v7683_v50, %s7736_s15  ;;  %v13802_v20 = vld [vmem:[#allocation70_spill] sm:$0xff]  ;;  %v1584_v50 = vsel %vm1582_vm5, %v1551_v8, %v13806_v30 }
 0x236   : > { %2182 = vrot.lane.b32.xlu0 %v7682_v12, %s7736_s15  ;;  %v1519_v38 = vsel %vm1516_vm3, %v13803_v45, %v13802_v20  ;;  %v1583_v12 = vsel %vm1582_vm5, %v1550_v46, %v13805_v44  ;;  %v13807_v20 = vld [vmem:[#allocation72_spill] sm:$0xff]  ;;  %v1617_v5 = vsel %vm1615_vm6, %v1584_v50, %v13809_v25  ;;  %v7684_v44 = vld [vmem:[%s7830_s14 + $0xb8] sm:$0xff] }
 0x237   : > { %v9350_v0 = vpop.permute.xlu1 %1376  ;;  %v1522_v27 = vsel %vm1516_vm3, %v7866_v29, %v13807_v20  ;;  %v1616_v61 = vsel %vm1615_vm6, %v1583_v12, %v13808_v32  ;;  %v13810_v46 = vld [vmem:[#allocation100_spill] sm:$0xff]  ;;  %v1650_v8 = vsel %vm1648_vm7, %v1617_v5, %v8944_v24  ;;  %v13811_v12 = vld [vmem:[#allocation102_spill] sm:$0xff]  ;;  %v13813_v32 = vld [vmem:[#allocation49_spill] sm:$0xff] }
 0x238   : > { %v9352_v45 = vpop.permute.xlu0 %1378  ;;  %v1552_v36 = vsel %vm1549_vm4, %v1519_v38, %v13810_v46  ;;  %v1649_v30 = vsel %vm1648_vm7, %v1616_v61, %v8938_v22  ;;  %v7685_v29 = vld [vmem:[%s7830_s14 + $0xb0] sm:$0xff]  ;;  %v1553_v50 = vsel %vm1549_vm4, %v1520_v40, %v13811_v12  ;;  %v1683_v38 = vsel %vm1681_vm8, %v1650_v8, %v9103_v42  ;;  %v13814_v46 = vld [vmem:[#allocation158_spill] sm:$0xff]  ;;  %v7686_v12 = vld [vmem:[%s7830_s14 + $0xc8] sm:$0xff] }
 0x239   : > { %2184 = vrot.lane.b32.xlu1 %v7685_v29, %s7736_s15  ;;  %v1682_v20 = vsel %vm1681_vm8, %v1649_v30, %v9097_v16  ;;  %v13812_v22 = vld [vmem:[#allocation132_spill] sm:$0xff]  ;;  %v1586_v61 = vsel %vm1582_vm5, %v1553_v50, %v13813_v32  ;;  %v1716_v40 = vsel %vm1714_vm9, %v1683_v38, %v9225_v13 }
 0x23a   : > { %2186 = vrot.lane.b32.xlu0 %v7684_v44, %s7736_s15  ;;  %v1585_v24 = vsel %vm1582_vm5, %v1552_v36, %v13812_v22  ;;  %v1715_v25 = vsel %vm1714_vm9, %v1682_v20, %v9223_v62  ;;  %v1619_v30 = vsel %vm1615_vm6, %v1586_v61, %v8821_v23  ;;  %v13815_v44 = vld [vmem:[#allocation103_spill] sm:$0xff]  ;;  %v13816_v50 = vld [vmem:[#allocation104_spill] sm:$0xff]  ;;  %v13818_v22 = vld [vmem:[#allocation134_spill] sm:$0xff] }
 0x23b   : > { %v1421_v5 = vpop.permute.xlu1 %1420  ;;  %v1618_v42 = vsel %vm1615_vm6, %v1585_v24, %v13814_v46  ;;  %v1554_v29 = vsel %vm1549_vm4, %v1521_v63, %v13815_v44  ;;  %v1652_v13 = vsel %vm1648_vm7, %v1619_v30, %v8956_v28  ;;  %v1555_v23 = vsel %vm1549_vm4, %v1522_v27, %v13816_v50  ;;  %v13817_v28 = vld [vmem:[#allocation133_spill] sm:$0xff]  ;;  %v7689_v46 = vld [vmem:[%s7830_s14 + $0xd0] sm:$0xff]  ;;  %v13820_v44 = vld [vmem:[#allocation74_spill] sm:$0xff] }
 0x23c   : > { %v1423_v16 = vpop.permute.xlu0 %1422  ;;  %v1748_v8 = vsel %vm1747_vm10, %v1715_v25, %v1421_v5  ;;  %v1651_v62 = vsel %vm1648_vm7, %v1618_v42, %v8946_v51  ;;  %v1685_v63 = vsel %vm1681_vm8, %v1652_v13, %v9111_v49  ;;  %v7687_v51 = vld [vmem:[%s7830_s14 + $0xc0] sm:$0xff]  ;;  %v1587_v38 = vsel %vm1582_vm5, %v1554_v29, %v13817_v28  ;;  %v13825_v28 = vld [vmem:[#allocation159_spill] sm:$0xff] }
 0x23d   : > { %v1749_v36 = vsel %vm1747_vm10, %v1716_v40, %v1423_v16  ;;  %6556 = vmatprep.mubr.msk.f32.mxu0 %vm1786_vm11, %v1748_v8  ;;  %v1684_v20 = vsel %vm1681_vm8, %v1651_v62, %v9105_v10  ;;  %2188 = vrot.lane.b32.xlu1 %v7687_v51, %s7736_s15  ;;  %v1588_v24 = vsel %vm1582_vm5, %v1555_v23, %v13818_v22  ;;  %v13819_v8 = vld [vmem:[#allocation73_spill] sm:$0xff]  ;;  %v13822_v13 = vld [vmem:[#allocation106_spill] sm:$0xff]  ;;  %v13824_v23 = vld [vmem:[#allocation136_spill] sm:$0xff] }
 0x23e   : > { %2190 = vrot.lane.b32.xlu0 %v7686_v12, %s7736_s15  ;;  %6557 = vmatmul.mubr.msk.f32.vlgmr.msra.gmra.mrb[0].mxu0 %vm1786_vm11, %v1749_v36  ;;  %v1717_v27 = vsel %vm1714_vm9, %v1684_v20, %v9231_v9  ;;  %v1718_v10 = vsel %vm1714_vm9, %v1685_v63, %v9233_v17  ;;  %v1620_v61 = vsel %vm1615_vm6, %v1587_v38, %v8823_v56  ;;  %v7688_v17 = vld [vmem:[%s7830_s14 + $0xd8] sm:$0xff]  ;;  %v7691_v50 = vld [vmem:[%s7830_s14 + $0xe0] sm:$0xff]  ;;  %v13826_v22 = vld [vmem:[#allocation160_spill] sm:$0xff] }
 0x23f   : > { %v1425_v49 = vpop.permute.xlu1 %1424  ;;  %v1621_v25 = vsel %vm1615_vm6, %v1588_v24, %v8832_v31  ;;  %v1653_v16 = vsel %vm1648_vm7, %v1620_v61, %v8958_v21  ;;  %v1524_v29 = vsel %vm1516_vm3, %v7874_v33, %v13820_v44  ;;  %v13828_v61 = vld [vmem:[#allocation101_spill] sm:$0xff] }
 0x240   : > { %v1427_v32 = vpop.permute.xlu0 %1426  ;;  %v1750_v40 = vsel %vm1747_vm10, %v1717_v27, %v1425_v49  ;;  %v1654_v9 = vsel %vm1648_vm7, %v1621_v25, %v8964_v15  ;;  %v1686_v56 = vsel %vm1681_vm8, %v1653_v16, %v9113_v43  ;;  %v1557_v12 = vsel %vm1549_vm4, %v1524_v29, %v13822_v13  ;;  %v13827_v27 = vld [vmem:[#allocation75_spill] sm:$0xff]  ;;  %v13838_v13 = vld [vmem:[#allocation162_spill] sm:$0xff] }
 0x241   : > { %v1751_v5 = vsel %vm1747_vm10, %v1718_v10, %v1427_v32  ;;  %6559 = vmatprep.mubr.msk.f32.mxu0 %vm1786_vm11, %v1750_v40  ;;  %v1687_v31 = vsel %vm1681_vm8, %v1654_v9, %v9119_v3  ;;  %2192 = vrot.lane.b32.xlu1 %v7689_v46, %s7736_s15  ;;  %v1719_v21 = vsel %vm1714_vm9, %v1686_v56, %v9239_v37  ;;  %v7690_v37 = vld [vmem:[%s7830_s14 + $0xe8] sm:$0xff]  ;;  %v7692_v9 = vld [vmem:[%s7830_s14 + $0xf0] sm:$0xff]  ;;  %v13831_v46 = vld [vmem:[#allocation161_spill] sm:$0xff] }
 0x242   : > { %2194 = vrot.lane.b32.xlu0 %v7688_v17, %s7736_s15  ;;  %6560 = vmatmul.mubr.msk.f32.gmra.mrb[2].mxu0 %vm1786_vm11, %v1751_v5  ;;  %v1720_v15 = vsel %vm1714_vm9, %v1687_v31, %v9241_v53  ;;  %v1523_v3 = vsel %vm1516_vm3, %v7886_v39, %v13819_v8  ;;  %v13821_v53 = vld [vmem:[#allocation105_spill] sm:$0xff]  ;;  %v13823_v39 = vld [vmem:[#allocation135_spill] sm:$0xff]  ;;  %v1590_v20 = vsel %vm1582_vm5, %v1557_v12, %v13824_v23 }
 0x243   : > { %v1429_v42 = vpop.permute.xlu1 %1428  ;;  %v1556_v62 = vsel %vm1549_vm4, %v1523_v3, %v13821_v53  ;;  %v1623_v24 = vsel %vm1615_vm6, %v1590_v20, %v13826_v22  ;;  %v1525_v10 = vsel %vm1516_vm3, %v7914_v55, %v13827_v27  ;;  %v13829_v25 = vld [vmem:[#allocation107_spill] sm:$0xff]  ;;  %v13830_v55 = vld [vmem:[#allocation137_spill] sm:$0xff]  ;;  %v13842_v22 = vld [vmem:[#allocation110_spill] sm:$0xff] }
 0x244   : > { %v1431_v30 = vpop.permute.xlu0 %1430  ;;  %v1752_v36 = vsel %vm1747_vm10, %v1719_v21, %v1429_v42  ;;  %v1589_v33 = vsel %vm1582_vm5, %v1556_v62, %v13823_v39  ;;  %v1656_v32 = vsel %vm1648_vm7, %v1623_v24, %v8972_v6  ;;  %v1558_v40 = vsel %vm1549_vm4, %v1525_v10, %v13829_v25  ;;  %v13835_v8 = vld [vmem:[#allocation109_spill] sm:$0xff]  ;;  %v13841_v20 = vld [vmem:[#allocation79_spill] sm:$0xff] }
 0x245   : > { %v1753_v43 = vsel %vm1747_vm10, %v1720_v15, %v1431_v30  ;;  %6562 = vmatprep.mubr.msk.f32.mxu0 %vm1786_vm11, %v1752_v36  ;;  %2196 = vrot.lane.b32.xlu1 %v7691_v50, %s7736_s15  ;;  %v1622_v38 = vsel %vm1615_vm6, %v1589_v33, %v13825_v28  ;;  %v1689_v16 = vsel %vm1681_vm8, %v1656_v32, %v9127_v1  ;;  %v13832_v15 = vld [vmem:[#allocation76_spill] sm:$0xff]  ;;  %v13833_v30 = vld [vmem:[#allocation77_spill] sm:$0xff]  ;;  %v13839_v50 = vld [vmem:[#allocation163_spill] sm:$0xff] }
 0x246   : > { %2198 = vrot.lane.b32.xlu0 %v7690_v37, %s7736_s15  ;;  %6563 = vmatmul.mubr.msk.f32.gmra.mrb[4].mxu0 %vm1786_vm11, %v1753_v43  ;;  %v1655_v49 = vsel %vm1648_vm7, %v1622_v38, %v8966_v18  ;;  %v1591_v18 = vsel %vm1582_vm5, %v1558_v40, %v13830_v55  ;;  %v1722_v17 = vsel %vm1714_vm9, %v1689_v16, %v9249_v58  ;;  %v13834_v36 = vld [vmem:[#allocation108_spill] sm:$0xff]  ;;  %v13840_v33 = vld [vmem:[#allocation78_spill] sm:$0xff]  ;;  %v13843_v27 = vld [vmem:[#allocation111_spill] sm:$0xff] }
 0x247   : > { %v9463_v63 = vpop.permute.xlu1 %1380  ;;  %v1688_v5 = vsel %vm1681_vm8, %v1655_v49, %v9121_v41  ;;  %v1624_v41 = vsel %vm1615_vm6, %v1591_v18, %v13831_v46  ;;  %v1526_v42 = vsel %vm1516_vm3, %v7911_v54, %v13832_v15  ;;  %v13836_v54 = vld [vmem:[#allocation138_spill] sm:$0xff]  ;;  %v1528_v23 = vsel %vm1516_vm3, %v7929_v60, %v13840_v33  ;;  %v13844_v49 = vld [vmem:[#allocation51_spill] sm:$0xff]  ;;  %v13845_v32 = vld [vmem:[#allocation140_spill] sm:$0xff] }
 0x248   : > { %v9465_v51 = vpop.permute.xlu0 %1382  ;;  %v1721_v6 = vsel %vm1714_vm9, %v1688_v5, %v9247_v47  ;;  %v1527_v47 = vsel %vm1516_vm3, %v7934_v4, %v13833_v30  ;;  %v1657_v58 = vsel %vm1648_vm7, %v1624_v41, %v8974_v48  ;;  %v1559_v43 = vsel %vm1549_vm4, %v1526_v42, %v13834_v36  ;;  %v13837_v4 = vld [vmem:[#allocation139_spill] sm:$0xff]  ;;  %v13846_v16 = vld [vmem:[#allocation164_spill] sm:$0xff]  ;;  %v13851_v46 = vld [vmem:[#allocation10_spill] sm:$0xff] }
 0x249   : > { %2200 = vrot.lane.b32.xlu1 %v7692_v9, %s7736_s15  ;;  %v1560_v3 = vsel %vm1549_vm4, %v1527_v47, %v13835_v8  ;;  %v1690_v44 = vsel %vm1681_vm8, %v1657_v58, %v9129_v2  ;;  %v1592_v29 = vsel %vm1582_vm5, %v1559_v43, %v13836_v54  ;;  %v1529_v28 = vsel %vm1516_vm3, %v7956_v19, %v13841_v20  ;;  %v13847_v9 = vld [vmem:[#allocation165_spill] sm:$0xff]  ;;  %v13854_v30 = vld [vmem:[#allocation48_spill] sm:$0xff]  ;;  %v13859_v54 = vld [vmem:[#allocation194_spill] sm:$0xff] }
 0x24a   : > { %2202 = vrot.lane.b32.xlu0 %v13828_v61, %s7736_s15  ;;  %v1593_v37 = vsel %vm1582_vm5, %v1560_v3, %v13837_v4  ;;  %v1723_v48 = vsel %vm1714_vm9, %v1690_v44, %v9255_v34  ;;  %v1625_v12 = vsel %vm1615_vm6, %v1592_v29, %v13838_v13  ;;  %v1561_v24 = vsel %vm1549_vm4, %v1528_v23, %v13842_v22  ;;  %v13853_v15 = vld [vmem:[#allocation113_spill] sm:$0xff]  ;;  %v13856_v58 = vld [vmem:[#allocation52_spill] sm:$0xff]  ;;  %v13861_v13 = vld [vmem:[#allocation167_spill] sm:$0xff] }
 0x24b   : > { %v1433_v56 = vpop.permute.xlu1 %1432  ;;  %v1626_v2 = vsel %vm1615_vm6, %v1593_v37, %v13839_v50  ;;  %v1658_v34 = vsel %vm1648_vm7, %v1625_v12, %v8980_v14  ;;  %v1562_v10 = vsel %vm1549_vm4, %v1529_v28, %v13843_v27  ;;  %v1594_v14 = vsel %vm1582_vm5, %v1561_v24, %v13844_v49  ;;  %v13855_v47 = vld [vmem:[#allocation53_spill] sm:$0xff]  ;;  %v13858_v3 = vld [vmem:[#allocation68_spill] sm:$0xff]  ;;  %v13863_v33 = vld [vmem:[#allocation15_spill] sm:$0xff] }
 0x24c   : > { %v1435_v31 = vpop.permute.xlu0 %1434  ;;  %v1754_v21 = vsel %vm1747_vm10, %v1721_v6, %v1433_v56  ;;  %v1659_v38 = vsel %vm1648_vm7, %v1626_v2, %v8982_v11  ;;  %v1691_v60 = vsel %vm1681_vm8, %v1658_v34, %v9135_v52  ;;  %v1595_v11 = vsel %vm1582_vm5, %v1562_v10, %v13845_v32  ;;  %v13848_v6 = vld [vmem:[#allocation80_spill] sm:$0xff]  ;;  %v13850_v56 = vld [vmem:[#allocation9_spill] sm:$0xff]  ;;  %v13864_v20 = vld [vmem:[#allocation83_spill] sm:$0xff] }
 0x24d   : > { %v1755_v1 = vsel %vm1747_vm10, %v1722_v17, %v1435_v31  ;;  %6565 = vmatprep.mubr.msk.f32.mxu0 %vm1786_vm11, %v1754_v21  ;;  %v1692_v19 = vsel %vm1681_vm8, %v1659_v38, %v9137_v7  ;;  %v1724_v61 = vsel %vm1714_vm9, %v1691_v60, %v9257_v57  ;;  %v1627_v52 = vsel %vm1615_vm6, %v1594_v14, %v13846_v16  ;;  %v13849_v57 = vld [vmem:[#allocation81_spill] sm:$0xff]  ;;  %v13852_v21 = vld [vmem:[#allocation112_spill] sm:$0xff]  ;;  %v13866_v38 = vld [vmem:[#allocation11_spill] sm:$0xff] }
 0x24e   : > { %6566 = vmatmul.mubr.msk.f32.gmra.mrb[6].mxu0 %vm1786_vm11, %v1755_v1  ;;  %v1725_v25 = vsel %vm1714_vm9, %v1692_v19, %v9263_v59  ;;  %v1628_v7 = vsel %vm1615_vm6, %v1595_v11, %v13847_v9  ;;  %v1530_v17 = vsel %vm1516_vm3, %v7960_v26, %v13848_v6  ;;  %v1531_v59 = vsel %vm1516_vm3, %v7977_v35, %v13849_v57  ;;  %v13857_v43 = vld [vmem:[#allocation141_spill] sm:$0xff]  ;;  %v13865_v28 = vld [vmem:[#allocation16_spill] sm:$0xff]  ;;  %v13868_v10 = vld [vmem:[#allocation114_spill] sm:$0xff] }
 0x24f   : > { %v9520_v53 = vpop.permute.xlu1 %6793  ;;  %v1660_v31 = vsel %vm1648_vm7, %v1627_v52, %v13850_v56  ;;  %v1661_v41 = vsel %vm1648_vm7, %v1628_v7, %v13851_v46  ;;  %v1563_v1 = vsel %vm1549_vm4, %v1530_v17, %v13852_v21  ;;  %v1564_v42 = vsel %vm1549_vm4, %v1531_v59, %v13853_v15  ;;  %v13867_v24 = vld [vmem:[#allocation12_spill] sm:$0xff]  ;;  %v13869_v19 = vld [vmem:[#allocation115_spill] sm:$0xff]  ;;  %v13870_v14 = vld [vmem:[#allocation54_spill] sm:$0xff] }
 0x250   : > { %v1437_v62 = vpop.permute.xlu0 %1436  ;;  %v1693_v26 = vsel %vm1681_vm8, %v1660_v31, %v13854_v30  ;;  %v1694_v35 = vsel %vm1681_vm8, %v1661_v41, %v13855_v47  ;;  %v1596_v36 = vsel %vm1582_vm5, %v1563_v1, %v13856_v58  ;;  %v1597_v8 = vsel %vm1582_vm5, %v1564_v42, %v13857_v43  ;;  %v13871_v11 = vld [vmem:[#allocation186_spill] sm:$0xff]  ;;  %v13874_v52 = vld [vmem:[#allocation195_spill] sm:$0xff]  ;;  %v13875_v7 = vld [vmem:[#allocation196_spill] sm:$0xff] }
 0x251   : > { %v1756_v39 = vsel %vm1747_vm10, %v1723_v48, %v1437_v62  ;;  %v1726_v44 = vsel %vm1714_vm9, %v1693_v26, %v13858_v3  ;;  %v1727_v29 = vsel %vm1714_vm9, %v1694_v35, %v13859_v54  ;;  %v13860_v48 = vld [vmem:[#allocation166_spill] sm:$0xff]  ;;  %v1630_v12 = vsel %vm1615_vm6, %v1597_v8, %v13861_v13  ;;  %v13876_v17 = vld [vmem:[#allocation168_spill] sm:$0xff]  ;;  %v13877_v59 = vld [vmem:[#allocation169_spill] sm:$0xff] }
 0x252   : > { %6568 = vmatprep.mubr.msk.f32.mxu0 %vm1786_vm11, %v1756_v39  ;;  %v1629_v62 = vsel %vm1615_vm6, %v1596_v36, %v13860_v48  ;;  %v13862_v39 = vld [vmem:[#allocation82_spill] sm:$0xff]  ;;  %v1533_v34 = vsel %vm1516_vm3, %v13865_v28, %v13864_v20  ;;  %v1663_v27 = vsel %vm1648_vm7, %v1630_v12, %v13867_v24  ;;  %v13878_v41 = vld [vmem:[#allocation84_spill] sm:$0xff]  ;;  %v13879_v21 = vld [vmem:[#allocation17_spill] sm:$0xff] }
 0x253   : > { %v1439_v40 = vpop.permute.xlu1 %1438  ;;  %v1532_v23 = vsel %vm1516_vm3, %v13863_v33, %v13862_v39  ;;  %v1662_v22 = vsel %vm1648_vm7, %v1629_v62, %v13866_v38  ;;  %v1566_v49 = vsel %vm1549_vm4, %v1533_v34, %v13869_v19  ;;  %v1534_v1 = vsel %vm1516_vm3, %v13879_v21, %v13878_v41  ;;  %v13880_v15 = vld [vmem:[#allocation85_spill] sm:$0xff]  ;;  %v13881_v42 = vld [vmem:[#allocation23_spill] sm:$0xff]  ;;  %v13883_v35 = vld [vmem:[#allocation14_spill] sm:$0xff] }
 0x254   : > { %v1441_v5 = vpop.permute.xlu0 %1440  ;;  %v1757_v55 = vsel %vm1747_vm10, %v1724_v61, %v1439_v40  ;;  %v1565_v60 = vsel %vm1549_vm4, %v1532_v23, %v13868_v10  ;;  %v1695_v32 = vsel %vm1681_vm8, %v1662_v22, %v13870_v14  ;;  %v1696_v61 = vsel %vm1681_vm8, %v1663_v27, %v13871_v11  ;;  %v13882_v26 = vld [vmem:[#allocation13_spill] sm:$0xff]  ;;  %v13884_v36 = vld [vmem:[#allocation116_spill] sm:$0xff]  ;;  %v13892_v20 = vld [vmem:[#allocation170_spill] sm:$0xff] }
 0x255   : > { %v1758_v18 = vsel %vm1747_vm10, %v1725_v25, %v1441_v5  ;;  %6569 = vmatmul.mubr.msk.f32.gmra.mrb[8].mxu0 %vm1786_vm11, %v1757_v55  ;;  %v13872_v25 = vld [vmem:[#allocation142_spill] sm:$0xff]  ;;  %v13873_v5 = vld [vmem:[#allocation143_spill] sm:$0xff]  ;;  %v1728_v9 = vsel %vm1714_vm9, %v1695_v32, %v13874_v52  ;;  %v1729_v55 = vsel %vm1714_vm9, %v1696_v61, %v13875_v7  ;;  %v1535_v30 = vsel %vm1516_vm3, %v13881_v42, %v13880_v15  ;;  %v13885_v8 = vld [vmem:[#allocation117_spill] sm:$0xff] }
 0x256   : > { %6571 = vmatprep.mubr.msk.f32.mxu0 %vm1786_vm11, %v1758_v18  ;;  %v1598_v40 = vsel %vm1582_vm5, %v1565_v60, %v13872_v25  ;;  %v1599_v16 = vsel %vm1582_vm5, %v1566_v49, %v13873_v5  ;;  %v1567_v43 = vsel %vm1549_vm4, %v1534_v1, %v13884_v36  ;;  %v1568_v3 = vsel %vm1549_vm4, %v1535_v30, %v13885_v8  ;;  %v13889_v62 = vld [vmem:[#allocation145_spill] sm:$0xff]  ;;  %v13893_v34 = vld [vmem:[#allocation171_spill] sm:$0xff]  ;;  %v13894_v27 = vld [vmem:[#allocation86_spill] sm:$0xff] }
 0x257   : > { %v1443_v4 = vpop.permute.xlu1 %1442  ;;  %v1631_v57 = vsel %vm1615_vm6, %v1598_v40, %v13876_v17  ;;  %v1632_v56 = vsel %vm1615_vm6, %v1599_v16, %v13877_v59  ;;  %v1601_v13 = vsel %vm1582_vm5, %v1568_v3, %v13889_v62  ;;  %v13890_v12 = vld [vmem:[#allocation197_spill] sm:$0xff]  ;;  %v13895_v10 = vld [vmem:[#allocation22_spill] sm:$0xff]  ;;  %v13896_v19 = vld [vmem:[#allocation87_spill] sm:$0xff] }
 0x258   : > { %v1445_v37 = vpop.permute.xlu0 %1444  ;;  %v1759_v50 = vsel %vm1747_vm10, %v1726_v44, %v1443_v4  ;;  %v1664_v47 = vsel %vm1648_vm7, %v1631_v57, %v13882_v26  ;;  %v1665_v58 = vsel %vm1648_vm7, %v1632_v56, %v13883_v35  ;;  %v13886_v44 = vld [vmem:[#allocation55_spill] sm:$0xff]  ;;  %v1634_v38 = vsel %vm1615_vm6, %v1601_v13, %v13893_v34  ;;  %v13898_v32 = vld [vmem:[#allocation18_spill] sm:$0xff]  ;;  %v13908_v15 = vld [vmem:[#allocation172_spill] sm:$0xff] }
 0x259   : > { %v1760_v2 = vsel %vm1747_vm10, %v1727_v29, %v1445_v37  ;;  %6572 = vmatmul.mubr.msk.f32.gmra.mrb[10].mxu0 %vm1786_vm11, %v1759_v50  ;;  %v1697_v54 = vsel %vm1681_vm8, %v1664_v47, %v13886_v44  ;;  %v13887_v29 = vld [vmem:[#allocation187_spill] sm:$0xff]  ;;  %v13888_v37 = vld [vmem:[#allocation144_spill] sm:$0xff]  ;;  %v1536_v60 = vsel %vm1516_vm3, %v13895_v10, %v13894_v27  ;;  %v13900_v40 = vld [vmem:[#allocation118_spill] sm:$0xff] }
 0x25a   : > { %6574 = vmatprep.mubr.msk.f32.mxu0 %vm1786_vm11, %v1760_v2  ;;  %v1698_v4 = vsel %vm1681_vm8, %v1665_v58, %v13887_v29  ;;  %v1600_v48 = vsel %vm1582_vm5, %v1567_v43, %v13888_v37  ;;  %v1730_v50 = vsel %vm1714_vm9, %v1697_v54, %v13890_v12  ;;  %v13891_v2 = vld [vmem:[#allocation198_spill] sm:$0xff]  ;;  %v13897_v49 = vld [vmem:[#allocation27_spill] sm:$0xff]  ;;  %v1569_v5 = vsel %vm1549_vm4, %v1536_v60, %v13900_v40  ;;  %v13909_v30 = vld [vmem:[#allocation173_spill] sm:$0xff] }
 0x25b   : > { %v1447_v18 = vpop.permute.xlu1 %1446  ;;  %v1731_v39 = vsel %vm1714_vm9, %v1698_v4, %v13891_v2  ;;  %v1633_v28 = vsel %vm1615_vm6, %v1600_v48, %v13892_v20  ;;  %v1537_v14 = vsel %vm1516_vm3, %v13897_v49, %v13896_v19  ;;  %v13899_v61 = vld [vmem:[#allocation19_spill] sm:$0xff]  ;;  %v13910_v58 = vld [vmem:[#allocation88_spill] sm:$0xff]  ;;  %v13911_v36 = vld [vmem:[#allocation26_spill] sm:$0xff] }
 0x25c   : > { %v1449_v6 = vpop.permute.xlu0 %1448  ;;  %v1761_v31 = vsel %vm1747_vm10, %v1728_v9, %v1447_v18  ;;  %v1666_v11 = vsel %vm1648_vm7, %v1633_v28, %v13898_v32  ;;  %v1667_v25 = vsel %vm1648_vm7, %v1634_v38, %v13899_v61  ;;  %v13901_v16 = vld [vmem:[#allocation119_spill] sm:$0xff]  ;;  %v13902_v9 = vld [vmem:[#allocation56_spill] sm:$0xff]  ;;  %v1538_v43 = vsel %vm1516_vm3, %v13911_v36, %v13910_v58  ;;  %v13912_v8 = vld [vmem:[#allocation89_spill] sm:$0xff] }
 0x25d   : > { %v1762_v46 = vsel %vm1747_vm10, %v1729_v55, %v1449_v6  ;;  %6575 = vmatmul.mubr.msk.f32.gmra.mrb[12].mxu0 %vm1786_vm11, %v1761_v31  ;;  %v1570_v52 = vsel %vm1549_vm4, %v1537_v14, %v13901_v16  ;;  %v1699_v7 = vsel %vm1681_vm8, %v1666_v11, %v13902_v9  ;;  %v13903_v55 = vld [vmem:[#allocation188_spill] sm:$0xff]  ;;  %v13904_v6 = vld [vmem:[#allocation146_spill] sm:$0xff]  ;;  %v13905_v57 = vld [vmem:[#allocation147_spill] sm:$0xff] }
 0x25e   : > { %6577 = vmatprep.mubr.msk.f32.mxu0 %vm1786_vm11, %v1762_v46  ;;  %v1700_v18 = vsel %vm1681_vm8, %v1667_v25, %v13903_v55  ;;  %v1602_v17 = vsel %vm1582_vm5, %v1569_v5, %v13904_v6  ;;  %v1603_v59 = vsel %vm1582_vm5, %v1570_v52, %v13905_v57  ;;  %v13906_v56 = vld [vmem:[#allocation199_spill] sm:$0xff]  ;;  %v13907_v46 = vld [vmem:[#allocation200_spill] sm:$0xff]  ;;  %v13913_v3 = vld [vmem:[#allocation30_spill] sm:$0xff] }
 0x25f   : > { %v1451_v33 = vpop.permute.xlu1 %1450  ;;  %v1732_v31 = vsel %vm1714_vm9, %v1699_v7, %v13906_v56  ;;  %v1733_v41 = vsel %vm1714_vm9, %v1700_v18, %v13907_v46  ;;  %v1635_v42 = vsel %vm1615_vm6, %v1602_v17, %v13908_v15  ;;  %v1636_v26 = vsel %vm1615_vm6, %v1603_v59, %v13909_v30  ;;  %v13914_v54 = vld [vmem:[#allocation20_spill] sm:$0xff]  ;;  %v13915_v4 = vld [vmem:[#allocation21_spill] sm:$0xff]  ;;  %v13924_v19 = vld [vmem:[#allocation174_spill] sm:$0xff] }
 0x260   : > { %v1453_v23 = vpop.permute.xlu0 %1452  ;;  %v1763_v22 = vsel %vm1747_vm10, %v1730_v50, %v1451_v33  ;;  %v1539_v44 = vsel %vm1516_vm3, %v13913_v3, %v13912_v8  ;;  %v1668_v29 = vsel %vm1648_vm7, %v1635_v42, %v13914_v54  ;;  %v1669_v37 = vsel %vm1648_vm7, %v1636_v26, %v13915_v4  ;;  %v13916_v48 = vld [vmem:[#allocation120_spill] sm:$0xff]  ;;  %v13917_v13 = vld [vmem:[#allocation121_spill] sm:$0xff]  ;;  %v13925_v14 = vld [vmem:[#allocation175_spill] sm:$0xff] }
 0x261   : > { %v1764_v24 = vsel %vm1747_vm10, %v1731_v39, %v1453_v23  ;;  %6578 = vmatmul.mubr.msk.f32.gmra.mrb[14].mxu0 %vm1786_vm11, %v1763_v22  ;;  %v1571_v62 = vsel %vm1549_vm4, %v1538_v43, %v13916_v48  ;;  %v1572_v12 = vsel %vm1549_vm4, %v1539_v44, %v13917_v13  ;;  %v13918_v50 = vld [vmem:[#allocation57_spill] sm:$0xff]  ;;  %v13920_v23 = vld [vmem:[#allocation148_spill] sm:$0xff]  ;;  %v13926_v25 = vld [vmem:[#allocation90_spill] sm:$0xff] }
 0x262   : > { %6580 = vmatprep.mubr.msk.f32.mxu0 %vm1786_vm11, %v1764_v24  ;;  %v1701_v2 = vsel %vm1681_vm8, %v1668_v29, %v13918_v50  ;;  %v13919_v39 = vld [vmem:[#allocation189_spill] sm:$0xff]  ;;  %v1604_v20 = vsel %vm1582_vm5, %v1571_v62, %v13920_v23  ;;  %v13923_v24 = vld [vmem:[#allocation202_spill] sm:$0xff]  ;;  %v13927_v40 = vld [vmem:[#allocation31_spill] sm:$0xff] }
 0x263   : > { %v1455_v21 = vpop.permute.xlu1 %1454  ;;  %v1702_v33 = vsel %vm1681_vm8, %v1669_v37, %v13919_v39  ;;  %v13921_v28 = vld [vmem:[#allocation149_spill] sm:$0xff]  ;;  %v1637_v49 = vsel %vm1615_vm6, %v1604_v20, %v13924_v19  ;;  %v1540_v5 = vsel %vm1516_vm3, %v13927_v40, %v13926_v25  ;;  %v13928_v16 = vld [vmem:[#allocation91_spill] sm:$0xff]  ;;  %v13930_v7 = vld [vmem:[#allocation24_spill] sm:$0xff] }
 0x264   : > { %v1457_v1 = vpop.permute.xlu0 %1456  ;;  %v1765_v47 = vsel %vm1747_vm10, %v1732_v31, %v1455_v21  ;;  %v1605_v34 = vsel %vm1582_vm5, %v1572_v12, %v13921_v28  ;;  %v13922_v38 = vld [vmem:[#allocation201_spill] sm:$0xff]  ;;  %v1735_v27 = vsel %vm1714_vm9, %v1702_v33, %v13923_v24  ;;  %v1670_v55 = vsel %vm1648_vm7, %v1637_v49, %v13930_v7  ;;  %v13932_v17 = vld [vmem:[#allocation122_spill] sm:$0xff]  ;;  %v13933_v59 = vld [vmem:[#allocation123_spill] sm:$0xff] }
 0x265   : > { %v1766_v35 = vsel %vm1747_vm10, %v1733_v41, %v1457_v1  ;;  %6581 = vmatmul.mubr.msk.f32.gmra.mrb[16].mxu0 %vm1786_vm11, %v1765_v47  ;;  %v1734_v22 = vsel %vm1714_vm9, %v1701_v2, %v13922_v38  ;;  %v1638_v32 = vsel %vm1615_vm6, %v1605_v34, %v13925_v14  ;;  %v13929_v52 = vld [vmem:[#allocation33_spill] sm:$0xff]  ;;  %v1573_v57 = vsel %vm1549_vm4, %v1540_v5, %v13932_v17  ;;  %v13934_v31 = vld [vmem:[#allocation58_spill] sm:$0xff]  ;;  %v13935_v41 = vld [vmem:[#allocation59_spill] sm:$0xff] }
 0x266   : > { %6583 = vmatprep.mubr.msk.f32.mxu0 %vm1786_vm11, %v1766_v35  ;;  %v1541_v9 = vsel %vm1516_vm3, %v13929_v52, %v13928_v16  ;;  %v13931_v18 = vld [vmem:[#allocation25_spill] sm:$0xff]  ;;  %v1703_v46 = vsel %vm1681_vm8, %v1670_v55, %v13934_v31  ;;  %v13936_v1 = vld [vmem:[#allocation150_spill] sm:$0xff]  ;;  %v13937_v42 = vld [vmem:[#allocation151_spill] sm:$0xff] }
 0x267   : > { %v1459_v10 = vpop.permute.xlu1 %1458  ;;  %v1671_v6 = vsel %vm1648_vm7, %v1638_v32, %v13931_v18  ;;  %v1574_v56 = vsel %vm1549_vm4, %v1541_v9, %v13933_v59  ;;  %v1606_v15 = vsel %vm1582_vm5, %v1573_v57, %v13936_v1  ;;  %v13938_v26 = vld [vmem:[#allocation203_spill] sm:$0xff]  ;;  %v13939_v35 = vld [vmem:[#allocation204_spill] sm:$0xff]  ;;  %v13941_v44 = vld [vmem:[#allocation177_spill] sm:$0xff] }
 0x268   : > { %v1461_v60 = vpop.permute.xlu0 %1460  ;;  %v1767_v11 = vsel %vm1747_vm10, %v1734_v22, %v1459_v10  ;;  %v1704_v21 = vsel %vm1681_vm8, %v1671_v6, %v13935_v41  ;;  %v1607_v30 = vsel %vm1582_vm5, %v1574_v56, %v13937_v42  ;;  %v1736_v47 = vsel %vm1714_vm9, %v1703_v46, %v13938_v26  ;;  %v13940_v8 = vld [vmem:[#allocation176_spill] sm:$0xff]  ;;  %v13943_v48 = vld [vmem:[#allocation35_spill] sm:$0xff]  ;;  %v13944_v13 = vld [vmem:[#allocation93_spill] sm:$0xff] }
 0x269   : > { %v1768_v61 = vsel %vm1747_vm10, %v1735_v27, %v1461_v60  ;;  %6584 = vmatmul.mubr.msk.f32.gmra.mrb[18].mxu0 %vm1786_vm11, %v1767_v11  ;;  %v1737_v58 = vsel %vm1714_vm9, %v1704_v21, %v13939_v35  ;;  %v1639_v3 = vsel %vm1615_vm6, %v1606_v15, %v13940_v8  ;;  %v1640_v54 = vsel %vm1615_vm6, %v1607_v30, %v13941_v44  ;;  %v13942_v37 = vld [vmem:[#allocation92_spill] sm:$0xff]  ;;  %v13945_v12 = vld [vmem:[#allocation38_spill] sm:$0xff]  ;;  %v13947_v33 = vld [vmem:[#allocation29_spill] sm:$0xff] }
 0x26a   : > { %6586 = vmatprep.mubr.msk.f32.mxu0 %vm1786_vm11, %v1768_v61  ;;  %v1542_v62 = vsel %vm1516_vm3, %v13943_v48, %v13942_v37  ;;  %v1543_v50 = vsel %vm1516_vm3, %v13945_v12, %v13944_v13  ;;  %v13946_v2 = vld [vmem:[#allocation28_spill] sm:$0xff]  ;;  %v1673_v23 = vsel %vm1648_vm7, %v1640_v54, %v13947_v33  ;;  %v13949_v34 = vld [vmem:[#allocation125_spill] sm:$0xff]  ;;  %v13951_v27 = vld [vmem:[#allocation190_spill] sm:$0xff] }
 0x26b   : > { %v1463_v36 = vpop.permute.xlu1 %1462  ;;  %v1672_v39 = vsel %vm1648_vm7, %v1639_v3, %v13946_v2  ;;  %v13948_v20 = vld [vmem:[#allocation124_spill] sm:$0xff]  ;;  %v1576_v38 = vsel %vm1549_vm4, %v1543_v50, %v13949_v34  ;;  %v1706_v10 = vsel %vm1681_vm8, %v1673_v23, %v13951_v27  ;;  %v13953_v49 = vld [vmem:[#allocation153_spill] sm:$0xff]  ;;  %v13955_v61 = vld [vmem:[#allocation67_spill] sm:$0xff] }
 0x26c   : > { %v1465_v43 = vpop.permute.xlu0 %1464  ;;  %v1769_v29 = vsel %vm1747_vm10, %v1736_v47, %v1463_v36  ;;  %v1575_v28 = vsel %vm1549_vm4, %v1542_v62, %v13948_v20  ;;  %v13950_v22 = vld [vmem:[#allocation60_spill] sm:$0xff]  ;;  %v1609_v14 = vsel %vm1582_vm5, %v1576_v38, %v13953_v49  ;;  %v13954_v32 = vld [vmem:[#allocation205_spill] sm:$0xff]  ;;  %v1739_v25 = vsel %vm1714_vm9, %v1706_v10, %v13955_v61  ;;  %v13956_v16 = vld [vmem:[#allocation178_spill] sm:$0xff] }
 0x26d   : > { %v1770_v4 = vsel %vm1747_vm10, %v1737_v58, %v1465_v43  ;;  %6587 = vmatmul.mubr.msk.f32.gmra.mrb[20].mxu0 %vm1786_vm11, %v1769_v29  ;;  %v1705_v24 = vsel %vm1681_vm8, %v1672_v39, %v13950_v22  ;;  %v13952_v60 = vld [vmem:[#allocation152_spill] sm:$0xff]  ;;  %v13957_v9 = vld [vmem:[#allocation179_spill] sm:$0xff]  ;;  %v13958_v6 = vld [vmem:[#allocation94_spill] sm:$0xff] }
 0x26e   : > { %6589 = vmatprep.mubr.msk.f32.mxu0 %vm1786_vm11, %v1770_v4  ;;  %v1608_v19 = vsel %vm1582_vm5, %v1575_v28, %v13952_v60  ;;  %v1738_v11 = vsel %vm1714_vm9, %v1705_v24, %v13954_v32  ;;  %v1642_v7 = vsel %vm1615_vm6, %v1609_v14, %v13957_v9  ;;  %v13959_v17 = vld [vmem:[#allocation39_spill] sm:$0xff]  ;;  %v13962_v46 = vld [vmem:[#allocation32_spill] sm:$0xff]  ;;  %v13963_v21 = vld [vmem:[#allocation34_spill] sm:$0xff] }
 0x26f   : > { %v1467_v40 = vpop.permute.xlu1 %1466  ;;  %v1641_v52 = vsel %vm1615_vm6, %v1608_v19, %v13956_v16  ;;  %v1544_v57 = vsel %vm1516_vm3, %v13959_v17, %v13958_v6  ;;  %v13960_v59 = vld [vmem:[#allocation95_spill] sm:$0xff]  ;;  %v1675_v1 = vsel %vm1648_vm7, %v1642_v7, %v13963_v21  ;;  %v13964_v15 = vld [vmem:[#allocation126_spill] sm:$0xff]  ;;  %v13967_v58 = vld [vmem:[#allocation192_spill] sm:$0xff] }
 0x270   : > { %v1469_v5 = vpop.permute.xlu0 %1468  ;;  %v1771_v55 = vsel %vm1747_vm10, %v1738_v11, %v1467_v40  ;;  %v13961_v56 = vld [vmem:[#allocation43_spill] sm:$0xff]  ;;  %v1674_v41 = vsel %vm1648_vm7, %v1641_v52, %v13962_v46  ;;  %v1577_v42 = vsel %vm1549_vm4, %v1544_v57, %v13964_v15  ;;  %v1708_v36 = vsel %vm1681_vm8, %v1675_v1, %v13967_v58  ;;  %v13968_v43 = vld [vmem:[#allocation154_spill] sm:$0xff]  ;;  %v13971_v62 = vld [vmem:[#allocation180_spill] sm:$0xff] }
 0x271   : > { %v1772_v18 = vsel %vm1747_vm10, %v1739_v25, %v1469_v5  ;;  %v1545_v31 = vsel %vm1516_vm3, %v13961_v56, %v13960_v59  ;;  %6590 = vmatmul.mubr.msk.f32.gmra.mrb[22].mxu0 %vm1786_vm11, %v1771_v55  ;;  %v13965_v30 = vld [vmem:[#allocation127_spill] sm:$0xff]  ;;  %v1610_v8 = vsel %vm1582_vm5, %v1577_v42, %v13968_v43  ;;  %v1741_v4 = vsel %vm1714_vm9, %v1708_v36, %v9350_v0  ;;  %v13972_v12 = vld [vmem:[#allocation181_spill] sm:$0xff]  ;;  %v13973_v33 = vld [vmem:[#allocation96_spill] sm:$0xff] }
 0x272   : > { %v1578_v26 = vsel %vm1549_vm4, %v1545_v31, %v13965_v30  ;;  %v13966_v47 = vld [vmem:[#allocation191_spill] sm:$0xff]  ;;  %6592 = vmatprep.mubr.msk.f32.mxu0 %vm1786_vm11, %v1772_v18  ;;  %v1643_v13 = vsel %vm1615_vm6, %v1610_v8, %v13971_v62  ;;  %v13974_v23 = vld [vmem:[#allocation42_spill] sm:$0xff]  ;;  %v13975_v28 = vld [vmem:[#allocation97_spill] sm:$0xff]  ;;  %v6795_v15 = vunpack.i.l.bf16 %v9520_v53 }
 0x273   : > { %v1707_v35 = vsel %vm1681_vm8, %v1674_v41, %v13966_v47  ;;  %v13969_v3 = vld [vmem:[#allocation155_spill] sm:$0xff]  ;;  %v1471_v37 = vpop.permute.xlu1 %1470  ;;  %v1546_v20 = vsel %vm1516_vm3, %v13974_v23, %v13973_v33  ;;  %v13977_v38 = vld [vmem:[#allocation36_spill] sm:$0xff]  ;;  %v13979_v10 = vld [vmem:[#allocation98_spill] sm:$0xff] }
 0x274   : > { %v1611_v44 = vsel %vm1582_vm5, %v1578_v26, %v13969_v3  ;;  %v13970_v54 = vld [vmem:[#allocation99_spill] sm:$0xff]  ;;  %v1473_v48 = vpop.permute.xlu0 %1472  ;;  %v1676_v22 = vsel %vm1648_vm7, %v1643_v13, %v13977_v38  ;;  %v13978_v24 = vld [vmem:[#allocation40_spill] sm:$0xff]  ;;  %v13980_v60 = vld [vmem:[#allocation46_spill] sm:$0xff] }
 0x275   : > { %v1740_v29 = vsel %vm1714_vm9, %v1707_v35, %v13970_v54  ;;  %v1644_v50 = vsel %vm1615_vm6, %v1611_v44, %v13972_v12  ;;  %v1774_v39 = vsel %vm1747_vm10, %v1741_v4, %v1473_v48  ;;  %v13976_v34 = vld [vmem:[#allocation47_spill] sm:$0xff]  ;;  %v1548_v19 = vsel %vm1516_vm3, %v13980_v60, %v13979_v10  ;;  %v13981_v49 = vld [vmem:[#allocation37_spill] sm:$0xff]  ;;  %v13984_v40 = vld [vmem:[#allocation128_spill] sm:$0xff] }
 0x276   : > { %v1773_v2 = vsel %vm1747_vm10, %v1740_v29, %v1471_v37  ;;  %v1547_v0 = vsel %vm1516_vm3, %v13976_v34, %v13975_v28  ;;  %v1677_v27 = vsel %vm1648_vm7, %v1644_v50, %v13978_v24  ;;  %v1579_v14 = vsel %vm1549_vm4, %v1546_v20, %v13981_v49  ;;  %v13982_v32 = vld [vmem:[#allocation63_spill] sm:$0xff]  ;;  %v13983_v61 = vld [vmem:[#allocation193_spill] sm:$0xff]  ;;  %v13986_v6 = vld [vmem:[#allocation182_spill] sm:$0xff] }
 0x277   : > { %6593 = vmatmul.mubr.msk.f32.gmra.mrb[24].mxu0 %vm1786_vm11, %v1773_v2  ;;  %v1709_v11 = vsel %vm1681_vm8, %v1676_v22, %v13982_v32  ;;  %v1710_v25 = vsel %vm1681_vm8, %v1677_v27, %v13983_v61  ;;  %v1580_v5 = vsel %vm1549_vm4, %v1547_v0, %v13984_v40  ;;  %v13985_v16 = vld [vmem:[#allocation61_spill] sm:$0xff]  ;;  %v1475_v55 = vpop.permute.xlu1 %1474  ;;  %v13987_v57 = vld [vmem:[#allocation66_spill] sm:$0xff]  ;;  %v13991_v42 = vld [vmem:[#allocation64_spill] sm:$0xff]  ;;  %v6796_v29 = vunpack.i.h.bf16 %v9520_v53 }
 0x278   : > { %6595 = vmatprep.mubr.msk.f32.mxu0 %vm1786_vm11, %v1774_v39  ;;  %v1612_v52 = vsel %vm1582_vm5, %v1579_v14, %v13985_v16  ;;  %v1742_v9 = vsel %vm1714_vm9, %v1709_v11, %v9352_v45  ;;  %v1743_v7 = vsel %vm1714_vm9, %v1710_v25, %v9463_v63  ;;  %v1477_v18 = vpop.permute.xlu0 %1476  ;;  %v6790_v59 = vunpack.i.l.bf16 %v13987_v57  ;;  %v13988_v46 = vld [vmem:[#allocation129_spill] sm:$0xff]  ;;  %v13989_v21 = vld [vmem:[#allocation62_spill] sm:$0xff]  ;;  %v13992_v26 = vld [vmem:[#allocation183_spill] sm:$0xff] }
 0x279   : > { %v1645_v17 = vsel %vm1615_vm6, %v1612_v52, %v13986_v6  ;;  %v1775_v56 = vsel %vm1747_vm10, %v1742_v9, %v1475_v55  ;;  %v1776_v31 = vsel %vm1747_vm10, %v1743_v7, %v1477_v18  ;;  %v1581_v41 = vsel %vm1549_vm4, %v1548_v19, %v13988_v46  ;;  %v13990_v1 = vld [vmem:[#allocation41_spill] sm:$0xff]  ;;  %v13994_v43 = vld [vmem:[#allocation184_spill] sm:$0xff]  ;;  %v9932_v14 = vld [vmem:[%s13216_s2] ss:$0 sm:$0xff] }
 0x27a   : > { %v1613_v45 = vsel %vm1582_vm5, %v1580_v5, %v13989_v21  ;;  %v1678_v63 = vsel %vm1648_vm7, %v1645_v17, %v13990_v1  ;;  %v1614_v30 = vsel %vm1582_vm5, %v1581_v41, %v13991_v42  ;;  %v13993_v35 = vld [vmem:[#allocation65_spill] sm:$0xff]  ;;  %v6791_v36 = vunpack.i.h.bf16 %v13987_v57  ;;  %v13995_v3 = vld [vmem:[#allocation44_spill] sm:$0xff] }
 0x27b   : > { %6596 = vmatmul.mubr.msk.f32.gmra.mrb[26].mxu0 %vm1786_vm11, %v1775_v56  ;;  %v1646_v47 = vsel %vm1615_vm6, %v1613_v45, %v13992_v26  ;;  %v1711_v58 = vsel %vm1681_vm8, %v1678_v63, %v13993_v35  ;;  %v1647_v8 = vsel %vm1615_vm6, %v1614_v30, %v13994_v43  ;;  %v1479_v4 = vpop.permute.xlu1 %1478  ;;  %v13997_v50 = vld [vmem:[#allocation45_spill] sm:$0xff]  ;;  %v13998_v20 = vmov 0.0  }
 0x27c   : > { %6598 = vmatprep.mubr.msk.f32.mxu0 %vm1786_vm11, %v1776_v31  ;;  %v1679_v44 = vsel %vm1648_vm7, %v1646_v47, %v13995_v3  ;;  %v1744_v54 = vsel %vm1714_vm9, %v1711_v58, %v9465_v51  ;;  %v9889_v37 = vpop.permute.xlu0 %6798  ;;  %v1680_v2 = vsel %vm1648_vm7, %v1647_v8, %v13997_v50  ;;  %v9910_v28 = vrot.slane %v13998_v20, 6 }
 0x27d   : > { %13996 = vst [vmem:[#allocation69_spill] sm:$0xff] %v9889_v37  ;;  %v1777_v48 = vsel %vm1747_vm10, %v1744_v54, %v1479_v4  ;;  %v13338_v62 = vunpack.i.h.bf16 %v9889_v37  ;;  %v13339_v13 = vunpack.i.l.bf16 %v9889_v37  ;;  %v1712_v12 = vsel %vm1681_vm8, %v1679_v44, %v6790_v59 }
 0x27e   : > { %v1745_v51 = vsel %vm1714_vm9, %v1712_v12, %v6795_v15  ;;  %v1713_v39 = vsel %vm1681_vm8, %v1680_v2, %v6791_v36  ;;  %13999 = vst [vmem:[#allocation7_spill] sm:$0xff] %v9910_v28  ;;  %v9914_v34 = vsel %vm2319_vm12, 0.0, %v9910_v28  ;;  %v9918_v0 = vsel %vm2319_vm12, %v9910_v28, 0.0 }
 0x27f   : > { %6599 = vmatmul.mubr.msk.f32.gmra.mrb[28].mxu0 %vm1786_vm11, %v1777_v48  ;;  %v1778_v53 = vsel %vm1747_vm10, %v1745_v51, %v13339_v13  ;;  %v1746_v33 = vsel %vm1714_vm9, %v1713_v39, %v6796_v29  ;;  %14000 = vst [vmem:[#allocation70_spill] sm:$0xff] %v9914_v34  ;;  %v2482_v38 = vrot.slane %v9914_v34, 2  ;;  %v2483_v22 = vrot.slane %v9910_v28, 2  ;;  %v2141_v49 = vpop.permute.xlu1 %2140 }
 0x280   : > { %6601 = vmatprep.mubr.msk.f32.mxu0 %vm1786_vm11, %v1778_v53  ;;  %v1779_v23 = vsel %vm1747_vm10, %v1746_v33, %v13338_v62  ;;  %v2485_v24 = vrot.slane %v9918_v0, 2  ;;  %v2143_v19 = vpop.permute.xlu0 %2142  ;;  %vm3495_vm9 = vcmask 916480  }
 0x281   : > { %v2484_v27 = vsel %vm751_vm2, %v2482_v38, %v2483_v22 }
 0x282   : > { %v2486_v10 = vsel %vm751_vm2, %v2483_v22, %v2485_v24 }
 0x283   : > { %6602 = vmatmul.mubr.msk.f32.gmra.mrb[30].mxu0 %vm1786_vm11, %v1779_v23  ;;  %v9925_v60 = vpack.i.bf16 %v2486_v10, %v2484_v27  ;;  %v2145_v40 = vpop.permute.xlu1 %2144 }
 0x284   : > { %v2147_v11 = vpop.permute.xlu0 %2146 }
 0x285   : > { %14001 = vst [vmem:[#allocation8_spill] sm:$0xff] %v9925_v60  ;;  %6803 = vrot.lane.b32.xlu1 %v9925_v60, %s7737_s16 }
 0x287   : > { %v2149_v46 = vpop.permute.xlu1 %2148 }
 0x288   : > { %v2151_v59 = vpop.permute.xlu0 %2150 }
 0x28b   : > { %v2153_v8 = vpop.permute.xlu1 %2152 }
 0x28c   : > { %v2155_v47 = vpop.permute.xlu0 %2154 }
 0x28f   : > { %v2157_v38 = vpop.permute.xlu1 %2156 }
 0x290   : > { %v9981_v53 = vpop.permute.xlu0 %2158 }
 0x311   : > { %v6558_v32 = vpop.f32.mrb[0].mxu0 }
 0x312   : > { %v1955_v61 = vadd.f32 %v6558_v32, %v9932_v14  ;;  %v1949_v25 = vpop.f32.mrb[1].mxu0 }
 0x313   : > { %v1950_v5 = vadd.f32 %v9932_v14, %v1949_v25 }
 0x314   : > { %v2109_v16 = vmax.f32 %v1955_v61, 0.0 }
 0x315   : > { %v2108_v52 = vmax.f32 %v1950_v5, 0.0  ;;  %v6561_v9 = vpop.f32.mrb[2].mxu0 }
 0x316   : > { %v1965_v7 = vadd.f32 %v6561_v9, %v9932_v14  ;;  %v9938_v55 = vsel %vm1516_vm3, %v2109_v16, %v2143_v19  ;;  %v1959_v18 = vpop.f32.mrb[3].mxu0 }
 0x317   : > { %14002 = vst [vmem:[#allocation71_spill] sm:$0xff] %v9938_v55  ;;  %v2323_v6 = vrot.slane %v9938_v55, 6  ;;  %v9942_v17 = vsel %vm1516_vm3, %v2108_v52, %v2141_v49  ;;  %v1960_v57 = vadd.f32 %v9932_v14, %v1959_v18 }
 0x318   : > { %14003 = vst [vmem:[#allocation130_spill] sm:$0xff] %v9942_v17  ;;  %v2111_v56 = vmax.f32 %v1965_v7, 0.0  ;;  %v2322_v31 = vrot.slane %v9942_v17, 6 }
 0x319   : > { %v9947_v41 = vsel %vm2319_vm12, %v2323_v6, 0.0  ;;  %v2110_v21 = vmax.f32 %v1960_v57, 0.0  ;;  %v6564_v45 = vpop.f32.mrb[4].mxu0  ;;  %v2163_v57 = vpop.permute.xlu0 %2162 }
 0x31a   : > { %v2490_v1 = vrot.slane %v9947_v41, 2  ;;  %v9951_v63 = vsel %vm2319_vm12, %v2322_v31, %v2323_v6  ;;  %v9954_v15 = vsel %vm2319_vm12, 0.0, %v2322_v31  ;;  %v1969_v42 = vpop.f32.mrb[5].mxu0  ;;  %v1975_v35 = vadd.f32 %v6564_v45, %v9932_v14 }
 0x31b   : > { %v2487_v30 = vrot.slane %v9954_v15, 2  ;;  %v2488_v26 = vrot.slane %v9951_v63, 2  ;;  %v9960_v58 = vsel %vm1516_vm3, %v2111_v56, %v2147_v11  ;;  %v9963_v36 = vsel %vm1516_vm3, %v2110_v21, %v2145_v40  ;;  %v2161_v21 = vpop.permute.xlu1 %2160 }
 0x31c   : > { %14004 = vst [vmem:[#allocation131_spill] sm:$0xff] %v9960_v58  ;;  %14005 = vst [vmem:[#allocation72_spill] sm:$0xff] %v9963_v36  ;;  %v1970_v43 = vadd.f32 %v9932_v14, %v1969_v42  ;;  %v2326_v3 = vrot.slane %v9960_v58, 6  ;;  %v2325_v44 = vrot.slane %v9963_v36, 6  ;;  %v2113_v4 = vmax.f32 %v1975_v35, 0.0 }
 0x31d   : > { %v2489_v54 = vsel %vm751_vm2, %v2487_v30, %v2488_v26  ;;  %v2491_v29 = vsel %vm751_vm2, %v2488_v26, %v2490_v1 }
 0x31e   : > { %v2112_v48 = vmax.f32 %v1970_v43, 0.0  ;;  %v9970_v12 = vpack.i.bf16 %v2491_v29, %v2489_v54  ;;  %v9973_v50 = vsel %vm2319_vm12, %v2326_v3, 0.0  ;;  %v9976_v2 = vsel %vm2319_vm12, %v2325_v44, %v2326_v3 }
 0x31f   : > { %v9979_v51 = vsel %vm2319_vm12, 0.0, %v2325_v44  ;;  %v2495_v39 = vrot.slane %v9973_v50, 2  ;;  %v2493_v23 = vrot.slane %v9976_v2, 2  ;;  %v9989_v22 = vsel %vm1516_vm3, %v2113_v4, %v2151_v59 }
 0x320   : > { %14006 = vst [vmem:[#allocation156_spill] sm:$0xff] %v9970_v12  ;;  %v2492_v33 = vrot.slane %v9979_v51, 2  ;;  %6808 = vrot.lane.b32.xlu0 %v9970_v12, %s7737_s16  ;;  %14007 = vst [vmem:[#allocation157_spill] sm:$0xff] %v9989_v22  ;;  %v9992_v24 = vsel %vm1516_vm3, %v2112_v48, %v2149_v46  ;;  %v2329_v10 = vrot.slane %v9989_v22, 6 }
 0x321   : > { %14008 = vst [vmem:[#allocation100_spill] sm:$0xff] %v9992_v24  ;;  %v6567_v27 = vpop.f32.mrb[6].mxu0  ;;  %v2328_v19 = vrot.slane %v9992_v24, 6  ;;  %v2496_v25 = vsel %vm751_vm2, %v2493_v23, %v2495_v39 }
 0x322   : > { %v1985_v49 = vadd.f32 %v6567_v27, %v9932_v14  ;;  %v1979_v32 = vpop.f32.mrb[7].mxu0  ;;  %v2494_v61 = vsel %vm751_vm2, %v2492_v33, %v2493_v23  ;;  %v2438_v40 = vsel %vm2319_vm12, %v2329_v10, 0.0  ;;  %v2167_v23 = vpop.permute.xlu0 %2166 }
 0x323   : > { %v1980_v11 = vadd.f32 %v9932_v14, %v1979_v32  ;;  %v10002_v5 = vsel %vm2319_vm12, %v2328_v19, %v2329_v10  ;;  %v10005_v16 = vsel %vm2319_vm12, 0.0, %v2328_v19  ;;  %v2500_v9 = vrot.slane %v2438_v40, 2 }
 0x324   : > { %v2115_v52 = vmax.f32 %v1985_v49, 0.0  ;;  %v2666_v7 = vrot.slane %v2438_v40, 4  ;;  %v2497_v18 = vrot.slane %v10005_v16, 2  ;;  %v2498_v6 = vrot.slane %v10002_v5, 2  ;;  %v2165_v49 = vpop.permute.xlu1 %2164 }
 0x325   : > { %v2114_v59 = vmax.f32 %v1980_v11, 0.0  ;;  %v10009_v56 = vpack.i.bf16 %v2496_v25, %v2494_v61  ;;  %v2663_v46 = vrot.slane %v10005_v16, 4  ;;  %v2664_v1 = vrot.slane %v10002_v5, 4 }
 0x326   : > { %v10012_v31 = vsel %vm1516_vm3, %v2115_v52, %v2155_v47  ;;  %v2499_v42 = vsel %vm751_vm2, %v2497_v18, %v2498_v6  ;;  %v2501_v30 = vsel %vm751_vm2, %v2498_v6, %v2500_v9 }
 0x327   : > { %14009 = vst [vmem:[#allocation102_spill] sm:$0xff] %v10009_v56  ;;  %14010 = vst [vmem:[#allocation132_spill] sm:$0xff] %v10012_v31  ;;  %v2332_v45 = vrot.slane %v10012_v31, 6  ;;  %6813 = vrot.lane.b32.xlu1 %v10009_v56, %s7737_s16  ;;  %v10022_v26 = vsel %vm1516_vm3, %v2114_v59, %v2153_v8  ;;  %v10024_v35 = vpack.i.bf16 %v2501_v30, %v2499_v42 }
 0x328   : > { %14011 = vst [vmem:[#allocation49_spill] sm:$0xff] %v10022_v26  ;;  %v6570_v47 = vpop.f32.mrb[8].mxu0  ;;  %v2331_v3 = vrot.slane %v10022_v26, 6  ;;  %v10031_v44 = vsel %vm2647_vm13, %v2663_v46, %v2664_v1  ;;  %v10034_v54 = vsel %vm2647_vm13, %v2664_v1, %v2666_v7 }
 0x329   : > { %14012 = vst [vmem:[#allocation158_spill] sm:$0xff] %v10024_v35  ;;  %v10027_v43 = vsel %vm2319_vm12, %v2332_v45, 0.0  ;;  %14013 = vst [vmem:[#allocation103_spill] sm:$0xff] %v10034_v54  ;;  %v1989_v29 = vpop.f32.mrb[9].mxu0  ;;  %6359 = vmatprep.mubr.msk.f32.mxu1 %vm1549_vm4, %v10031_v44  ;;  %6818 = vrot.lane.b32.xlu0 %v10024_v35, %s7737_s16  ;;  %v1995_v39 = vadd.f32 %v6570_v47, %v9932_v14 }
 0x32a   : > { %v2505_v4 = vrot.slane %v10027_v43, 2  ;;  %v10042_v8 = vsel %vm2319_vm12, %v2331_v3, %v2332_v45  ;;  %v10045_v48 = vsel %vm2319_vm12, 0.0, %v2331_v3  ;;  %v1990_v33 = vadd.f32 %v9932_v14, %v1989_v29  ;;  %v2171_v3 = vpop.permute.xlu0 %2170 }
 0x32b   : > { %v2502_v27 = vrot.slane %v10045_v48, 2  ;;  %v2503_v10 = vrot.slane %v10042_v8, 2  ;;  %v2117_v32 = vmax.f32 %v1995_v39, 0.0  ;;  %v2169_v39 = vpop.permute.xlu1 %2168 }
 0x32c   : > { %v6573_v19 = vpop.f32.mrb[10].mxu0  ;;  %v2116_v11 = vmax.f32 %v1990_v33, 0.0 }
 0x32d   : > { %v2005_v61 = vadd.f32 %v6573_v19, %v9932_v14  ;;  %v1999_v25 = vpop.f32.mrb[11].mxu0  ;;  %v2504_v52 = vsel %vm751_vm2, %v2502_v27, %v2503_v10  ;;  %v2506_v9 = vsel %vm751_vm2, %v2503_v10, %v2505_v4  ;;  %v10057_v18 = vsel %vm1516_vm3, %v2117_v32, %v9981_v53 }
 0x32e   : > { %v2000_v40 = vadd.f32 %v9932_v14, %v1999_v25  ;;  %14014 = vst [vmem:[#allocation104_spill] sm:$0xff] %v10057_v18  ;;  %v10060_v6 = vsel %vm1516_vm3, %v2116_v11, %v2157_v38  ;;  %v10062_v59 = vpack.i.bf16 %v2506_v9, %v2504_v52  ;;  %v2335_v46 = vrot.slane %v10057_v18, 6 }
 0x32f   : > { %v2119_v7 = vmax.f32 %v2005_v61, 0.0  ;;  %14015 = vst [vmem:[#allocation133_spill] sm:$0xff] %v10060_v6  ;;  %v2334_v45 = vrot.slane %v10060_v6, 6  ;;  %v2173_v13 = vpop.permute.xlu1 %2172 }
 0x330   : > { %14016 = vst [vmem:[#allocation134_spill] sm:$0xff] %v10062_v59  ;;  %v6576_v1 = vpop.f32.mrb[12].mxu0  ;;  %v2118_v42 = vmax.f32 %v2000_v40, 0.0  ;;  %6823 = vrot.lane.b32.xlu1 %v10062_v59, %s7737_s16  ;;  %v10073_v38 = vsel %vm2319_vm12, %v2335_v46, 0.0 }
 0x331   : > { %v2015_v30 = vadd.f32 %v6576_v1, %v9932_v14  ;;  %v10070_v47 = vsel %vm1516_vm3, %v2119_v7, %v2163_v57  ;;  %v2009_v53 = vpop.f32.mrb[13].mxu0  ;;  %v10076_v29 = vsel %vm2319_vm12, %v2334_v45, %v2335_v46  ;;  %v10079_v4 = vsel %vm2319_vm12, 0.0, %v2334_v45 }
 0x332   : > { %14017 = vst [vmem:[#allocation73_spill] sm:$0xff] %v10070_v47  ;;  %v2510_v33 = vrot.slane %v10073_v38, 2  ;;  %v2507_v27 = vrot.slane %v10079_v4, 2  ;;  %v2508_v10 = vrot.slane %v10076_v29, 2  ;;  %v2338_v19 = vrot.slane %v10070_v47, 6 }
 0x333   : > { %v2121_v57 = vmax.f32 %v2015_v30, 0.0  ;;  %v10086_v11 = vsel %vm1516_vm3, %v2118_v42, %v2161_v21  ;;  %v2010_v61 = vadd.f32 %v9932_v14, %v2009_v53  ;;  %v2175_v30 = vpop.permute.xlu0 %2174 }
 0x334   : > { %v6579_v32 = vpop.f32.mrb[14].mxu0  ;;  %14018 = vst [vmem:[#allocation74_spill] sm:$0xff] %v10086_v11  ;;  %v2337_v40 = vrot.slane %v10086_v11, 6  ;;  %v2509_v45 = vsel %vm751_vm2, %v2507_v27, %v2508_v10  ;;  %v2511_v1 = vsel %vm751_vm2, %v2508_v10, %v2510_v33 }
 0x335   : > { %v2019_v25 = vpop.f32.mrb[15].mxu0  ;;  %v2025_v52 = vadd.f32 %v6579_v32, %v9932_v14  ;;  %v10092_v9 = vsel %vm1516_vm3, %v2121_v57, %v2167_v23  ;;  %v2120_v46 = vmax.f32 %v2010_v61, 0.0  ;;  %v10104_v23 = vsel %vm2319_vm12, %v2338_v19, 0.0 }
 0x336   : > { %14019 = vst [vmem:[#allocation105_spill] sm:$0xff] %v10092_v9  ;;  %v2020_v7 = vadd.f32 %v9932_v14, %v2019_v25  ;;  %v10098_v21 = vsel %vm2319_vm12, %v2337_v40, %v2338_v19  ;;  %v10101_v42 = vsel %vm2319_vm12, 0.0, %v2337_v40  ;;  %v2341_v27 = vrot.slane %v10092_v9, 6 }
 0x337   : > { %14020 = vst [vmem:[#allocation106_spill] sm:$0xff] %v10098_v21  ;;  %14021 = vst [vmem:[#allocation135_spill] sm:$0xff] %v10101_v42  ;;  %v2123_v53 = vmax.f32 %v2025_v52, 0.0  ;;  %v2512_v57 = vrot.slane %v10101_v42, 2  ;;  %v2513_v33 = vrot.slane %v10098_v21, 2  ;;  %v10110_v10 = vsel %vm1516_vm3, %v2120_v46, %v2165_v49  ;;  %v2179_v9 = vpop.permute.xlu0 %2178 }
 0x338   : > { %v2122_v62 = vmax.f32 %v2020_v7, 0.0  ;;  %v6582_v32 = vpop.f32.mrb[16].mxu0  ;;  %14022 = vst [vmem:[#allocation136_spill] sm:$0xff] %v10110_v10  ;;  %v10112_v25 = vpack.i.bf16 %v2511_v1, %v2509_v45  ;;  %v2340_v52 = vrot.slane %v10110_v10, 6  ;;  %v2515_v19 = vrot.slane %v10104_v23, 2 }
 0x339   : > { %v2029_v61 = vpop.f32.mrb[17].mxu0  ;;  %v2035_v40 = vadd.f32 %v6582_v32, %v9932_v14  ;;  %v10117_v7 = vsel %vm1516_vm3, %v2123_v53, %v2171_v3  ;;  %v10128_v45 = vsel %vm2319_vm12, %v2341_v27, 0.0 }
 0x33a   : > { %14023 = vst [vmem:[#allocation159_spill] sm:$0xff] %v10112_v25  ;;  %14024 = vst [vmem:[#allocation160_spill] sm:$0xff] %v10117_v7  ;;  %6828 = vrot.lane.b32.xlu0 %v10112_v25, %s7737_s16  ;;  %v2344_v37 = vrot.slane %v10117_v7, 6  ;;  %v10124_v20 = vsel %vm1516_vm3, %v2122_v62, %v2169_v39  ;;  %v2030_v49 = vadd.f32 %v9932_v14, %v2029_v61  ;;  %v10134_v3 = vsel %vm2319_vm12, 0.0, %v2340_v52  ;;  %v2177_v61 = vpop.permute.xlu1 %2176 }
 0x33b   : > { %14025 = vst [vmem:[#allocation75_spill] sm:$0xff] %v10124_v20  ;;  %v10131_v1 = vsel %vm2319_vm12, %v2340_v52, %v2341_v27  ;;  %14027 = vst [vmem:[#allocation107_spill] sm:$0xff] %v10134_v3  ;;  %v2343_v53 = vrot.slane %v10124_v20, 6  ;;  %v2517_v7 = vrot.slane %v10134_v3, 2  ;;  %v2125_v62 = vmax.f32 %v2035_v40, 0.0 }
 0x33c   : > { %v6585_v46 = vpop.f32.mrb[18].mxu0  ;;  %14026 = vst [vmem:[#allocation101_spill] sm:$0xff] %v10131_v1  ;;  %v2514_v39 = vsel %vm751_vm2, %v2512_v57, %v2513_v33  ;;  %v2518_v10 = vrot.slane %v10131_v1, 2  ;;  %v2124_v52 = vmax.f32 %v2030_v49, 0.0  ;;  %v2520_v11 = vrot.slane %v10128_v45, 2 }
 0x33d   : > { %v2039_v32 = vpop.f32.mrb[19].mxu0  ;;  %v10141_v47 = vsel %vm2319_vm12, %v2343_v53, %v2344_v37  ;;  %v10144_v27 = vsel %vm2319_vm12, 0.0, %v2343_v53  ;;  %v10148_v20 = vsel %vm2319_vm12, %v2344_v37, 0.0  ;;  %v2516_v6 = vsel %vm751_vm2, %v2513_v33, %v2515_v19  ;;  %v2183_v19 = vpop.permute.xlu0 %2182 }
 0x33e   : > { %14028 = vst [vmem:[#allocation137_spill] sm:$0xff] %v10141_v47  ;;  %14029 = vst [vmem:[#allocation161_spill] sm:$0xff] %v10144_v27  ;;  %v2522_v40 = vrot.slane %v10144_v27, 2  ;;  %v2523_v57 = vrot.slane %v10141_v47, 2  ;;  %v2045_v31 = vadd.f32 %v6585_v46, %v9932_v14  ;;  %v10154_v22 = vpack.i.bf16 %v2516_v6, %v2514_v39 }
 0x33f   : > { %v10157_v53 = vsel %vm1516_vm3, %v2125_v62, %v2175_v30  ;;  %v10160_v49 = vsel %vm1516_vm3, %v2124_v52, %v2173_v13  ;;  %v2040_v37 = vadd.f32 %v9932_v14, %v2039_v32  ;;  %v2519_v33 = vsel %vm751_vm2, %v2517_v7, %v2518_v10  ;;  %v2181_v32 = vpop.permute.xlu1 %2180 }
 0x340   : > { %v6588_v18 = vpop.f32.mrb[20].mxu0  ;;  %14030 = vst [vmem:[#allocation76_spill] sm:$0xff] %v10154_v22  ;;  %14031 = vst [vmem:[#allocation77_spill] sm:$0xff] %v10157_v53  ;;  %v2127_v24 = vmax.f32 %v2045_v31, 0.0  ;;  %v2347_v58 = vrot.slane %v10157_v53, 6  ;;  %v2346_v36 = vrot.slane %v10160_v49, 6  ;;  %6833 = vrot.lane.b32.xlu1 %v10154_v22, %s7737_s16  ;;  %v2521_v30 = vsel %vm751_vm2, %v2518_v10, %v2520_v11 }
 0x341   : > { %v2049_v26 = vpop.f32.mrb[21].mxu0  ;;  %14032 = vst [vmem:[#allocation108_spill] sm:$0xff] %v10160_v49  ;;  %v2126_v6 = vmax.f32 %v2040_v37, 0.0  ;;  %v2055_v46 = vadd.f32 %v6588_v18, %v9932_v14  ;;  %v2525_v31 = vrot.slane %v10148_v20, 2  ;;  %v10178_v52 = vpack.i.bf16 %v2521_v30, %v2519_v33 }
 0x342   : > { %v2050_v13 = vadd.f32 %v9932_v14, %v2049_v26  ;;  %v10173_v39 = vsel %vm2319_vm12, %v2347_v58, 0.0  ;;  %v10176_v7 = vsel %vm2319_vm12, 0.0, %v2346_v36  ;;  %v10181_v37 = vsel %vm2319_vm12, %v2346_v36, %v2347_v58 }
 0x343   : > { %14033 = vst [vmem:[#allocation109_spill] sm:$0xff] %v10176_v7  ;;  %14034 = vst [vmem:[#allocation138_spill] sm:$0xff] %v10178_v52  ;;  %v2530_v18 = vrot.slane %v10173_v39, 2  ;;  %v2527_v26 = vrot.slane %v10176_v7, 2  ;;  %6838 = vrot.lane.b32.xlu0 %v10178_v52, %s7737_s16  ;;  %v2129_v11 = vmax.f32 %v2055_v46, 0.0  ;;  %v10188_v10 = vsel %vm1516_vm3, %v2127_v24, %v2179_v9  ;;  %v2187_v24 = vpop.permute.xlu0 %2186 }
 0x344   : > { %v6591_v62 = vpop.f32.mrb[22].mxu0  ;;  %14035 = vst [vmem:[#allocation139_spill] sm:$0xff] %v10181_v37  ;;  %14036 = vst [vmem:[#allocation162_spill] sm:$0xff] %v10188_v10  ;;  %v2350_v49 = vrot.slane %v10188_v10, 6  ;;  %v10192_v33 = vsel %vm1516_vm3, %v2126_v6, %v2177_v61  ;;  %v2128_v30 = vmax.f32 %v2050_v13, 0.0  ;;  %v2524_v58 = vsel %vm751_vm2, %v2522_v40, %v2523_v57  ;;  %v2185_v13 = vpop.permute.xlu1 %2184 }
 0x345   : > { %v2059_v53 = vpop.f32.mrb[23].mxu0  ;;  %14037 = vst [vmem:[#allocation163_spill] sm:$0xff] %v10192_v33  ;;  %v2349_v55 = vrot.slane %v10192_v33, 6  ;;  %v2526_v17 = vsel %vm751_vm2, %v2523_v57, %v2525_v31  ;;  %v2065_v60 = vadd.f32 %v6591_v62, %v9932_v14  ;;  %v10199_v46 = vsel %vm1516_vm3, %v2129_v11, %v2183_v19 }
 0x346   : > { %14038 = vst [vmem:[#allocation78_spill] sm:$0xff] %v10199_v46  ;;  %v2528_v10 = vrot.slane %v10181_v37, 2  ;;  %v10203_v61 = vsel %vm2319_vm12, %v2350_v49, 0.0  ;;  %v10205_v6 = vpack.i.bf16 %v2526_v17, %v2524_v58  ;;  %v10208_v40 = vsel %vm1516_vm3, %v2128_v30, %v2181_v32 }
 0x347   : > { %14040 = vst [vmem:[#allocation110_spill] sm:$0xff] %v10208_v40  ;;  %v10211_v57 = vsel %vm2319_vm12, %v2349_v55, %v2350_v49  ;;  %v10214_v62 = vsel %vm2319_vm12, 0.0, %v2349_v55  ;;  %v2353_v19 = vrot.slane %v10199_v46, 6  ;;  %v2535_v11 = vrot.slane %v10203_v61, 2 }
 0x348   : > { %14039 = vst [vmem:[#allocation79_spill] sm:$0xff] %v10205_v6  ;;  %14041 = vst [vmem:[#allocation111_spill] sm:$0xff] %v10211_v57  ;;  %6843 = vrot.lane.b32.xlu1 %v10205_v6, %s7737_s16  ;;  %v2131_v17 = vmax.f32 %v2065_v60, 0.0  ;;  %v2352_v58 = vrot.slane %v10208_v40, 6  ;;  %v2060_v32 = vadd.f32 %v9932_v14, %v2059_v53  ;;  %v2532_v49 = vrot.slane %v10214_v62, 2  ;;  %v2191_v40 = vpop.permute.xlu0 %2190 }
 0x349   : > { %14042 = vst [vmem:[#allocation51_spill] sm:$0xff] %v10214_v62  ;;  %v2533_v33 = vrot.slane %v10211_v57, 2  ;;  %v2529_v55 = vsel %vm751_vm2, %v2527_v26, %v2528_v10  ;;  %v2531_v46 = vsel %vm751_vm2, %v2528_v10, %v2530_v18  ;;  %v10235_v53 = vsel %vm2319_vm12, %v2353_v19, 0.0  ;;  %v2189_v26 = vpop.permute.xlu1 %2188 }
 0x34a   : > { %v6594_v36 = vpop.f32.mrb[24].mxu0  ;;  %v10227_v52 = vsel %vm2319_vm12, %v2352_v58, %v2353_v19  ;;  %v10230_v6 = vsel %vm2319_vm12, 0.0, %v2352_v58  ;;  %v2130_v60 = vmax.f32 %v2060_v32, 0.0  ;;  %v10232_v22 = vpack.i.bf16 %v2531_v46, %v2529_v55 }
 0x34b   : > { %v2069_v9 = vpop.f32.mrb[25].mxu0  ;;  %14043 = vst [vmem:[#allocation140_spill] sm:$0xff] %v10227_v52  ;;  %14044 = vst [vmem:[#allocation164_spill] sm:$0xff] %v10230_v6  ;;  %v2537_v25 = vrot.slane %v10230_v6, 2  ;;  %v2538_v59 = vrot.slane %v10227_v52, 2  ;;  %v2075_v18 = vadd.f32 %v6594_v36, %v9932_v14  ;;  %v10245_v10 = vsel %vm1516_vm3, %v2131_v17, %v2187_v24 }
 0x34c   : > { %14045 = vst [vmem:[#allocation165_spill] sm:$0xff] %v10232_v22  ;;  %6848 = vrot.lane.b32.xlu0 %v10232_v22, %s7737_s16  ;;  %14047 = vst [vmem:[#allocation81_spill] sm:$0xff] %v10245_v10  ;;  %v10248_v46 = vsel %vm1516_vm3, %v2130_v60, %v2185_v13  ;;  %v2070_v19 = vadd.f32 %v9932_v14, %v2069_v9  ;;  %v2356_v32 = vrot.slane %v10245_v10, 6  ;;  %v2540_v13 = vrot.slane %v10235_v53, 2 }
 0x34d   : > { %14048 = vst [vmem:[#allocation9_spill] sm:$0xff] %v10248_v46  ;;  %v2355_v55 = vrot.slane %v10248_v46, 6  ;;  %v2536_v22 = vsel %vm751_vm2, %v2533_v33, %v2535_v11  ;;  %v2133_v35 = vmax.f32 %v2075_v18, 0.0 }
 0x34e   : > { %v6597_v31 = vpop.f32.mrb[26].mxu0  ;;  %v2132_v36 = vmax.f32 %v2070_v19, 0.0  ;;  %v10262_v9 = vsel %vm2319_vm12, %v2356_v32, 0.0 }
 0x34f   : > { %v2079_v30 = vpop.f32.mrb[27].mxu0  ;;  %v2085_v24 = vadd.f32 %v6597_v31, %v9932_v14  ;;  %v10265_v17 = vsel %vm2319_vm12, 0.0, %v2355_v55  ;;  %v2545_v31 = vrot.slane %v10262_v9, 2  ;;  %v10280_v18 = vsel %vm1516_vm3, %v2133_v35, %v2191_v40 }
 0x350   : > { %14050 = vst [vmem:[#allocation112_spill] sm:$0xff] %v10265_v17  ;;  %v2080_v60 = vadd.f32 %v9932_v14, %v2079_v30  ;;  %v2542_v11 = vrot.slane %v10265_v17, 2  ;;  %14054 = vst [vmem:[#allocation52_spill] sm:$0xff] %v10280_v18  ;;  %v2193_v14 = vpop.permute.xlu1 %2192  ;;  %v2359_v30 = vrot.slane %v10280_v18, 6  ;;  %v10284_v19 = vsel %vm1516_vm3, %v2132_v36, %v2189_v26 }
 0x351   : > { %14055 = vst [vmem:[#allocation141_spill] sm:$0xff] %v10284_v19 }
 0x352   : > { %v10239_v56 = vpop.f32.mrb[28].mxu0  ;;  %v10294_v35 = vsel %vm2319_vm12, %v2359_v30, 0.0 }
 0x353   : > { %14046 = vst [vmem:[#allocation80_spill] sm:$0xff] %v10239_v56  ;;  %v10251_v58 = vpop.f32.mrb[29].mxu0  ;;  %v2534_v56 = vsel %vm751_vm2, %v2532_v49, %v2533_v33  ;;  %v10271_v33 = vsel %vm2319_vm12, %v2355_v55, %v2356_v32  ;;  %v2135_v49 = vmax.f32 %v2085_v24, 0.0  ;;  %v2134_v32 = vmax.f32 %v2080_v60, 0.0 }
 0x354   : > { %14049 = vst [vmem:[#allocation10_spill] sm:$0xff] %v10251_v58  ;;  %v10257_v12 = vpack.i.bf16 %v2536_v22, %v2534_v56  ;;  %14052 = vst [vmem:[#allocation48_spill] sm:$0xff] %v10271_v33  ;;  %v2195_v22 = vpop.permute.xlu0 %2194  ;;  %v2539_v55 = vsel %vm751_vm2, %v2537_v25, %v2538_v59  ;;  %v2543_v10 = vrot.slane %v10271_v33, 2 }
 0x355   : > { %v10291_v24 = vsel %vm1516_vm3, %v2135_v49, %v2195_v22  ;;  %v10300_v36 = vsel %vm1516_vm3, %v2134_v32, %v2193_v14  ;;  %v2550_v22 = vrot.slane %v10294_v35, 2 }
 0x356   : > { %v10268_v46 = vpop.f32.mrb[30].mxu0  ;;  %6853 = vrot.lane.b32.xlu1 %v10257_v12, %s7737_s16  ;;  %14056 = vst [vmem:[#allocation68_spill] sm:$0xff] %v10291_v24  ;;  %v2362_v26 = vrot.slane %v10291_v24, 6  ;;  %14058 = vst [vmem:[#allocation166_spill] sm:$0xff] %v10300_v36  ;;  %v2361_v14 = vrot.slane %v10300_v36, 6  ;;  %v2544_v32 = vsel %vm751_vm2, %v2542_v11, %v2543_v10 }
 0x357   : > { %14051 = vst [vmem:[#allocation113_spill] sm:$0xff] %v10268_v46  ;;  %v10275_v56 = vpop.f32.mrb[31].mxu0  ;;  %v2541_v46 = vsel %vm751_vm2, %v2538_v59, %v2540_v13  ;;  %v2648_v59 = vrot.slane %v9914_v34, 4  ;;  %v2649_v13 = vrot.slane %v9910_v28, 4 }
 0x358   : > { %14053 = vst [vmem:[#allocation53_spill] sm:$0xff] %v10275_v56  ;;  %v2358_v56 = vrot.slane %v10284_v19, 6  ;;  %v10296_v40 = vpack.i.bf16 %v2541_v46, %v2539_v55  ;;  %v2651_v46 = vrot.slane %v9918_v0, 4  ;;  %v10315_v49 = vsel %vm2319_vm12, %v2362_v26, 0.0 }
 0x359   : > { %v2546_v55 = vsel %vm751_vm2, %v2543_v10, %v2545_v31  ;;  %v10323_v24 = vsel %vm2319_vm12, %v2361_v14, %v2362_v26  ;;  %v10326_v0 = vsel %vm2319_vm12, 0.0, %v2361_v14  ;;  %v10331_v18 = vsel %vm2647_vm13, %v2648_v59, %v2649_v13 }
 0x35a   : > { %14057 = vst [vmem:[#allocation194_spill] sm:$0xff] %v10296_v40  ;;  %v10303_v25 = vsel %vm2319_vm12, %v2358_v56, %v2359_v30  ;;  %v10306_v60 = vsel %vm2319_vm12, 0.0, %v2358_v56  ;;  %6858 = vrot.lane.b32.xlu0 %v10296_v40, %s7737_s16  ;;  %14061 = vst [vmem:[#allocation15_spill] sm:$0xff] %v10323_v24  ;;  %v10328_v19 = vpack.i.bf16 %v2546_v55, %v2544_v32  ;;  %v2555_v36 = vrot.slane %v10315_v49, 2 }
 0x35b   : > { %14059 = vst [vmem:[#allocation167_spill] sm:$0xff] %v10303_v25  ;;  %14060 = vst [vmem:[#allocation82_spill] sm:$0xff] %v10306_v60  ;;  %v2547_v30 = vrot.slane %v10306_v60, 2  ;;  %v2548_v56 = vrot.slane %v10303_v25, 2  ;;  %v2552_v28 = vrot.slane %v10326_v0, 2  ;;  %v2553_v34 = vrot.slane %v10323_v24, 2 }
 0x35c   : > { %14062 = vst [vmem:[#allocation83_spill] sm:$0xff] %v10326_v0  ;;  %14063 = vst [vmem:[#allocation16_spill] sm:$0xff] %v10328_v19  ;;  %v10337_v11 = vsel %vm2647_vm13, %v2649_v13, %v2651_v46  ;;  %v2656_v10 = vrot.slane %v9947_v41, 4  ;;  %v2653_v31 = vrot.slane %v9954_v15, 4  ;;  %v2654_v26 = vrot.slane %v9951_v63, 4  ;;  %6863 = vrot.lane.b32.xlu1 %v10328_v19, %s7737_s16 }
 0x35d   : > { %14064 = vst [vmem:[#allocation11_spill] sm:$0xff] %v10331_v18  ;;  %14065 = vst [vmem:[#allocation12_spill] sm:$0xff] %v10337_v11  ;;  %v2661_v14 = vrot.slane %v9973_v50, 4  ;;  %v2658_v59 = vrot.slane %v9979_v51, 4  ;;  %v2659_v32 = vrot.slane %v9976_v2, 4  ;;  %v2549_v55 = vsel %vm751_vm2, %v2547_v30, %v2548_v56 }
 0x35e   : > { %v2551_v13 = vsel %vm751_vm2, %v2548_v56, %v2550_v22  ;;  %v2554_v41 = vsel %vm751_vm2, %v2552_v28, %v2553_v34  ;;  %v2556_v58 = vsel %vm751_vm2, %v2553_v34, %v2555_v36  ;;  %v6877_v50 = vpack.i.bf16 %v10337_v11, %v10331_v18 }
 0x35f   : > { %v10349_v46 = vpack.i.bf16 %v2551_v13, %v2549_v55  ;;  %v2660_v19 = vsel %vm2647_vm13, %v2658_v59, %v2659_v32  ;;  %v2662_v40 = vsel %vm2647_vm13, %v2659_v32, %v2661_v14  ;;  %v2655_v30 = vsel %vm2647_vm13, %v2653_v31, %v2654_v26 }
 0x360   : > { %v2657_v22 = vsel %vm2647_vm13, %v2654_v26, %v2656_v10  ;;  %v2671_v56 = vrot.slane %v10027_v43, 4  ;;  %v2668_v28 = vrot.slane %v10045_v48, 4  ;;  %v2669_v34 = vrot.slane %v10042_v8, 4 }
 0x361   : > { %6868 = vrot.lane.b32.xlu0 %v10349_v46, %s7737_s16  ;;  %v10364_v36 = vpack.i.bf16 %v2556_v58, %v2554_v41  ;;  %v10369_v59 = vpack.i.bf16 %v2662_v40, %v2660_v19  ;;  %v10371_v14 = vpack.i.bf16 %v2657_v22, %v2655_v30  ;;  %v2676_v31 = vrot.slane %v10073_v38, 4 }
 0x362   : > { %v2673_v10 = vrot.slane %v10079_v4, 4  ;;  %v10376_v43 = vsel %vm2647_vm13, %v2668_v28, %v2669_v34  ;;  %v10379_v26 = vsel %vm2647_vm13, %v2669_v34, %v2671_v56  ;;  %v2674_v58 = vrot.slane %v10076_v29, 4 }
 0x363   : > { %6873 = vrot.lane.b32.xlu1 %v10364_v36, %s7737_s16  ;;  %14066 = vst [vmem:[#allocation114_spill] sm:$0xff] %v10376_v43  ;;  %14067 = vst [vmem:[#allocation115_spill] sm:$0xff] %v10379_v26  ;;  %v2681_v32 = vrot.slane %v10104_v23, 4  ;;  %v2678_v55 = vrot.slane %v10101_v42, 4  ;;  %v2679_v19 = vrot.slane %v10098_v21, 4  ;;  %v10391_v38 = vpack.i.bf16 %v10034_v54, %v10031_v44 }
 0x364   : > { %v2686_v40 = vrot.slane %v10128_v45, 4  ;;  %v2683_v13 = vrot.slane %v10134_v3, 4  ;;  %v10397_v23 = vpack.i.bf16 %v10379_v26, %v10376_v43  ;;  %v2684_v41 = vrot.slane %v10131_v1, 4 }
 0x365   : > { %6878 = vrot.lane.b32.xlu0 %v6877_v50, %s7739_s18  ;;  %v2691_v50 = vrot.slane %v10148_v20, 4  ;;  %v2688_v30 = vrot.slane %v10144_v27, 4  ;;  %v2689_v22 = vrot.slane %v10141_v47, 4  ;;  %v10404_v56 = vsel %vm2647_vm13, %v2678_v55, %v2679_v19 }
 0x366   : > { %14068 = vst [vmem:[#allocation54_spill] sm:$0xff] %v10404_v56  ;;  %v10407_v44 = vsel %vm2647_vm13, %v2679_v19, %v2681_v32  ;;  %v10410_v45 = vsel %vm2647_vm13, %v2673_v10, %v2674_v58  ;;  %v10413_v28 = vsel %vm2647_vm13, %v2674_v58, %v2676_v31  ;;  %v2696_v34 = vrot.slane %v10173_v39, 4 }
 0x367   : > { %6883 = vrot.lane.b32.xlu1 %v10371_v14, %s7739_s18  ;;  %14069 = vst [vmem:[#allocation186_spill] sm:$0xff] %v10407_v44  ;;  %14070 = vst [vmem:[#allocation142_spill] sm:$0xff] %v10410_v45  ;;  %v2693_v20 = vrot.slane %v10176_v7, 4  ;;  %v2694_v11 = vrot.slane %v10181_v37, 4  ;;  %v2701_v18 = vrot.slane %v10203_v61, 4  ;;  %v2698_v10 = vrot.slane %v10214_v62, 4 }
 0x368   : > { %14071 = vst [vmem:[#allocation143_spill] sm:$0xff] %v10413_v28  ;;  %v2699_v32 = vrot.slane %v10211_v57, 4  ;;  %v2706_v31 = vrot.slane %v10235_v53, 4  ;;  %v2703_v39 = vrot.slane %v10230_v6, 4  ;;  %v10429_v58 = vpack.i.bf16 %v10407_v44, %v10404_v56 }
 0x369   : > { %6888 = vrot.lane.b32.xlu0 %v10369_v59, %s7739_s18  ;;  %v10433_v61 = vpack.i.bf16 %v10413_v28, %v10410_v45  ;;  %v10436_v55 = vsel %vm2647_vm13, %v2688_v30, %v2689_v22  ;;  %v10439_v19 = vsel %vm2647_vm13, %v2689_v22, %v2691_v50  ;;  %v2704_v26 = vrot.slane %v10227_v52, 4 }
 0x36a   : > { %14072 = vst [vmem:[#allocation195_spill] sm:$0xff] %v10436_v55  ;;  %14073 = vst [vmem:[#allocation196_spill] sm:$0xff] %v10439_v19  ;;  %v2711_v53 = vrot.slane %v10262_v9, 4  ;;  %v10444_v43 = vsel %vm2647_vm13, %v2683_v13, %v2684_v41  ;;  %v10447_v44 = vsel %vm2647_vm13, %v2684_v41, %v2686_v40  ;;  %v2708_v56 = vrot.slane %v10265_v17, 4 }
 0x36b   : > { %6893 = vrot.lane.b32.xlu1 %v10391_v38, %s7739_s18  ;;  %v2709_v28 = vrot.slane %v10271_v33, 4  ;;  %v2716_v30 = vrot.slane %v10294_v35, 4  ;;  %v2713_v9 = vrot.slane %v10306_v60, 4  ;;  %v2714_v13 = vrot.slane %v10303_v25, 4 }
 0x36c   : > { %v10460_v40 = vpack.i.bf16 %v10439_v19, %v10436_v55  ;;  %v13408_v41 = vmov 0.0|0.0   ;;  %v10465_v35 = vpack.i.bf16 %v10447_v44, %v10444_v43  ;;  %v10468_v50 = vsel %vm2647_vm13, %v2698_v10, %v2699_v32 }
 0x36d   : > { %6898 = vrot.lane.b32.xlu0 %v10397_v23, %s7739_s18  ;;  %6676 = vmatprep.subr.bf16.mxu1 %v13408_v41  ;;  %14074 = vst [vmem:[#allocation168_spill] sm:$0xff] %v10468_v50  ;;  %v10471_v22 = vsel %vm2647_vm13, %v2699_v32, %v2701_v18  ;;  %v10475_v45 = vsel %vm2647_vm13, %v2693_v20, %v2694_v11  ;;  %v2718_v55 = vrot.slane %v10326_v0, 4  ;;  %v2719_v54 = vrot.slane %v10323_v24, 4 }
 0x36e   : > { %14075 = vst [vmem:[#allocation169_spill] sm:$0xff] %v10471_v22  ;;  %6703 = vmatprep.subr.bf16.mxu0 %v13408_v41  ;;  %14076 = vst [vmem:[#allocation84_spill] sm:$0xff] %v10475_v45  ;;  %v10478_v19 = vsel %vm2647_vm13, %v2694_v11, %v2696_v34  ;;  %v10488_v18 = vpack.i.bf16 %v10471_v22, %v10468_v50  ;;  %v10491_v20 = vsel %vm2647_vm13, %v2708_v56, %v2709_v28  ;;  %v2268_v56 = vld [vmem:[%s13217_s3] sm:$0xff]  ;;  %v2269_v22 = vld [vmem:[%s13217_s3 + $0x8] sm:$0xff] }
 0x36f   : > { %6903 = vrot.lane.b32.xlu1 %v10433_v61, %s7739_s18  ;;  %14077 = vst [vmem:[#allocation17_spill] sm:$0xff] %v10478_v19  ;;  %14078 = vst [vmem:[#allocation85_spill] sm:$0xff] %v10491_v20  ;;  %v10495_v11 = vpack.i.bf16 %v10478_v19, %v10475_v45  ;;  %v10498_v34 = vsel %vm2647_vm13, %v2709_v28, %v2711_v53  ;;  %v2721_v10 = vrot.slane %v10315_v49, 4  ;;  %v2271_v53 = vld [vmem:[%s13217_s3 + $0x18] sm:$0xff] }
 0x370   : > { %14079 = vst [vmem:[#allocation23_spill] sm:$0xff] %v10498_v34  ;;  %v10502_v32 = vsel %vm2647_vm13, %v2703_v39, %v2704_v26  ;;  %v10505_v41 = vsel %vm2647_vm13, %v2704_v26, %v2706_v31  ;;  %v10519_v49 = vpack.i.bf16 %v10498_v34, %v10491_v20  ;;  %v10526_v28 = vsel %vm2647_vm13, %v2718_v55, %v2719_v54  ;;  %v2270_v39 = vld [vmem:[%s13217_s3 + $0x10] sm:$0xff] }
 0x371   : > { %6908 = vrot.lane.b32.xlu0 %v10429_v58, %s7739_s18  ;;  %14080 = vst [vmem:[#allocation13_spill] sm:$0xff] %v10502_v32  ;;  %14081 = vst [vmem:[#allocation14_spill] sm:$0xff] %v10505_v41  ;;  %v10523_v26 = vpack.i.bf16 %v10505_v41, %v10502_v32  ;;  %v6677_v31 = vpack.c.bf16 %v2269_v22, %v2268_v56  ;;  %v10535_v50 = vsel %vm2647_vm13, %v2719_v54, %v2721_v10  ;;  %v14088_v41 = vld [vmem:[#allocation158_spill] sm:$0xff] }
 0x372   : > { %14082 = vst [vmem:[#allocation116_spill] sm:$0xff] %v10526_v28  ;;  %14083 = vst [vmem:[#allocation117_spill] sm:$0xff] %v10535_v50  ;;  %v10538_v34 = vsel %vm2647_vm13, %v2713_v9, %v2714_v13  ;;  %v10541_v20 = vsel %vm2647_vm13, %v2714_v13, %v2716_v30  ;;  %v6680_v55 = vpack.c.bf16 %v2271_v53, %v2270_v39  ;;  %v14086_v9 = vmov 0.0|0.0   ;;  %v2272_v30 = vld [vmem:[%s13217_s3 + $0x20] sm:$0xff]  ;;  %v2273_v13 = vld [vmem:[%s13217_s3 + $0x28] sm:$0xff] }
 0x373   : > { %6913 = vrot.lane.b32.xlu1 %v10465_v35, %s7739_s18  ;;  %14084 = vst [vmem:[#allocation55_spill] sm:$0xff] %v10538_v34  ;;  %14085 = vst [vmem:[#allocation187_spill] sm:$0xff] %v10541_v20  ;;  %6678 = vmatpush1.bf16.msra.mxu1 %v6677_v31  ;;  %v10549_v22 = vpack.i.bf16 %v10535_v50, %v10526_v28  ;;  %v10553_v54 = vpack.i.bf16 %v10541_v20, %v10538_v34  ;;  %v2274_v39 = vld [vmem:[%s13217_s3 + $0x30] sm:$0xff]  ;;  %v2275_v53 = vld [vmem:[%s13217_s3 + $0x38] sm:$0xff] }
 0x374   : > { %6679 = vmatprep.subr.bf16.mxu1 %v14086_v9  ;;  %v6683_v10 = vpack.c.bf16 %v2273_v13, %v2272_v30  ;;  %v6957_v56 = vpack.i.bf16 %v9976_v2, %v9979_v51  ;;  %v6952_v31 = vpack.i.bf16 %v9951_v63, %v9954_v15  ;;  %v6967_v30 = vpack.i.bf16 %v10042_v8, %v10045_v48  ;;  %v2276_v50 = vld [vmem:[%s13217_s3 + $0x40] sm:$0xff]  ;;  %v2279_v28 = vld [vmem:[%s13217_s3 + $0x58] sm:$0xff]  ;;  %v2281_v34 = vld [vmem:[%s13217_s3 + $0x68] sm:$0xff] }
 0x375   : > { %6918 = vrot.lane.b32.xlu0 %v10460_v40, %s7739_s18  ;;  %v6962_v13 = vpack.i.bf16 %v10002_v5, %v10005_v16  ;;  %v2280_v20 = vld [vmem:[%s13217_s3 + $0x60] sm:$0xff] }
 0x377   : > { %6923 = vrot.lane.b32.xlu1 %v10495_v11, %s7739_s18  ;;  %6681 = vmatpush1.bf16.msra.mxu1 %v6680_v55  ;;  %v6686_v55 = vpack.c.bf16 %v2275_v53, %v2274_v39  ;;  %v6972_v39 = vpack.i.bf16 %v10076_v29, %v10079_v4  ;;  %v2278_v53 = vld [vmem:[%s13217_s3 + $0x50] sm:$0xff] }
 0x378   : > { %6682 = vmatprep.subr.bf16.mxu1 %v14086_v9 }
 0x379   : > { %6928 = vrot.lane.b32.xlu0 %v10488_v18, %s7739_s18 }
 0x37b   : > { %6933 = vrot.lane.b32.xlu1 %v10523_v26, %s7739_s18  ;;  %6684 = vmatpush1.bf16.msra.mxu1 %v6683_v10 }
 0x37c   : > { %6685 = vmatprep.subr.bf16.mxu1 %v14086_v9 }
 0x37d   : > { %6938 = vrot.lane.b32.xlu0 %v10519_v49, %s7739_s18 }
 0x37f   : > { %6943 = vrot.lane.b32.xlu1 %v10553_v54, %s7739_s18  ;;  %6687 = vmatpush1.bf16.msra.mxu1 %v6686_v55  ;;  %v6987_v55 = vpack.i.bf16 %v10141_v47, %v10144_v27  ;;  %v14087_v47 = vld [vmem:[#allocation156_spill] sm:$0xff] }
 0x380   : > { %6688 = vmatprep.subr.bf16.mxu1 %v14086_v9 }
 0x381   : > { %6948 = vrot.lane.b32.xlu0 %v10549_v22, %s7739_s18  ;;  %s7747_s18 = smov 96  }
 0x383   : > { %6953 = vrot.lane.b32.xlu1 %v6952_v31, %s7741_s20  ;;  %v6977_v31 = vpack.i.bf16 %v10098_v21, %v10101_v42 }
 0x385   : > { %6958 = vrot.lane.b32.xlu0 %v6957_v56, %s7741_s20  ;;  %v2277_v56 = vld [vmem:[%s13217_s3 + $0x48] sm:$0xff] }
 0x386   : > { %v6689_v10 = vpack.c.bf16 %v2277_v56, %v2276_v50  ;;  %v6692_v50 = vpack.c.bf16 %v2279_v28, %v2278_v53  ;;  %v6982_v56 = vpack.i.bf16 %v10131_v1, %v10134_v3  ;;  %v6695_v28 = vpack.c.bf16 %v2281_v34, %v2280_v20  ;;  %v2283_v53 = vld [vmem:[%s13217_s3 + $0x78] sm:$0xff]  ;;  %v2284_v20 = vld [vmem:[%s13217_s3 + $0x80] sm:$0xff]  ;;  %v2285_v34 = vld [vmem:[%s13217_s3 + $0x88] sm:$0xff] }
 0x387   : > { %6963 = vrot.lane.b32.xlu1 %v6962_v13, %s7741_s20  ;;  %v14124_v3 = vld [vmem:[#allocation70_spill] sm:$0xff] }
 0x388   : > { %6690 = vmatpush1.bf16.msra.mxu1 %v6689_v10  ;;  %v2282_v10 = vld [vmem:[%s13217_s3 + $0x70] sm:$0xff] }
 0x389   : > { %6968 = vrot.lane.b32.xlu0 %v6967_v30, %s7741_s20  ;;  %6691 = vmatprep.subr.bf16.mxu1 %v14086_v9 }
 0x38b   : > { %6973 = vrot.lane.b32.xlu1 %v6972_v39, %s7741_s20 }
 0x38c   : > { %6693 = vmatpush1.bf16.msra.mxu1 %v6692_v50  ;;  %v6698_v50 = vpack.c.bf16 %v2283_v53, %v2282_v10  ;;  %v14093_v10 = vld [vmem:[#allocation138_spill] sm:$0xff] }
 0x38d   : > { %6978 = vrot.lane.b32.xlu0 %v6977_v31, %s7741_s20  ;;  %6694 = vmatprep.subr.bf16.mxu1 %v14086_v9 }
 0x38f   : > { %6983 = vrot.lane.b32.xlu1 %v6982_v56, %s7741_s20 }
 0x390   : > { %6696 = vmatpush1.bf16.msra.mxu1 %v6695_v28  ;;  %v14090_v28 = vld [vmem:[#allocation134_spill] sm:$0xff] }
 0x391   : > { %6988 = vrot.lane.b32.xlu0 %v6987_v55, %s7741_s20  ;;  %6697 = vmatprep.subr.bf16.mxu1 %v14086_v9 }
 0x393   : > { %6993 = vrot.lane.b32.xlu1 %v14087_v47, %s7743_s12  ;;  %v6701_v47 = vpack.c.bf16 %v2285_v34, %v2284_v20 }
 0x394   : > { %6699 = vmatpush1.bf16.msra.mxu1 %v6698_v50  ;;  %v14094_v50 = vld [vmem:[#allocation79_spill] sm:$0xff] }
 0x395   : > { %6998 = vrot.lane.b32.xlu0 %v10371_v14, %s7745_s22  ;;  %6700 = vmatprep.subr.bf16.mxu1 %v14086_v9  ;;  %v14089_v14 = vld [vmem:[#allocation102_spill] sm:$0xff] }
 0x397   : > { %7003 = vrot.lane.b32.xlu1 %v6962_v13, %s7747_s18  ;;  %v14091_v13 = vld [vmem:[#allocation159_spill] sm:$0xff] }
 0x398   : > { %6702 = vmatpush1.bf16.msra.mxu1 %v6701_v47  ;;  %v7122_v47 = vpack.i.bf16 %v10181_v37, %v10176_v7 }
 0x399   : > { %7008 = vrot.lane.b32.xlu0 %v14088_v41, %s7746_s27 }
 0x39b   : > { %7013 = vrot.lane.b32.xlu1 %v14089_v14, %s7743_s12  ;;  %v14096_v14 = vld [vmem:[#allocation165_spill] sm:$0xff] }
 0x39d   : > { %7018 = vrot.lane.b32.xlu0 %v10369_v59, %s7745_s22  ;;  %v10658_v59 = vpop.permute.xlu1 %2196 }
 0x39f   : > { %7023 = vrot.lane.b32.xlu1 %v6967_v30, %s7747_s18  ;;  %v10660_v30 = vpop.permute.xlu0 %2198 }
 0x3a1   : > { %7028 = vrot.lane.b32.xlu0 %v14090_v28, %s7746_s27 }
 0x3a3   : > { %7033 = vrot.lane.b32.xlu1 %v14088_v41, %s7743_s12  ;;  %v10665_v41 = vpop.permute.xlu1 %2200 }
 0x3a5   : > { %7038 = vrot.lane.b32.xlu0 %v10391_v38, %s7745_s22  ;;  %v14092_v38 = vld [vmem:[#allocation76_spill] sm:$0xff] }
 0x3a7   : > { %7043 = vrot.lane.b32.xlu1 %v6972_v39, %s7747_s18  ;;  %v10673_v39 = vpop.permute.xlu1 %6803 }
 0x3a9   : > { %7048 = vrot.lane.b32.xlu0 %v14091_v13, %s7746_s27 }
 0x3ab   : > { %7053 = vrot.lane.b32.xlu1 %v14090_v28, %s7743_s12 }
 0x3ad   : > { %7058 = vrot.lane.b32.xlu0 %v10397_v23, %s7745_s22  ;;  %v10671_v23 = vpop.permute.xlu0 %2202 }
 0x3af   : > { %7063 = vrot.lane.b32.xlu1 %v6977_v31, %s7747_s18 }
 0x3b1   : > { %7068 = vrot.lane.b32.xlu0 %v14092_v38, %s7746_s27  ;;  %v10678_v53 = vpop.permute.xlu0 %6808 }
 0x3b3   : > { %7073 = vrot.lane.b32.xlu1 %v14091_v13, %s7743_s12 }
 0x3b5   : > { %7078 = vrot.lane.b32.xlu0 %v10433_v61, %s7745_s22  ;;  %v10684_v61 = vpop.permute.xlu1 %6813  ;;  %v10686_v31 = vpop.permute.xlu0 %6818 }
 0x3b7   : > { %7083 = vrot.lane.b32.xlu1 %v6982_v56, %s7747_s18 }
 0x3b9   : > { %7088 = vrot.lane.b32.xlu0 %v14093_v10, %s7746_s27  ;;  %v10691_v20 = vpop.permute.xlu1 %6823  ;;  %v10693_v56 = vpop.permute.xlu0 %6828 }
 0x3bb   : > { %7093 = vrot.lane.b32.xlu1 %v14092_v38, %s7743_s12  ;;  %v7142_v38 = vpack.i.bf16 %v10211_v57, %v10214_v62 }
 0x3bd   : > { %7098 = vrot.lane.b32.xlu0 %v10429_v58, %s7745_s22  ;;  %v10699_v58 = vpop.permute.xlu1 %6833  ;;  %v10701_v34 = vpop.permute.xlu0 %6838 }
 0x3be   : > { %14095 = vst [vmem:[#allocation144_spill] sm:$0xff] %v10701_v34 }
 0x3bf   : > { %7103 = vrot.lane.b32.xlu1 %v6987_v55, %s7747_s18 }
 0x3c1   : > { %7108 = vrot.lane.b32.xlu0 %v14094_v50, %s7746_s27  ;;  %v10708_v55 = vpop.permute.xlu1 %6843  ;;  %v10710_v28 = vpop.permute.xlu0 %6848 }
 0x3c2   : > { %14097 = vst [vmem:[#allocation145_spill] sm:$0xff] %v10708_v55  ;;  %14098 = vst [vmem:[#allocation197_spill] sm:$0xff] %v10710_v28  ;;  %v7217_v28 = vpack.i.bf16 %v10303_v25, %v10306_v60  ;;  %v14116_v55 = vld [vmem:[#allocation53_spill] sm:$0xff] }
 0x3c3   : > { %7113 = vrot.lane.b32.xlu1 %v14093_v10, %s7743_s12 }
 0x3c5   : > { %7118 = vrot.lane.b32.xlu0 %v10465_v35, %s7745_s22 }
 0x3c7   : > { %7123 = vrot.lane.b32.xlu1 %v7122_v47, %s7747_s18 }
 0x3c8   : > { %v10716_v35 = vpop.permute.xlu1 %6853 }
 0x3c9   : > { %7128 = vrot.lane.b32.xlu0 %v14096_v14, %s7746_s27  ;;  %14099 = vst [vmem:[#allocation198_spill] sm:$0xff] %v10716_v35 }
 0x3cb   : > { %7133 = vrot.lane.b32.xlu1 %v14094_v50, %s7743_s12 }
 0x3cc   : > { %v10718_v13 = vpop.permute.xlu0 %6858 }
 0x3cd   : > { %7138 = vrot.lane.b32.xlu0 %v10460_v40, %s7745_s22  ;;  %14100 = vst [vmem:[#allocation170_spill] sm:$0xff] %v10718_v13  ;;  %v7167_v13 = vpack.i.bf16 %v10227_v52, %v10230_v6  ;;  %v14106_v6 = vld [vmem:[#allocation16_spill] sm:$0xff] }
 0x3ce   : > { %v10725_v10 = vpop.permute.xlu1 %6863 }
 0x3cf   : > { %7143 = vrot.lane.b32.xlu1 %v7142_v38, %s7747_s18  ;;  %14101 = vst [vmem:[#allocation171_spill] sm:$0xff] %v10725_v10 }
 0x3d1   : > { %7148 = vrot.lane.b32.xlu0 %v10257_v12, %s7746_s27 }
 0x3d3   : > { %v10727_v9 = vpop.permute.xlu0 %6868  ;;  %7153 = vrot.lane.b32.xlu1 %v7122_v47, %s7741_s20  ;;  %v14104_v47 = vld [vmem:[#allocation194_spill] sm:$0xff] }
 0x3d4   : > { %14102 = vst [vmem:[#allocation86_spill] sm:$0xff] %v10727_v9 }
 0x3d5   : > { %7158 = vrot.lane.b32.xlu0 %v14096_v14, %s7743_s12  ;;  %v10732_v40 = vpop.permute.xlu1 %6873 }
 0x3d6   : > { %14103 = vst [vmem:[#allocation22_spill] sm:$0xff] %v10732_v40 }
 0x3d7   : > { %v10734_v50 = vpop.permute.xlu0 %6878  ;;  %7163 = vrot.lane.b32.xlu1 %v10495_v11, %s7745_s22 }
 0x3d9   : > { %7168 = vrot.lane.b32.xlu0 %v7167_v13, %s7747_s18  ;;  %v10741_v10 = vpop.permute.xlu1 %6883 }
 0x3db   : > { %v10743_v9 = vpop.permute.xlu0 %6888  ;;  %7173 = vrot.lane.b32.xlu1 %v14104_v47, %s7746_s27 }
 0x3dd   : > { %7178 = vrot.lane.b32.xlu0 %v7142_v38, %s7741_s20  ;;  %v10748_v14 = vpop.permute.xlu1 %6893  ;;  %v7192_v38 = vpack.i.bf16 %v10271_v33, %v10265_v17  ;;  %v14110_v17 = vld [vmem:[#allocation10_spill] sm:$0xff] }
 0x3df   : > { %v10750_v40 = vpop.permute.xlu0 %6898  ;;  %7183 = vrot.lane.b32.xlu1 %v10257_v12, %s7743_s12  ;;  %v7693_v12 = vld [vmem:[%s13216_s2] ss:$0 sm:$0xff] }
 0x3e0   : > { %v2090_v35 = vadd.f32 %v7693_v12, %v14110_v17 }
 0x3e1   : > { %7188 = vrot.lane.b32.xlu0 %v10488_v18, %s7745_s22  ;;  %v10756_v11 = vpop.permute.xlu1 %6903  ;;  %v14109_v18 = vld [vmem:[#allocation80_spill] sm:$0xff] }
 0x3e2   : > { %v2095_v33 = vadd.f32 %v7693_v12, %v14109_v18  ;;  %v14115_v18 = vld [vmem:[#allocation113_spill] sm:$0xff] }
 0x3e3   : > { %v10758_v52 = vpop.permute.xlu0 %6908  ;;  %7193 = vrot.lane.b32.xlu1 %v7192_v38, %s7747_s18  ;;  %v2105_v17 = vadd.f32 %v7693_v12, %v14115_v18 }
 0x3e4   : > { %14105 = vst [vmem:[#allocation87_spill] sm:$0xff] %v10758_v52 }
 0x3e5   : > { %7198 = vrot.lane.b32.xlu0 %v14106_v6, %s7746_s27  ;;  %v10765_v57 = vpop.permute.xlu1 %6913  ;;  %v2139_v18 = vmax.f32 %v2105_v17, 0.0 }
 0x3e6   : > { %14107 = vst [vmem:[#allocation27_spill] sm:$0xff] %v10765_v57 }
 0x3e7   : > { %v10767_v62 = vpop.permute.xlu0 %6918  ;;  %7203 = vrot.lane.b32.xlu1 %v7167_v13, %s7741_s20  ;;  %v2137_v13 = vmax.f32 %v2095_v33, 0.0 }
 0x3e8   : > { %14108 = vst [vmem:[#allocation18_spill] sm:$0xff] %v10767_v62 }
 0x3e9   : > { %7208 = vrot.lane.b32.xlu0 %v14104_v47, %s7743_s12  ;;  %v10777_v37 = vpop.permute.xlu1 %6923  ;;  %v2136_v47 = vmax.f32 %v2090_v35, 0.0  ;;  %v10797_v25 = vsel %vm1516_vm3, %v2137_v13, %v10660_v30  ;;  %v7242_v13 = vpack.i.bf16 %v10323_v24, %v10326_v0 }
 0x3ea   : > { %14111 = vst [vmem:[#allocation19_spill] sm:$0xff] %v10777_v37  ;;  %v2100_v37 = vadd.f32 %v7693_v12, %v14116_v55  ;;  %14117 = vst [vmem:[#allocation188_spill] sm:$0xff] %v10797_v25  ;;  %v2365_v55 = vrot.slane %v10797_v25, 6 }
 0x3eb   : > { %v10779_v7 = vpop.permute.xlu0 %6928  ;;  %7213 = vrot.lane.b32.xlu1 %v10523_v26, %s7745_s22  ;;  %v10801_v33 = vsel %vm1516_vm3, %v2136_v47, %v10658_v59  ;;  %v10821_v47 = vsel %vm1516_vm3, %v2139_v18, %v10671_v23 }
 0x3ec   : > { %14112 = vst [vmem:[#allocation118_spill] sm:$0xff] %v10779_v7  ;;  %14118 = vst [vmem:[#allocation146_spill] sm:$0xff] %v10801_v33  ;;  %v2138_v12 = vmax.f32 %v2100_v37, 0.0  ;;  %v10824_v17 = vsel %vm2319_vm12, %v2365_v55, 0.0  ;;  %v2368_v23 = vrot.slane %v10821_v47, 6 }
 0x3ed   : > { %7218 = vrot.lane.b32.xlu0 %v7217_v28, %s7747_s18  ;;  %v10786_v27 = vpop.permute.xlu1 %6933  ;;  %14121 = vst [vmem:[#allocation200_spill] sm:$0xff] %v10821_v47 }
 0x3ee   : > { %14113 = vst [vmem:[#allocation119_spill] sm:$0xff] %v10786_v27 }
 0x3ef   : > { %v10788_v62 = vpop.permute.xlu0 %6938  ;;  %7223 = vrot.lane.b32.xlu1 %v10349_v46, %s7746_s27 }
 0x3f0   : > { %14114 = vst [vmem:[#allocation56_spill] sm:$0xff] %v10788_v62 }
 0x3f1   : > { %7228 = vrot.lane.b32.xlu0 %v7192_v38, %s7741_s20  ;;  %v10803_v26 = vpop.permute.xlu1 %6943  ;;  %v2364_v38 = vrot.slane %v10801_v33, 6 }
 0x3f2   : > { %14119 = vst [vmem:[#allocation147_spill] sm:$0xff] %v10803_v26  ;;  %v6805_v26 = vunpack.i.l.bf16 %v10673_v39 }
 0x3f3   : > { %v10805_v35 = vpop.permute.xlu0 %6948  ;;  %7233 = vrot.lane.b32.xlu1 %v14106_v6, %s7743_s12  ;;  %v10827_v37 = vsel %vm2319_vm12, %v2364_v38, %v2365_v55  ;;  %v10834_v6 = vsel %vm1516_vm3, %v2138_v12, %v10665_v41  ;;  %v2916_v55 = vrot.slane %v10824_v17, 2  ;;  %v10852_v12 = vsel %vm2319_vm12, %v2368_v23, 0.0 }
 0x3f4   : > { %14120 = vst [vmem:[#allocation199_spill] sm:$0xff] %v10805_v35  ;;  %14122 = vst [vmem:[#allocation172_spill] sm:$0xff] %v10834_v6  ;;  %v2914_v25 = vrot.slane %v10827_v37, 2  ;;  %v2367_v41 = vrot.slane %v10834_v6, 6  ;;  %v2921_v60 = vrot.slane %v10852_v12, 2  ;;  %v3020_v1 = vrot.slane %v10827_v37, 4 }
 0x3f5   : > { %7238 = vrot.lane.b32.xlu0 %v10519_v49, %s7745_s22  ;;  %v10813_v30 = vpop.permute.xlu1 %6953  ;;  %v10830_v49 = vsel %vm2319_vm12, 0.0, %v2364_v38 }
 0x3f6   : > { %v2913_v38 = vrot.slane %v10830_v49, 2  ;;  %v10860_v24 = vpack.i.bf16 %v10827_v37, %v10830_v49  ;;  %v10863_v35 = vsel %vm2319_vm12, %v2367_v41, %v2368_v23  ;;  %v10866_v6 = vsel %vm2319_vm12, 0.0, %v2367_v41  ;;  %v14125_v37 = vld [vmem:[#allocation7_spill] sm:$0xff] }
 0x3f7   : > { %v10815_v59 = vpop.permute.xlu0 %6958  ;;  %7243 = vrot.lane.b32.xlu1 %v7242_v13, %s7747_s18  ;;  %v2918_v23 = vrot.slane %v10866_v6, 2  ;;  %v2919_v62 = vrot.slane %v10863_v35, 2  ;;  %v6955_v7 = vunpack.i.l.bf16 %v10813_v30  ;;  %v3019_v32 = vrot.slane %v10830_v49, 4 }
 0x3f8   : > { %vm5383_vm12 = vcmask 719872  }
 0x3f9   : > { %7248 = vrot.lane.b32.xlu0 %v10364_v36, %s7746_s27  ;;  %v10840_v18 = vpop.permute.xlu1 %6963  ;;  %v2920_v34 = vsel %vm751_vm2, %v2918_v23, %v2919_v62 }
 0x3fb   : > { %v10842_v33 = vpop.permute.xlu0 %6968  ;;  %7253 = vrot.lane.b32.xlu1 %v7217_v28, %s7741_s20  ;;  %v2917_v28 = vsel %vm751_vm2, %v2914_v25, %v2916_v55  ;;  %v6806_v55 = vunpack.i.h.bf16 %v10673_v39 }
 0x3fd   : > { %7258 = vrot.lane.b32.xlu0 %v10349_v46, %s7743_s12  ;;  %v10854_v47 = vpop.permute.xlu1 %6973  ;;  %v2915_v46 = vsel %vm751_vm2, %v2913_v38, %v2914_v25  ;;  %v6880_v25 = vunpack.i.l.bf16 %v10734_v50  ;;  %v3306_v45 = vsel %vm1549_vm4, %v14125_v37, %v6806_v55 }
 0x3fe   : > { %v10882_v38 = vpack.i.bf16 %v2917_v28, %v2915_v46  ;;  %v3305_v46 = vsel %vm1549_vm4, %v14124_v3, %v6805_v26  ;;  %v6881_v28 = vunpack.i.h.bf16 %v10734_v50 }
 0x3ff   : > { %v10856_v0 = vpop.permute.xlu0 %6978  ;;  %7263 = vrot.lane.b32.xlu1 %v10553_v54, %s7745_s22  ;;  %v3022_v54 = vrot.slane %v10824_v17, 4  ;;  %v6956_v17 = vunpack.i.h.bf16 %v10813_v30  ;;  %v3335_v21 = vsel %vm1615_vm6, %v3305_v46, %v6880_v25 }
 0x400   : > { %v3365_v26 = vsel %vm1681_vm8, %v3335_v21, %v6955_v7 }
 0x401   : > { %7268 = vrot.lane.b32.xlu0 %v10860_v24, %s7747_s18  ;;  %v10878_v41 = vpop.permute.xlu1 %6983 }
 0x403   : > { %v10880_v27 = vpop.permute.xlu0 %6988  ;;  %7273 = vrot.lane.b32.xlu1 %v10882_v38, %s7746_s27 }
 0x404   : > { %14123 = vst [vmem:[#allocation173_spill] sm:$0xff] %v10880_v27  ;;  %v3024_v27 = vrot.slane %v10866_v6, 4 }
 0x405   : > { %7278 = vrot.lane.b32.xlu0 %v7242_v13, %s7741_s20  ;;  %v6994_v57 = vpop.permute.xlu1 %6993  ;;  %v2922_v13 = vsel %vm751_vm2, %v2919_v62, %v2921_v60  ;;  %v10910_v62 = vpack.i.bf16 %v10863_v35, %v10866_v6  ;;  %v3336_v60 = vsel %vm1615_vm6, %v3306_v45, %v6881_v28  ;;  %v3025_v45 = vrot.slane %v10863_v35, 4 }
 0x406   : > { %v6996_v49 = vunpack.i.h.bf16 %v6994_v57  ;;  %v6995_v42 = vunpack.i.l.bf16 %v6994_v57  ;;  %v10914_v30 = vpack.i.bf16 %v2922_v13, %v2920_v34  ;;  %v3366_v7 = vsel %vm1681_vm8, %v3336_v60, %v6956_v17 }
 0x407   : > { %v6999_v39 = vpop.permute.xlu0 %6998  ;;  %7283 = vrot.lane.b32.xlu1 %v10364_v36, %s7743_s12  ;;  %v10928_v17 = vsel %vm2647_vm13, %v3019_v32, %v3020_v1  ;;  %v6961_v35 = vunpack.i.h.bf16 %v10815_v59 }
 0x408   : > { %v7000_v50 = vunpack.i.l.bf16 %v6999_v39  ;;  %v3397_v57 = vsel %vm1747_vm10, %v3365_v26, %v6995_v42  ;;  %v7001_v23 = vunpack.i.h.bf16 %v6999_v39  ;;  %v3398_v36 = vsel %vm1747_vm10, %v3366_v7, %v6996_v49 }
 0x409   : > { %7288 = vrot.lane.b32.xlu0 %v10549_v22, %s7745_s22  ;;  %v7004_v25 = vpop.permute.xlu1 %7003  ;;  %v6960_v42 = vunpack.i.l.bf16 %v10815_v59  ;;  %v10931_v39 = vsel %vm2647_vm13, %v3020_v1, %v3022_v54  ;;  %v10951_v54 = vsel %vm2647_vm13, %v3024_v27, %v3025_v45  ;;  %v6965_v27 = vunpack.i.l.bf16 %v10840_v18 }
 0x40a   : > { %v7006_v22 = vunpack.i.h.bf16 %v7004_v25  ;;  %v7005_v46 = vunpack.i.l.bf16 %v7004_v25  ;;  %v3430_v34 = vsel %vm3429_vm14, %v3397_v57, %v7000_v50  ;;  %v3431_v7 = vsel %vm3429_vm14, %v3398_v36, %v7001_v23 }
 0x40b   : > { %v7009_v55 = vpop.permute.xlu0 %7008  ;;  %7293 = vrot.lane.b32.xlu1 %v10910_v62, %s7747_s18  ;;  %v3367_v32 = vsel %vm1681_vm8, %v3335_v21, %v6960_v42  ;;  %v7312_v1 = vpack.i.bf16 %v10931_v39, %v10928_v17  ;;  %v7317_v21 = vpack.i.bf16 %v14125_v37, %v14124_v3  ;;  %v6885_v23 = vunpack.i.l.bf16 %v10741_v10  ;;  %v14127_v37 = vld [vmem:[#allocation114_spill] sm:$0xff] }
 0x40c   : > { %v7010_v19 = vunpack.i.l.bf16 %v7009_v55  ;;  %v3463_v28 = vsel %vm3462_vm15, %v3430_v34, %v7005_v46  ;;  %v7011_v6 = vunpack.i.h.bf16 %v7009_v55  ;;  %v3464_v50 = vsel %vm3462_vm15, %v3431_v7, %v7006_v22  ;;  %v14126_v46 = vld [vmem:[#allocation103_spill] sm:$0xff] }
 0x40d   : > { %7298 = vrot.lane.b32.xlu0 %v10914_v30, %s7746_s27  ;;  %v7014_v13 = vpop.permute.xlu1 %7013  ;;  %v6811_v3 = vunpack.i.h.bf16 %v10678_v53 }
 0x40e   : > { %v3496_v26 = vsel %vm3495_vm9, %v3463_v28, %v7010_v19  ;;  %v7016_v25 = vunpack.i.h.bf16 %v7014_v13  ;;  %v7015_v52 = vunpack.i.l.bf16 %v7014_v13  ;;  %v6810_v19 = vunpack.i.l.bf16 %v10678_v53 }
 0x40f   : > { %v7019_v49 = vpop.permute.xlu0 %7018  ;;  %3659 = vmatmul.mubr.f32.vlgmr.msra.gmra.mrb[0].mxu1 %v3496_v26  ;;  %7303 = vrot.lane.b32.xlu1 %v10860_v24, %s7741_s20  ;;  %v3368_v24 = vsel %vm1681_vm8, %v3336_v60, %v6961_v35  ;;  %v3497_v42 = vsel %vm3495_vm9, %v3464_v50, %v7011_v6  ;;  %v6886_v6 = vunpack.i.h.bf16 %v10741_v10  ;;  %v14128_v53 = vrot.slane %v10852_v12, 4 }
 0x410   : > { %v7020_v57 = vunpack.i.l.bf16 %v7019_v49  ;;  %6360 = vmatprep.mubr.msk.f32.mxu1 %vm1549_vm4, %v14126_v46  ;;  %v3399_v59 = vsel %vm1747_vm10, %v3367_v32, %v7015_v52  ;;  %v7021_v55 = vunpack.i.h.bf16 %v7019_v49  ;;  %v3400_v52 = vsel %vm1747_vm10, %v3368_v24, %v7016_v25 }
 0x411   : > { %7308 = vrot.lane.b32.xlu0 %v10882_v38, %s7743_s12  ;;  %v7024_v36 = vpop.permute.xlu1 %7023  ;;  %v3307_v35 = vsel %vm1549_vm4, %v9954_v15, %v6810_v19  ;;  %v10971_v49 = vsel %vm2647_vm13, %v3025_v45, %v14128_v53  ;;  %v6966_v26 = vunpack.i.h.bf16 %v10840_v18  ;;  %v3308_v12 = vsel %vm1549_vm4, %v9951_v63, %v6811_v3  ;;  %v14129_v19 = vld [vmem:[#allocation115_spill] sm:$0xff] }
 0x412   : > { %v7026_v34 = vunpack.i.h.bf16 %v7024_v36  ;;  %v7025_v28 = vunpack.i.l.bf16 %v7024_v36  ;;  %v3432_v60 = vsel %vm3429_vm14, %v3399_v59, %v7020_v57  ;;  %v3433_v15 = vsel %vm3429_vm14, %v3400_v52, %v7021_v55  ;;  %v14130_v59 = vld [vmem:[#allocation8_spill] sm:$0xff] }
 0x413   : > { %v7029_v22 = vpop.permute.xlu0 %7028  ;;  %3664 = vmatmul.mubr.f32.gmra.mrb[2].mxu1 %v3497_v42  ;;  %7313 = vrot.lane.b32.xlu1 %v7312_v1, %s7745_s22  ;;  %v3337_v10 = vsel %vm1615_vm6, %v3307_v35, %v6885_v23  ;;  %v3338_v23 = vsel %vm1615_vm6, %v3308_v12, %v6886_v6  ;;  %v7337_v63 = vpack.i.bf16 %v10971_v49, %v10951_v54  ;;  %v6890_v55 = vunpack.i.l.bf16 %v10743_v9 }
 0x414   : > { %v7030_v38 = vunpack.i.l.bf16 %v7029_v22  ;;  %6361 = vmatprep.mubr.msk.f32.mxu1 %vm1549_vm4, %v14127_v37  ;;  %v3465_v13 = vsel %vm3462_vm15, %v3432_v60, %v7025_v28  ;;  %v7031_v7 = vunpack.i.h.bf16 %v7029_v22  ;;  %v3466_v1 = vsel %vm3462_vm15, %v3433_v15, %v7026_v34  ;;  %v14131_v60 = vld [vmem:[#allocation142_spill] sm:$0xff] }
 0x415   : > { %7318 = vrot.lane.b32.xlu0 %v7317_v21, %s7747_s18  ;;  %v7034_v25 = vpop.permute.xlu1 %7033  ;;  %v3369_v45 = vsel %vm1681_vm8, %v3337_v10, %v6965_v27  ;;  %v6815_v21 = vunpack.i.l.bf16 %v10684_v61  ;;  %v3370_v36 = vsel %vm1681_vm8, %v3338_v23, %v6966_v26  ;;  %v6970_v37 = vunpack.i.l.bf16 %v10842_v33 }
 0x416   : > { %v3498_v32 = vsel %vm3495_vm9, %v3465_v13, %v7030_v38  ;;  %v7036_v57 = vunpack.i.h.bf16 %v7034_v25  ;;  %v7035_v46 = vunpack.i.l.bf16 %v7034_v25  ;;  %v3499_v34 = vsel %vm3495_vm9, %v3466_v1, %v7031_v7  ;;  %v14133_v1 = vld [vmem:[#allocation130_spill] sm:$0xff] }
 0x417   : > { %v7039_v50 = vpop.permute.xlu0 %7038  ;;  %3669 = vmatmul.mubr.f32.gmra.mrb[4].mxu1 %v3498_v32  ;;  %7323 = vrot.lane.b32.xlu1 %v14130_v59, %s7746_s27  ;;  %v3309_v6 = vsel %vm1549_vm4, %v9979_v51, %v6815_v21  ;;  %v6891_v13 = vunpack.i.h.bf16 %v10743_v9  ;;  %v6820_v12 = vunpack.i.l.bf16 %v10686_v31  ;;  %s7749_s27 = smov 72   ;;  %vm5248_vm13 = vcmask 982016  }
 0x418   : > { %v7040_v18 = vunpack.i.l.bf16 %v7039_v50  ;;  %6362 = vmatprep.mubr.msk.f32.mxu1 %vm1549_vm4, %v14129_v19  ;;  %v3401_v24 = vsel %vm1747_vm10, %v3369_v45, %v7035_v46  ;;  %v7041_v22 = vunpack.i.h.bf16 %v7039_v50  ;;  %v3402_v28 = vsel %vm1747_vm10, %v3370_v36, %v7036_v57  ;;  %v14132_v46 = vld [vmem:[#allocation143_spill] sm:$0xff] }
 0x419   : > { %7328 = vrot.lane.b32.xlu0 %v10910_v62, %s7741_s20  ;;  %v7044_v42 = vpop.permute.xlu1 %7043  ;;  %v6816_v62 = vunpack.i.h.bf16 %v10684_v61  ;;  %v6971_v61 = vunpack.i.h.bf16 %v10842_v33  ;;  %v3339_v32 = vsel %vm1615_vm6, %v3309_v6, %v6890_v55  ;;  %v14134_v19 = vld [vmem:[#allocation71_spill] sm:$0xff] }
 0x41a   : > { %v7046_v38 = vunpack.i.h.bf16 %v7044_v42  ;;  %v7045_v3 = vunpack.i.l.bf16 %v7044_v42  ;;  %v3434_v35 = vsel %vm3429_vm14, %v3401_v24, %v7040_v18  ;;  %v3371_v57 = vsel %vm1681_vm8, %v3339_v32, %v6970_v37  ;;  %v14137_v37 = vld [vmem:[#allocation131_spill] sm:$0xff]  ;;  %v14139_v32 = vld [vmem:[#allocation100_spill] sm:$0xff] }
 0x41b   : > { %v7049_v52 = vpop.permute.xlu0 %7048  ;;  %3674 = vmatmul.mubr.f32.gmra.mrb[6].mxu1 %v3499_v34  ;;  %7333 = vrot.lane.b32.xlu1 %v10914_v30, %s7743_s12  ;;  %v3435_v30 = vsel %vm3429_vm14, %v3402_v28, %v7041_v22  ;;  %v3310_v9 = vsel %vm1549_vm4, %v9976_v2, %v6816_v62  ;;  %v6895_v2 = vunpack.i.l.bf16 %v10748_v14  ;;  %v6975_v34 = vunpack.i.l.bf16 %v10854_v47  ;;  %v14135_v28 = vld [vmem:[#allocation54_spill] sm:$0xff] }
 0x41c   : > { %v7050_v27 = vunpack.i.l.bf16 %v7049_v52  ;;  %6363 = vmatprep.mubr.msk.f32.mxu1 %vm1549_vm4, %v14131_v60  ;;  %v3467_v53 = vsel %vm3462_vm15, %v3434_v35, %v7045_v3  ;;  %v7051_v26 = vunpack.i.h.bf16 %v7049_v52  ;;  %v3468_v51 = vsel %vm3462_vm15, %v3435_v30, %v7046_v38  ;;  %v14136_v38 = vld [vmem:[#allocation72_spill] sm:$0xff]  ;;  %v14138_v30 = vld [vmem:[#allocation186_spill] sm:$0xff] }
 0x41d   : > { %7338 = vrot.lane.b32.xlu0 %v7337_v63, %s7745_s22  ;;  %v7054_v7 = vpop.permute.xlu1 %7053  ;;  %v3340_v45 = vsel %vm1615_vm6, %v3310_v9, %v6891_v13  ;;  %v6821_v52 = vunpack.i.h.bf16 %v10686_v31  ;;  %v6896_v62 = vunpack.i.h.bf16 %v10748_v14  ;;  %v6976_v60 = vunpack.i.h.bf16 %v10854_v47  ;;  %v14140_v9 = vld [vmem:[#allocation157_spill] sm:$0xff] }
 0x41e   : > { %v3500_v50 = vsel %vm3495_vm9, %v3467_v53, %v7050_v27  ;;  %v7056_v15 = vunpack.i.h.bf16 %v7054_v7  ;;  %v7055_v10 = vunpack.i.l.bf16 %v7054_v7  ;;  %v3372_v59 = vsel %vm1681_vm8, %v3340_v45, %v6971_v61 }
 0x41f   : > { %v7059_v25 = vpop.permute.xlu0 %7058  ;;  %3679 = vmatmul.mubr.f32.gmra.mrb[8].mxu1 %v3500_v50  ;;  %3851 = vrot.lane.b32.xlu1 %v14133_v1, %s7736_s15  ;;  %v3501_v63 = vsel %vm3495_vm9, %v3468_v51, %v7051_v26  ;;  %v3311_v27 = vsel %vm1549_vm4, %v10005_v16, %v6820_v12 }
 0x420   : > { %v7060_v33 = vunpack.i.l.bf16 %v7059_v25  ;;  %6364 = vmatprep.mubr.msk.f32.mxu1 %vm1549_vm4, %v14132_v46  ;;  %v3403_v18 = vsel %vm1747_vm10, %v3371_v57, %v7055_v10  ;;  %v7061_v21 = vunpack.i.h.bf16 %v7059_v25  ;;  %v3404_v55 = vsel %vm1747_vm10, %v3372_v59, %v7056_v15 }
 0x421   : > { %3853 = vrot.lane.b32.xlu0 %v14134_v19, %s7736_s15  ;;  %v7064_v23 = vpop.permute.xlu1 %7063  ;;  %v3341_v26 = vsel %vm1615_vm6, %v3311_v27, %v6895_v2  ;;  %v3312_v25 = vsel %vm1549_vm4, %v10002_v5, %v6821_v52  ;;  %v6825_v15 = vunpack.i.l.bf16 %v10691_v20  ;;  %v6900_v5 = vunpack.i.l.bf16 %v10750_v40 }
 0x422   : > { %v7066_v36 = vunpack.i.h.bf16 %v7064_v23  ;;  %v7065_v22 = vunpack.i.l.bf16 %v7064_v23  ;;  %v3436_v3 = vsel %vm3429_vm14, %v3403_v18, %v7060_v33  ;;  %v3437_v61 = vsel %vm3429_vm14, %v3404_v55, %v7061_v21  ;;  %v14141_v23 = vld [vmem:[#allocation49_spill] sm:$0xff] }
 0x423   : > { %v7069_v24 = vpop.permute.xlu0 %7068  ;;  %3684 = vmatmul.mubr.f32.gmra.mrb[10].mxu1 %v3501_v63  ;;  %3855 = vrot.lane.b32.xlu1 %v14136_v38, %s7736_s15  ;;  %v3373_v50 = vsel %vm1681_vm8, %v3341_v26, %v6975_v34  ;;  %v3342_v10 = vsel %vm1615_vm6, %v3312_v25, %v6896_v62  ;;  %v6826_v59 = vunpack.i.h.bf16 %v10691_v20  ;;  %v6980_v21 = vunpack.i.l.bf16 %v10856_v0 }
 0x424   : > { %v7070_v42 = vunpack.i.l.bf16 %v7069_v24  ;;  %6365 = vmatprep.mubr.msk.f32.mxu1 %vm1549_vm4, %v14135_v28  ;;  %v3469_v31 = vsel %vm3462_vm15, %v3436_v3, %v7065_v22  ;;  %v7071_v35 = vunpack.i.h.bf16 %v7069_v24  ;;  %v3470_v14 = vsel %vm3462_vm15, %v3437_v61, %v7066_v36  ;;  %v14142_v36 = vld [vmem:[#allocation132_spill] sm:$0xff] }
 0x425   : > { %3857 = vrot.lane.b32.xlu0 %v14137_v37, %s7736_s15  ;;  %v7074_v6 = vpop.permute.xlu1 %7073  ;;  %v3374_v57 = vsel %vm1681_vm8, %v3342_v10, %v6976_v60  ;;  %v3313_v63 = vsel %vm1549_vm4, %v10045_v48, %v6825_v15  ;;  %v6901_v55 = vunpack.i.h.bf16 %v10750_v40  ;;  %v6981_v22 = vunpack.i.h.bf16 %v10856_v0  ;;  %v14143_v37 = vld [vmem:[#allocation133_spill] sm:$0xff] }
 0x426   : > { %v3502_v53 = vsel %vm3495_vm9, %v3469_v31, %v7070_v42  ;;  %v7076_v7 = vunpack.i.h.bf16 %v7074_v6  ;;  %v7075_v16 = vunpack.i.l.bf16 %v7074_v6  ;;  %v3503_v12 = vsel %vm3495_vm9, %v3470_v14, %v7071_v35  ;;  %v14144_v6 = vld [vmem:[#allocation104_spill] sm:$0xff] }
 0x427   : > { %v7079_v13 = vpop.permute.xlu0 %7078  ;;  %3689 = vmatmul.mubr.f32.gmra.mrb[12].mxu1 %v3502_v53  ;;  %3859 = vrot.lane.b32.xlu1 %v14139_v32, %s7736_s15  ;;  %v3343_v38 = vsel %vm1615_vm6, %v3313_v63, %v6900_v5  ;;  %v3314_v27 = vsel %vm1549_vm4, %v10042_v8, %v6826_v59  ;;  %v6830_v31 = vunpack.i.l.bf16 %v10693_v56  ;;  %v6905_v8 = vunpack.i.l.bf16 %v10756_v11  ;;  %v14146_v32 = vld [vmem:[#allocation74_spill] sm:$0xff]  ;;  %v14148_v59 = vld [vmem:[#allocation196_spill] sm:$0xff] }
 0x428   : > { %v7080_v47 = vunpack.i.l.bf16 %v7079_v13  ;;  %6366 = vmatprep.mubr.msk.f32.mxu1 %vm1549_vm4, %v14138_v30  ;;  %v3405_v51 = vsel %vm1747_vm10, %v3373_v50, %v7075_v16  ;;  %v7081_v33 = vunpack.i.h.bf16 %v7079_v13  ;;  %v3406_v45 = vsel %vm1747_vm10, %v3374_v57, %v7076_v7  ;;  %v14145_v30 = vld [vmem:[#allocation195_spill] sm:$0xff] }
 0x429   : > { %3861 = vrot.lane.b32.xlu0 %v14140_v9, %s7736_s15  ;;  %v7084_v46 = vpop.permute.xlu1 %7083  ;;  %v3375_v62 = vsel %vm1681_vm8, %v3343_v38, %v6980_v21  ;;  %v3344_v60 = vsel %vm1615_vm6, %v3314_v27, %v6901_v55  ;;  %v6831_v50 = vunpack.i.h.bf16 %v10693_v56  ;;  %v3315_v10 = vsel %vm1549_vm4, %v10079_v4, %v6830_v31  ;;  %v14147_v9 = vld [vmem:[#allocation73_spill] sm:$0xff]  ;;  %v14149_v21 = vld [vmem:[#allocation136_spill] sm:$0xff]  ;;  %v14155_v31 = vld [vmem:[#allocation135_spill] sm:$0xff] }
 0x42a   : > { %v7086_v18 = vunpack.i.h.bf16 %v7084_v46  ;;  %v7085_v19 = vunpack.i.l.bf16 %v7084_v46  ;;  %v3438_v24 = vsel %vm3429_vm14, %v3405_v51, %v7080_v47  ;;  %v3439_v28 = vsel %vm3429_vm14, %v3406_v45, %v7081_v33  ;;  %v14150_v55 = vld [vmem:[#allocation105_spill] sm:$0xff] }
 0x42b   : > { %v7089_v1 = vpop.permute.xlu0 %7088  ;;  %3694 = vmatmul.mubr.f32.gmra.mrb[14].mxu1 %v3503_v12  ;;  %3863 = vrot.lane.b32.xlu1 %v14141_v23, %s7736_s15  ;;  %v3376_v13 = vsel %vm1681_vm8, %v3344_v60, %v6981_v22  ;;  %v6985_v47 = vunpack.i.l.bf16 %v10878_v41  ;;  %v6906_v51 = vunpack.i.h.bf16 %v10756_v11  ;;  %v6986_v5 = vunpack.i.h.bf16 %v10878_v41 }
 0x42c   : > { %v7090_v2 = vunpack.i.l.bf16 %v7089_v1  ;;  %6367 = vmatprep.mubr.msk.f32.mxu1 %vm1549_vm4, %v10444_v43  ;;  %v3471_v20 = vsel %vm3462_vm15, %v3438_v24, %v7085_v19  ;;  %v7091_v42 = vunpack.i.h.bf16 %v7089_v1  ;;  %v3472_v40 = vsel %vm3462_vm15, %v3439_v28, %v7086_v18 }
 0x42d   : > { %3865 = vrot.lane.b32.xlu0 %v14142_v36, %s7736_s15  ;;  %v7094_v52 = vpop.permute.xlu1 %7093  ;;  %v3345_v45 = vsel %vm1615_vm6, %v3315_v10, %v6905_v8  ;;  %v3316_v19 = vsel %vm1549_vm4, %v10076_v29, %v6831_v50  ;;  %v6835_v23 = vunpack.i.l.bf16 %v10699_v58  ;;  %v14151_v36 = vld [vmem:[#allocation87_spill] sm:$0xff]  ;;  %v14157_v50 = vld [vmem:[#allocation106_spill] sm:$0xff]  ;;  %v14159_v10 = vld [vmem:[#allocation108_spill] sm:$0xff] }
 0x42e   : > { %v3504_v34 = vsel %vm3495_vm9, %v3471_v20, %v7090_v2  ;;  %v7096_v3 = vunpack.i.h.bf16 %v7094_v52  ;;  %v7095_v48 = vunpack.i.l.bf16 %v7094_v52  ;;  %v3377_v2 = vsel %vm1681_vm8, %v3345_v45, %v6985_v47 }
 0x42f   : > { %v7099_v43 = vpop.permute.xlu0 %7098  ;;  %3699 = vmatmul.mubr.f32.gmra.mrb[16].mxu1 %v3504_v34  ;;  %3867 = vrot.lane.b32.xlu1 %v14143_v37, %s7736_s15  ;;  %v3346_v24 = vsel %vm1615_vm6, %v3316_v19, %v6906_v51  ;;  %v6910_v29 = vunpack.i.l.bf16 %v14151_v36  ;;  %v3317_v60 = vsel %vm1549_vm4, %v14155_v31, %v6835_v23 }
 0x430   : > { %v7100_v0 = vunpack.i.l.bf16 %v7099_v43  ;;  %6368 = vmatprep.mubr.msk.f32.mxu1 %vm1549_vm4, %v10447_v44  ;;  %v3407_v35 = vsel %vm1747_vm10, %v3375_v62, %v7095_v48  ;;  %v7101_v53 = vunpack.i.h.bf16 %v7099_v43  ;;  %v3505_v44 = vsel %vm3495_vm9, %v3472_v40, %v7091_v42  ;;  %v14152_v40 = vld [vmem:[#allocation173_spill] sm:$0xff]  ;;  %v14153_v62 = vld [vmem:[#allocation84_spill] sm:$0xff] }
 0x431   : > { %3869 = vrot.lane.b32.xlu0 %v14144_v6, %s7736_s15  ;;  %v7104_v61 = vpop.permute.xlu1 %7103  ;;  %v3408_v7 = vsel %vm1747_vm10, %v3376_v13, %v7096_v3  ;;  %v3378_v20 = vsel %vm1681_vm8, %v3346_v24, %v6986_v5  ;;  %v6836_v48 = vunpack.i.h.bf16 %v10699_v58  ;;  %v6990_v27 = vunpack.i.l.bf16 %v14152_v40  ;;  %v14156_v6 = vld [vmem:[#allocation160_spill] sm:$0xff]  ;;  %v14165_v24 = vld [vmem:[#allocation163_spill] sm:$0xff] }
 0x432   : > { %v7106_v16 = vunpack.i.h.bf16 %v7104_v61  ;;  %v7105_v14 = vunpack.i.l.bf16 %v7104_v61  ;;  %v3440_v15 = vsel %vm3429_vm14, %v3407_v35, %v7100_v0  ;;  %v3441_v12 = vsel %vm3429_vm14, %v3408_v7, %v7101_v53  ;;  %v14154_v0 = vld [vmem:[#allocation75_spill] sm:$0xff]  ;;  %v14161_v5 = vld [vmem:[#allocation144_spill] sm:$0xff] }
 0x433   : > { %v7109_v26 = vpop.permute.xlu0 %7108  ;;  %3704 = vmatmul.mubr.f32.gmra.mrb[18].mxu1 %v3505_v44  ;;  %3871 = vrot.lane.b32.xlu1 %v14146_v32, %s7736_s15  ;;  %v6911_v35 = vunpack.i.h.bf16 %v14151_v36  ;;  %v6991_v8 = vunpack.i.h.bf16 %v14152_v40  ;;  %v3347_v7 = vsel %vm1615_vm6, %v3317_v60, %v6910_v29  ;;  %v3318_v47 = vsel %vm1549_vm4, %v14157_v50, %v6836_v48  ;;  %v14167_v40 = vld [vmem:[#allocation169_spill] sm:$0xff] }
 0x434   : > { %v7110_v25 = vunpack.i.l.bf16 %v7109_v26  ;;  %6369 = vmatprep.mubr.msk.f32.mxu1 %vm1549_vm4, %v14145_v30  ;;  %v3473_v56 = vsel %vm3462_vm15, %v3440_v15, %v7105_v14  ;;  %v7111_v57 = vunpack.i.h.bf16 %v7109_v26  ;;  %v3474_v11 = vsel %vm3462_vm15, %v3441_v12, %v7106_v16  ;;  %v14158_v15 = vld [vmem:[#allocation17_spill] sm:$0xff] }
 0x435   : > { %3873 = vrot.lane.b32.xlu0 %v14147_v9, %s7736_s15  ;;  %v7114_v33 = vpop.permute.xlu1 %7113  ;;  %v3379_v30 = vsel %vm1681_vm8, %v3347_v7, %v6990_v27  ;;  %v3348_v51 = vsel %vm1615_vm6, %v3318_v47, %v6911_v35  ;;  %v14168_v27 = vld [vmem:[#allocation162_spill] sm:$0xff]  ;;  %v14169_v35 = vld [vmem:[#allocation101_spill] sm:$0xff] }
 0x436   : > { %v3506_v1 = vsel %vm3495_vm9, %v3473_v56, %v7110_v25  ;;  %v7116_v18 = vunpack.i.h.bf16 %v7114_v33  ;;  %v7115_v4 = vunpack.i.l.bf16 %v7114_v33  ;;  %v3507_v43 = vsel %vm3495_vm9, %v3474_v11, %v7111_v57  ;;  %v14160_v56 = vld [vmem:[#allocation77_spill] sm:$0xff] }
 0x437   : > { %v7119_v46 = vpop.permute.xlu0 %7118  ;;  %3709 = vmatmul.mubr.f32.gmra.mrb[20].mxu1 %v3506_v1  ;;  %3875 = vrot.lane.b32.xlu1 %v14149_v21, %s7736_s15  ;;  %v6840_v57 = vunpack.i.l.bf16 %v14161_v5  ;;  %v3380_v33 = vsel %vm1681_vm8, %v3348_v51, %v6991_v8  ;;  %v14164_v21 = vld [vmem:[#allocation6_spill] sm:$0xff] }
 0x438   : > { %v7120_v41 = vunpack.i.l.bf16 %v7119_v46  ;;  %6370 = vmatprep.mubr.msk.f32.mxu1 %vm1549_vm4, %v14148_v59  ;;  %v3409_v63 = vsel %vm1747_vm10, %v3377_v2, %v7115_v4  ;;  %v7121_v22 = vunpack.i.h.bf16 %v7119_v46  ;;  %v3410_v34 = vsel %vm1747_vm10, %v3378_v20, %v7116_v18  ;;  %v14162_v2 = vld [vmem:[#allocation27_spill] sm:$0xff]  ;;  %v14163_v59 = vld [vmem:[#allocation168_spill] sm:$0xff] }
 0x439   : > { %3877 = vrot.lane.b32.xlu0 %v14150_v55, %s7736_s15  ;;  %v7124_v42 = vpop.permute.xlu1 %7123 }
 0x43a   : > { %v7126_v28 = vunpack.i.h.bf16 %v7124_v42  ;;  %v7125_v38 = vunpack.i.l.bf16 %v7124_v42  ;;  %v3442_v37 = vsel %vm3429_vm14, %v3409_v63, %v7120_v41  ;;  %v3443_v44 = vsel %vm3429_vm14, %v3410_v34, %v7121_v22 }
 0x43b   : > { %v7129_v52 = vpop.permute.xlu0 %7128  ;;  %3714 = vmatmul.mubr.f32.gmra.mrb[22].mxu1 %v3507_v43  ;;  %3879 = vrot.lane.b32.xlu1 %v14154_v0, %s7736_s15  ;;  %v6915_v41 = vunpack.i.l.bf16 %v14162_v2  ;;  %v6841_v42 = vunpack.i.h.bf16 %v14161_v5 }
 0x43c   : > { %v7130_v3 = vunpack.i.l.bf16 %v7129_v52  ;;  %6371 = vmatprep.mubr.msk.f32.mxu1 %vm1549_vm4, %v14153_v62  ;;  %v3475_v58 = vsel %vm3462_vm15, %v3442_v37, %v7125_v38  ;;  %v7131_v13 = vunpack.i.h.bf16 %v7129_v52  ;;  %v3476_v25 = vsel %vm3462_vm15, %v3443_v44, %v7126_v28  ;;  %v14166_v52 = vld [vmem:[#allocation107_spill] sm:$0xff] }
 0x43d   : > { %3881 = vrot.lane.b32.xlu0 %v14156_v6, %s7736_s15  ;;  %v7134_v53 = vpop.permute.xlu1 %7133  ;;  %v3319_v43 = vsel %vm1549_vm4, %v14166_v52, %v6840_v57  ;;  %v6916_v38 = vunpack.i.h.bf16 %v14162_v2  ;;  %v3320_v6 = vsel %vm1549_vm4, %v14169_v35, %v6841_v42 }
 0x43e   : > { %v3508_v26 = vsel %vm3495_vm9, %v3475_v58, %v7130_v3  ;;  %v7136_v16 = vunpack.i.h.bf16 %v7134_v53  ;;  %v7135_v14 = vunpack.i.l.bf16 %v7134_v53  ;;  %v3509_v45 = vsel %vm3495_vm9, %v3476_v25, %v7131_v13 }
 0x43f   : > { %v7139_v61 = vpop.permute.xlu0 %7138  ;;  %3719 = vmatmul.mubr.f32.gmra.mrb[24].mxu1 %v3508_v26  ;;  %3883 = vrot.lane.b32.xlu1 %v14159_v10, %s7736_s15  ;;  %v3349_v3 = vsel %vm1615_vm6, %v3319_v43, %v6915_v41  ;;  %v3350_v8 = vsel %vm1615_vm6, %v3320_v6, %v6916_v38  ;;  %v14170_v26 = vld [vmem:[#allocation13_spill] sm:$0xff] }
 0x440   : > { %v7140_v32 = vunpack.i.l.bf16 %v7139_v61  ;;  %6372 = vmatprep.mubr.msk.f32.mxu1 %vm1549_vm4, %v14158_v15  ;;  %v3411_v9 = vsel %vm1747_vm10, %v3379_v30, %v7135_v14  ;;  %v7141_v46 = vunpack.i.h.bf16 %v7139_v61  ;;  %v3412_v18 = vsel %vm1747_vm10, %v3380_v33, %v7136_v16  ;;  %v14171_v14 = vld [vmem:[#allocation145_spill] sm:$0xff] }
 0x441   : > { %3885 = vrot.lane.b32.xlu0 %v14160_v56, %s7736_s15  ;;  %v7144_v1 = vpop.permute.xlu1 %7143  ;;  %v6845_v25 = vunpack.i.l.bf16 %v14171_v14  ;;  %v6846_v30 = vunpack.i.h.bf16 %v14171_v14 }
 0x442   : > { %v7146_v4 = vunpack.i.h.bf16 %v7144_v1  ;;  %v7145_v11 = vunpack.i.l.bf16 %v7144_v1  ;;  %v3444_v23 = vsel %vm3429_vm14, %v3411_v9, %v7140_v32  ;;  %v3445_v22 = vsel %vm3429_vm14, %v3412_v18, %v7141_v46  ;;  %v14172_v32 = vld [vmem:[#allocation18_spill] sm:$0xff] }
 0x443   : > { %v7149_v12 = vpop.permute.xlu0 %7148  ;;  %3724 = vmatmul.mubr.f32.gmra.mrb[26].mxu1 %v3509_v45  ;;  %7343 = vrot.lane.b32.xlu1 %v14164_v21, %s7738_s17  ;;  %v6920_v15 = vunpack.i.l.bf16 %v14172_v32  ;;  %v6921_v57 = vunpack.i.h.bf16 %v14172_v32  ;;  %v14175_v21 = vld [vmem:[#allocation137_spill] sm:$0xff] }
 0x444   : > { %v7150_v19 = vunpack.i.l.bf16 %v7149_v12  ;;  %6373 = vmatprep.mubr.msk.f32.mxu1 %vm1549_vm4, %v14163_v59  ;;  %v3477_v63 = vsel %vm3462_vm15, %v3444_v23, %v7145_v11  ;;  %v7151_v55 = vunpack.i.h.bf16 %v7149_v12  ;;  %v3478_v28 = vsel %vm3462_vm15, %v3445_v22, %v7146_v4  ;;  %v14173_v12 = vld [vmem:[#allocation161_spill] sm:$0xff]  ;;  %v14174_v59 = vld [vmem:[#allocation14_spill] sm:$0xff] }
 0x445   : > { %3887 = vrot.lane.b32.xlu0 %v14165_v24, %s7736_s15  ;;  %v7154_v36 = vpop.permute.xlu1 %7153  ;;  %v3321_v45 = vsel %vm1549_vm4, %v14173_v12, %v6845_v25  ;;  %v3322_v23 = vsel %vm1549_vm4, %v14175_v21, %v6846_v30  ;;  %v14176_v22 = vld [vmem:[#allocation197_spill] sm:$0xff]  ;;  %v14180_v25 = vld [vmem:[#allocation23_spill] sm:$0xff] }
 0x446   : > { %v3510_v20 = vsel %vm3495_vm9, %v3477_v63, %v7150_v19  ;;  %v7155_v34 = vunpack.i.l.bf16 %v7154_v36  ;;  %v7156_v62 = vunpack.i.h.bf16 %v7154_v36  ;;  %v3511_v60 = vsel %vm3495_vm9, %v3478_v28, %v7151_v55 }
 0x447   : > { %v7159_v29 = vpop.permute.xlu0 %7158  ;;  %3729 = vmatmul.mubr.f32.gmra.mrb[28].mxu1 %v3510_v20  ;;  %3889 = vrot.lane.b32.xlu1 %v14168_v27, %s7736_s15  ;;  %v3351_v19 = vsel %vm1615_vm6, %v3321_v45, %v6920_v15  ;;  %v3352_v36 = vsel %vm1615_vm6, %v3322_v23, %v6921_v57  ;;  %v6850_v42 = vunpack.i.l.bf16 %v14176_v22  ;;  %v14177_v27 = vld [vmem:[#allocation85_spill] sm:$0xff] }
 0x448   : > { %v7160_v48 = vunpack.i.l.bf16 %v7159_v29  ;;  %6374 = vmatprep.mubr.msk.f32.mxu1 %vm1549_vm4, %v14167_v40  ;;  %v3381_v0 = vsel %vm1681_vm8, %v3349_v3, %v7155_v34  ;;  %v7161_v13 = vunpack.i.h.bf16 %v7159_v29  ;;  %v3382_v44 = vsel %vm1681_vm8, %v3350_v8, %v7156_v62  ;;  %v14178_v62 = vld [vmem:[#allocation19_spill] sm:$0xff] }
 0x449   : > { %v7164_v37 = vpop.permute.xlu1 %7163 }
 0x44a   : > { %v7165_v58 = vunpack.i.l.bf16 %v7164_v37  ;;  %v3413_v53 = vsel %vm1747_vm10, %v3381_v0, %v7160_v48  ;;  %v7166_v7 = vunpack.i.h.bf16 %v7164_v37  ;;  %v3414_v51 = vsel %vm1747_vm10, %v3382_v44, %v7161_v13 }
 0x44b   : > { %v7169_v31 = vpop.permute.xlu0 %7168  ;;  %3734 = vmatmul.mubr.f32.gmra.mrb[30].mxu1 %v3511_v60  ;;  %v6925_v0 = vunpack.i.l.bf16 %v14178_v62  ;;  %v6851_v13 = vunpack.i.h.bf16 %v14176_v22 }
 0x44c   : > { %v7170_v61 = vunpack.i.l.bf16 %v7169_v31  ;;  %6375 = vmatprep.mubr.msk.f32.mxu1 %vm1549_vm4, %v14170_v26  ;;  %v3446_v16 = vsel %vm3429_vm14, %v3413_v53, %v7165_v58  ;;  %v7171_v9 = vunpack.i.h.bf16 %v7169_v31  ;;  %v3447_v1 = vsel %vm3429_vm14, %v3414_v51, %v7166_v7  ;;  %v14179_v53 = vld [vmem:[#allocation109_spill] sm:$0xff] }
 0x44d   : > { %v7174_v50 = vpop.permute.xlu1 %7173  ;;  %v6926_v7 = vunpack.i.h.bf16 %v14178_v62 }
 0x44e   : > { %v7175_v10 = vunpack.i.l.bf16 %v7174_v50  ;;  %v3479_v5 = vsel %vm3462_vm15, %v3446_v16, %v7170_v61  ;;  %v7176_v33 = vunpack.i.h.bf16 %v7174_v50  ;;  %v3480_v55 = vsel %vm3462_vm15, %v3447_v1, %v7171_v9 }
 0x44f   : > { %v7179_v47 = vpop.permute.xlu0 %7178  ;;  %v3323_v61 = vsel %vm1549_vm4, %v14179_v53, %v6850_v42  ;;  %v14185_v42 = vld [vmem:[#allocation51_spill] sm:$0xff] }
 0x450   : > { %v7180_v56 = vunpack.i.l.bf16 %v7179_v47  ;;  %v3512_v46 = vsel %vm3495_vm9, %v3479_v5, %v7175_v10  ;;  %v7181_v18 = vunpack.i.h.bf16 %v7179_v47  ;;  %v3513_v20 = vsel %vm3495_vm9, %v3480_v55, %v7176_v33  ;;  %v14181_v10 = vld [vmem:[#allocation139_spill] sm:$0xff] }
 0x451   : > { %v7184_v4 = vpop.permute.xlu1 %7183  ;;  %3739 = vmatmul.mubr.f32.gmra.mrb[32].mxu1 %v3512_v46  ;;  %v3353_v16 = vsel %vm1615_vm6, %v3323_v61, %v6925_v0  ;;  %v3324_v51 = vsel %vm1549_vm4, %v14181_v10, %v6851_v13  ;;  %v14182_v46 = vld [vmem:[#allocation55_spill] sm:$0xff] }
 0x452   : > { %v7186_v2 = vunpack.i.h.bf16 %v7184_v4  ;;  %v7185_v41 = vunpack.i.l.bf16 %v7184_v4  ;;  %6376 = vmatprep.mubr.msk.f32.mxu1 %vm1549_vm4, %v14174_v59  ;;  %v3383_v24 = vsel %vm1681_vm8, %v3351_v19, %v7180_v56  ;;  %v3384_v52 = vsel %vm1681_vm8, %v3352_v36, %v7181_v18  ;;  %v14183_v18 = vld [vmem:[#allocation198_spill] sm:$0xff] }
 0x453   : > { %v7189_v11 = vpop.permute.xlu0 %7188  ;;  %v3354_v56 = vsel %vm1615_vm6, %v3324_v51, %v6926_v7  ;;  %v6855_v4 = vunpack.i.l.bf16 %v14183_v18 }
 0x454   : > { %v7190_v63 = vunpack.i.l.bf16 %v7189_v11  ;;  %v3415_v29 = vsel %vm1747_vm10, %v3383_v24, %v7185_v41  ;;  %v7191_v43 = vunpack.i.h.bf16 %v7189_v11  ;;  %v3416_v38 = vsel %vm1747_vm10, %v3384_v52, %v7186_v2  ;;  %v14184_v41 = vld [vmem:[#allocation118_spill] sm:$0xff] }
 0x455   : > { %v7194_v34 = vpop.permute.xlu1 %7193  ;;  %3744 = vmatmul.mubr.f32.gmra.mrb[34].mxu1 %v3513_v20  ;;  %v6856_v2 = vunpack.i.h.bf16 %v14183_v18  ;;  %v6930_v59 = vunpack.i.l.bf16 %v14184_v41  ;;  %v6931_v36 = vunpack.i.h.bf16 %v14184_v41  ;;  %v3325_v52 = vsel %vm1549_vm4, %v14185_v42, %v6855_v4  ;;  %v14192_v4 = vld [vmem:[#allocation117_spill] sm:$0xff] }
 0x456   : > { %v7196_v3 = vunpack.i.h.bf16 %v7194_v34  ;;  %v7195_v48 = vunpack.i.l.bf16 %v7194_v34  ;;  %6377 = vmatprep.mubr.msk.f32.mxu1 %vm1549_vm4, %v14177_v27  ;;  %v3448_v37 = vsel %vm3429_vm14, %v3415_v29, %v7190_v63  ;;  %v3449_v8 = vsel %vm3429_vm14, %v3416_v38, %v7191_v43  ;;  %v14187_v27 = vld [vmem:[#allocation111_spill] sm:$0xff] }
 0x457   : > { %v7199_v28 = vpop.permute.xlu0 %7198  ;;  %v3355_v38 = vsel %vm1615_vm6, %v3325_v52, %v6930_v59  ;;  %v3326_v62 = vsel %vm1549_vm4, %v14187_v27, %v6856_v2  ;;  %v14194_v52 = vld [vmem:[#allocation171_spill] sm:$0xff] }
 0x458   : > { %v7200_v40 = vunpack.i.l.bf16 %v7199_v28  ;;  %v3481_v31 = vsel %vm3462_vm15, %v3448_v37, %v7195_v48  ;;  %v7201_v60 = vunpack.i.h.bf16 %v7199_v28  ;;  %v3482_v44 = vsel %vm3462_vm15, %v3449_v8, %v7196_v3 }
 0x459   : > { %v7204_v35 = vpop.permute.xlu1 %7203 }
 0x45a   : > { %v3514_v58 = vsel %vm3495_vm9, %v3481_v31, %v7200_v40  ;;  %v7205_v26 = vunpack.i.l.bf16 %v7204_v35  ;;  %v7206_v50 = vunpack.i.h.bf16 %v7204_v35  ;;  %v3515_v15 = vsel %vm3495_vm9, %v3482_v44, %v7201_v60  ;;  %v14186_v40 = vld [vmem:[#allocation187_spill] sm:$0xff] }
 0x45b   : > { %v7209_v6 = vpop.permute.xlu0 %7208  ;;  %3749 = vmatmul.mubr.f32.gmra.mrb[36].mxu1 %v3514_v58  ;;  %v3356_v60 = vsel %vm1615_vm6, %v3326_v62, %v6931_v36  ;;  %v14188_v58 = vld [vmem:[#allocation170_spill] sm:$0xff] }
 0x45c   : > { %v7210_v14 = vunpack.i.l.bf16 %v7209_v6  ;;  %6378 = vmatprep.mubr.msk.f32.mxu1 %vm1549_vm4, %v14180_v25  ;;  %v3385_v47 = vsel %vm1681_vm8, %v3353_v16, %v7205_v26  ;;  %v7211_v5 = vunpack.i.h.bf16 %v7209_v6  ;;  %v3386_v1 = vsel %vm1681_vm8, %v3354_v56, %v7206_v50  ;;  %v14189_v25 = vld [vmem:[#allocation116_spill] sm:$0xff]  ;;  %v14190_v50 = vld [vmem:[#allocation119_spill] sm:$0xff] }
 0x45d   : > { %v7214_v30 = vpop.permute.xlu1 %7213  ;;  %v6860_v8 = vunpack.i.l.bf16 %v14188_v58 }
 0x45e   : > { %v7215_v9 = vunpack.i.l.bf16 %v7214_v30  ;;  %v3417_v57 = vsel %vm1747_vm10, %v3385_v47, %v7210_v14  ;;  %v7216_v12 = vunpack.i.h.bf16 %v7214_v30  ;;  %v3418_v23 = vsel %vm1747_vm10, %v3386_v1, %v7211_v5 }
 0x45f   : > { %v7219_v32 = vpop.permute.xlu0 %7218  ;;  %3754 = vmatmul.mubr.f32.gmra.mrb[38].mxu1 %v3515_v15  ;;  %v6935_v47 = vunpack.i.l.bf16 %v14190_v50  ;;  %v6861_v5 = vunpack.i.h.bf16 %v14188_v58  ;;  %v14197_v58 = vld [vmem:[#allocation112_spill] sm:$0xff] }
 0x460   : > { %v7220_v33 = vunpack.i.l.bf16 %v7219_v32  ;;  %6379 = vmatprep.mubr.msk.f32.mxu1 %vm1549_vm4, %v14182_v46  ;;  %v3450_v45 = vsel %vm3429_vm14, %v3417_v57, %v7215_v9  ;;  %v7221_v24 = vunpack.i.h.bf16 %v7219_v32  ;;  %v3451_v22 = vsel %vm3429_vm14, %v3418_v23, %v7216_v12  ;;  %v14191_v57 = vld [vmem:[#allocation164_spill] sm:$0xff] }
 0x461   : > { %v7224_v11 = vpop.permute.xlu1 %7223  ;;  %v6936_v12 = vunpack.i.h.bf16 %v14190_v50 }
 0x462   : > { %v7225_v21 = vunpack.i.l.bf16 %v7224_v11  ;;  %v3483_v55 = vsel %vm3462_vm15, %v3450_v45, %v7220_v33  ;;  %v7226_v29 = vunpack.i.h.bf16 %v7224_v11  ;;  %v3484_v31 = vsel %vm3462_vm15, %v3451_v22, %v7221_v24 }
 0x463   : > { %v7229_v19 = vpop.permute.xlu0 %7228  ;;  %v3327_v33 = vsel %vm1549_vm4, %v14191_v57, %v6860_v8 }
 0x464   : > { %v7230_v63 = vunpack.i.l.bf16 %v7229_v19  ;;  %v3516_v20 = vsel %vm3495_vm9, %v3483_v55, %v7225_v21  ;;  %v7231_v43 = vunpack.i.h.bf16 %v7229_v19  ;;  %v3517_v6 = vsel %vm3495_vm9, %v3484_v31, %v7226_v29  ;;  %v14193_v21 = vld [vmem:[#allocation140_spill] sm:$0xff] }
 0x465   : > { %v7234_v34 = vpop.permute.xlu1 %7233  ;;  %3759 = vmatmul.mubr.f32.gmra.mrb[40].mxu1 %v3516_v20  ;;  %v3357_v45 = vsel %vm1615_vm6, %v3327_v33, %v6935_v47  ;;  %v3328_v23 = vsel %vm1549_vm4, %v14193_v21, %v6861_v5  ;;  %v14201_v21 = vld [vmem:[#allocation82_spill] sm:$0xff] }
 0x466   : > { %v7236_v3 = vunpack.i.h.bf16 %v7234_v34  ;;  %v7235_v48 = vunpack.i.l.bf16 %v7234_v34  ;;  %6380 = vmatprep.mubr.msk.f32.mxu1 %vm1549_vm4, %v14186_v40  ;;  %v3387_v0 = vsel %vm1681_vm8, %v3355_v38, %v7230_v63  ;;  %v3388_v13 = vsel %vm1681_vm8, %v3356_v60, %v7231_v43 }
 0x467   : > { %v7239_v28 = vpop.permute.xlu0 %7238  ;;  %v3358_v63 = vsel %vm1615_vm6, %v3328_v23, %v6936_v12  ;;  %v6865_v43 = vunpack.i.l.bf16 %v14194_v52  ;;  %v6866_v38 = vunpack.i.h.bf16 %v14194_v52  ;;  %v14200_v12 = vld [vmem:[#allocation147_spill] sm:$0xff] }
 0x468   : > { %v7240_v37 = vunpack.i.l.bf16 %v7239_v28  ;;  %v3419_v35 = vsel %vm1747_vm10, %v3387_v0, %v7235_v48  ;;  %v7241_v53 = vunpack.i.h.bf16 %v7239_v28  ;;  %v3420_v44 = vsel %vm1747_vm10, %v3388_v13, %v7236_v3  ;;  %v14195_v3 = vld [vmem:[#allocation56_spill] sm:$0xff] }
 0x469   : > { %v7244_v61 = vpop.permute.xlu1 %7243  ;;  %3764 = vmatmul.mubr.f32.gmra.mrb[42].mxu1 %v3517_v6  ;;  %v6940_v48 = vunpack.i.l.bf16 %v14195_v3  ;;  %v6941_v31 = vunpack.i.h.bf16 %v14195_v3  ;;  %v3329_v8 = vsel %vm1549_vm4, %v14197_v58, %v6865_v43 }
 0x46a   : > { %v7246_v7 = vunpack.i.h.bf16 %v7244_v61  ;;  %v7245_v16 = vunpack.i.l.bf16 %v7244_v61  ;;  %6381 = vmatprep.mubr.msk.f32.mxu1 %vm1549_vm4, %v14189_v25  ;;  %v3452_v30 = vsel %vm3429_vm14, %v3419_v35, %v7240_v37  ;;  %v3453_v56 = vsel %vm3429_vm14, %v3420_v44, %v7241_v53  ;;  %v14196_v37 = vld [vmem:[#allocation50_spill] sm:$0xff] }
 0x46b   : > { %v7249_v26 = vpop.permute.xlu0 %7248  ;;  %7348 = vrot.lane.b32.xlu0 %v14196_v37, %s7741_s20 }
 0x46c   : > { %v7250_v14 = vunpack.i.l.bf16 %v7249_v26  ;;  %v3485_v32 = vsel %vm3462_vm15, %v3452_v30, %v7245_v16  ;;  %v7251_v15 = vunpack.i.h.bf16 %v7249_v26  ;;  %v3486_v1 = vsel %vm3462_vm15, %v3453_v56, %v7246_v7  ;;  %v14198_v16 = vld [vmem:[#allocation48_spill] sm:$0xff] }
 0x46d   : > { %v7254_v10 = vpop.permute.xlu1 %7253  ;;  %v3359_v26 = vsel %vm1615_vm6, %v3329_v8, %v6940_v48 }
 0x46e   : > { %v3518_v9 = vsel %vm3495_vm9, %v3485_v32, %v7250_v14  ;;  %v7255_v46 = vunpack.i.l.bf16 %v7254_v10  ;;  %v7256_v11 = vunpack.i.h.bf16 %v7254_v10  ;;  %v3519_v59 = vsel %vm3495_vm9, %v3486_v1, %v7251_v15  ;;  %v14199_v10 = vld [vmem:[#allocation86_spill] sm:$0xff] }
 0x46f   : > { %v7259_v51 = vpop.permute.xlu0 %7258  ;;  %3769 = vmatmul.mubr.f32.gmra.mrb[44].mxu1 %v3518_v9  ;;  %v3330_v14 = vsel %vm1549_vm4, %v14198_v16, %v6866_v38 }
 0x470   : > { %v7260_v18 = vunpack.i.l.bf16 %v7259_v51  ;;  %6382 = vmatprep.mubr.msk.f32.mxu1 %vm1549_vm4, %v14192_v4  ;;  %v3389_v19 = vsel %vm1681_vm8, %v3357_v45, %v7255_v46  ;;  %v7261_v55 = vunpack.i.h.bf16 %v7259_v51  ;;  %v3390_v20 = vsel %vm1681_vm8, %v3358_v63, %v7256_v11 }
 0x471   : > { %v7264_v2 = vpop.permute.xlu1 %7263  ;;  %v3360_v30 = vsel %vm1615_vm6, %v3330_v14, %v6941_v31  ;;  %v6870_v51 = vunpack.i.l.bf16 %v14199_v10  ;;  %v6945_v45 = vunpack.i.l.bf16 %v14200_v12  ;;  %v6871_v11 = vunpack.i.h.bf16 %v14199_v10 }
 0x472   : > { %v7265_v24 = vunpack.i.l.bf16 %v7264_v2  ;;  %v3421_v36 = vsel %vm1747_vm10, %v3389_v19, %v7260_v18  ;;  %v7266_v22 = vunpack.i.h.bf16 %v7264_v2  ;;  %v3422_v27 = vsel %vm1747_vm10, %v3390_v20, %v7261_v55 }
 0x473   : > { %v7269_v41 = vpop.permute.xlu0 %7268  ;;  %3774 = vmatmul.mubr.f32.gmra.mrb[46].mxu1 %v3519_v59  ;;  %v3331_v23 = vsel %vm1549_vm4, %v14201_v21, %v6870_v51 }
 0x474   : > { %v7270_v29 = vunpack.i.l.bf16 %v7269_v41  ;;  %6383 = vmatprep.mubr.msk.f32.mxu1 %vm1549_vm4, %v10928_v17  ;;  %v3454_v42 = vsel %vm3429_vm14, %v3421_v36, %v7265_v24  ;;  %v7271_v62 = vunpack.i.h.bf16 %v7269_v41  ;;  %v3455_v6 = vsel %vm3429_vm14, %v3422_v27, %v7266_v22 }
 0x475   : > { %v7274_v34 = vpop.permute.xlu1 %7273  ;;  %v6946_v24 = vunpack.i.h.bf16 %v14200_v12  ;;  %v3361_v36 = vsel %vm1615_vm6, %v3331_v23, %v6945_v45 }
 0x476   : > { %v7275_v40 = vunpack.i.l.bf16 %v7274_v34  ;;  %v3487_v17 = vsel %vm3462_vm15, %v3454_v42, %v7270_v29  ;;  %v7276_v60 = vunpack.i.h.bf16 %v7274_v34  ;;  %v3488_v47 = vsel %vm3462_vm15, %v3455_v6, %v7271_v62  ;;  %v14202_v42 = vld [vmem:[#allocation167_spill] sm:$0xff] }
 0x477   : > { %v7279_v28 = vpop.permute.xlu0 %7278  ;;  %v3332_v52 = vsel %vm1549_vm4, %v14202_v42, %v6871_v11  ;;  %v3984_v42 = vld [vmem:[%s13219_s5 + $0x28] sm:$0xff] }
 0x478   : > { %v7280_v0 = vunpack.i.l.bf16 %v7279_v28  ;;  %v3520_v35 = vsel %vm3495_vm9, %v3487_v17, %v7275_v40  ;;  %v7281_v13 = vunpack.i.h.bf16 %v7279_v28  ;;  %v3521_v15 = vsel %vm3495_vm9, %v3488_v47, %v7276_v60  ;;  %v14204_v17 = vld [vmem:[#allocation22_spill] sm:$0xff] }
 0x479   : > { %v7284_v53 = vpop.permute.xlu1 %7283  ;;  %3779 = vmatmul.mubr.f32.gmra.mrb[48].mxu1 %v3520_v35  ;;  %v3362_v28 = vsel %vm1615_vm6, %v3332_v52, %v6946_v24  ;;  %v6876_v37 = vunpack.i.h.bf16 %v14204_v17  ;;  %v6875_v60 = vunpack.i.l.bf16 %v14204_v17  ;;  %v14205_v35 = vld [vmem:[#allocation199_spill] sm:$0xff]  ;;  %v3979_v24 = vld [vmem:[%s13219_s5] sm:$0xff]  ;;  %v3985_v52 = vld [vmem:[%s13219_s5 + $0x30] sm:$0xff] }
 0x47a   : > { %v7286_v44 = vunpack.i.h.bf16 %v7284_v53  ;;  %v7285_v7 = vunpack.i.l.bf16 %v7284_v53  ;;  %6384 = vmatprep.mubr.msk.f32.mxu1 %vm1549_vm4, %v10931_v39  ;;  %v3391_v25 = vsel %vm1681_vm8, %v3359_v26, %v7280_v0  ;;  %v3392_v9 = vsel %vm1681_vm8, %v3360_v30, %v7281_v13  ;;  %v14203_v0 = vld [vmem:[#allocation11_spill] sm:$0xff] }
 0x47b   : > { %v7289_v61 = vpop.permute.xlu0 %7288  ;;  %v6951_v6 = vunpack.i.h.bf16 %v14205_v35  ;;  %v6950_v8 = vunpack.i.l.bf16 %v14205_v35  ;;  %v3995_v35 = vld [vmem:[%s13219_s5 + $0x80] sm:$0xff] }
 0x47c   : > { %v7290_v50 = vunpack.i.l.bf16 %v7289_v61  ;;  %v3423_v32 = vsel %vm1747_vm10, %v3391_v25, %v7285_v7  ;;  %v7291_v56 = vunpack.i.h.bf16 %v7289_v61  ;;  %v3424_v57 = vsel %vm1747_vm10, %v3392_v9, %v7286_v44  ;;  %v14206_v25 = vld [vmem:[#allocation15_spill] sm:$0xff] }
 0x47d   : > { %3784 = vmatmul.mubr.f32.gmra.mrb[50].mxu1 %v3521_v15  ;;  %v7294_v39 = vpop.permute.xlu1 %7293 }
 0x47e   : > { %v7296_v33 = vunpack.i.h.bf16 %v7294_v39  ;;  %v7295_v46 = vunpack.i.l.bf16 %v7294_v39  ;;  %6385 = vmatprep.mubr.msk.f32.mxu1 %vm1549_vm4, %v10951_v54  ;;  %v3456_v18 = vsel %vm3429_vm14, %v3423_v32, %v7290_v50  ;;  %v3457_v59 = vsel %vm3429_vm14, %v3424_v57, %v7291_v56  ;;  %v14207_v32 = vld [vmem:[#allocation83_spill] sm:$0xff]  ;;  %v14208_v57 = vld [vmem:[#allocation12_spill] sm:$0xff] }
 0x47f   : > { %v7299_v5 = vpop.permute.xlu0 %7298  ;;  %v3334_v50 = vsel %vm1549_vm4, %v14206_v25, %v6876_v37  ;;  %v3333_v15 = vsel %vm1549_vm4, %v14207_v32, %v6875_v60  ;;  %v3993_v37 = vld [vmem:[%s13219_s5 + $0x70] sm:$0xff] }
 0x480   : > { %v7300_v1 = vunpack.i.l.bf16 %v7299_v5  ;;  %v3489_v4 = vsel %vm3462_vm15, %v3456_v18, %v7295_v46  ;;  %v7301_v19 = vunpack.i.h.bf16 %v7299_v5  ;;  %v3490_v55 = vsel %vm3462_vm15, %v3457_v59, %v7296_v33 }
 0x481   : > { %v7304_v2 = vpop.permute.xlu1 %7303  ;;  %v3364_v10 = vsel %vm1615_vm6, %v3334_v50, %v6951_v6  ;;  %v3363_v9 = vsel %vm1615_vm6, %v3333_v15, %v6950_v8  ;;  %v3996_v6 = vld [vmem:[%s13219_s5 + $0x88] sm:$0xff]  ;;  %v3999_v15 = vld [vmem:[%s13219_s5 + $0xa0] sm:$0xff] }
 0x482   : > { %v3522_v41 = vsel %vm3495_vm9, %v3489_v4, %v7300_v1  ;;  %v7305_v54 = vunpack.i.l.bf16 %v7304_v2  ;;  %v7306_v29 = vunpack.i.h.bf16 %v7304_v2  ;;  %v3523_v34 = vsel %vm3495_vm9, %v3490_v55, %v7301_v19 }
 0x483   : > { %v7309_v63 = vpop.permute.xlu0 %7308  ;;  %3789 = vmatmul.mubr.f32.gmra.mrb[52].mxu1 %v3522_v41  ;;  %v14209_v55 = vmov 0.0|0.0   ;;  %v6728_v8 = vpack.c.bf16 %v3996_v6, %v3995_v35 }
 0x484   : > { %v7310_v20 = vunpack.i.l.bf16 %v7309_v63  ;;  %6386 = vmatprep.mubr.msk.f32.mxu1 %vm1549_vm4, %v10971_v49  ;;  %v3393_v22 = vsel %vm1681_vm8, %v3361_v36, %v7305_v54  ;;  %v7311_v38 = vunpack.i.h.bf16 %v7309_v63  ;;  %v3394_v40 = vsel %vm1681_vm8, %v3362_v28, %v7306_v29  ;;  %v3980_v54 = vld [vmem:[%s13219_s5 + $0x8] sm:$0xff]  ;;  %v3981_v36 = vld [vmem:[%s13219_s5 + $0x10] sm:$0xff]  ;;  %v3982_v29 = vld [vmem:[%s13219_s5 + $0x18] sm:$0xff] }
 0x485   : > { %v7314_v43 = vpop.permute.xlu1 %7313  ;;  %v6704_v63 = vpack.c.bf16 %v3980_v54, %v3979_v24 }
 0x486   : > { %v7315_v3 = vunpack.i.l.bf16 %v7314_v43  ;;  %v3425_v27 = vsel %vm1747_vm10, %v3393_v22, %v7310_v20  ;;  %v7316_v62 = vunpack.i.h.bf16 %v7314_v43  ;;  %v3426_v13 = vsel %vm1747_vm10, %v3394_v40, %v7311_v38  ;;  %v3983_v22 = vld [vmem:[%s13219_s5 + $0x20] sm:$0xff]  ;;  %v3989_v40 = vld [vmem:[%s13219_s5 + $0x50] sm:$0xff] }
 0x487   : > { %v7319_v48 = vpop.permute.xlu0 %7318  ;;  %3794 = vmatmul.mubr.f32.gmra.mrb[54].mxu1 %v3523_v34  ;;  %6705 = vmatpush1.bf16.msra.mxu0 %v6704_v63  ;;  %v6707_v20 = vpack.c.bf16 %v3982_v29, %v3981_v36  ;;  %v6710_v43 = vpack.c.bf16 %v3984_v42, %v3983_v22  ;;  %v3986_v34 = vld [vmem:[%s13219_s5 + $0x38] sm:$0xff]  ;;  %v3987_v38 = vld [vmem:[%s13219_s5 + $0x40] sm:$0xff] }
 0x488   : > { %v7320_v49 = vunpack.i.l.bf16 %v7319_v48  ;;  %6387 = vmatprep.mubr.msk.f32.mxu1 %vm1549_vm4, %v14203_v0  ;;  %v3458_v31 = vsel %vm3429_vm14, %v3425_v27, %v7315_v3  ;;  %v7321_v53 = vunpack.i.h.bf16 %v7319_v48  ;;  %v3459_v14 = vsel %vm3429_vm14, %v3426_v13, %v7316_v62  ;;  %6706 = vmatprep.subr.bf16.mxu0 %v14209_v55  ;;  %v3988_v3 = vld [vmem:[%s13219_s5 + $0x48] sm:$0xff]  ;;  %v3990_v27 = vld [vmem:[%s13219_s5 + $0x58] sm:$0xff]  ;;  %v4003_v29 = vld [vmem:[%s13219_s5 + $0xc0] sm:$0xff] }
 0x489   : > { %v7324_v58 = vpop.permute.xlu1 %7323  ;;  %v6713_v28 = vpack.c.bf16 %v3986_v34, %v3985_v52  ;;  %v6716_v48 = vpack.c.bf16 %v3988_v3, %v3987_v38  ;;  %v6719_v62 = vpack.c.bf16 %v3990_v27, %v3989_v40 }
 0x48a   : > { %v7325_v61 = vunpack.i.l.bf16 %v7324_v58  ;;  %v3491_v16 = vsel %vm3462_vm15, %v3458_v31, %v7320_v49  ;;  %v7326_v47 = vunpack.i.h.bf16 %v7324_v58  ;;  %v3492_v33 = vsel %vm3462_vm15, %v3459_v14, %v7321_v53  ;;  %v3994_v31 = vld [vmem:[%s13219_s5 + $0x78] sm:$0xff]  ;;  %v11437_v58 = vld [vmem:[%s13218_s4] ss:$0 sm:$0xff] }
 0x48b   : > { %v7329_v26 = vpop.permute.xlu0 %7328  ;;  %6708 = vmatpush1.bf16.msra.mxu0 %v6707_v20  ;;  %v6725_v60 = vpack.c.bf16 %v3994_v31, %v3993_v37  ;;  %v4004_v20 = vld [vmem:[%s13219_s5 + $0xc8] sm:$0xff] }
 0x48c   : > { %v7331_v44 = vunpack.i.h.bf16 %v7329_v26  ;;  %v7330_v7 = vunpack.i.l.bf16 %v7329_v26  ;;  %v3524_v30 = vsel %vm3495_vm9, %v3491_v16, %v7325_v61  ;;  %v3525_v11 = vsel %vm3495_vm9, %v3492_v33, %v7326_v47  ;;  %6709 = vmatprep.subr.bf16.mxu0 %v14209_v55  ;;  %v3997_v26 = vld [vmem:[%s13219_s5 + $0x90] sm:$0xff] }
 0x48d   : > { %v7334_v51 = vpop.permute.xlu1 %7333  ;;  %3799 = vmatmul.mubr.f32.gmra.mrb[56].mxu1 %v3524_v30 }
 0x48e   : > { %v7336_v56 = vunpack.i.h.bf16 %v7334_v51  ;;  %v7335_v39 = vunpack.i.l.bf16 %v7334_v51  ;;  %6388 = vmatprep.mubr.msk.f32.mxu1 %vm1549_vm4, %v14208_v57  ;;  %v3396_v46 = vsel %vm1681_vm8, %v3364_v10, %v7331_v44  ;;  %v3395_v1 = vsel %vm1681_vm8, %v3363_v9, %v7330_v7  ;;  %v3998_v44 = vld [vmem:[%s13219_s5 + $0x98] sm:$0xff]  ;;  %v4000_v10 = vld [vmem:[%s13219_s5 + $0xa8] sm:$0xff] }
 0x48f   : > { %v7339_v5 = vpop.permute.xlu0 %7338  ;;  %6711 = vmatpush1.bf16.msra.mxu0 %v6710_v43  ;;  %v6731_v16 = vpack.c.bf16 %v3998_v44, %v3997_v26  ;;  %v6734_v9 = vpack.c.bf16 %v4000_v10, %v3999_v15  ;;  %v6740_v43 = vpack.c.bf16 %v4004_v20, %v4003_v29 }
 0x490   : > { %v7341_v12 = vunpack.i.h.bf16 %v7339_v5  ;;  %v7340_v45 = vunpack.i.l.bf16 %v7339_v5  ;;  %v3427_v18 = vsel %vm1747_vm10, %v3395_v1, %v7335_v39  ;;  %v3428_v4 = vsel %vm1747_vm10, %v3396_v46, %v7336_v56  ;;  %6712 = vmatprep.subr.bf16.mxu0 %v14209_v55 }
 0x491   : > { %3804 = vmatmul.mubr.f32.gmra.mrb[58].mxu1 %v3525_v11  ;;  %v3852_v14 = vpop.permute.xlu1 %3851 }
 0x492   : > { %v3460_v19 = vsel %vm3429_vm14, %v3427_v18, %v7340_v45  ;;  %6389 = vmatprep.mubr.msk.f32.mxu1 %vm1549_vm4, %v14203_v0  ;;  %v3461_v41 = vsel %vm3429_vm14, %v3428_v4, %v7341_v12  ;;  %v3992_v0 = vld [vmem:[%s13219_s5 + $0x68] sm:$0xff]  ;;  %v4001_v12 = vld [vmem:[%s13219_s5 + $0xb0] sm:$0xff]  ;;  %v4002_v45 = vld [vmem:[%s13219_s5 + $0xb8] sm:$0xff] }
 0x493   : > { %v3493_v2 = vsel %vm3462_vm15, %v3460_v19, %v7320_v49  ;;  %v3494_v21 = vsel %vm3462_vm15, %v3461_v41, %v7321_v53  ;;  %6714 = vmatpush1.bf16.msra.mxu0 %v6713_v28  ;;  %v3991_v49 = vld [vmem:[%s13219_s5 + $0x60] sm:$0xff]  ;;  %v3854_v56 = vpop.permute.xlu0 %3853  ;;  %v6737_v4 = vpack.c.bf16 %v4002_v45, %v4001_v12 }
 0x494   : > { %v3526_v59 = vsel %vm3495_vm9, %v3493_v2, %v7325_v61  ;;  %v3527_v23 = vsel %vm3495_vm9, %v3494_v21, %v7326_v47  ;;  %6715 = vmatprep.subr.bf16.mxu0 %v14209_v55  ;;  %v6722_v17 = vpack.c.bf16 %v3992_v0, %v3991_v49  ;;  %v14214_v0 = vmov 0.0  }
 0x495   : > { %3809 = vmatmul.mubr.f32.gmra.mrb[60].mxu1 %v3526_v59  ;;  %v3856_v11 = vpop.permute.xlu1 %3855 }
 0x496   : > { %6390 = vmatprep.mubr.msk.f32.mxu1 %vm1549_vm4, %v14208_v57 }
 0x497   : > { %6717 = vmatpush1.bf16.msra.mxu0 %v6716_v48  ;;  %v3858_v34 = vpop.permute.xlu0 %3857 }
 0x498   : > { %6718 = vmatprep.subr.bf16.mxu0 %v14209_v55 }
 0x499   : > { %3814 = vmatmul.mubr.f32.gmra.mrb[62].mxu1 %v3527_v23 }
 0x49b   : > { %6720 = vmatpush1.bf16.msra.mxu0 %v6719_v62  ;;  %v3862_v12 = vpop.permute.xlu0 %3861 }
 0x49c   : > { %6721 = vmatprep.subr.bf16.mxu0 %v14209_v55 }
 0x49f   : > { %6723 = vmatpush1.bf16.msra.mxu0 %v6722_v17  ;;  %v4005_v17 = vld [vmem:[%s13219_s5 + $0xd0] sm:$0xff] }
 0x4a0   : > { %6724 = vmatprep.subr.bf16.mxu0 %v14209_v55 }
 0x4a3   : > { %6726 = vmatpush1.bf16.msra.mxu0 %v6725_v60 }
 0x4a4   : > { %6727 = vmatprep.subr.bf16.mxu0 %v14209_v55 }
 0x4a7   : > { %6729 = vmatpush1.bf16.msra.mxu0 %v6728_v8 }
 0x4a8   : > { %6730 = vmatprep.subr.bf16.mxu0 %v14209_v55 }
 0x4ab   : > { %6732 = vmatpush1.bf16.msra.mxu0 %v6731_v16 }
 0x4ac   : > { %6733 = vmatprep.subr.bf16.mxu0 %v14209_v55 }
 0x4af   : > { %6735 = vmatpush1.bf16.msra.mxu0 %v6734_v9 }
 0x4b0   : > { %6736 = vmatprep.subr.bf16.mxu0 %v14209_v55 }
 0x4b3   : > { %6738 = vmatpush1.bf16.msra.mxu0 %v6737_v4 }
 0x4b4   : > { %6739 = vmatprep.subr.bf16.mxu0 %v14209_v55 }
 0x4b7   : > { %6741 = vmatpush1.bf16.msra.mxu0 %v6740_v43 }
 0x4b8   : > { %5532 = vmatprep.subr.mxu0 %v14214_v0 }
 0x4bb   : > { %5533 = vmatpush1.msra.mxu0 %v4005_v17 }
 0x4e2   : > { %v3660_v13 = vpop.f32.mrb[0].mxu1 }
 0x4e3   : > { %v3661_v53 = vadd.f32 %v11437_v58, %v3660_v13  ;;  %v3662_v61 = vpop.f32.mrb[1].mxu1 }
 0x4e5   : > { %v3819_v7 = vmax.f32 %v3661_v53, 0.0 }
 0x4e6   : > { %v3665_v25 = vpop.f32.mrb[2].mxu1 }
 0x4e7   : > { %v11449_v50 = vsel %vm1516_vm3, %v3819_v7, %v3852_v14  ;;  %v3666_v47 = vadd.f32 %v11437_v58, %v3665_v25  ;;  %v3667_v30 = vpop.f32.mrb[3].mxu1 }
 0x4e8   : > { %14210 = vst [vmem:[#allocation88_spill] sm:$0xff] %v11449_v50  ;;  %v4039_v32 = vrot.slane %v11449_v50, 7 }
 0x4e9   : > { %v3820_v51 = vmax.f32 %v3666_v47, 0.0 }
 0x4ea   : > { %v3670_v39 = vpop.f32.mrb[4].mxu1  ;;  %v11465_v46 = vsel %vm408_vm0, 0.0, %v4039_v32 }
 0x4eb   : > { %v11461_v5 = vsel %vm1516_vm3, %v3820_v51, %v3854_v56  ;;  %v3671_v57 = vadd.f32 %v11437_v58, %v3670_v39  ;;  %v3672_v33 = vpop.f32.mrb[5].mxu1  ;;  %v4367_v24 = vrot.slane %v11465_v46, 2  ;;  %v4196_v3 = vrot.slane %v11465_v46, 1 }
 0x4ec   : > { %14211 = vst [vmem:[#allocation26_spill] sm:$0xff] %v11461_v5  ;;  %v4040_v1 = vrot.slane %v11461_v5, 7 }
 0x4ed   : > { %v3821_v18 = vmax.f32 %v3671_v57, 0.0 }
 0x4ee   : > { %v11476_v19 = vsel %vm408_vm0, %v4039_v32, %v4040_v1  ;;  %v4150_v2 = vsel %vm408_vm0, %v4040_v1, 0.0  ;;  %v3675_v41 = vpop.f32.mrb[6].mxu1 }
 0x4ef   : > { %v11480_v59 = vsel %vm1516_vm3, %v3821_v18, %v3856_v11  ;;  %v3676_v21 = vadd.f32 %v11437_v58, %v3675_v41  ;;  %v3677_v23 = vpop.f32.mrb[7].mxu1  ;;  %v4368_v54 = vrot.slane %v11476_v19, 2  ;;  %v4199_v63 = vrot.slane %v4150_v2, 1  ;;  %v3860_v11 = vpop.permute.xlu1 %3859 }
 0x4f0   : > { %14212 = vst [vmem:[#allocation89_spill] sm:$0xff] %v11480_v59  ;;  %v4042_v36 = vrot.slane %v11480_v59, 7  ;;  %v4197_v52 = vrot.slane %v11476_v19, 1  ;;  %v7352_v27 = vpack.i.bf16 %v11476_v19, %v11465_v46  ;;  %v4370_v53 = vrot.slane %v4150_v2, 2  ;;  %v14217_v23 = vld [vmem:[#allocation78_spill] sm:$0xff] }
 0x4f1   : > { %v3822_v22 = vmax.f32 %v3676_v21, 0.0  ;;  %v11493_v42 = vsel %vm751_vm2, %v4367_v24, %v4368_v54  ;;  %v14218_v24 = vld [vmem:[#allocation110_spill] sm:$0xff] }
 0x4f2   : > { %v3680_v28 = vpop.f32.mrb[8].mxu1  ;;  %4742 = vrot.lane.b32.xlu1 %v11493_v42, %s7748_s24  ;;  %v11500_v38 = vsel %vm408_vm0, 0.0, %v4042_v36  ;;  %v4198_v62 = vsel %vm574_vm1, %v4196_v3, %v4197_v52  ;;  %v4200_v49 = vsel %vm574_vm1, %v4197_v52, %v4199_v63  ;;  %v4371_v14 = vsel %vm751_vm2, %v4368_v54, %v4370_v53 }
 0x4f3   : > { %v11504_v48 = vsel %vm1516_vm3, %v3822_v22, %v3858_v34  ;;  %v3682_v40 = vpop.f32.mrb[9].mxu1  ;;  %4838 = vrot.lane.b32.xlu0 %v11500_v38, %s7737_s16  ;;  %v4201_v35 = vrot.slane %v11500_v38, 1  ;;  %v7357_v8 = vpack.i.bf16 %v4200_v49, %v4198_v62  ;;  %v4372_v16 = vrot.slane %v11500_v38, 2 }
 0x4f4   : > { %14213 = vst [vmem:[#allocation30_spill] sm:$0xff] %v11504_v48  ;;  %v4043_v55 = vrot.slane %v11504_v48, 7  ;;  %v3681_v10 = vadd.f32 %v11437_v58, %v3680_v28 }
 0x4f6   : > { %v11518_v37 = vsel %vm408_vm0, %v4042_v36, %v4043_v55  ;;  %v3685_v31 = vpop.f32.mrb[10].mxu1  ;;  %7353 = vrot.lane.b32.xlu1 %v7352_v27, %s7749_s27  ;;  %v4151_v26 = vsel %vm408_vm0, %v4043_v55, 0.0  ;;  %v3823_v33 = vmax.f32 %v3681_v10, 0.0  ;;  %v7367_v36 = vpack.i.bf16 %v4371_v14, %v11493_v42 }
 0x4f7   : > { %v3687_v60 = vpop.f32.mrb[11].mxu1  ;;  %v4202_v6 = vrot.slane %v11518_v37, 1  ;;  %v4373_v61 = vrot.slane %v11518_v37, 2  ;;  %v4204_v47 = vrot.slane %v4151_v26, 1  ;;  %v3686_v32 = vadd.f32 %v11437_v58, %v3685_v31 }
 0x4f8   : > { %v4375_v9 = vrot.slane %v4151_v26, 2  ;;  %v11558_v2 = vsel %vm1516_vm3, %v3823_v33, %v3860_v11  ;;  %v7372_v52 = vpack.i.bf16 %v11518_v37, %v11500_v38 }
 0x4f9   : > { %v4203_v13 = vsel %vm574_vm1, %v4201_v35, %v4202_v6  ;;  %v11533_v25 = vsel %vm751_vm2, %v4372_v16, %v4373_v61  ;;  %v4205_v51 = vsel %vm574_vm1, %v4202_v6, %v4204_v47  ;;  %v3824_v39 = vmax.f32 %v3686_v32, 0.0  ;;  %14216 = vst [vmem:[#allocation21_spill] sm:$0xff] %v11558_v2  ;;  %v3864_v32 = vpop.permute.xlu1 %3863 }
 0x4fa   : > { %v11526_v44 = vpop.f32.mrb[12].mxu1  ;;  %7358 = vrot.lane.b32.xlu1 %v7357_v8, %s7747_s18  ;;  %4934 = vrot.lane.b32.xlu0 %v4203_v13, %s7740_s19  ;;  %v11547_v1 = vsel %vm751_vm2, %v4373_v61, %v4375_v9  ;;  %v4045_v63 = vrot.slane %v11558_v2, 7  ;;  %v7377_v40 = vpack.i.bf16 %v4205_v51, %v4203_v13 }
 0x4fb   : > { %v3692_v7 = vpop.f32.mrb[13].mxu1  ;;  %v11555_v18 = vsel %vm1516_vm3, %v3824_v39, %v3862_v12  ;;  %v3691_v13 = vadd.f32 %v11437_v58, %v11526_v44  ;;  %v14221_v39 = vld [vmem:[#allocation81_spill] sm:$0xff]  ;;  %v7387_v12 = vpack.i.bf16 %v11547_v1, %v11533_v25 }
 0x4fc   : > { %14215 = vst [vmem:[#allocation20_spill] sm:$0xff] %v11555_v18  ;;  %v4046_v41 = vrot.slane %v11555_v18, 7  ;;  %v11580_v43 = vsel %vm408_vm0, 0.0, %v4045_v63 }
 0x4fd   : > { %v4206_v3 = vrot.slane %v11580_v43, 1  ;;  %v4377_v17 = vrot.slane %v11580_v43, 2 }
 0x4fe   : > { %v3695_v30 = vpop.f32.mrb[14].mxu1  ;;  %4744 = vrot.lane.b32.xlu1 %v4371_v14, %s7748_s24  ;;  %5030 = vrot.lane.b32.xlu0 %v11533_v25, %s7743_s12  ;;  %v11570_v29 = vsel %vm408_vm0, %v4045_v63, %v4046_v41  ;;  %v4152_v62 = vsel %vm408_vm0, %v4046_v41, 0.0  ;;  %v3825_v14 = vmax.f32 %v3691_v13, 0.0 }
 0x4ff   : > { %v3697_v15 = vpop.f32.mrb[15].mxu1  ;;  %v4207_v34 = vrot.slane %v11570_v29, 1  ;;  %v4378_v27 = vrot.slane %v11570_v29, 2  ;;  %v4209_v60 = vrot.slane %v4152_v62, 1  ;;  %v3696_v6 = vadd.f32 %v11437_v58, %v3695_v30  ;;  %v3866_v30 = vpop.permute.xlu0 %3865 }
 0x500   : > { %v4380_v61 = vrot.slane %v4152_v62, 2  ;;  %v11625_v15 = vsel %vm1516_vm3, %v3825_v14, %v3864_v32 }
 0x501   : > { %v4208_v55 = vsel %vm574_vm1, %v4206_v3, %v4207_v34  ;;  %v11598_v31 = vsel %vm751_vm2, %v4377_v17, %v4378_v27  ;;  %v4210_v53 = vsel %vm574_vm1, %v4207_v34, %v4209_v60  ;;  %v3826_v7 = vmax.f32 %v3696_v6, 0.0  ;;  %14220 = vst [vmem:[#allocation121_spill] sm:$0xff] %v11625_v15 }
 0x502   : > { %v11541_v56 = vpop.f32.mrb[16].mxu1  ;;  %4936 = vrot.lane.b32.xlu1 %v4205_v51, %s7740_s19  ;;  %4840 = vrot.lane.b32.xlu0 %v11518_v37, %s7737_s16  ;;  %v11616_v47 = vsel %vm751_vm2, %v4378_v27, %v4380_v61  ;;  %v4048_v33 = vrot.slane %v11625_v15, 7 }
 0x503   : > { %v3702_v57 = vpop.f32.mrb[17].mxu1  ;;  %v11622_v44 = vsel %vm1516_vm3, %v3826_v7, %v3866_v30 }
 0x504   : > { %14219 = vst [vmem:[#allocation120_spill] sm:$0xff] %v11622_v44  ;;  %v4049_v51 = vrot.slane %v11622_v44, 7  ;;  %v14222_v57 = vld [vmem:[#allocation9_spill] sm:$0xff] }
 0x506   : > { %v11549_v45 = vpop.f32.mrb[18].mxu1  ;;  %7363 = vrot.lane.b32.xlu1 %v7357_v8, %s7738_s17  ;;  %5032 = vrot.lane.b32.xlu0 %v11547_v1, %s7743_s12  ;;  %v11640_v11 = vsel %vm408_vm0, %v4048_v33, %v4049_v51  ;;  %v4153_v34 = vsel %vm408_vm0, %v4049_v51, 0.0 }
 0x507   : > { %v3707_v4 = vpop.f32.mrb[19].mxu1  ;;  %v4214_v62 = vrot.slane %v4153_v34, 1  ;;  %v4385_v6 = vrot.slane %v4153_v34, 2 }
 0x50a   : > { %v11561_v21 = vpop.f32.mrb[20].mxu1  ;;  %3893 = vrot.lane.b32.xlu1 %v14217_v23, %s7736_s15  ;;  %3891 = vrot.lane.b32.xlu0 %v14218_v24, %s7736_s15  ;;  %v7392_v23 = vpack.i.bf16 %v11570_v29, %v11580_v43  ;;  %v11648_v24 = vsel %vm408_vm0, 0.0, %v4048_v33 }
 0x50b   : > { %v3712_v54 = vpop.f32.mrb[21].mxu1  ;;  %v4211_v63 = vrot.slane %v11648_v24, 1 }
 0x50c   : > { %v4212_v54 = vrot.slane %v11640_v11, 1 }
 0x50e   : > { %v11572_v20 = vpop.f32.mrb[22].mxu1  ;;  %4746 = vrot.lane.b32.xlu1 %v11533_v25, %s7748_s24  ;;  %7368 = vrot.lane.b32.xlu0 %v7367_v36, %s7741_s20  ;;  %v7397_v36 = vpack.i.bf16 %v4210_v53, %v4208_v55  ;;  %v4215_v60 = vsel %vm574_vm1, %v4212_v54, %v4214_v62 }
 0x50f   : > { %v3717_v22 = vpop.f32.mrb[23].mxu1 }
 0x510   : > { %v4213_v22 = vsel %vm574_vm1, %v4211_v63, %v4212_v54 }
 0x512   : > { %v11583_v42 = vpop.f32.mrb[24].mxu1  ;;  %7373 = vrot.lane.b32.xlu1 %v7372_v52, %s7749_s27  ;;  %4842 = vrot.lane.b32.xlu0 %v11580_v43, %s7737_s16  ;;  %v4383_v52 = vrot.slane %v11640_v11, 2 }
 0x513   : > { %v3722_v28 = vpop.f32.mrb[25].mxu1 }
 0x516   : > { %v11592_v49 = vpop.f32.mrb[26].mxu1  ;;  %7378 = vrot.lane.b32.xlu1 %v7377_v40, %s7747_s18  ;;  %4938 = vrot.lane.b32.xlu0 %v4208_v55, %s7740_s19  ;;  %v3706_v55 = vadd.f32 %v11437_v58, %v11549_v45  ;;  %v11685_v45 = vsel %vm751_vm2, %v4383_v52, %v4385_v6 }
 0x517   : > { %v3727_v0 = vpop.f32.mrb[27].mxu1 }
 0x518   : > { %v3701_v0 = vadd.f32 %v11437_v58, %v11541_v56  ;;  %v3828_v13 = vmax.f32 %v3706_v55, 0.0  ;;  %v3870_v56 = vpop.permute.xlu0 %3869 }
 0x51a   : > { %v11600_v35 = vpop.f32.mrb[28].mxu1  ;;  %4748 = vrot.lane.b32.xlu1 %v11547_v1, %s7748_s24  ;;  %5034 = vrot.lane.b32.xlu0 %v11598_v31, %s7743_s12  ;;  %v3827_v61 = vmax.f32 %v3701_v0, 0.0  ;;  %v11691_v14 = vsel %vm1516_vm3, %v3828_v13, %v3870_v56 }
 0x51b   : > { %v3732_v8 = vpop.f32.mrb[29].mxu1  ;;  %14223 = vst [vmem:[#allocation57_spill] sm:$0xff] %v11691_v14  ;;  %v4052_v51 = vrot.slane %v11691_v14, 7 }
 0x51e   : > { %v11610_v26 = vpop.f32.mrb[30].mxu1  ;;  %4940 = vrot.lane.b32.xlu1 %v4210_v53, %s7740_s19  ;;  %4844 = vrot.lane.b32.xlu0 %v11570_v29, %s7737_s16  ;;  %v3868_v53 = vpop.permute.xlu1 %3867 }
 0x51f   : > { %v3737_v16 = vpop.f32.mrb[31].mxu1  ;;  %v11694_v30 = vsel %vm1516_vm3, %v3827_v61, %v3868_v53 }
 0x520   : > { %14224 = vst [vmem:[#allocation189_spill] sm:$0xff] %v11694_v30 }
 0x522   : > { %7383 = vrot.lane.b32.xlu1 %v7377_v40, %s7738_s17  ;;  %5036 = vrot.lane.b32.xlu0 %v11616_v47, %s7743_s12  ;;  %v4382_v40 = vrot.slane %v11648_v24, 2  ;;  %v3872_v32 = vpop.permute.xlu1 %3871 }
 0x524   : > { %v11627_v10 = vpop.f32.mrb[32].mxu1  ;;  %v11666_v27 = vsel %vm751_vm2, %v4382_v40, %v4383_v52  ;;  %v7412_v52 = vpack.i.bf16 %v11640_v11, %v11648_v24  ;;  %v7417_v40 = vpack.i.bf16 %v4215_v60, %v4213_v22 }
 0x525   : > { %v3742_v9 = vpop.f32.mrb[33].mxu1 }
 0x526   : > { %3897 = vrot.lane.b32.xlu1 %v14221_v39, %s7736_s15  ;;  %3895 = vrot.lane.b32.xlu0 %v14222_v57, %s7736_s15  ;;  %v14225_v39 = vld [vmem:[#allocation52_spill] sm:$0xff]  ;;  %v14226_v57 = vld [vmem:[#allocation141_spill] sm:$0xff] }
 0x528   : > { %v11637_v4 = vpop.f32.mrb[34].mxu1 }
 0x529   : > { %v3747_v41 = vpop.f32.mrb[35].mxu1 }
 0x52a   : > { %4750 = vrot.lane.b32.xlu1 %v11598_v31, %s7748_s24  ;;  %7388 = vrot.lane.b32.xlu0 %v7387_v12, %s7741_s20  ;;  %v4051_v12 = vrot.slane %v11694_v30, 7  ;;  %v7407_v41 = vpack.i.bf16 %v11616_v47, %v11598_v31 }
 0x52c   : > { %v11707_v54 = vsel %vm408_vm0, %v4051_v12, %v4052_v51  ;;  %v11719_v34 = vsel %vm408_vm0, 0.0, %v4051_v12 }
 0x52d   : > { %v4217_v31 = vrot.slane %v11707_v54, 1  ;;  %v4388_v0 = vrot.slane %v11707_v54, 2  ;;  %v4387_v53 = vrot.slane %v11719_v34, 2 }
 0x52e   : > { %v11651_v25 = vpop.f32.mrb[36].mxu1  ;;  %7393 = vrot.lane.b32.xlu1 %v7392_v23, %s7749_s27  ;;  %4846 = vrot.lane.b32.xlu0 %v11648_v24, %s7737_s16  ;;  %v3874_v23 = vpop.permute.xlu0 %3873 }
 0x52f   : > { %v3752_v1 = vpop.f32.mrb[37].mxu1 }
 0x532   : > { %v11660_v28 = vpop.f32.mrb[38].mxu1  ;;  %7398 = vrot.lane.b32.xlu1 %v7397_v36, %s7747_s18  ;;  %4942 = vrot.lane.b32.xlu0 %v4213_v22, %s7740_s19  ;;  %v11741_v22 = vsel %vm751_vm2, %v4387_v53, %v4388_v0 }
 0x533   : > { %v3757_v3 = vpop.f32.mrb[39].mxu1 }
 0x534   : > { %v11726_v3 = vpop.permute.xlu0 %3877 }
 0x536   : > { %4752 = vrot.lane.b32.xlu1 %v11616_v47, %s7748_s24  ;;  %5038 = vrot.lane.b32.xlu0 %v11666_v27, %s7743_s12  ;;  %v4216_v47 = vrot.slane %v11719_v34, 1 }
 0x538   : > { %v11676_v17 = vpop.f32.mrb[40].mxu1  ;;  %v4218_v55 = vsel %vm574_vm1, %v4216_v47, %v4217_v31  ;;  %v11743_v56 = vpop.permute.xlu0 %3881 }
 0x539   : > { %v3762_v8 = vpop.f32.mrb[41].mxu1 }
 0x53a   : > { %4944 = vrot.lane.b32.xlu1 %v4215_v60, %s7740_s19  ;;  %4848 = vrot.lane.b32.xlu0 %v11640_v11, %s7737_s16  ;;  %v4154_v8 = vsel %vm408_vm0, %v4052_v51, 0.0  ;;  %v3716_v51 = vadd.f32 %v11437_v58, %v11572_v20 }
 0x53b   : > { %v4219_v60 = vrot.slane %v4154_v8, 1  ;;  %v4390_v12 = vrot.slane %v4154_v8, 2 }
 0x53c   : > { %v11682_v7 = vpop.f32.mrb[42].mxu1  ;;  %v11761_v47 = vpop.permute.xlu0 %3885 }
 0x53d   : > { %v3767_v16 = vpop.f32.mrb[43].mxu1 }
 0x53e   : > { %7403 = vrot.lane.b32.xlu1 %v7397_v36, %s7738_s17  ;;  %5040 = vrot.lane.b32.xlu0 %v11685_v45, %s7743_s12  ;;  %v11714_v36 = vpop.permute.xlu1 %3875 }
 0x542   : > { %v11697_v9 = vpop.f32.mrb[44].mxu1  ;;  %3901 = vrot.lane.b32.xlu1 %v14225_v39, %s7736_s15  ;;  %3899 = vrot.lane.b32.xlu0 %v14226_v57, %s7736_s15  ;;  %v11732_v6 = vpop.permute.xlu1 %3879  ;;  %v3711_v57 = vadd.f32 %v11437_v58, %v11561_v21 }
 0x543   : > { %v3772_v33 = vpop.f32.mrb[45].mxu1 }
 0x544   : > { %v4220_v33 = vsel %vm574_vm1, %v4217_v31, %v4219_v60  ;;  %v3829_v20 = vmax.f32 %v3711_v57, 0.0 }
 0x545   : > { %v7437_v59 = vpack.i.bf16 %v4220_v33, %v4218_v55 }
 0x546   : > { %v11709_v1 = vpop.f32.mrb[46].mxu1  ;;  %4754 = vrot.lane.b32.xlu1 %v11666_v27, %s7748_s24  ;;  %7408 = vrot.lane.b32.xlu0 %v7407_v41, %s7741_s20  ;;  %v11751_v39 = vpop.permute.xlu1 %3883  ;;  %v11777_v60 = vsel %vm1516_vm3, %v3829_v20, %v3872_v32 }
 0x547   : > { %v3777_v63 = vpop.f32.mrb[47].mxu1  ;;  %14230 = vst [vmem:[#allocation202_spill] sm:$0xff] %v11777_v60 }
 0x548   : > { %v3830_v63 = vmax.f32 %v3716_v51, 0.0  ;;  %v14231_v51 = vld [vmem:[#allocation68_spill] sm:$0xff] }
 0x54a   : > { %7413 = vrot.lane.b32.xlu1 %v7412_v52, %s7749_s27  ;;  %4850 = vrot.lane.b32.xlu0 %v11719_v34, %s7737_s16  ;;  %v11766_v53 = vpop.permute.xlu1 %7343  ;;  %v11774_v31 = vsel %vm1516_vm3, %v3830_v63, %v3874_v23  ;;  %v7427_v23 = vpack.i.bf16 %v11685_v45, %v11666_v27 }
 0x54b   : > { %14229 = vst [vmem:[#allocation201_spill] sm:$0xff] %v11774_v31 }
 0x54c   : > { %v11728_v62 = vpop.f32.mrb[48].mxu1 }
 0x54d   : > { %v3782_v13 = vpop.f32.mrb[49].mxu1 }
 0x54e   : > { %7418 = vrot.lane.b32.xlu1 %v7417_v40, %s7747_s18  ;;  %4946 = vrot.lane.b32.xlu0 %v4218_v55, %s7740_s19  ;;  %v11764_v13 = vsel %vm751_vm2, %v4388_v0, %v4390_v12  ;;  %v4055_v0 = vrot.slane %v11774_v31, 7  ;;  %v11786_v57 = vpop.permute.xlu1 %3889  ;;  %v4054_v12 = vrot.slane %v11777_v60, 7  ;;  %v14237_v55 = vld [vmem:[#allocation3_spill] sm:$0xff] }
 0x550   : > { %v11738_v61 = vpop.f32.mrb[50].mxu1  ;;  %v11794_v32 = vsel %vm408_vm0, %v4054_v12, %v4055_v0 }
 0x551   : > { %v3787_v16 = vpop.f32.mrb[51].mxu1  ;;  %14234 = vst [vmem:[#allocation175_spill] sm:$0xff] %v11794_v32  ;;  %v4393_v14 = vrot.slane %v11794_v32, 2 }
 0x552   : > { %4756 = vrot.lane.b32.xlu1 %v11685_v45, %s7748_s24  ;;  %5042 = vrot.lane.b32.xlu0 %v11741_v22, %s7743_s12  ;;  %v11779_v16 = vpop.permute.xlu0 %3887  ;;  %v4222_v45 = vrot.slane %v11794_v32, 1 }
 0x556   : > { %4948 = vrot.lane.b32.xlu1 %v4220_v33, %s7740_s19  ;;  %4852 = vrot.lane.b32.xlu0 %v11707_v54, %s7737_s16  ;;  %v11759_v41 = vpop.f32.mrb[52].mxu1 }
 0x557   : > { %14227 = vst [vmem:[#allocation148_spill] sm:$0xff] %v11759_v41  ;;  %v3792_v52 = vpop.f32.mrb[53].mxu1 }
 0x558   : > { %v11796_v52 = vpop.permute.xlu0 %7348 }
 0x559   : > { %v7350_v60 = vunpack.i.l.bf16 %v11796_v52 }
 0x55a   : > { %7423 = vrot.lane.b32.xlu1 %v7417_v40, %s7738_s17  ;;  %5044 = vrot.lane.b32.xlu0 %v11764_v13, %s7743_s12  ;;  %v11771_v21 = vpop.f32.mrb[54].mxu1  ;;  %v14232_v40 = vld [vmem:[#allocation166_spill] sm:$0xff] }
 0x55b   : > { %14228 = vst [vmem:[#allocation149_spill] sm:$0xff] %v11771_v21  ;;  %v3797_v8 = vpop.f32.mrb[55].mxu1 }
 0x55e   : > { %3905 = vrot.lane.b32.xlu1 %v14231_v51, %s7736_s15  ;;  %3903 = vrot.lane.b32.xlu0 %v14232_v40, %s7736_s15  ;;  %v7432_v51 = vpack.i.bf16 %v11707_v54, %v11719_v34  ;;  %v11804_v40 = vsel %vm408_vm0, 0.0, %v4054_v12 }
 0x55f   : > { %v4392_v30 = vrot.slane %v11804_v40, 2 }
 0x560   : > { %v11791_v63 = vpop.f32.mrb[56].mxu1 }
 0x561   : > { %14233 = vst [vmem:[#allocation174_spill] sm:$0xff] %v11791_v63  ;;  %v3802_v20 = vpop.f32.mrb[57].mxu1 }
 0x562   : > { %4758 = vrot.lane.b32.xlu1 %v11741_v22, %s7748_s24  ;;  %7428 = vrot.lane.b32.xlu0 %v7427_v23, %s7741_s20  ;;  %v7345_v23 = vunpack.i.l.bf16 %v11766_v53  ;;  %v4221_v20 = vrot.slane %v11804_v40, 1 }
 0x564   : > { %v4743_v8 = vpop.permute.xlu1 %4742  ;;  %v11806_v27 = vpop.f32.mrb[58].mxu1  ;;  %v11817_v12 = vsel %vm574_vm1, %v4221_v20, %v4222_v45  ;;  %v5120_v33 = vsel %vm1582_vm5, %v14237_v55, %v7345_v23  ;;  %v3726_v55 = vadd.f32 %v11437_v58, %v11592_v49 }
 0x565   : > { %14235 = vst [vmem:[#allocation90_spill] sm:$0xff] %v11806_v27  ;;  %v3807_v48 = vpop.f32.mrb[59].mxu1  ;;  %v4839_v5 = vpop.permute.xlu0 %4838  ;;  %v5152_v27 = vsel %vm1681_vm8, %v5120_v33, %v7350_v60 }
 0x566   : > { %7433 = vrot.lane.b32.xlu1 %v7432_v51, %s7749_s27  ;;  %4854 = vrot.lane.b32.xlu0 %v11804_v40, %s7737_s16  ;;  %v4155_v51 = vsel %vm408_vm0, %v4055_v0, 0.0  ;;  %v11831_v0 = vsel %vm751_vm2, %v4392_v30, %v4393_v14 }
 0x567   : > { %v4395_v49 = vrot.slane %v4155_v51, 2 }
 0x568   : > { %v7354_v50 = vpop.permute.xlu1 %7353  ;;  %v11814_v31 = vpop.f32.mrb[60].mxu1 }
 0x569   : > { %14236 = vst [vmem:[#allocation31_spill] sm:$0xff] %v11814_v31  ;;  %v3812_v48 = vpop.f32.mrb[61].mxu1  ;;  %v7355_v44 = vunpack.i.l.bf16 %v7354_v50  ;;  %v4224_v31 = vrot.slane %v4155_v51, 1  ;;  %v11859_v51 = vsel %vm751_vm2, %v4393_v14, %v4395_v49 }
 0x56a   : > { %7438 = vrot.lane.b32.xlu1 %v7437_v59, %s7747_s18  ;;  %4950 = vrot.lane.b32.xlu0 %v11817_v12, %s7740_s19  ;;  %v7346_v48 = vunpack.i.h.bf16 %v11766_v53 }
 0x56b   : > { %v5184_v30 = vsel %vm1786_vm11, %v5152_v27, %v7355_v44  ;;  %v4225_v41 = vsel %vm574_vm1, %v4222_v45, %v4224_v31  ;;  %v3832_v44 = vmax.f32 %v3726_v55, 0.0 }
 0x56c   : > { %v7359_v20 = vpop.permute.xlu1 %7358  ;;  %v4935_v18 = vpop.permute.xlu0 %4934 }
 0x56d   : > { %v7360_v15 = vunpack.i.l.bf16 %v7359_v20  ;;  %v11828_v2 = vpop.f32.mrb[62].mxu1 }
 0x56e   : > { %14238 = vst [vmem:[#allocation91_spill] sm:$0xff] %v11828_v2  ;;  %4760 = vrot.lane.b32.xlu1 %v11764_v13, %s7748_s24  ;;  %5046 = vrot.lane.b32.xlu0 %v11831_v0, %s7743_s12  ;;  %v3817_v23 = vpop.f32.mrb[63].mxu1  ;;  %v5281_v2 = vsel %vm1549_vm4, %v4743_v8, %v4839_v5  ;;  %v7351_v5 = vunpack.i.h.bf16 %v11796_v52 }
 0x56f   : > { %v5313_v63 = vsel %vm1648_vm7, %v5281_v2, %v4935_v18  ;;  %v5216_v33 = vsel %vm3462_vm15, %v5184_v30, %v7360_v15  ;;  %v3721_v23 = vadd.f32 %v11437_v58, %v11583_v42  ;;  %v14239_v18 = vld [vmem:[#allocation2_spill] sm:$0xff]  ;;  %v7356_v15 = vunpack.i.h.bf16 %v7354_v50 }
 0x570   : > { %v4745_v21 = vpop.permute.xlu1 %4744  ;;  %v5031_v60 = vpop.permute.xlu0 %5030  ;;  %v5121_v2 = vsel %vm1582_vm5, %v14239_v18, %v7346_v48  ;;  %v5249_v42 = vsel %vm5248_vm13, %v5216_v33, %v4743_v8  ;;  %v11867_v50 = vsel %vm1516_vm3, %v3832_v44, %v11726_v3  ;;  %v14242_v3 = vld [vmem:[#allocation188_spill] sm:$0xff] }
 0x571   : > { %v5345_v53 = vsel %vm1747_vm10, %v5313_v63, %v5031_v60  ;;  %v7361_v63 = vunpack.i.h.bf16 %v7359_v20  ;;  %v3831_v45 = vmax.f32 %v3721_v23, 0.0  ;;  %v5153_v30 = vsel %vm1681_vm8, %v5121_v2, %v7351_v5  ;;  %14240 = vst [vmem:[#allocation33_spill] sm:$0xff] %v11867_v50  ;;  %v14243_v23 = vld [vmem:[#allocation146_spill] sm:$0xff] }
 0x572   : > { %4952 = vrot.lane.b32.xlu1 %v4225_v41, %s7740_s19  ;;  %4856 = vrot.lane.b32.xlu0 %v11794_v32, %s7737_s16  ;;  %v5185_v8 = vsel %vm1786_vm11, %v5153_v30, %v7356_v15  ;;  %v4058_v33 = vrot.slane %v11867_v50, 7  ;;  %v7452_v15 = vpack.i.bf16 %v11794_v32, %v11804_v40 }
 0x573   : > { %6392 = vmatprep.mubr.msk.f32.mxu0 %vm5383_vm12, %v5345_v53  ;;  %v5217_v14 = vsel %vm3462_vm15, %v5185_v8, %v7361_v63  ;;  %v11876_v60 = vsel %vm1516_vm3, %v3831_v45, %v11714_v36  ;;  %v7447_v36 = vpack.i.bf16 %v11764_v13, %v11741_v22  ;;  %v7457_v63 = vpack.i.bf16 %v4225_v41, %v11817_v12 }
 0x574   : > { %5545 = vmatmul.mubr.f32.vlgmr.msra.gmra.mrb[32].mxu0 %v5249_v42  ;;  %v4937_v31 = vpop.permute.xlu1 %4936  ;;  %v4841_v27 = vpop.permute.xlu0 %4840  ;;  %14241 = vst [vmem:[#allocation24_spill] sm:$0xff] %v11876_v60  ;;  %v5250_v53 = vsel %vm5248_vm13, %v5217_v14, %v4745_v21  ;;  %v4057_v49 = vrot.slane %v11876_v60, 7  ;;  %v4156_v8 = vsel %vm408_vm0, %v4058_v33, 0.0 }
 0x575   : > { %v5282_v52 = vsel %vm1549_vm4, %v4745_v21, %v4841_v27 }
 0x576   : > { %7443 = vrot.lane.b32.xlu1 %v7437_v59, %s7738_s17  ;;  %5048 = vrot.lane.b32.xlu0 %v11859_v51, %s7743_s12  ;;  %v5314_v48 = vsel %vm1648_vm7, %v5282_v52, %v4937_v31  ;;  %v11894_v2 = vsel %vm408_vm0, %v4057_v49, %v4058_v33  ;;  %v11902_v22 = vsel %vm408_vm0, 0.0, %v4057_v49  ;;  %v3736_v49 = vadd.f32 %v11437_v58, %v11610_v26 }
 0x577   : > { %v4227_v13 = vrot.slane %v11894_v2, 1  ;;  %v4226_v42 = vrot.slane %v11902_v22, 1  ;;  %v4398_v30 = vrot.slane %v11894_v2, 2  ;;  %v4397_v41 = vrot.slane %v11902_v22, 2 }
 0x578   : > { %v11870_v20 = vpop.permute.xlu1 %7363  ;;  %v5033_v55 = vpop.permute.xlu0 %5032  ;;  %v4400_v26 = vrot.slane %v4156_v8, 2 }
 0x579   : > { %v5346_v59 = vsel %vm1747_vm10, %v5314_v48, %v5033_v55  ;;  %v7365_v45 = vunpack.i.l.bf16 %v11870_v20  ;;  %v11912_v52 = vsel %vm574_vm1, %v4226_v42, %v4227_v13 }
 0x57a   : > { %3909 = vrot.lane.b32.xlu1 %v14242_v3, %s7736_s15  ;;  %3907 = vrot.lane.b32.xlu0 %v14243_v23, %s7736_s15  ;;  %v11923_v23 = vsel %vm751_vm2, %v4397_v41, %v4398_v30 }
 0x57b   : > { %6393 = vmatprep.mubr.msk.f32.mxu0 %vm5383_vm12, %v5346_v59  ;;  %v5122_v59 = vsel %vm1582_vm5, %v11465_v46, %v7365_v45 }
 0x57c   : > { %5550 = vmatmul.mubr.f32.gmra.mrb[34].mxu0 %v5250_v53  ;;  %v11889_v5 = vpop.permute.xlu1 %3893  ;;  %v11891_v18 = vpop.permute.xlu0 %3891  ;;  %v4229_v53 = vrot.slane %v4156_v8, 1  ;;  %v11950_v8 = vsel %vm751_vm2, %v4398_v30, %v4400_v26  ;;  %v7472_v26 = vpack.i.bf16 %v11894_v2, %v11902_v22 }
 0x57e   : > { %4762 = vrot.lane.b32.xlu1 %v11831_v0, %s7748_s24  ;;  %7448 = vrot.lane.b32.xlu0 %v7447_v36, %s7741_s20  ;;  %v4230_v60 = vsel %vm574_vm1, %v4227_v13, %v4229_v53 }
 0x580   : > { %v4747_v44 = vpop.permute.xlu1 %4746  ;;  %v7369_v21 = vpop.permute.xlu0 %7368 }
 0x581   : > { %v7370_v48 = vunpack.i.l.bf16 %v7369_v21  ;;  %v7371_v32 = vunpack.i.h.bf16 %v7369_v21 }
 0x582   : > { %7453 = vrot.lane.b32.xlu1 %v7452_v15, %s7749_s27  ;;  %4858 = vrot.lane.b32.xlu0 %v11902_v22, %s7737_s16  ;;  %v3731_v15 = vadd.f32 %v11437_v58, %v11600_v35  ;;  %v3834_v35 = vmax.f32 %v3736_v49, 0.0 }
 0x583   : > { %v5154_v33 = vsel %vm1681_vm8, %v5122_v59, %v7370_v48  ;;  %v7366_v59 = vunpack.i.h.bf16 %v11870_v20 }
 0x584   : > { %v7374_v31 = vpop.permute.xlu1 %7373  ;;  %v4843_v27 = vpop.permute.xlu0 %4842 }
 0x585   : > { %v7375_v55 = vunpack.i.l.bf16 %v7374_v31  ;;  %v5283_v36 = vsel %vm1549_vm4, %v4747_v44, %v4843_v27  ;;  %v7376_v27 = vunpack.i.h.bf16 %v7374_v31  ;;  %v5123_v13 = vsel %vm1582_vm5, %v11476_v19, %v7366_v59 }
 0x586   : > { %7458 = vrot.lane.b32.xlu1 %v7457_v63, %s7747_s18  ;;  %4954 = vrot.lane.b32.xlu0 %v11912_v52, %s7740_s19  ;;  %v5155_v53 = vsel %vm1681_vm8, %v5123_v13, %v7371_v32 }
 0x587   : > { %v5186_v46 = vsel %vm1786_vm11, %v5154_v33, %v7375_v55  ;;  %v3833_v33 = vmax.f32 %v3731_v15, 0.0 }
 0x588   : > { %v7379_v12 = vpop.permute.xlu1 %7378  ;;  %v4939_v14 = vpop.permute.xlu0 %4938 }
 0x589   : > { %v7380_v3 = vunpack.i.l.bf16 %v7379_v12  ;;  %v5315_v42 = vsel %vm1648_vm7, %v5283_v36, %v4939_v14  ;;  %v7381_v14 = vunpack.i.h.bf16 %v7379_v12  ;;  %v11967_v32 = vsel %vm1516_vm3, %v3833_v33, %v11732_v6  ;;  %v14245_v36 = vld [vmem:[#allocation172_spill] sm:$0xff] }
 0x58a   : > { %4764 = vrot.lane.b32.xlu1 %v11859_v51, %s7748_s24  ;;  %5050 = vrot.lane.b32.xlu0 %v11923_v23, %s7743_s12  ;;  %v4060_v15 = vrot.slane %v11967_v32, 7  ;;  %v7467_v6 = vpack.i.bf16 %v11859_v51, %v11831_v0 }
 0x58b   : > { %v5218_v41 = vsel %vm3462_vm15, %v5186_v46, %v7380_v3 }
 0x58c   : > { %v4749_v45 = vpop.permute.xlu1 %4748  ;;  %v5035_v48 = vpop.permute.xlu0 %5034  ;;  %v5251_v55 = vsel %vm5248_vm13, %v5218_v41, %v4747_v44  ;;  %v5187_v44 = vsel %vm1786_vm11, %v5155_v53, %v7376_v27  ;;  %v11993_v0 = vsel %vm408_vm0, 0.0, %v4060_v15  ;;  %v7477_v27 = vpack.i.bf16 %v4230_v60, %v11912_v52 }
 0x58d   : > { %v5347_v50 = vsel %vm1747_vm10, %v5315_v42, %v5035_v48  ;;  %v5219_v30 = vsel %vm3462_vm15, %v5187_v44, %v7381_v14  ;;  %v4402_v53 = vrot.slane %v11993_v0, 2  ;;  %v3741_v44 = vadd.f32 %v11437_v58, %v11627_v10 }
 0x58e   : > { %4956 = vrot.lane.b32.xlu1 %v4230_v60, %s7740_s19  ;;  %4860 = vrot.lane.b32.xlu0 %v11894_v2, %s7737_s16  ;;  %v5252_v46 = vsel %vm5248_vm13, %v5219_v30, %v4749_v45  ;;  %v3746_v60 = vadd.f32 %v11437_v58, %v11637_v4 }
 0x58f   : > { %6394 = vmatprep.mubr.msk.f32.mxu0 %vm5383_vm12, %v5347_v50  ;;  %v11958_v50 = vsel %vm1516_vm3, %v3834_v35, %v11743_v56  ;;  %v14244_v56 = vld [vmem:[#allocation200_spill] sm:$0xff]  ;;  %v4231_v35 = vrot.slane %v11993_v0, 1 }
 0x590   : > { %5555 = vmatmul.mubr.f32.gmra.mrb[36].mxu0 %v5251_v55  ;;  %v4941_v20 = vpop.permute.xlu1 %4940  ;;  %v4845_v3 = vpop.permute.xlu0 %4844  ;;  %v4061_v49 = vrot.slane %v11958_v50, 7  ;;  %v3836_v4 = vmax.f32 %v3746_v60, 0.0 }
 0x591   : > { %v5284_v21 = vsel %vm1549_vm4, %v4749_v45, %v4845_v3 }
 0x592   : > { %7463 = vrot.lane.b32.xlu1 %v7457_v63, %s7738_s17  ;;  %5052 = vrot.lane.b32.xlu0 %v11950_v8, %s7743_s12  ;;  %v5316_v19 = vsel %vm1648_vm7, %v5284_v21, %v4941_v20  ;;  %v11985_v41 = vsel %vm408_vm0, %v4060_v15, %v4061_v49  ;;  %v4157_v13 = vsel %vm408_vm0, %v4061_v49, 0.0 }
 0x593   : > { %v4232_v51 = vrot.slane %v11985_v41, 1  ;;  %v4403_v33 = vrot.slane %v11985_v41, 2 }
 0x594   : > { %v11961_v31 = vpop.permute.xlu1 %7383  ;;  %v5037_v12 = vpop.permute.xlu0 %5036 }
 0x595   : > { %v5348_v63 = vsel %vm1747_vm10, %v5316_v19, %v5037_v12  ;;  %v7385_v20 = vunpack.i.l.bf16 %v11961_v31  ;;  %v12003_v3 = vsel %vm574_vm1, %v4231_v35, %v4232_v51  ;;  %v12018_v49 = vsel %vm751_vm2, %v4402_v53, %v4403_v33 }
 0x596   : > { %3913 = vrot.lane.b32.xlu1 %v14244_v56, %s7736_s15  ;;  %3911 = vrot.lane.b32.xlu0 %v14245_v36, %s7736_s15  ;;  %v4234_v56 = vrot.slane %v4157_v13, 1  ;;  %v3835_v35 = vmax.f32 %v3741_v44, 0.0 }
 0x597   : > { %6395 = vmatprep.mubr.msk.f32.mxu0 %vm5383_vm12, %v5348_v63  ;;  %v5124_v30 = vsel %vm1582_vm5, %v11500_v38, %v7385_v20  ;;  %v7386_v20 = vunpack.i.h.bf16 %v11961_v31 }
 0x598   : > { %5560 = vmatmul.mubr.f32.gmra.mrb[38].mxu0 %v5252_v46  ;;  %v11980_v42 = vpop.permute.xlu1 %3897  ;;  %v11982_v48 = vpop.permute.xlu0 %3895  ;;  %v4235_v53 = vsel %vm574_vm1, %v4232_v51, %v4234_v56 }
 0x599   : > { %v5125_v51 = vsel %vm1582_vm5, %v11518_v37, %v7386_v20  ;;  %v7487_v37 = vpack.i.bf16 %v11950_v8, %v11923_v23 }
 0x59a   : > { %4766 = vrot.lane.b32.xlu1 %v11923_v23, %s7748_s24  ;;  %7468 = vrot.lane.b32.xlu0 %v7467_v6, %s7741_s20 }
 0x59c   : > { %v4751_v59 = vpop.permute.xlu1 %4750  ;;  %v7389_v45 = vpop.permute.xlu0 %7388 }
 0x59d   : > { %v7390_v21 = vunpack.i.l.bf16 %v7389_v45 }
 0x59e   : > { %7473 = vrot.lane.b32.xlu1 %v7472_v26, %s7749_s27  ;;  %4862 = vrot.lane.b32.xlu0 %v11993_v0, %s7737_s16  ;;  %v4405_v26 = vrot.slane %v4157_v13, 2 }
 0x59f   : > { %v5156_v36 = vsel %vm1681_vm8, %v5124_v30, %v7390_v21  ;;  %v7391_v30 = vunpack.i.h.bf16 %v7389_v45  ;;  %v12043_v45 = vsel %vm1516_vm3, %v3835_v35, %v11751_v39 }
 0x5a0   : > { %v7394_v55 = vpop.permute.xlu1 %7393  ;;  %v4847_v14 = vpop.permute.xlu0 %4846 }
 0x5a1   : > { %v7395_v52 = vunpack.i.l.bf16 %v7394_v55  ;;  %v5285_v58 = vsel %vm1549_vm4, %v4751_v59, %v4847_v14  ;;  %v12037_v14 = vsel %vm1516_vm3, %v3836_v4, %v11761_v47  ;;  %v7396_v60 = vunpack.i.h.bf16 %v7394_v55 }
 0x5a2   : > { %7478 = vrot.lane.b32.xlu1 %v7477_v27, %s7747_s18  ;;  %4958 = vrot.lane.b32.xlu0 %v12003_v3, %s7740_s19  ;;  %v12049_v47 = vsel %vm751_vm2, %v4403_v33, %v4405_v26  ;;  %v4064_v55 = vrot.slane %v12037_v14, 7 }
 0x5a3   : > { %v5188_v10 = vsel %vm1786_vm11, %v5156_v36, %v7395_v52 }
 0x5a4   : > { %v7399_v19 = vpop.permute.xlu1 %7398  ;;  %v4943_v12 = vpop.permute.xlu0 %4942 }
 0x5a5   : > { %v7400_v63 = vunpack.i.l.bf16 %v7399_v19  ;;  %v5317_v38 = vsel %vm1648_vm7, %v5285_v58, %v4943_v12  ;;  %v7401_v31 = vunpack.i.h.bf16 %v7399_v19  ;;  %v4063_v19 = vrot.slane %v12043_v45, 7 }
 0x5a6   : > { %4768 = vrot.lane.b32.xlu1 %v11950_v8, %s7748_s24  ;;  %5054 = vrot.lane.b32.xlu0 %v12018_v49, %s7743_s12 }
 0x5a7   : > { %v5220_v6 = vsel %vm3462_vm15, %v5188_v10, %v7400_v63  ;;  %v7492_v10 = vpack.i.bf16 %v11985_v41, %v11993_v0 }
 0x5a8   : > { %v4753_v46 = vpop.permute.xlu1 %4752  ;;  %v5039_v15 = vpop.permute.xlu0 %5038  ;;  %v5253_v13 = vsel %vm5248_vm13, %v5220_v6, %v4751_v59  ;;  %v5157_v59 = vsel %vm1681_vm8, %v5125_v51, %v7391_v30  ;;  %v7497_v6 = vpack.i.bf16 %v4235_v53, %v12003_v3  ;;  %v4158_v30 = vsel %vm408_vm0, %v4064_v55, 0.0 }
 0x5a9   : > { %v5349_v21 = vsel %vm1747_vm10, %v5317_v38, %v5039_v15  ;;  %v5189_v39 = vsel %vm1786_vm11, %v5157_v59, %v7396_v60  ;;  %v12080_v38 = vsel %vm408_vm0, 0.0, %v4063_v19  ;;  %v12099_v60 = vld [vmem:[%s13218_s4] ss:$0 sm:$0xff] }
 0x5aa   : > { %4960 = vrot.lane.b32.xlu1 %v4235_v53, %s7740_s19  ;;  %4864 = vrot.lane.b32.xlu0 %v11985_v41, %s7737_s16  ;;  %v5221_v36 = vsel %vm3462_vm15, %v5189_v39, %v7401_v31  ;;  %v3756_v3 = vadd.f32 %v12099_v60, %v11660_v28  ;;  %v4407_v53 = vrot.slane %v12080_v38, 2 }
 0x5ab   : > { %6396 = vmatprep.mubr.msk.f32.mxu0 %vm5383_vm12, %v5349_v21  ;;  %v5254_v23 = vsel %vm5248_vm13, %v5221_v36, %v4753_v46  ;;  %v4410_v36 = vrot.slane %v4158_v30, 2 }
 0x5ac   : > { %5565 = vmatmul.mubr.f32.gmra.mrb[40].mxu0 %v5253_v13  ;;  %v4945_v52 = vpop.permute.xlu1 %4944  ;;  %v4849_v44 = vpop.permute.xlu0 %4848  ;;  %v3751_v13 = vadd.f32 %v12099_v60, %v11651_v25  ;;  %v3838_v28 = vmax.f32 %v3756_v3, 0.0 }
 0x5ad   : > { %v5286_v12 = vsel %vm1549_vm4, %v4753_v46, %v4849_v44  ;;  %v4236_v46 = vrot.slane %v12080_v38, 1 }
 0x5ae   : > { %7483 = vrot.lane.b32.xlu1 %v7477_v27, %s7738_s17  ;;  %5056 = vrot.lane.b32.xlu0 %v12049_v47, %s7743_s12  ;;  %v5318_v33 = vsel %vm1648_vm7, %v5286_v12, %v4945_v52  ;;  %v12066_v27 = vsel %vm408_vm0, %v4063_v19, %v4064_v55  ;;  %v4239_v12 = vrot.slane %v4158_v30, 1  ;;  %v3837_v39 = vmax.f32 %v3751_v13, 0.0 }
 0x5af   : > { %v4237_v15 = vrot.slane %v12066_v27, 1  ;;  %v4408_v21 = vrot.slane %v12066_v27, 2 }
 0x5b0   : > { %v12060_v63 = vpop.permute.xlu1 %7403  ;;  %v5041_v56 = vpop.permute.xlu0 %5040 }
 0x5b1   : > { %v5350_v4 = vsel %vm1747_vm10, %v5318_v33, %v5041_v56  ;;  %v12089_v20 = vsel %vm574_vm1, %v4236_v46, %v4237_v15  ;;  %v7405_v44 = vunpack.i.l.bf16 %v12060_v63  ;;  %v12108_v51 = vsel %vm751_vm2, %v4407_v53, %v4408_v21 }
 0x5b2   : > { %4770 = vrot.lane.b32.xlu1 %v12018_v49, %s7748_s24  ;;  %7488 = vrot.lane.b32.xlu0 %v7487_v37, %s7741_s20  ;;  %v4240_v56 = vsel %vm574_vm1, %v4237_v15, %v4239_v12  ;;  %v12131_v53 = vsel %vm1516_vm3, %v3837_v39, %v11779_v16  ;;  %v7406_v13 = vunpack.i.h.bf16 %v12060_v63 }
 0x5b3   : > { %6397 = vmatprep.mubr.msk.f32.mxu0 %vm5383_vm12, %v5350_v4  ;;  %v5126_v37 = vsel %vm1582_vm5, %v11580_v43, %v7405_v44  ;;  %v4066_v63 = vrot.slane %v12131_v53, 7 }
 0x5b4   : > { %5570 = vmatmul.mubr.f32.gmra.mrb[42].mxu0 %v5254_v23  ;;  %v12073_v8 = vpop.permute.xlu1 %3901  ;;  %v12075_v58 = vpop.permute.xlu0 %3899  ;;  %v12123_v23 = vsel %vm1516_vm3, %v3838_v28, %v11786_v57  ;;  %v12136_v57 = vsel %vm751_vm2, %v4408_v21, %v4410_v36  ;;  %v7507_v28 = vpack.i.bf16 %v12049_v47, %v12018_v49 }
 0x5b6   : > { %7493 = vrot.lane.b32.xlu1 %v7492_v10, %s7749_s27  ;;  %4866 = vrot.lane.b32.xlu0 %v12080_v38, %s7737_s16 }
 0x5b8   : > { %v4755_v26 = vpop.permute.xlu1 %4754  ;;  %v7409_v35 = vpop.permute.xlu0 %7408 }
 0x5b9   : > { %v7410_v55 = vunpack.i.l.bf16 %v7409_v35  ;;  %v7411_v12 = vunpack.i.h.bf16 %v7409_v35 }
 0x5ba   : > { %7498 = vrot.lane.b32.xlu1 %v7497_v6, %s7747_s18  ;;  %4962 = vrot.lane.b32.xlu0 %v12089_v20, %s7740_s19 }
 0x5bb   : > { %v5158_v4 = vsel %vm1681_vm8, %v5126_v37, %v7410_v55  ;;  %v12164_v37 = vsel %vm408_vm0, 0.0, %v4066_v63 }
 0x5bc   : > { %v7414_v31 = vpop.permute.xlu1 %7413  ;;  %v4851_v52 = vpop.permute.xlu0 %4850 }
 0x5bd   : > { %v7415_v59 = vunpack.i.l.bf16 %v7414_v31  ;;  %v5287_v10 = vsel %vm1549_vm4, %v4755_v26, %v4851_v52  ;;  %v4067_v52 = vrot.slane %v12123_v23, 7  ;;  %v7416_v55 = vunpack.i.h.bf16 %v7414_v31 }
 0x5be   : > { %4772 = vrot.lane.b32.xlu1 %v12049_v47, %s7748_s24  ;;  %5058 = vrot.lane.b32.xlu0 %v12108_v51, %s7743_s12 }
 0x5bf   : > { %v5190_v46 = vsel %vm1786_vm11, %v5158_v4, %v7415_v59  ;;  %v12151_v31 = vsel %vm408_vm0, %v4066_v63, %v4067_v52 }
 0x5c0   : > { %v7419_v19 = vpop.permute.xlu1 %7418  ;;  %v4947_v25 = vpop.permute.xlu0 %4946  ;;  %v4242_v4 = vrot.slane %v12151_v31, 1 }
 0x5c1   : > { %v7420_v33 = vunpack.i.l.bf16 %v7419_v19  ;;  %v5319_v43 = vsel %vm1648_vm7, %v5287_v10, %v4947_v25  ;;  %v7421_v21 = vunpack.i.h.bf16 %v7419_v19 }
 0x5c2   : > { %4964 = vrot.lane.b32.xlu1 %v4240_v56, %s7740_s19  ;;  %4868 = vrot.lane.b32.xlu0 %v12066_v27, %s7737_s16 }
 0x5c3   : > { %v5222_v30 = vsel %vm3462_vm15, %v5190_v46, %v7420_v33  ;;  %v4241_v46 = vrot.slane %v12164_v37, 1 }
 0x5c4   : > { %v4757_v3 = vpop.permute.xlu1 %4756  ;;  %v5043_v15 = vpop.permute.xlu0 %5042  ;;  %v5255_v16 = vsel %vm5248_vm13, %v5222_v30, %v4755_v26 }
 0x5c5   : > { %v5351_v44 = vsel %vm1747_vm10, %v5319_v43, %v5043_v15  ;;  %v7517_v43 = vpack.i.bf16 %v4240_v56, %v12089_v20 }
 0x5c6   : > { %7503 = vrot.lane.b32.xlu1 %v7497_v6, %s7738_s17  ;;  %5060 = vrot.lane.b32.xlu0 %v12136_v57, %s7743_s12  ;;  %v5127_v6 = vsel %vm1582_vm5, %v11570_v29, %v7406_v13  ;;  %v7512_v29 = vpack.i.bf16 %v12066_v27, %v12080_v38  ;;  %v12181_v13 = vsel %vm574_vm1, %v4241_v46, %v4242_v4 }
 0x5c7   : > { %6398 = vmatprep.mubr.msk.f32.mxu0 %vm5383_vm12, %v5351_v44  ;;  %v5159_v25 = vsel %vm1681_vm8, %v5127_v6, %v7411_v12  ;;  %v4413_v44 = vrot.slane %v12151_v31, 2  ;;  %v4159_v12 = vsel %vm408_vm0, %v4067_v52, 0.0 }
 0x5c8   : > { %5575 = vmatmul.mubr.f32.gmra.mrb[44].mxu0 %v5255_v16  ;;  %v4949_v59 = vpop.permute.xlu1 %4948  ;;  %v4853_v39 = vpop.permute.xlu0 %4852  ;;  %v5191_v49 = vsel %vm1786_vm11, %v5159_v25, %v7416_v55  ;;  %v3761_v55 = vadd.f32 %v12099_v60, %v11676_v17  ;;  %v3766_v16 = vadd.f32 %v12099_v60, %v11682_v7 }
 0x5c9   : > { %v5288_v35 = vsel %vm1549_vm4, %v4757_v3, %v4853_v39  ;;  %v5223_v33 = vsel %vm3462_vm15, %v5191_v49, %v7421_v21 }
 0x5ca   : > { %4774 = vrot.lane.b32.xlu1 %v12108_v51, %s7748_s24  ;;  %7508 = vrot.lane.b32.xlu0 %v7507_v28, %s7741_s20  ;;  %v5320_v26 = vsel %vm1648_vm7, %v5288_v35, %v4949_v59  ;;  %v5256_v10 = vsel %vm5248_vm13, %v5223_v33, %v4757_v3  ;;  %v4412_v3 = vrot.slane %v12164_v37, 2  ;;  %v4244_v28 = vrot.slane %v4159_v12, 1 }
 0x5cb   : > { %v4415_v59 = vrot.slane %v4159_v12, 2  ;;  %v3839_v39 = vmax.f32 %v3761_v55, 0.0  ;;  %v3840_v6 = vmax.f32 %v3766_v16, 0.0 }
 0x5cc   : > { %v12158_v47 = vpop.permute.xlu1 %7423  ;;  %v5045_v19 = vpop.permute.xlu0 %5044  ;;  %v12194_v63 = vsel %vm751_vm2, %v4412_v3, %v4413_v44  ;;  %v4245_v35 = vsel %vm574_vm1, %v4242_v4, %v4244_v28 }
 0x5cd   : > { %v5352_v36 = vsel %vm1747_vm10, %v5320_v26, %v5045_v19  ;;  %v7425_v17 = vunpack.i.l.bf16 %v12158_v47  ;;  %v12207_v25 = vsel %vm1516_vm3, %v3840_v6, %v11889_v5  ;;  %v12211_v49 = vsel %vm1516_vm3, %v3839_v39, %v11891_v18 }
 0x5ce   : > { %7513 = vrot.lane.b32.xlu1 %v7512_v29, %s7749_s27  ;;  %4870 = vrot.lane.b32.xlu0 %v12164_v37, %s7737_s16  ;;  %v12216_v4 = vsel %vm751_vm2, %v4413_v44, %v4415_v59  ;;  %v4069_v46 = vrot.slane %v12211_v49, 7  ;;  %v7426_v28 = vunpack.i.h.bf16 %v12158_v47 }
 0x5cf   : > { %6399 = vmatprep.mubr.msk.f32.mxu0 %vm5383_vm12, %v5352_v36  ;;  %v5128_v33 = vsel %vm1582_vm5, %v11648_v24, %v7425_v17  ;;  %v7527_v24 = vpack.i.bf16 %v12136_v57, %v12108_v51 }
 0x5d0   : > { %5580 = vmatmul.mubr.f32.gmra.mrb[46].mxu0 %v5256_v10  ;;  %v12176_v15 = vpop.permute.xlu1 %3905  ;;  %v12178_v30 = vpop.permute.xlu0 %3903  ;;  %v4070_v10 = vrot.slane %v12207_v25, 7 }
 0x5d2   : > { %7518 = vrot.lane.b32.xlu1 %v7517_v43, %s7747_s18  ;;  %4966 = vrot.lane.b32.xlu0 %v12181_v13, %s7740_s19  ;;  %v12233_v59 = vsel %vm408_vm0, %v4069_v46, %v4070_v10 }
 0x5d4   : > { %v4759_v20 = vpop.permute.xlu1 %4758  ;;  %v7429_v56 = vpop.permute.xlu0 %7428 }
 0x5d5   : > { %v7430_v7 = vunpack.i.l.bf16 %v7429_v56  ;;  %v7431_v39 = vunpack.i.h.bf16 %v7429_v56  ;;  %v5129_v56 = vsel %vm1582_vm5, %v11640_v11, %v7426_v28  ;;  %v3771_v28 = vadd.f32 %v12099_v60, %v11697_v9 }
 0x5d6   : > { %4776 = vrot.lane.b32.xlu1 %v12136_v57, %s7748_s24  ;;  %5062 = vrot.lane.b32.xlu0 %v12194_v63, %s7743_s12 }
 0x5d7   : > { %v5160_v5 = vsel %vm1681_vm8, %v5128_v33, %v7430_v7  ;;  %v7532_v7 = vpack.i.bf16 %v12151_v31, %v12164_v37  ;;  %v5161_v33 = vsel %vm1681_vm8, %v5129_v56, %v7431_v39 }
 0x5d8   : > { %v7434_v52 = vpop.permute.xlu1 %7433  ;;  %v4855_v21 = vpop.permute.xlu0 %4854 }
 0x5d9   : > { %v7435_v26 = vunpack.i.l.bf16 %v7434_v52  ;;  %v5289_v18 = vsel %vm1549_vm4, %v4759_v20, %v4855_v21  ;;  %v12236_v21 = vsel %vm408_vm0, 0.0, %v4069_v46  ;;  %v7436_v51 = vunpack.i.h.bf16 %v7434_v52 }
 0x5da   : > { %4968 = vrot.lane.b32.xlu1 %v4245_v35, %s7740_s19  ;;  %4872 = vrot.lane.b32.xlu0 %v12151_v31, %s7737_s16  ;;  %v4247_v52 = vrot.slane %v12233_v59, 1 }
 0x5db   : > { %v5192_v12 = vsel %vm1786_vm11, %v5160_v5, %v7435_v26 }
 0x5dc   : > { %v7439_v19 = vpop.permute.xlu1 %7438  ;;  %v4951_v29 = vpop.permute.xlu0 %4950 }
 0x5dd   : > { %v7440_v36 = vunpack.i.l.bf16 %v7439_v19  ;;  %v5321_v44 = vsel %vm1648_vm7, %v5289_v18, %v4951_v29  ;;  %v7441_v47 = vunpack.i.h.bf16 %v7439_v19  ;;  %v4246_v29 = vrot.slane %v12236_v21, 1 }
 0x5de   : > { %7523 = vrot.lane.b32.xlu1 %v7517_v43, %s7738_s17  ;;  %5064 = vrot.lane.b32.xlu0 %v12216_v4, %s7743_s12  ;;  %v7537_v19 = vpack.i.bf16 %v4245_v35, %v12181_v13 }
 0x5df   : > { %v5224_v16 = vsel %vm3462_vm15, %v5192_v12, %v7440_v36  ;;  %v12262_v12 = vsel %vm574_vm1, %v4246_v29, %v4247_v52 }
 0x5e0   : > { %v4761_v3 = vpop.permute.xlu1 %4760  ;;  %v5047_v55 = vpop.permute.xlu0 %5046  ;;  %v5257_v57 = vsel %vm5248_vm13, %v5224_v16, %v4759_v20  ;;  %v5193_v20 = vsel %vm1786_vm11, %v5161_v33, %v7436_v51 }
 0x5e1   : > { %v5353_v43 = vsel %vm1747_vm10, %v5321_v44, %v5047_v55  ;;  %v5225_v5 = vsel %vm3462_vm15, %v5193_v20, %v7441_v47  ;;  %v4418_v44 = vrot.slane %v12233_v59, 2  ;;  %v4160_v55 = vsel %vm408_vm0, %v4070_v10, 0.0 }
 0x5e2   : > { %4778 = vrot.lane.b32.xlu1 %v12194_v63, %s7748_s24  ;;  %7528 = vrot.lane.b32.xlu0 %v7527_v24, %s7741_s20  ;;  %v4417_v24 = vrot.slane %v12236_v21, 2  ;;  %v5258_v13 = vsel %vm5248_vm13, %v5225_v5, %v4761_v3  ;;  %v3776_v10 = vadd.f32 %v12099_v60, %v11709_v1 }
 0x5e3   : > { %6400 = vmatprep.mubr.msk.f32.mxu0 %vm5383_vm12, %v5353_v43  ;;  %v4249_v43 = vrot.slane %v4160_v55, 1 }
 0x5e4   : > { %5585 = vmatmul.mubr.f32.gmra.mrb[48].mxu0 %v5257_v57  ;;  %v4953_v6 = vpop.permute.xlu1 %4952  ;;  %v4857_v17 = vpop.permute.xlu0 %4856  ;;  %v12281_v39 = vsel %vm751_vm2, %v4417_v24, %v4418_v44  ;;  %v3841_v57 = vmax.f32 %v3771_v28, 0.0  ;;  %v3842_v47 = vmax.f32 %v3776_v10, 0.0  ;;  %v7552_v28 = vpack.i.bf16 %v12233_v59, %v12236_v21 }
 0x5e5   : > { %v5290_v26 = vsel %vm1549_vm4, %v4761_v3, %v4857_v17  ;;  %v4250_v9 = vsel %vm574_vm1, %v4247_v52, %v4249_v43 }
 0x5e6   : > { %7533 = vrot.lane.b32.xlu1 %v7532_v7, %s7749_s27  ;;  %4874 = vrot.lane.b32.xlu0 %v12236_v21, %s7737_s16  ;;  %v5322_v11 = vsel %vm1648_vm7, %v5290_v26, %v4953_v6  ;;  %v4420_v6 = vrot.slane %v4160_v55, 2  ;;  %v12293_v1 = vsel %vm1516_vm3, %v3842_v47, %v11980_v42  ;;  %v12297_v17 = vsel %vm1516_vm3, %v3841_v57, %v11982_v48 }
 0x5e7   : > { %v4073_v52 = vrot.slane %v12293_v1, 7  ;;  %v4072_v33 = vrot.slane %v12297_v17, 7  ;;  %v7547_v48 = vpack.i.bf16 %v12216_v4, %v12194_v63 }
 0x5e8   : > { %v12256_v36 = vpop.permute.xlu1 %7443  ;;  %v5049_v46 = vpop.permute.xlu0 %5048  ;;  %v12301_v29 = vsel %vm751_vm2, %v4418_v44, %v4420_v6 }
 0x5e9   : > { %v5354_v18 = vsel %vm1747_vm10, %v5322_v11, %v5049_v46  ;;  %v7445_v26 = vunpack.i.l.bf16 %v12256_v36  ;;  %v12313_v24 = vsel %vm408_vm0, %v4072_v33, %v4073_v52  ;;  %v12316_v44 = vsel %vm408_vm0, 0.0, %v4072_v33 }
 0x5ea   : > { %7538 = vrot.lane.b32.xlu1 %v7537_v19, %s7747_s18  ;;  %4970 = vrot.lane.b32.xlu0 %v12262_v12, %s7740_s19  ;;  %v7446_v43 = vunpack.i.h.bf16 %v12256_v36  ;;  %v4251_v47 = vrot.slane %v12316_v44, 1  ;;  %v4252_v6 = vrot.slane %v12313_v24, 1 }
 0x5eb   : > { %6401 = vmatprep.mubr.msk.f32.mxu0 %vm5383_vm12, %v5354_v18  ;;  %v5130_v5 = vsel %vm1582_vm5, %v11719_v34, %v7445_v26 }
 0x5ec   : > { %5590 = vmatmul.mubr.f32.gmra.mrb[50].mxu0 %v5258_v13  ;;  %v12272_v35 = vpop.permute.xlu1 %3909  ;;  %v12274_v16 = vpop.permute.xlu0 %3907 }
 0x5ee   : > { %4780 = vrot.lane.b32.xlu1 %v12216_v4, %s7748_s24  ;;  %5066 = vrot.lane.b32.xlu0 %v12281_v39, %s7743_s12 }
 0x5f0   : > { %v4763_v3 = vpop.permute.xlu1 %4762  ;;  %v7449_v51 = vpop.permute.xlu0 %7448 }
 0x5f1   : > { %v7450_v20 = vunpack.i.l.bf16 %v7449_v51 }
 0x5f2   : > { %4972 = vrot.lane.b32.xlu1 %v4250_v9, %s7740_s19  ;;  %4876 = vrot.lane.b32.xlu0 %v12233_v59, %s7737_s16 }
 0x5f4   : > { %v7454_v7 = vpop.permute.xlu1 %7453  ;;  %v4859_v56 = vpop.permute.xlu0 %4858 }
 0x5f5   : > { %v7455_v42 = vunpack.i.l.bf16 %v7454_v7  ;;  %v5291_v63 = vsel %vm1549_vm4, %v4763_v3, %v4859_v56  ;;  %v7451_v56 = vunpack.i.h.bf16 %v7449_v51  ;;  %v7456_v26 = vunpack.i.h.bf16 %v7454_v7 }
 0x5f6   : > { %7543 = vrot.lane.b32.xlu1 %v7537_v19, %s7738_s17  ;;  %5068 = vrot.lane.b32.xlu0 %v12301_v29, %s7743_s12  ;;  %v5162_v19 = vsel %vm1681_vm8, %v5130_v5, %v7450_v20  ;;  %v7557_v20 = vpack.i.bf16 %v4250_v9, %v12262_v12  ;;  %v5131_v51 = vsel %vm1582_vm5, %v11707_v54, %v7446_v43  ;;  %v4423_v7 = vrot.slane %v12313_v24, 2 }
 0x5f7   : > { %v5194_v4 = vsel %vm1786_vm11, %v5162_v19, %v7455_v42  ;;  %v4161_v19 = vsel %vm408_vm0, %v4073_v52, 0.0  ;;  %v3781_v9 = vadd.f32 %v12099_v60, %v11728_v62  ;;  %v3786_v52 = vadd.f32 %v12099_v60, %v11738_v61 }
 0x5f8   : > { %v7459_v11 = vpop.permute.xlu1 %7458  ;;  %v4955_v46 = vpop.permute.xlu0 %4954 }
 0x5f9   : > { %v7460_v18 = vunpack.i.l.bf16 %v7459_v11  ;;  %v5323_v34 = vsel %vm1648_vm7, %v5291_v63, %v4955_v46  ;;  %v7461_v36 = vunpack.i.h.bf16 %v7459_v11  ;;  %v4422_v46 = vrot.slane %v12316_v44, 2 }
 0x5fa   : > { %4782 = vrot.lane.b32.xlu1 %v12281_v39, %s7748_s24  ;;  %7548 = vrot.lane.b32.xlu0 %v7547_v48, %s7741_s20  ;;  %v3843_v43 = vmax.f32 %v3781_v9, 0.0 }
 0x5fb   : > { %v5226_v10 = vsel %vm3462_vm15, %v5194_v4, %v7460_v18  ;;  %v4253_v18 = vsel %vm574_vm1, %v4251_v47, %v4252_v6  ;;  %v4425_v47 = vrot.slane %v4161_v19, 2 }
 0x5fc   : > { %v4765_v55 = vpop.permute.xlu1 %4764  ;;  %v5051_v13 = vpop.permute.xlu0 %5050  ;;  %v5259_v33 = vsel %vm5248_vm13, %v5226_v10, %v4763_v3  ;;  %v5163_v3 = vsel %vm1681_vm8, %v5131_v51, %v7451_v56 }
 0x5fd   : > { %v5355_v57 = vsel %vm1747_vm10, %v5323_v34, %v5051_v13  ;;  %v5195_v12 = vsel %vm1786_vm11, %v5163_v3, %v7456_v26  ;;  %v4254_v34 = vrot.slane %v4161_v19, 1 }
 0x5fe   : > { %7553 = vrot.lane.b32.xlu1 %v7552_v28, %s7749_s27  ;;  %4878 = vrot.lane.b32.xlu0 %v12316_v44, %s7737_s16  ;;  %v5227_v4 = vsel %vm3462_vm15, %v5195_v12, %v7461_v36  ;;  %v12359_v28 = vsel %vm751_vm2, %v4422_v46, %v4423_v7 }
 0x5ff   : > { %6402 = vmatprep.mubr.msk.f32.mxu0 %vm5383_vm12, %v5355_v57  ;;  %v5260_v62 = vsel %vm5248_vm13, %v5227_v4, %v4765_v55  ;;  %v3844_v57 = vmax.f32 %v3786_v52, 0.0  ;;  %v4255_v56 = vsel %vm574_vm1, %v4252_v6, %v4254_v34 }
 0x600   : > { %5595 = vmatmul.mubr.f32.gmra.mrb[52].mxu0 %v5259_v33  ;;  %v4957_v42 = vpop.permute.xlu1 %4956  ;;  %v4861_v48 = vpop.permute.xlu0 %4860 }
 0x601   : > { %v5292_v5 = vsel %vm1549_vm4, %v4765_v55, %v4861_v48  ;;  %v12377_v26 = vsel %vm1516_vm3, %v3844_v57, %v12073_v8  ;;  %v12381_v55 = vsel %vm1516_vm3, %v3843_v43, %v12075_v58  ;;  %v7567_v8 = vpack.i.bf16 %v12301_v29, %v12281_v39 }
 0x602   : > { %7558 = vrot.lane.b32.xlu1 %v7557_v20, %s7747_s18  ;;  %4974 = vrot.lane.b32.xlu0 %v4253_v18, %s7740_s19  ;;  %v5324_v11 = vsel %vm1648_vm7, %v5292_v5, %v4957_v42  ;;  %v12384_v42 = vsel %vm751_vm2, %v4423_v7, %v4425_v47  ;;  %v4076_v6 = vrot.slane %v12377_v26, 7  ;;  %v4075_v48 = vrot.slane %v12381_v55, 7 }
 0x603   : > { %v7572_v39 = vpack.i.bf16 %v12313_v24, %v12316_v44 }
 0x604   : > { %v12351_v54 = vpop.permute.xlu1 %7463  ;;  %v5053_v63 = vpop.permute.xlu0 %5052  ;;  %v12395_v5 = vsel %vm408_vm0, %v4075_v48, %v4076_v6  ;;  %v12398_v7 = vsel %vm408_vm0, 0.0, %v4075_v48 }
 0x605   : > { %v5356_v13 = vsel %vm1747_vm10, %v5324_v11, %v5053_v63  ;;  %v7465_v51 = vunpack.i.l.bf16 %v12351_v54  ;;  %v4256_v11 = vrot.slane %v12398_v7, 1  ;;  %v4257_v63 = vrot.slane %v12395_v5, 1 }
 0x606   : > { %4784 = vrot.lane.b32.xlu1 %v12301_v29, %s7748_s24  ;;  %5070 = vrot.lane.b32.xlu0 %v12359_v28, %s7743_s12  ;;  %v4427_v47 = vrot.slane %v12398_v7, 2  ;;  %v7466_v48 = vunpack.i.h.bf16 %v12351_v54 }
 0x607   : > { %6403 = vmatprep.mubr.msk.f32.mxu0 %vm5383_vm12, %v5356_v13  ;;  %v5132_v29 = vsel %vm1582_vm5, %v11804_v40, %v7465_v51  ;;  %v7577_v13 = vpack.i.bf16 %v4255_v56, %v4253_v18  ;;  %v12421_v51 = vsel %vm574_vm1, %v4256_v11, %v4257_v63 }
 0x608   : > { %5600 = vmatmul.mubr.f32.gmra.mrb[54].mxu0 %v5260_v62  ;;  %v12367_v10 = vpop.permute.xlu1 %3913  ;;  %v12369_v61 = vpop.permute.xlu0 %3911 }
 0x60a   : > { %4976 = vrot.lane.b32.xlu1 %v4255_v56, %s7740_s19  ;;  %4880 = vrot.lane.b32.xlu0 %v12313_v24, %s7737_s16 }
 0x60c   : > { %v4767_v33 = vpop.permute.xlu1 %4766  ;;  %v7469_v36 = vpop.permute.xlu0 %7468 }
 0x60d   : > { %v7470_v19 = vunpack.i.l.bf16 %v7469_v36  ;;  %v7471_v18 = vunpack.i.h.bf16 %v7469_v36 }
 0x60e   : > { %7563 = vrot.lane.b32.xlu1 %v7557_v20, %s7738_s17  ;;  %5072 = vrot.lane.b32.xlu0 %v12384_v42, %s7743_s12 }
 0x60f   : > { %v5164_v4 = vsel %vm1681_vm8, %v5132_v29, %v7470_v19  ;;  %v4162_v19 = vsel %vm408_vm0, %v4076_v6, 0.0 }
 0x610   : > { %v7474_v46 = vpop.permute.xlu1 %7473  ;;  %v4863_v58 = vpop.permute.xlu0 %4862  ;;  %v4259_v29 = vrot.slane %v4162_v19, 1 }
 0x611   : > { %v7475_v20 = vunpack.i.l.bf16 %v7474_v46  ;;  %v5293_v52 = vsel %vm1549_vm4, %v4767_v33, %v4863_v58  ;;  %v4428_v58 = vrot.slane %v12395_v5, 2  ;;  %v7476_v56 = vunpack.i.h.bf16 %v7474_v46 }
 0x612   : > { %4786 = vrot.lane.b32.xlu1 %v12359_v28, %s7748_s24  ;;  %7568 = vrot.lane.b32.xlu0 %v7567_v8, %s7741_s20 }
 0x613   : > { %v5196_v34 = vsel %vm1786_vm11, %v5164_v4, %v7475_v20  ;;  %v12434_v6 = vsel %vm751_vm2, %v4427_v47, %v4428_v58  ;;  %v14247_v4 = vld [vmem:[#allocation148_spill] sm:$0xff] }
 0x614   : > { %v7479_v3 = vpop.permute.xlu1 %7478  ;;  %v4959_v12 = vpop.permute.xlu0 %4958  ;;  %v3791_v46 = vadd.f32 %v12099_v60, %v14247_v4 }
 0x615   : > { %v7480_v9 = vunpack.i.l.bf16 %v7479_v3  ;;  %v5325_v62 = vsel %vm1648_vm7, %v5293_v52, %v4959_v12  ;;  %v7481_v20 = vunpack.i.h.bf16 %v7479_v3  ;;  %v14248_v52 = vld [vmem:[#allocation149_spill] sm:$0xff] }
 0x616   : > { %7573 = vrot.lane.b32.xlu1 %v7572_v39, %s7749_s27  ;;  %4882 = vrot.lane.b32.xlu0 %v12398_v7, %s7737_s16 }
 0x617   : > { %v5228_v57 = vsel %vm3462_vm15, %v5196_v34, %v7480_v9  ;;  %v14246_v9 = vld [vmem:[#allocation175_spill] sm:$0xff]  ;;  %v3796_v34 = vadd.f32 %v12099_v60, %v14248_v52 }
 0x618   : > { %v4769_v40 = vpop.permute.xlu1 %4768  ;;  %v5055_v43 = vpop.permute.xlu0 %5054  ;;  %v5261_v54 = vsel %vm5248_vm13, %v5228_v57, %v4767_v33  ;;  %v5133_v11 = vsel %vm1582_vm5, %v14246_v9, %v7466_v48  ;;  %v4430_v48 = vrot.slane %v4162_v19, 2  ;;  %v7587_v9 = vpack.i.bf16 %v12384_v42, %v12359_v28 }
 0x619   : > { %v5357_v8 = vsel %vm1747_vm10, %v5325_v62, %v5055_v43  ;;  %v5165_v33 = vsel %vm1681_vm8, %v5133_v11, %v7471_v18  ;;  %v4260_v18 = vsel %vm574_vm1, %v4257_v63, %v4259_v29 }
 0x61a   : > { %7578 = vrot.lane.b32.xlu1 %v7577_v13, %s7747_s18  ;;  %4978 = vrot.lane.b32.xlu0 %v12421_v51, %s7740_s19  ;;  %v5197_v3 = vsel %vm1786_vm11, %v5165_v33, %v7476_v56  ;;  %v12466_v29 = vsel %vm751_vm2, %v4428_v58, %v4430_v48 }
 0x61b   : > { %6404 = vmatprep.mubr.msk.f32.mxu0 %vm5383_vm12, %v5357_v8  ;;  %v5229_v47 = vsel %vm3462_vm15, %v5197_v3, %v7481_v20 }
 0x61c   : > { %5605 = vmatmul.mubr.f32.gmra.mrb[56].mxu0 %v5261_v54  ;;  %v4961_v12 = vpop.permute.xlu1 %4960  ;;  %v4865_v39 = vpop.permute.xlu0 %4864  ;;  %v3845_v54 = vmax.f32 %v3791_v46, 0.0  ;;  %v5262_v56 = vsel %vm5248_vm13, %v5229_v47, %v4769_v40 }
 0x61d   : > { %v5294_v36 = vsel %vm1549_vm4, %v4769_v40, %v4865_v39  ;;  %v3846_v39 = vmax.f32 %v3796_v34, 0.0  ;;  %v7592_v34 = vpack.i.bf16 %v12395_v5, %v12398_v7 }
 0x61e   : > { %4788 = vrot.lane.b32.xlu1 %v12384_v42, %s7748_s24  ;;  %5074 = vrot.lane.b32.xlu0 %v12434_v6, %s7743_s12  ;;  %v5326_v43 = vsel %vm1648_vm7, %v5294_v36, %v4961_v12  ;;  %v12463_v19 = vsel %vm1516_vm3, %v3845_v54, %v12178_v30  ;;  %v7597_v54 = vpack.i.bf16 %v4260_v18, %v12421_v51 }
 0x61f   : > { %v12459_v12 = vsel %vm1516_vm3, %v3846_v39, %v12176_v15  ;;  %v4078_v15 = vrot.slane %v12463_v19, 7 }
 0x620   : > { %v12446_v62 = vpop.permute.xlu1 %7483  ;;  %v5057_v57 = vpop.permute.xlu0 %5056  ;;  %v4079_v40 = vrot.slane %v12459_v12, 7 }
 0x621   : > { %v5358_v8 = vsel %vm1747_vm10, %v5326_v43, %v5057_v57  ;;  %v7485_v30 = vunpack.i.l.bf16 %v12446_v62  ;;  %v12483_v58 = vsel %vm408_vm0, 0.0, %v4078_v15 }
 0x622   : > { %4980 = vrot.lane.b32.xlu1 %v4260_v18, %s7740_s19  ;;  %4884 = vrot.lane.b32.xlu0 %v12395_v5, %s7737_s16  ;;  %v4261_v43 = vrot.slane %v12483_v58, 1 }
 0x623   : > { %6405 = vmatprep.mubr.msk.f32.mxu0 %vm5383_vm12, %v5358_v8  ;;  %v5134_v28 = vsel %vm1582_vm5, %v11902_v22, %v7485_v30  ;;  %v7486_v8 = vunpack.i.h.bf16 %v12446_v62 }
 0x624   : > { %5610 = vmatmul.mubr.f32.gmra.mrb[58].mxu0 %v5262_v56  ;;  %v4771_v63 = vpop.permute.xlu1 %4770  ;;  %v7489_v20 = vpop.permute.xlu0 %7488 }
 0x625   : > { %v7490_v4 = vunpack.i.l.bf16 %v7489_v20  ;;  %v7491_v30 = vunpack.i.h.bf16 %v7489_v20  ;;  %v5135_v20 = vsel %vm1582_vm5, %v11894_v2, %v7486_v8 }
 0x626   : > { %7583 = vrot.lane.b32.xlu1 %v7577_v13, %s7738_s17  ;;  %5076 = vrot.lane.b32.xlu0 %v12466_v29, %s7743_s12  ;;  %v12480_v13 = vsel %vm408_vm0, %v4078_v15, %v4079_v40 }
 0x627   : > { %v5166_v33 = vsel %vm1681_vm8, %v5134_v28, %v7490_v4  ;;  %v4262_v57 = vrot.slane %v12480_v13, 1  ;;  %v4432_v28 = vrot.slane %v12483_v58, 2  ;;  %v4433_v18 = vrot.slane %v12480_v13, 2 }
 0x628   : > { %v7494_v11 = vpop.permute.xlu1 %7493  ;;  %v4867_v36 = vpop.permute.xlu0 %4866 }
 0x629   : > { %v7495_v46 = vunpack.i.l.bf16 %v7494_v11  ;;  %v5295_v22 = vsel %vm1549_vm4, %v4771_v63, %v4867_v36  ;;  %v12507_v62 = vsel %vm574_vm1, %v4261_v43, %v4262_v57  ;;  %v14250_v43 = vld [vmem:[#allocation90_spill] sm:$0xff] }
 0x62a   : > { %4790 = vrot.lane.b32.xlu1 %v12434_v6, %s7748_s24  ;;  %7588 = vrot.lane.b32.xlu0 %v7587_v9, %s7741_s20  ;;  %v4163_v9 = vsel %vm408_vm0, %v4079_v40, 0.0 }
 0x62b   : > { %v5198_v47 = vsel %vm1786_vm11, %v5166_v33, %v7495_v46  ;;  %v7496_v46 = vunpack.i.h.bf16 %v7494_v11 }
 0x62c   : > { %v7499_v42 = vpop.permute.xlu1 %7498  ;;  %v4963_v52 = vpop.permute.xlu0 %4962 }
 0x62d   : > { %v7500_v3 = vunpack.i.l.bf16 %v7499_v42  ;;  %v5327_v39 = vsel %vm1648_vm7, %v5295_v22, %v4963_v52  ;;  %v7501_v36 = vunpack.i.h.bf16 %v7499_v42  ;;  %v4264_v52 = vrot.slane %v4163_v9, 1 }
 0x62e   : > { %7593 = vrot.lane.b32.xlu1 %v7592_v34, %s7749_s27  ;;  %4886 = vrot.lane.b32.xlu0 %v12483_v58, %s7737_s16  ;;  %v5167_v34 = vsel %vm1681_vm8, %v5135_v20, %v7491_v30  ;;  %v3806_v42 = vadd.f32 %v12099_v60, %v14250_v43 }
 0x62f   : > { %v5230_v48 = vsel %vm3462_vm15, %v5198_v47, %v7500_v3  ;;  %v14249_v3 = vld [vmem:[#allocation174_spill] sm:$0xff]  ;;  %v12524_v47 = vsel %vm751_vm2, %v4432_v28, %v4433_v18  ;;  %v5199_v2 = vsel %vm1786_vm11, %v5167_v34, %v7496_v46  ;;  %v4265_v30 = vsel %vm574_vm1, %v4262_v57, %v4264_v52 }
 0x630   : > { %v4773_v56 = vpop.permute.xlu1 %4772  ;;  %v5059_v15 = vpop.permute.xlu0 %5058  ;;  %v5263_v51 = vsel %vm5248_vm13, %v5230_v48, %v4771_v63  ;;  %v3801_v63 = vadd.f32 %v12099_v60, %v14249_v3  ;;  %v5231_v22 = vsel %vm3462_vm15, %v5199_v2, %v7501_v36  ;;  %v4435_v28 = vrot.slane %v4163_v9, 2 }
 0x631   : > { %v5359_v4 = vsel %vm1747_vm10, %v5327_v39, %v5059_v15  ;;  %v5264_v46 = vsel %vm5248_vm13, %v5231_v22, %v4773_v56 }
 0x632   : > { %7598 = vrot.lane.b32.xlu1 %v7597_v54, %s7747_s18  ;;  %6406 = vmatprep.mubr.msk.f32.mxu0 %vm5383_vm12, %v5359_v4  ;;  %v3847_v4 = vmax.f32 %v3801_v63, 0.0 }
 0x633   : > { %4982 = vrot.lane.b32.xlu0 %v12507_v62, %s7740_s19  ;;  %5615 = vmatmul.mubr.f32.gmra.mrb[60].mxu0 %v5263_v51  ;;  %v3848_v51 = vmax.f32 %v3806_v42, 0.0 }
 0x634   : > { %v4965_v40 = vpop.permute.xlu1 %4964  ;;  %v4869_v11 = vpop.permute.xlu0 %4868  ;;  %v12546_v57 = vsel %vm1516_vm3, %v3847_v4, %v12274_v16  ;;  %v7607_v16 = vpack.i.bf16 %v12466_v29, %v12434_v6  ;;  %v7612_v6 = vpack.i.bf16 %v12480_v13, %v12483_v58  ;;  %v7617_v4 = vpack.i.bf16 %v4265_v30, %v12507_v62 }
 0x635   : > { %v5296_v33 = vsel %vm1549_vm4, %v4773_v56, %v4869_v11  ;;  %v12542_v36 = vsel %vm1516_vm3, %v3848_v51, %v12272_v35  ;;  %v4081_v11 = vrot.slane %v12546_v57, 7 }
 0x636   : > { %4792 = vrot.lane.b32.xlu1 %v12466_v29, %s7748_s24  ;;  %v5328_v8 = vsel %vm1648_vm7, %v5296_v33, %v4965_v40  ;;  %v12550_v40 = vsel %vm751_vm2, %v4433_v18, %v4435_v28  ;;  %v4082_v56 = vrot.slane %v12542_v36, 7 }
 0x637   : > { %5078 = vrot.lane.b32.xlu0 %v12524_v47, %s7743_s12  ;;  %v12565_v18 = vsel %vm408_vm0, 0.0, %v4081_v11 }
 0x638   : > { %v12530_v48 = vpop.permute.xlu1 %7503  ;;  %v5061_v39 = vpop.permute.xlu0 %5060  ;;  %v4266_v22 = vrot.slane %v12565_v18, 1 }
 0x639   : > { %v5360_v15 = vsel %vm1747_vm10, %v5328_v8, %v5061_v39  ;;  %v7505_v34 = vunpack.i.l.bf16 %v12530_v48 }
 0x63a   : > { %6407 = vmatprep.mubr.msk.f32.mxu0 %vm5383_vm12, %v5360_v15  ;;  %4984 = vrot.lane.b32.xlu1 %v4265_v30, %s7740_s19 }
 0x63b   : > { %4888 = vrot.lane.b32.xlu0 %v12480_v13, %s7737_s16  ;;  %5620 = vmatmul.mubr.f32.gmra.mrb[62].mxu0 %v5264_v46  ;;  %v5136_v29 = vsel %vm1582_vm5, %v11993_v0, %v7505_v34 }
 0x63c   : > { %v4775_v20 = vpop.permute.xlu1 %4774  ;;  %v7509_v9 = vpop.permute.xlu0 %7508 }
 0x63d   : > { %v7510_v33 = vunpack.i.l.bf16 %v7509_v9 }
 0x63e   : > { %7603 = vrot.lane.b32.xlu1 %v7597_v54, %s7738_s17  ;;  %v12562_v54 = vsel %vm408_vm0, %v4081_v11, %v4082_v56  ;;  %v4164_v11 = vsel %vm408_vm0, %v4082_v56, 0.0 }
 0x63f   : > { %5080 = vrot.lane.b32.xlu0 %v12550_v40, %s7743_s12  ;;  %v5168_v2 = vsel %vm1681_vm8, %v5136_v29, %v7510_v33  ;;  %v4267_v8 = vrot.slane %v12562_v54, 1  ;;  %v7511_v29 = vunpack.i.h.bf16 %v7509_v9  ;;  %v4438_v30 = vrot.slane %v12562_v54, 2 }
 0x640   : > { %v7514_v35 = vpop.permute.xlu1 %7513  ;;  %v4871_v52 = vpop.permute.xlu0 %4870 }
 0x641   : > { %v7515_v3 = vunpack.i.l.bf16 %v7514_v35  ;;  %v5297_v0 = vsel %vm1549_vm4, %v4775_v20, %v4871_v52  ;;  %v12591_v62 = vsel %vm574_vm1, %v4266_v22, %v4267_v8  ;;  %v7516_v52 = vunpack.i.h.bf16 %v7514_v35 }
 0x642   : > { %4794 = vrot.lane.b32.xlu1 %v12524_v47, %s7748_s24 }
 0x643   : > { %7608 = vrot.lane.b32.xlu0 %v7607_v16, %s7741_s20  ;;  %v5200_v15 = vsel %vm1786_vm11, %v5168_v2, %v7515_v3  ;;  %v7506_v16 = vunpack.i.h.bf16 %v12530_v48  ;;  %v4269_v2 = vrot.slane %v4164_v11, 1 }
 0x644   : > { %v7519_v63 = vpop.permute.xlu1 %7518  ;;  %v4967_v43 = vpop.permute.xlu0 %4966 }
 0x645   : > { %v7520_v42 = vunpack.i.l.bf16 %v7519_v63  ;;  %v5329_v34 = vsel %vm1648_vm7, %v5297_v0, %v4967_v43  ;;  %v7521_v56 = vunpack.i.h.bf16 %v7519_v63  ;;  %v14251_v43 = vld [vmem:[#allocation31_spill] sm:$0xff]  ;;  %v5137_v22 = vsel %vm1582_vm5, %v11985_v41, %v7506_v16 }
 0x646   : > { %7613 = vrot.lane.b32.xlu1 %v7612_v6, %s7749_s27  ;;  %v4437_v6 = vrot.slane %v12565_v18, 2  ;;  %v14252_v0 = vld [vmem:[#allocation91_spill] sm:$0xff] }
 0x647   : > { %v12576_v39 = vpop.f32.mrb[32].mxu0  ;;  %4890 = vrot.lane.b32.xlu0 %v12565_v18, %s7737_s16  ;;  %v5232_v46 = vsel %vm3462_vm15, %v5200_v15, %v7520_v42  ;;  %v3811_v42 = vadd.f32 %v12099_v60, %v14251_v43  ;;  %v3816_v35 = vadd.f32 %v12099_v60, %v14252_v0  ;;  %v4440_v43 = vrot.slane %v4164_v11, 2 }
 0x648   : > { %v5548_v51 = vpop.f32.mrb[33].mxu0  ;;  %v4777_v28 = vpop.permute.xlu1 %4776  ;;  %v5265_v48 = vsel %vm5248_vm13, %v5232_v46, %v4775_v20  ;;  %v12609_v20 = vsel %vm751_vm2, %v4437_v6, %v4438_v30 }
 0x649   : > { %v5063_v33 = vpop.permute.xlu0 %5062  ;;  %v5169_v51 = vsel %vm1681_vm8, %v5137_v22, %v7511_v29  ;;  %v3850_v6 = vmax.f32 %v3816_v35, 0.0 }
 0x64a   : > { %v5361_v3 = vsel %vm1747_vm10, %v5329_v34, %v5063_v33  ;;  %7618 = vrot.lane.b32.xlu1 %v7617_v4, %s7747_s18  ;;  %v5201_v41 = vsel %vm1786_vm11, %v5169_v51, %v7516_v52 }
 0x64b   : > { %6408 = vmatprep.mubr.msk.f32.mxu0 %vm5383_vm12, %v5361_v3  ;;  %4986 = vrot.lane.b32.xlu0 %v12591_v62, %s7740_s19  ;;  %v5233_v60 = vsel %vm3462_vm15, %v5201_v41, %v7521_v56  ;;  %v4270_v3 = vsel %vm574_vm1, %v4267_v8, %v4269_v2  ;;  %v12629_v56 = vsel %vm1516_vm3, %v3850_v6, %v12367_v10 }
 0x64c   : > { %5625 = vmatmul.mubr.f32.gmra.mrb[64].mxu0 %v5265_v48  ;;  %v4969_v9 = vpop.permute.xlu1 %4968  ;;  %v3849_v48 = vmax.f32 %v3811_v42, 0.0  ;;  %v5266_v52 = vsel %vm5248_vm13, %v5233_v60, %v4777_v28  ;;  %v12637_v42 = vsel %vm751_vm2, %v4438_v30, %v4440_v43  ;;  %v4085_v2 = vrot.slane %v12629_v56, 7 }
 0x64d   : > { %v4873_v15 = vpop.permute.xlu0 %4872  ;;  %v7637_v6 = vpack.i.bf16 %v4270_v3, %v12591_v62 }
 0x64e   : > { %v5298_v34 = vsel %vm1549_vm4, %v4777_v28, %v4873_v15  ;;  %4796 = vrot.lane.b32.xlu1 %v12550_v40, %s7748_s24  ;;  %v12633_v8 = vsel %vm1516_vm3, %v3849_v48, %v12369_v61  ;;  %v7627_v61 = vpack.i.bf16 %v12550_v40, %v12524_v47  ;;  %v7632_v47 = vpack.i.bf16 %v12562_v54, %v12565_v18 }
 0x64f   : > { %v12611_v63 = vpop.f32.mrb[34].mxu0  ;;  %5082 = vrot.lane.b32.xlu0 %v12609_v20, %s7743_s12  ;;  %v5330_v33 = vsel %vm1648_vm7, %v5298_v34, %v4969_v9  ;;  %v4084_v28 = vrot.slane %v12633_v8, 7 }
 0x650   : > { %v5553_v46 = vpop.f32.mrb[35].mxu0  ;;  %v12616_v16 = vpop.permute.xlu1 %7523 }
 0x651   : > { %v5065_v29 = vpop.permute.xlu0 %5064  ;;  %v7525_v15 = vunpack.i.l.bf16 %v12616_v16  ;;  %v12653_v51 = vsel %vm408_vm0, 0.0, %v4084_v28 }
 0x652   : > { %v5362_v22 = vsel %vm1747_vm10, %v5330_v33, %v5065_v29  ;;  %4988 = vrot.lane.b32.xlu1 %v4270_v3, %s7740_s19  ;;  %v4636_v33 = vrot.slane %v12653_v51, 1 }
 0x653   : > { %6409 = vmatprep.mubr.msk.f32.mxu0 %vm5383_vm12, %v5362_v22  ;;  %4892 = vrot.lane.b32.xlu0 %v12562_v54, %s7737_s16  ;;  %v5138_v40 = vsel %vm1582_vm5, %v12080_v38, %v7525_v15  ;;  %v4737_v15 = vrot.slane %v12653_v51, 2 }
 0x654   : > { %5630 = vmatmul.mubr.f32.gmra.mrb[66].mxu0 %v5266_v52  ;;  %v4779_v11 = vpop.permute.xlu1 %4778  ;;  %v4165_v52 = vsel %vm408_vm0, %v4085_v2, 0.0 }
 0x655   : > { %v7529_v9 = vpop.permute.xlu0 %7528 }
 0x656   : > { %7623 = vrot.lane.b32.xlu1 %v7617_v4, %s7738_s17  ;;  %v7530_v35 = vunpack.i.l.bf16 %v7529_v9  ;;  %v12649_v4 = vsel %vm408_vm0, %v4084_v28, %v4085_v2  ;;  %v7526_v28 = vunpack.i.h.bf16 %v12616_v16 }
 0x657   : > { %5084 = vrot.lane.b32.xlu0 %v12637_v42, %s7743_s12  ;;  %v4637_v29 = vrot.slane %v12649_v4, 1  ;;  %v4738_v3 = vrot.slane %v12649_v4, 2 }
 0x658   : > { %v7534_v10 = vpop.permute.xlu1 %7533  ;;  %v5170_v60 = vsel %vm1681_vm8, %v5138_v40, %v7530_v35 }
 0x659   : > { %v4875_v0 = vpop.permute.xlu0 %4874  ;;  %v7535_v30 = vunpack.i.l.bf16 %v7534_v10  ;;  %v12676_v62 = vsel %vm574_vm1, %v4636_v33, %v4637_v29 }
 0x65a   : > { %4798 = vrot.lane.b32.xlu1 %v12609_v20, %s7748_s24  ;;  %v5299_v43 = vsel %vm1549_vm4, %v4779_v11, %v4875_v0  ;;  %v7536_v0 = vunpack.i.h.bf16 %v7534_v10 }
 0x65b   : > { %7628 = vrot.lane.b32.xlu0 %v7627_v61, %s7741_s20  ;;  %v5202_v48 = vsel %vm1786_vm11, %v5170_v60, %v7535_v30  ;;  %v5139_v60 = vsel %vm1582_vm5, %v12066_v27, %v7526_v28 }
 0x65c   : > { %v7539_v34 = vpop.permute.xlu1 %7538 }
 0x65d   : > { %v7540_v41 = vunpack.i.l.bf16 %v7539_v34  ;;  %v4971_v46 = vpop.permute.xlu0 %4970 }
 0x65e   : > { %7633 = vrot.lane.b32.xlu1 %v7632_v47, %s7749_s27  ;;  %v5331_v61 = vsel %vm1648_vm7, %v5299_v43, %v4971_v46  ;;  %v7531_v47 = vunpack.i.h.bf16 %v7529_v9  ;;  %v7541_v9 = vunpack.i.h.bf16 %v7539_v34  ;;  %v4639_v46 = vrot.slane %v4165_v52, 1 }
 0x65f   : > { %4894 = vrot.lane.b32.xlu0 %v12653_v51, %s7737_s16  ;;  %v5234_v22 = vsel %vm3462_vm15, %v5202_v48, %v7540_v41  ;;  %v4739_v43 = vsel %vm751_vm2, %v4737_v15, %v4738_v3 }
 0x660   : > { %v4781_v38 = vpop.permute.xlu1 %4780  ;;  %v5267_v16 = vsel %vm5248_vm13, %v5234_v22, %v4779_v11  ;;  %v5171_v10 = vsel %vm1681_vm8, %v5139_v60, %v7531_v47 }
 0x661   : > { %v5067_v35 = vpop.permute.xlu0 %5066  ;;  %v5203_v11 = vsel %vm1786_vm11, %v5171_v10, %v7536_v0 }
 0x662   : > { %v5363_v40 = vsel %vm1747_vm10, %v5331_v61, %v5067_v35  ;;  %7638 = vrot.lane.b32.xlu1 %v7637_v6, %s7747_s18  ;;  %v5235_v22 = vsel %vm3462_vm15, %v5203_v11, %v7541_v9  ;;  %v12699_v61 = vsel %vm574_vm1, %v4637_v29, %v4639_v46  ;;  %v4740_v35 = vrot.slane %v4165_v52, 2 }
 0x663   : > { %v12679_v30 = vpop.f32.mrb[36].mxu0  ;;  %6410 = vmatprep.mubr.msk.f32.mxu0 %vm5383_vm12, %v5363_v40  ;;  %4990 = vrot.lane.b32.xlu0 %v12676_v62, %s7740_s19  ;;  %v5268_v40 = vsel %vm5248_vm13, %v5235_v22, %v4781_v38  ;;  %v14253_v22 = vld [vmem:[#allocation185_spill] sm:$0xff] }
 0x664   : > { %v5558_v2 = vpop.f32.mrb[37].mxu0  ;;  %5635 = vmatmul.mubr.f32.gmra.mrb[68].mxu0 %v5267_v16  ;;  %v4973_v41 = vpop.permute.xlu1 %4972  ;;  %v4741_v52 = vsel %vm751_vm2, %v4738_v3, %v4740_v35  ;;  %v5866_v3 = vld [vmem:[%s13221_s7 + $0x8] sm:$0xff] }
 0x665   : > { %v4877_v33 = vpop.permute.xlu0 %4876  ;;  %v7647_v2 = vpack.i.bf16 %v12637_v42, %v12609_v20  ;;  %v7657_v20 = vpack.i.bf16 %v12649_v4, %v12653_v51 }
 0x666   : > { %v5300_v48 = vsel %vm1549_vm4, %v4781_v38, %v4877_v33  ;;  %4800 = vrot.lane.b32.xlu1 %v12637_v42, %s7748_s24 }
 0x667   : > { %5086 = vrot.lane.b32.xlu0 %v4739_v43, %s7743_s12  ;;  %v5332_v27 = vsel %vm1648_vm7, %v5300_v48, %v4973_v41 }
 0x668   : > { %v12694_v34 = vpop.permute.xlu1 %7543 }
 0x669   : > { %v5069_v28 = vpop.permute.xlu0 %5068  ;;  %v7545_v41 = vunpack.i.l.bf16 %v12694_v34 }
 0x66a   : > { %v5364_v47 = vsel %vm1747_vm10, %v5332_v27, %v5069_v28  ;;  %4992 = vrot.lane.b32.xlu1 %v12699_v61, %s7740_s19 }
 0x66b   : > { %v12704_v15 = vpop.f32.mrb[38].mxu0  ;;  %6411 = vmatprep.mubr.msk.f32.mxu0 %vm5383_vm12, %v5364_v47  ;;  %4896 = vrot.lane.b32.xlu0 %v12649_v4, %s7737_s16  ;;  %v5140_v10 = vsel %vm1582_vm5, %v12164_v37, %v7545_v41  ;;  %v7546_v37 = vunpack.i.h.bf16 %v12694_v34  ;;  %v5868_v41 = vld [vmem:[%s13221_s7 + $0x18] sm:$0xff]  ;;  %v14254_v34 = vld [vmem:[#allocation4_spill] sm:$0xff] }
 0x66c   : > { %v5563_v0 = vpop.f32.mrb[39].mxu0  ;;  %5640 = vmatmul.mubr.f32.gmra.mrb[70].mxu0 %v5268_v40  ;;  %v4783_v16 = vpop.permute.xlu1 %4782 }
 0x66d   : > { %v7549_v29 = vpop.permute.xlu0 %7548 }
 0x66e   : > { %7643 = vrot.lane.b32.xlu1 %v7637_v6, %s7738_s17  ;;  %v7550_v60 = vunpack.i.l.bf16 %v7549_v29  ;;  %v5865_v6 = vld [vmem:[%s13221_s7] sm:$0xff]  ;;  %v7551_v40 = vunpack.i.h.bf16 %v7549_v29 }
 0x66f   : > { %5088 = vrot.lane.b32.xlu0 %v4741_v52, %s7743_s12  ;;  %v6742_v42 = vpack.c.bf16 %v5866_v3, %v5865_v6  ;;  %v5141_v6 = vsel %vm1582_vm5, %v12151_v31, %v7546_v37  ;;  %v14257_v37 = vld [vmem:[#allocation121_spill] sm:$0xff] }
 0x670   : > { %v7554_v9 = vpop.permute.xlu1 %7553  ;;  %v5172_v11 = vsel %vm1681_vm8, %v5140_v10, %v7550_v60 }
 0x671   : > { %v4879_v46 = vpop.permute.xlu0 %4878  ;;  %v7555_v38 = vunpack.i.l.bf16 %v7554_v9  ;;  %6750 = vmatprep.subr.bf16.mxu1 %v6742_v42  ;;  %6743 = vmatprep.subr.bf16.mxu0 %v6742_v42 }
 0x672   : > { %4802 = vrot.lane.b32.xlu1 %v4739_v43, %s7748_s24  ;;  %6752 = vmatpush3.bf16.msra.mxu1 %v6742_v42  ;;  %v5301_v28 = vsel %vm1549_vm4, %v4783_v16, %v4879_v46  ;;  %v7556_v46 = vunpack.i.h.bf16 %v7554_v9 }
 0x673   : > { %7648 = vrot.lane.b32.xlu0 %v7647_v2, %s7741_s20  ;;  %v5204_v27 = vsel %vm1786_vm11, %v5172_v11, %v7555_v38  ;;  %6745 = vmatpush3.bf16.msra.mxu0 %v6742_v42  ;;  %v5867_v2 = vld [vmem:[%s13221_s7 + $0x10] sm:$0xff]  ;;  %v14255_v42 = vld [vmem:[#allocation5_spill] sm:$0xff] }
 0x674   : > { %v7559_v33 = vpop.permute.xlu1 %7558  ;;  %v6746_v60 = vpack.c.bf16 %v5868_v41, %v5867_v2 }
 0x675   : > { %v7560_v48 = vunpack.i.l.bf16 %v7559_v33  ;;  %v4975_v43 = vpop.permute.xlu0 %4974  ;;  %v7561_v38 = vunpack.i.h.bf16 %v7559_v33 }
 0x676   : > { %7658 = vrot.lane.b32.xlu1 %v7657_v20, %s7749_s27  ;;  %v5333_v35 = vsel %vm1648_vm7, %v5301_v28, %v4975_v43  ;;  %6751 = vmatprep.subr.bf16.mxu1 %v6746_v60  ;;  %v5173_v20 = vsel %vm1681_vm8, %v5141_v6, %v7551_v40  ;;  %s13080_s27 = scalar_lea.vmem %s13223_s9, %s6459_s11 }
 0x677   : > { %7653 = vrot.lane.b32.xlu0 %v14253_v22, %s7737_s16  ;;  %v5236_v51 = vsel %vm3462_vm15, %v5204_v27, %v7560_v48  ;;  %6747 = vmatprep.subr.bf16.mxu0 %v6746_v60  ;;  %v14256_v27 = vld [vmem:[#allocation21_spill] sm:$0xff] }
 0x678   : > { %v4785_v4 = vpop.permute.xlu1 %4784  ;;  %v5269_v29 = vsel %vm5248_vm13, %v5236_v51, %v4783_v16  ;;  %6753 = vmatpush3.bf16.msra.mxu1 %v6746_v60  ;;  %v5205_v16 = vsel %vm1786_vm11, %v5173_v20, %v7556_v46  ;;  %6749 = vmatpush3.bf16.msra.mxu0 %v6746_v60  ;;  %v14262_v20 = vld [vmem:[#allocation57_spill] sm:$0xff] }
 0x679   : > { %v5071_v47 = vpop.permute.xlu0 %5070  ;;  %v5237_v48 = vsel %vm3462_vm15, %v5205_v16, %v7561_v38 }
 0x67a   : > { %v5365_v0 = vsel %vm1747_vm10, %v5333_v35, %v5071_v47  ;;  %4701 = vrot.lane.b32.xlu1 %v12676_v62, %s7747_s18  ;;  %v14258_v47 = vld [vmem:[#allocation20_spill] sm:$0xff] }
 0x67b   : > { %6412 = vmatprep.mubr.msk.f32.mxu0 %vm5383_vm12, %v5365_v0  ;;  %4994 = vrot.lane.b32.xlu0 %v14254_v34, %s7740_s19  ;;  %v14260_v34 = vld [vmem:[#allocation120_spill] sm:$0xff] }
 0x67c   : > { %5645 = vmatmul.mubr.f32.gmra.mrb[72].mxu0 %v5269_v29  ;;  %v4977_v62 = vpop.permute.xlu1 %4976 }
 0x67d   : > { %v4881_v3 = vpop.permute.xlu0 %4880 }
 0x67e   : > { %v5302_v9 = vsel %vm1549_vm4, %v4785_v4, %v4881_v3  ;;  %4996 = vrot.lane.b32.xlu1 %v14255_v42, %s7740_s19  ;;  %v14261_v3 = vld [vmem:[#allocation202_spill] sm:$0xff] }
 0x67f   : > { %v12756_v10 = vpop.f32.mrb[40].mxu0  ;;  %4804 = vrot.lane.b32.xlu0 %v4741_v52, %s7748_s24  ;;  %v5334_v43 = vsel %vm1648_vm7, %v5302_v9, %v4977_v62  ;;  %v5270_v52 = vsel %vm5248_vm13, %v5237_v48, %v4785_v4 }
 0x680   : > { %v5568_v33 = vpop.f32.mrb[41].mxu0  ;;  %v7564_v31 = vpop.permute.xlu1 %7563 }
 0x681   : > { %v5073_v11 = vpop.permute.xlu0 %5072  ;;  %v7565_v2 = vunpack.i.l.bf16 %v7564_v31  ;;  %v7566_v48 = vunpack.i.h.bf16 %v7564_v31 }
 0x682   : > { %v5366_v22 = vsel %vm1747_vm10, %v5334_v43, %v5073_v11  ;;  %5745 = vrot.lane.b32.xlu1 %v14256_v27, %s7736_s15  ;;  %v14263_v27 = vld [vmem:[#allocation24_spill] sm:$0xff] }
 0x683   : > { %6413 = vmatprep.mubr.msk.f32.mxu0 %vm5383_vm12, %v5366_v22  ;;  %4703 = vrot.lane.b32.xlu0 %v12699_v61, %s7747_s18  ;;  %v14259_v61 = vld [vmem:[#allocation189_spill] sm:$0xff]  ;;  %v5142_v60 = vsel %vm1582_vm5, %v12236_v21, %v7565_v2  ;;  %v5143_v2 = vsel %vm1582_vm5, %v12233_v59, %v7566_v48 }
 0x684   : > { %5650 = vmatmul.mubr.f32.gmra.mrb[74].mxu0 %v5270_v52  ;;  %v4787_v28 = vpop.permute.xlu1 %4786 }
 0x685   : > { %v7569_v51 = vpop.permute.xlu0 %7568 }
 0x686   : > { %5749 = vrot.lane.b32.xlu1 %v14257_v37, %s7736_s15  ;;  %v7570_v46 = vunpack.i.l.bf16 %v7569_v51  ;;  %v7571_v11 = vunpack.i.h.bf16 %v7569_v51  ;;  %v14264_v37 = vld [vmem:[#allocation201_spill] sm:$0xff] }
 0x687   : > { %v12771_v35 = vpop.f32.mrb[42].mxu0  ;;  %5747 = vrot.lane.b32.xlu0 %v14258_v47, %s7736_s15 }
 0x688   : > { %v5573_v40 = vpop.f32.mrb[43].mxu0  ;;  %v7574_v0 = vpop.permute.xlu1 %7573  ;;  %v5174_v6 = vsel %vm1681_vm8, %v5142_v60, %v7570_v46 }
 0x689   : > { %v4883_v41 = vpop.permute.xlu0 %4882  ;;  %v7575_v4 = vunpack.i.l.bf16 %v7574_v0  ;;  %v7576_v52 = vunpack.i.h.bf16 %v7574_v0  ;;  %v14265_v0 = vld [vmem:[#allocation33_spill] sm:$0xff] }
 0x68a   : > { %5753 = vrot.lane.b32.xlu1 %v14259_v61, %s7736_s15  ;;  %v5303_v42 = vsel %vm1549_vm4, %v4787_v28, %v4883_v41  ;;  %v5175_v41 = vsel %vm1681_vm8, %v5143_v2, %v7571_v11 }
 0x68b   : > { %5751 = vrot.lane.b32.xlu0 %v14260_v34, %s7736_s15  ;;  %v5206_v9 = vsel %vm1786_vm11, %v5174_v6, %v7575_v4  ;;  %v5207_v61 = vsel %vm1786_vm11, %v5175_v41, %v7576_v52 }
 0x68c   : > { %v7579_v29 = vpop.permute.xlu1 %7578 }
 0x68d   : > { %v7580_v38 = vunpack.i.l.bf16 %v7579_v29  ;;  %v4979_v62 = vpop.permute.xlu0 %4978  ;;  %v7581_v40 = vunpack.i.h.bf16 %v7579_v29 }
 0x68e   : > { %5757 = vrot.lane.b32.xlu1 %v14261_v3, %s7736_s15  ;;  %v5335_v21 = vsel %vm1648_vm7, %v5303_v42, %v4979_v62 }
 0x68f   : > { %5755 = vrot.lane.b32.xlu0 %v14262_v20, %s7736_s15  ;;  %v5238_v33 = vsel %vm3462_vm15, %v5206_v9, %v7580_v38  ;;  %v5239_v4 = vsel %vm3462_vm15, %v5207_v61, %v7581_v40 }
 0x690   : > { %v4789_v16 = vpop.permute.xlu1 %4788  ;;  %v5271_v47 = vsel %vm5248_vm13, %v5238_v33, %v4787_v28 }
 0x691   : > { %v5075_v43 = vpop.permute.xlu0 %5074 }
 0x692   : > { %v5367_v22 = vsel %vm1747_vm10, %v5335_v21, %v5075_v43  ;;  %5761 = vrot.lane.b32.xlu1 %v14263_v27, %s7736_s15 }
 0x693   : > { %6414 = vmatprep.mubr.msk.f32.mxu0 %vm5383_vm12, %v5367_v22  ;;  %5759 = vrot.lane.b32.xlu0 %v14264_v37, %s7736_s15 }
 0x694   : > { %5655 = vmatmul.mubr.f32.gmra.mrb[76].mxu0 %v5271_v47  ;;  %v4981_v31 = vpop.permute.xlu1 %4980 }
 0x695   : > { %v4885_v51 = vpop.permute.xlu0 %4884 }
 0x696   : > { %v5304_v46 = vsel %vm1549_vm4, %v4789_v16, %v4885_v51  ;;  %5765 = vrot.lane.b32.xlu1 %v11967_v32, %s7736_s15  ;;  %v5272_v32 = vsel %vm5248_vm13, %v5239_v4, %v4789_v16 }
 0x697   : > { %5763 = vrot.lane.b32.xlu0 %v14265_v0, %s7736_s15  ;;  %v5336_v34 = vsel %vm1648_vm7, %v5304_v46, %v4981_v31 }
 0x698   : > { %v7584_v28 = vpop.permute.xlu1 %7583 }
 0x699   : > { %v5077_v29 = vpop.permute.xlu0 %5076  ;;  %v7585_v3 = vunpack.i.l.bf16 %v7584_v28  ;;  %v7586_v22 = vunpack.i.h.bf16 %v7584_v28  ;;  %v14266_v28 = vld [vmem:[#allocation88_spill] sm:$0xff] }
 0x69a   : > { %v5368_v59 = vsel %vm1747_vm10, %v5336_v34, %v5077_v29  ;;  %5769 = vrot.lane.b32.xlu1 %v12043_v45, %s7736_s15  ;;  %v14267_v34 = vld [vmem:[#allocation26_spill] sm:$0xff] }
 0x69b   : > { %v12811_v60 = vpop.f32.mrb[44].mxu0  ;;  %6415 = vmatprep.mubr.msk.f32.mxu0 %vm5383_vm12, %v5368_v59  ;;  %5767 = vrot.lane.b32.xlu0 %v11958_v50, %s7736_s15  ;;  %v5145_v31 = vsel %vm1582_vm5, %v12313_v24, %v7586_v22 }
 0x69c   : > { %v5578_v38 = vpop.f32.mrb[45].mxu0  ;;  %5660 = vmatmul.mubr.f32.gmra.mrb[78].mxu0 %v5272_v32  ;;  %v4791_v62 = vpop.permute.xlu1 %4790 }
 0x69d   : > { %v7589_v6 = vpop.permute.xlu0 %7588 }
 0x69e   : > { %5773 = vrot.lane.b32.xlu1 %v12131_v53, %s7736_s15  ;;  %v7590_v9 = vunpack.i.l.bf16 %v7589_v6  ;;  %v5144_v53 = vsel %vm1582_vm5, %v12316_v44, %v7585_v3  ;;  %v7591_v52 = vunpack.i.h.bf16 %v7589_v6  ;;  %v14268_v6 = vld [vmem:[#allocation89_spill] sm:$0xff] }
 0x69f   : > { %5771 = vrot.lane.b32.xlu0 %v12037_v14, %s7736_s15 }
 0x6a0   : > { %v7594_v45 = vpop.permute.xlu1 %7593  ;;  %v5176_v21 = vsel %vm1681_vm8, %v5144_v53, %v7590_v9  ;;  %v5177_v51 = vsel %vm1681_vm8, %v5145_v31, %v7591_v52 }
 0x6a1   : > { %v4887_v20 = vpop.permute.xlu0 %4886  ;;  %v7595_v50 = vunpack.i.l.bf16 %v7594_v45 }
 0x6a2   : > { %5777 = vrot.lane.b32.xlu1 %v12211_v49, %s7736_s15  ;;  %v5305_v43 = vsel %vm1549_vm4, %v4791_v62, %v4887_v20 }
 0x6a3   : > { %v12823_v42 = vpop.f32.mrb[46].mxu0  ;;  %5775 = vrot.lane.b32.xlu0 %v12123_v23, %s7736_s15  ;;  %v5208_v49 = vsel %vm1786_vm11, %v5176_v21, %v7595_v50 }
 0x6a4   : > { %v5583_v16 = vpop.f32.mrb[47].mxu0  ;;  %v7599_v33 = vpop.permute.xlu1 %7598 }
 0x6a5   : > { %v7600_v48 = vunpack.i.l.bf16 %v7599_v33  ;;  %v4983_v14 = vpop.permute.xlu0 %4982  ;;  %v7601_v47 = vunpack.i.h.bf16 %v7599_v33  ;;  %v14269_v16 = vld [vmem:[#allocation30_spill] sm:$0xff] }
 0x6a6   : > { %5781 = vrot.lane.b32.xlu1 %v12297_v17, %s7736_s15  ;;  %v5337_v44 = vsel %vm1648_vm7, %v5305_v43, %v4983_v14  ;;  %v7596_v17 = vunpack.i.h.bf16 %v7594_v45 }
 0x6a7   : > { %5779 = vrot.lane.b32.xlu0 %v12207_v25, %s7736_s15  ;;  %v5240_v11 = vsel %vm3462_vm15, %v5208_v49, %v7600_v48 }
 0x6a8   : > { %v4793_v23 = vpop.permute.xlu1 %4792  ;;  %v5273_v25 = vsel %vm5248_vm13, %v5240_v11, %v4791_v62 }
 0x6a9   : > { %v5079_v27 = vpop.permute.xlu0 %5078 }
 0x6aa   : > { %v5369_v37 = vsel %vm1747_vm10, %v5337_v44, %v5079_v27  ;;  %5785 = vrot.lane.b32.xlu1 %v12381_v55, %s7736_s15 }
 0x6ab   : > { %5783 = vrot.lane.b32.xlu0 %v12293_v1, %s7736_s15  ;;  %6416 = vmatprep.mubr.msk.f32.mxu0 %vm5383_vm12, %v5369_v37  ;;  %v5209_v1 = vsel %vm1786_vm11, %v5177_v51, %v7596_v17 }
 0x6ac   : > { %5665 = vmatmul.mubr.f32.gmra.mrb[80].mxu0 %v5273_v25  ;;  %v4985_v40 = vpop.permute.xlu1 %4984  ;;  %v5241_v46 = vsel %vm3462_vm15, %v5209_v1, %v7601_v47 }
 0x6ad   : > { %v4889_v2 = vpop.permute.xlu0 %4888 }
 0x6ae   : > { %v5306_v41 = vsel %vm1549_vm4, %v4793_v23, %v4889_v2  ;;  %5789 = vrot.lane.b32.xlu1 %v12463_v19, %s7736_s15 }
 0x6af   : > { %5787 = vrot.lane.b32.xlu0 %v12377_v26, %s7736_s15  ;;  %v5338_v0 = vsel %vm1648_vm7, %v5306_v41, %v4985_v40  ;;  %v5274_v26 = vsel %vm5248_vm13, %v5241_v46, %v4793_v23 }
 0x6b0   : > { %v7604_v55 = vpop.permute.xlu1 %7603 }
 0x6b1   : > { %v5081_v61 = vpop.permute.xlu0 %5080  ;;  %v7605_v38 = vunpack.i.l.bf16 %v7604_v55  ;;  %v7606_v21 = vunpack.i.h.bf16 %v7604_v55 }
 0x6b2   : > { %v5370_v24 = vsel %vm1747_vm10, %v5338_v0, %v5081_v61  ;;  %5737 = vrot.lane.b32.xlu1 %v14266_v28, %s7736_s15 }
 0x6b3   : > { %5791 = vrot.lane.b32.xlu0 %v12459_v12, %s7736_s15  ;;  %6417 = vmatprep.mubr.msk.f32.mxu0 %vm5383_vm12, %v5370_v24  ;;  %v5146_v20 = vsel %vm1582_vm5, %v12398_v7, %v7605_v38  ;;  %v5147_v52 = vsel %vm1582_vm5, %v12395_v5, %v7606_v21 }
 0x6b4   : > { %5670 = vmatmul.mubr.f32.gmra.mrb[82].mxu0 %v5274_v26  ;;  %v4795_v19 = vpop.permute.xlu1 %4794 }
 0x6b5   : > { %v7609_v4 = vpop.permute.xlu0 %7608 }
 0x6b6   : > { %5739 = vrot.lane.b32.xlu1 %v14267_v34, %s7736_s15  ;;  %v7610_v12 = vunpack.i.l.bf16 %v7609_v4  ;;  %v7611_v23 = vunpack.i.h.bf16 %v7609_v4 }
 0x6b7   : > { %v12865_v29 = vpop.f32.mrb[48].mxu0  ;;  %5793 = vrot.lane.b32.xlu0 %v12546_v57, %s7736_s15 }
 0x6b8   : > { %v5588_v59 = vpop.f32.mrb[49].mxu0  ;;  %v7614_v32 = vpop.permute.xlu1 %7613  ;;  %v5178_v57 = vsel %vm1681_vm8, %v5146_v20, %v7610_v12  ;;  %v5179_v17 = vsel %vm1681_vm8, %v5147_v52, %v7611_v23 }
 0x6b9   : > { %v4891_v62 = vpop.permute.xlu0 %4890  ;;  %v7615_v45 = vunpack.i.l.bf16 %v7614_v32  ;;  %v7616_v22 = vunpack.i.h.bf16 %v7614_v32 }
 0x6ba   : > { %5741 = vrot.lane.b32.xlu1 %v14268_v6, %s7736_s15 }
 0x6bb   : > { %5795 = vrot.lane.b32.xlu0 %v12542_v36, %s7736_s15  ;;  %v5210_v53 = vsel %vm1786_vm11, %v5178_v57, %v7615_v45  ;;  %v5307_v36 = vsel %vm1549_vm4, %v4795_v19, %v4891_v62  ;;  %v5211_v47 = vsel %vm1786_vm11, %v5179_v17, %v7616_v22 }
 0x6bc   : > { %v7619_v3 = vpop.permute.xlu1 %7618 }
 0x6bd   : > { %v7620_v9 = vunpack.i.l.bf16 %v7619_v3  ;;  %v4987_v50 = vpop.permute.xlu0 %4986  ;;  %v7621_v44 = vunpack.i.h.bf16 %v7619_v3 }
 0x6be   : > { %5743 = vrot.lane.b32.xlu1 %v14269_v16, %s7736_s15  ;;  %v5339_v49 = vsel %vm1648_vm7, %v5307_v36, %v4987_v50 }
 0x6bf   : > { %v12878_v33 = vpop.f32.mrb[50].mxu0  ;;  %5797 = vrot.lane.b32.xlu0 %v12633_v8, %s7736_s15  ;;  %v5242_v7 = vsel %vm3462_vm15, %v5210_v53, %v7620_v9 }
 0x6c0   : > { %v5593_v48 = vpop.f32.mrb[51].mxu0  ;;  %v4797_v14 = vpop.permute.xlu1 %4796  ;;  %v5275_v8 = vsel %vm5248_vm13, %v5242_v7, %v4795_v19 }
 0x6c1   : > { %v5083_v43 = vpop.permute.xlu0 %5082 }
 0x6c2   : > { %v5371_v11 = vsel %vm1747_vm10, %v5339_v49, %v5083_v43 }
 0x6c3   : > { %5799 = vrot.lane.b32.xlu0 %v12629_v56, %s7736_s15  ;;  %6418 = vmatprep.mubr.msk.f32.mxu0 %vm5383_vm12, %v5371_v11  ;;  %v5243_v56 = vsel %vm3462_vm15, %v5211_v47, %v7621_v44 }
 0x6c4   : > { %5675 = vmatmul.mubr.f32.gmra.mrb[84].mxu0 %v5275_v8  ;;  %v4989_v27 = vpop.permute.xlu1 %4988  ;;  %v5276_v41 = vsel %vm5248_vm13, %v5243_v56, %v4797_v14 }
 0x6c5   : > { %v4893_v37 = vpop.permute.xlu0 %4892 }
 0x6c6   : > { %v5308_v25 = vsel %vm1549_vm4, %v4797_v14, %v4893_v37 }
 0x6c7   : > { %v5340_v31 = vsel %vm1648_vm7, %v5308_v25, %v4989_v27 }
 0x6c8   : > { %v7624_v40 = vpop.permute.xlu1 %7623 }
 0x6c9   : > { %v5085_v2 = vpop.permute.xlu0 %5084  ;;  %v7625_v46 = vunpack.i.l.bf16 %v7624_v40  ;;  %v7626_v45 = vunpack.i.h.bf16 %v7624_v40 }
 0x6ca   : > { %v5372_v51 = vsel %vm1747_vm10, %v5340_v31, %v5085_v2 }
 0x6cb   : > { %6419 = vmatprep.mubr.msk.f32.mxu0 %vm5383_vm12, %v5372_v51  ;;  %v5148_v4 = vsel %vm1582_vm5, %v12483_v58, %v7625_v46  ;;  %v5149_v14 = vsel %vm1582_vm5, %v12480_v13, %v7626_v45  ;;  %v12934_v46 = vld [vmem:[%s13220_s6] ss:$0 sm:$0xff] }
 0x6cc   : > { %5680 = vmatmul.mubr.f32.gmra.mrb[86].mxu0 %v5276_v41  ;;  %v4799_v5 = vpop.permute.xlu1 %4798 }
 0x6cd   : > { %v7629_v1 = vpop.permute.xlu0 %7628 }
 0x6ce   : > { %v7630_v61 = vunpack.i.l.bf16 %v7629_v1  ;;  %v7631_v9 = vunpack.i.h.bf16 %v7629_v1 }
 0x6d0   : > { %v7634_v55 = vpop.permute.xlu1 %7633  ;;  %v5180_v32 = vsel %vm1681_vm8, %v5148_v4, %v7630_v61  ;;  %v5181_v21 = vsel %vm1681_vm8, %v5149_v14, %v7631_v9  ;;  %v5567_v61 = vadd.f32 %v12934_v46, %v12756_v10  ;;  %v5577_v10 = vadd.f32 %v12934_v46, %v12811_v60 }
 0x6d1   : > { %v4895_v0 = vpop.permute.xlu0 %4894  ;;  %v7635_v24 = vunpack.i.l.bf16 %v7634_v55  ;;  %v7636_v57 = vunpack.i.h.bf16 %v7634_v55 }
 0x6d2   : > { %v5309_v62 = vsel %vm1549_vm4, %v4799_v5, %v4895_v0 }
 0x6d3   : > { %v12901_v28 = vpop.f32.mrb[52].mxu0  ;;  %v5212_v38 = vsel %vm1786_vm11, %v5180_v32, %v7635_v24  ;;  %v5213_v43 = vsel %vm1786_vm11, %v5181_v21, %v7636_v57 }
 0x6d4   : > { %v5598_v26 = vpop.f32.mrb[53].mxu0  ;;  %v7639_v19 = vpop.permute.xlu1 %7638 }
 0x6d5   : > { %v7640_v34 = vunpack.i.l.bf16 %v7639_v19  ;;  %v4991_v59 = vpop.permute.xlu0 %4990  ;;  %v7641_v53 = vunpack.i.h.bf16 %v7639_v19  ;;  %v14270_v19 = vld [vmem:[#allocation69_spill] sm:$0xff] }
 0x6d6   : > { %v5341_v3 = vsel %vm1648_vm7, %v5309_v62, %v4991_v59  ;;  %v14271_v4 = vunpack.i.l.bf16 %v14270_v19 }
 0x6d7   : > { %v5244_v6 = vsel %vm3462_vm15, %v5212_v38, %v7640_v34  ;;  %v5245_v11 = vsel %vm3462_vm15, %v5213_v43, %v7641_v53  ;;  %v14272_v53 = vunpack.i.h.bf16 %v14270_v19 }
 0x6d8   : > { %v4801_v12 = vpop.permute.xlu1 %4800  ;;  %v5277_v16 = vsel %vm5248_vm13, %v5244_v6, %v4799_v5 }
 0x6d9   : > { %v5087_v20 = vpop.permute.xlu0 %5086  ;;  %v5278_v27 = vsel %vm5248_vm13, %v5245_v11, %v4801_v12 }
 0x6da   : > { %v5373_v50 = vsel %vm1747_vm10, %v5341_v3, %v5087_v20  ;;  %v5709_v3 = vmax.f32 %v5567_v61, 0.0 }
 0x6db   : > { %v12911_v58 = vpop.f32.mrb[54].mxu0  ;;  %6420 = vmatprep.mubr.msk.f32.mxu0 %vm5383_vm12, %v5373_v50  ;;  %v5572_v50 = vadd.f32 %v12934_v46, %v12771_v35  ;;  %v5587_v35 = vadd.f32 %v12934_v46, %v12865_v29 }
 0x6dc   : > { %v5603_v36 = vpop.f32.mrb[55].mxu0  ;;  %5685 = vmatmul.mubr.f32.gmra.mrb[88].mxu0 %v5277_v16  ;;  %v4993_v48 = vpop.permute.xlu1 %4992 }
 0x6dd   : > { %v4897_v7 = vpop.permute.xlu0 %4896  ;;  %v5710_v43 = vmax.f32 %v5572_v50, 0.0 }
 0x6de   : > { %v5310_v49 = vsel %vm1549_vm4, %v4801_v12, %v4897_v7  ;;  %v5711_v7 = vmax.f32 %v5577_v10, 0.0 }
 0x6df   : > { %v5342_v22 = vsel %vm1648_vm7, %v5310_v49, %v4993_v48 }
 0x6e0   : > { %v7644_v23 = vpop.permute.xlu1 %7643 }
 0x6e1   : > { %v5089_v8 = vpop.permute.xlu0 %5088  ;;  %v7645_v52 = vunpack.i.l.bf16 %v7644_v23  ;;  %v7646_v24 = vunpack.i.h.bf16 %v7644_v23  ;;  %v5582_v23 = vadd.f32 %v12934_v46, %v12823_v42 }
 0x6e2   : > { %v5374_v44 = vsel %vm1747_vm10, %v5342_v22, %v5089_v8 }
 0x6e3   : > { %6421 = vmatprep.mubr.msk.f32.mxu0 %vm5383_vm12, %v5374_v44  ;;  %v5150_v47 = vsel %vm1582_vm5, %v12565_v18, %v7645_v52  ;;  %v5151_v20 = vsel %vm1582_vm5, %v12562_v54, %v7646_v24  ;;  %v5597_v52 = vadd.f32 %v12934_v46, %v12901_v28  ;;  %v5712_v29 = vmax.f32 %v5582_v23, 0.0 }
 0x6e4   : > { %5690 = vmatmul.mubr.f32.gmra.mrb[90].mxu0 %v5278_v27  ;;  %v4803_v13 = vpop.permute.xlu1 %4802 }
 0x6e5   : > { %v7649_v37 = vpop.permute.xlu0 %7648 }
 0x6e6   : > { %v7650_v17 = vunpack.i.l.bf16 %v7649_v37  ;;  %v7651_v59 = vunpack.i.h.bf16 %v7649_v37  ;;  %v5592_v37 = vadd.f32 %v12934_v46, %v12878_v33 }
 0x6e8   : > { %v7659_v25 = vpop.permute.xlu1 %7658  ;;  %v5182_v2 = vsel %vm1681_vm8, %v5150_v47, %v7650_v17  ;;  %v5183_v16 = vsel %vm1681_vm8, %v5151_v20, %v7651_v59  ;;  %v5714_v28 = vmax.f32 %v5592_v37, 0.0 }
 0x6e9   : > { %v7660_v40 = vunpack.i.l.bf16 %v7659_v25  ;;  %v7654_v56 = vpop.permute.xlu0 %7653  ;;  %v7661_v12 = vunpack.i.h.bf16 %v7659_v25 }
 0x6ea   : > { %v7655_v31 = vunpack.i.l.bf16 %v7654_v56  ;;  %v7656_v32 = vunpack.i.h.bf16 %v7654_v56 }
 0x6eb   : > { %v5214_v51 = vsel %vm1786_vm11, %v5182_v2, %v7660_v40  ;;  %v5215_v60 = vsel %vm1786_vm11, %v5183_v16, %v7661_v12  ;;  %v5715_v40 = vmax.f32 %v5597_v52, 0.0 }
 0x6ec   : > { %v4702_v41 = vpop.permute.xlu1 %4701  ;;  %v5311_v5 = vsel %vm1549_vm4, %v4803_v13, %v7655_v31  ;;  %v5602_v31 = vadd.f32 %v12934_v46, %v12911_v58 }
 0x6ed   : > { %v5246_v1 = vsel %vm3462_vm15, %v5214_v51, %v4702_v41  ;;  %v4995_v55 = vpop.permute.xlu0 %4994 }
 0x6ee   : > { %v5343_v18 = vsel %vm1648_vm7, %v5311_v5, %v4995_v55  ;;  %v5279_v0 = vsel %vm5248_vm13, %v5246_v1, %v4803_v13  ;;  %v5713_v13 = vmax.f32 %v5587_v35, 0.0  ;;  %v5716_v1 = vmax.f32 %v5602_v31, 0.0 }
 0x6ef   : > { %v5606_v26 = vpop.f32.mrb[56].mxu0  ;;  %v5375_v34 = vsel %vm1747_vm10, %v5343_v18, %v14271_v4 }
 0x6f0   : > { %v5608_v38 = vpop.f32.mrb[57].mxu0  ;;  %6422 = vmatprep.mubr.msk.f32.mxu0 %vm5383_vm12, %v5375_v34  ;;  %v4997_v62 = vpop.permute.xlu1 %4996  ;;  %v5607_v56 = vadd.f32 %v12934_v46, %v5606_v26 }
 0x6f1   : > { %v4805_v6 = vpop.permute.xlu0 %4804  ;;  %5695 = vmatmul.mubr.f32.gmra.mrb[92].mxu0 %v5279_v0 }
 0x6f2   : > { %v5312_v45 = vsel %vm1549_vm4, %v4805_v6, %v7656_v32  ;;  %v5717_v5 = vmax.f32 %v5607_v56, 0.0 }
 0x6f3   : > { %v5344_v9 = vsel %vm1648_vm7, %v5312_v45, %v4997_v62 }
 0x6f4   : > { %v5746_v57 = vpop.permute.xlu1 %5745  ;;  %v5376_v36 = vsel %vm1747_vm10, %v5344_v9, %v14272_v53 }
 0x6f5   : > { %v5837_v48 = vsel %vm1516_vm3, %v5709_v3, %v5746_v57  ;;  %v4704_v14 = vpop.permute.xlu0 %4703  ;;  %6423 = vmatprep.mubr.msk.f32.mxu0 %vm5383_vm12, %v5376_v36  ;;  %v5547_v36 = vadd.f32 %v12934_v46, %v12576_v39 }
 0x6f6   : > { %v5247_v54 = vsel %vm3462_vm15, %v5215_v60, %v4704_v14  ;;  %6618 = vmatprep.mubr.msk.f32.mxu1 %vm1615_vm6, %v5837_v48 }
 0x6f7   : > { %v5611_v21 = vpop.f32.mrb[58].mxu0  ;;  %v5280_v49 = vsel %vm5248_vm13, %v5247_v54, %v4805_v6  ;;  %v5705_v35 = vmax.f32 %v5547_v36, 0.0 }
 0x6f8   : > { %v5613_v11 = vpop.f32.mrb[59].mxu0  ;;  %5700 = vmatmul.mubr.f32.gmra.mrb[94].mxu0 %v5280_v49  ;;  %v5750_v22 = vpop.permute.xlu1 %5749  ;;  %v5612_v55 = vadd.f32 %v12934_v46, %v5611_v21  ;;  %v5552_v21 = vadd.f32 %v12934_v46, %v12611_v63 }
 0x6f9   : > { %v5839_v8 = vsel %vm1516_vm3, %v5711_v7, %v5750_v22  ;;  %v5748_v44 = vpop.permute.xlu0 %5747  ;;  %v5557_v11 = vadd.f32 %v12934_v46, %v12679_v30 }
 0x6fa   : > { %v5838_v27 = vsel %vm1516_vm3, %v5710_v43, %v5748_v44  ;;  %v5718_v4 = vmax.f32 %v5612_v55, 0.0  ;;  %v5706_v39 = vmax.f32 %v5552_v21, 0.0 }
 0x6fb   : > { %6619 = vmatmul.mubr.msk.f32.vlgmr.msra.gmra.mrb[64].mxu1 %vm1615_vm6, %v5838_v27  ;;  %v5707_v52 = vmax.f32 %v5557_v11, 0.0 }
 0x6fc   : > { %6621 = vmatprep.mubr.msk.f32.mxu1 %vm1615_vm6, %v5839_v8  ;;  %v5754_v42 = vpop.permute.xlu1 %5753 }
 0x6fd   : > { %v5841_v17 = vsel %vm1516_vm3, %v5713_v13, %v5754_v42  ;;  %v5752_v25 = vpop.permute.xlu0 %5751 }
 0x6fe   : > { %v5840_v47 = vsel %vm1516_vm3, %v5712_v29, %v5752_v25  ;;  %v5562_v29 = vadd.f32 %v12934_v46, %v12704_v15 }
 0x6ff   : > { %6622 = vmatmul.mubr.msk.f32.gmra.mrb[66].mxu1 %vm1615_vm6, %v5840_v47 }
 0x700   : > { %6624 = vmatprep.mubr.msk.f32.mxu1 %vm1615_vm6, %v5841_v17  ;;  %v5758_v33 = vpop.permute.xlu1 %5757  ;;  %v5708_v25 = vmax.f32 %v5562_v29, 0.0 }
 0x701   : > { %v5843_v2 = vsel %vm1516_vm3, %v5715_v40, %v5758_v33  ;;  %v5756_v51 = vpop.permute.xlu0 %5755 }
 0x702   : > { %v5842_v41 = vsel %vm1516_vm3, %v5714_v28, %v5756_v51 }
 0x703   : > { %6625 = vmatmul.mubr.msk.f32.gmra.mrb[68].mxu1 %vm1615_vm6, %v5842_v41 }
 0x704   : > { %6627 = vmatprep.mubr.msk.f32.mxu1 %vm1615_vm6, %v5843_v2  ;;  %v5762_v18 = vpop.permute.xlu1 %5761 }
 0x705   : > { %v5845_v0 = vsel %vm1516_vm3, %v5717_v5, %v5762_v18  ;;  %v5760_v58 = vpop.permute.xlu0 %5759 }
 0x706   : > { %v5844_v61 = vsel %vm1516_vm3, %v5716_v1, %v5760_v58  ;;  %v5616_v24 = vpop.f32.mrb[60].mxu0 }
 0x707   : > { %v5617_v26 = vadd.f32 %v12934_v46, %v5616_v24  ;;  %6628 = vmatmul.mubr.msk.f32.gmra.mrb[70].mxu1 %vm1615_vm6, %v5844_v61  ;;  %v5618_v19 = vpop.f32.mrb[61].mxu0 }
 0x708   : > { %6630 = vmatprep.mubr.msk.f32.mxu1 %vm1615_vm6, %v5845_v0  ;;  %v5766_v34 = vpop.permute.xlu1 %5765 }
 0x709   : > { %v5719_v59 = vmax.f32 %v5617_v26, 0.0  ;;  %v5764_v32 = vpop.permute.xlu0 %5763 }
 0x70a   : > { %v5846_v38 = vsel %vm1516_vm3, %v5718_v4, %v5764_v32 }
 0x70b   : > { %v5847_v62 = vsel %vm1516_vm3, %v5719_v59, %v5766_v34  ;;  %6631 = vmatmul.mubr.msk.f32.gmra.mrb[72].mxu1 %vm1615_vm6, %v5846_v38 }
 0x70c   : > { %v5770_v12 = vpop.permute.xlu1 %5769  ;;  %6633 = vmatprep.mubr.msk.f32.mxu1 %vm1615_vm6, %v5847_v62 }
 0x70d   : > { %v5768_v9 = vpop.permute.xlu0 %5767 }
 0x70e   : > { %v5621_v6 = vpop.f32.mrb[62].mxu0 }
 0x70f   : > { %v5622_v45 = vadd.f32 %v12934_v46, %v5621_v6  ;;  %v5623_v3 = vpop.f32.mrb[63].mxu0 }
 0x710   : > { %v5774_v10 = vpop.permute.xlu1 %5773 }
 0x711   : > { %v5720_v20 = vmax.f32 %v5622_v45, 0.0  ;;  %v5772_v37 = vpop.permute.xlu0 %5771 }
 0x713   : > { %v5848_v50 = vsel %vm1516_vm3, %v5720_v20, %v5768_v9 }
 0x714   : > { %v5778_v57 = vpop.permute.xlu1 %5777  ;;  %6634 = vmatmul.mubr.msk.f32.gmra.mrb[74].mxu1 %vm1615_vm6, %v5848_v50 }
 0x715   : > { %v5776_v1 = vpop.permute.xlu0 %5775 }
 0x718   : > { %v12998_v16 = vpop.permute.xlu1 %5781 }
 0x719   : > { %v5780_v59 = vpop.permute.xlu0 %5779 }
 0x71c   : > { %v13000_v53 = vpop.permute.xlu1 %5785 }
 0x71d   : > { %v5784_v50 = vpop.permute.xlu0 %5783 }
 0x71f   : > { %v5626_v48 = vpop.f32.mrb[64].mxu0 }
 0x720   : > { %v5627_v14 = vadd.f32 %v12934_v46, %v5626_v48  ;;  %v5628_v60 = vpop.f32.mrb[65].mxu0  ;;  %v13005_v54 = vpop.permute.xlu1 %5789 }
 0x722   : > { %v5721_v7 = vmax.f32 %v5627_v14, 0.0 }
 0x724   : > { %v5738_v49 = vpop.permute.xlu1 %5737  ;;  %v5849_v43 = vsel %vm1516_vm3, %v5721_v7, %v5770_v12 }
 0x725   : > { %v5833_v23 = vsel %vm1516_vm3, %v5705_v35, %v5738_v49  ;;  %6636 = vmatprep.mubr.msk.f32.mxu1 %vm1615_vm6, %v5849_v43  ;;  %v5788_v43 = vpop.permute.xlu0 %5787 }
 0x726   : > { %6612 = vmatprep.mubr.msk.f32.mxu0 %vm1615_vm6, %v5833_v23 }
 0x727   : > { %v5631_v22 = vpop.f32.mrb[66].mxu0 }
 0x728   : > { %v5632_v8 = vadd.f32 %v12934_v46, %v5631_v22  ;;  %v5633_v44 = vpop.f32.mrb[67].mxu0  ;;  %v5740_v27 = vpop.permute.xlu1 %5739 }
 0x729   : > { %v5834_v63 = vsel %vm1516_vm3, %v5706_v39, %v5740_v27 }
 0x72a   : > { %v5722_v13 = vmax.f32 %v5632_v8, 0.0  ;;  %6613 = vmatmul.mubr.msk.f32.vlgmr.msra.gmra.mrb[96].mxu0 %vm1615_vm6, %v5834_v63 }
 0x72c   : > { %v5742_v42 = vpop.permute.xlu1 %5741  ;;  %v5850_v17 = vsel %vm1516_vm3, %v5722_v13, %v5772_v37 }
 0x72d   : > { %v5835_v30 = vsel %vm1516_vm3, %v5707_v52, %v5742_v42  ;;  %6637 = vmatmul.mubr.msk.f32.gmra.mrb[76].mxu1 %vm1615_vm6, %v5850_v17  ;;  %v5792_v52 = vpop.permute.xlu0 %5791 }
 0x72e   : > { %6615 = vmatprep.mubr.msk.f32.mxu0 %vm1615_vm6, %v5835_v30 }
 0x730   : > { %v5744_v47 = vpop.permute.xlu1 %5743 }
 0x731   : > { %v5836_v40 = vsel %vm1516_vm3, %v5708_v25, %v5744_v47  ;;  %v5794_v25 = vpop.permute.xlu0 %5793 }
 0x732   : > { %6616 = vmatmul.mubr.msk.f32.gmra.mrb[98].mxu0 %vm1615_vm6, %v5836_v40 }
 0x737   : > { %v5636_v56 = vpop.f32.mrb[68].mxu0 }
 0x738   : > { %v5637_v28 = vadd.f32 %v12934_v46, %v5636_v56  ;;  %v5638_v15 = vpop.f32.mrb[69].mxu0 }
 0x739   : > { %v5796_v15 = vpop.permute.xlu0 %5795 }
 0x73a   : > { %v5723_v31 = vmax.f32 %v5637_v28, 0.0 }
 0x73c   : > { %v5851_v33 = vsel %vm1516_vm3, %v5723_v31, %v5774_v10 }
 0x73d   : > { %6639 = vmatprep.mubr.msk.f32.mxu1 %vm1615_vm6, %v5851_v33 }
 0x73f   : > { %v5641_v2 = vpop.f32.mrb[70].mxu0 }
 0x740   : > { %v5642_v51 = vadd.f32 %v12934_v46, %v5641_v2  ;;  %v5643_v41 = vpop.f32.mrb[71].mxu0 }
 0x742   : > { %v5724_v5 = vmax.f32 %v5642_v51, 0.0 }
 0x744   : > { %v5852_v55 = vsel %vm1516_vm3, %v5724_v5, %v5776_v1  ;;  %v5798_v5 = vpop.permute.xlu0 %5797 }
 0x745   : > { %6640 = vmatmul.mubr.msk.f32.gmra.mrb[78].mxu1 %vm1615_vm6, %v5852_v55 }
 0x74f   : > { %v5646_v18 = vpop.f32.mrb[72].mxu0 }
 0x750   : > { %v5647_v0 = vadd.f32 %v12934_v46, %v5646_v18  ;;  %v5648_v58 = vpop.f32.mrb[73].mxu0 }
 0x751   : > { %v13072_v58 = vld [vmem:[%s13222_s8] ss:$0 sm:$0xff] }
 0x752   : > { %v5725_v61 = vmax.f32 %v5647_v0, 0.0 }
 0x754   : > { %v5853_v24 = vsel %vm1516_vm3, %v5725_v61, %v5778_v57 }
 0x755   : > { %6642 = vmatprep.mubr.msk.f32.mxu1 %vm1615_vm6, %v5853_v24 }
 0x757   : > { %v5651_v26 = vpop.f32.mrb[74].mxu0 }
 0x758   : > { %v5652_v19 = vadd.f32 %v12934_v46, %v5651_v26  ;;  %v5653_v4 = vpop.f32.mrb[75].mxu0  ;;  %v5800_v26 = vpop.permute.xlu0 %5799 }
 0x75a   : > { %v5726_v34 = vmax.f32 %v5652_v19, 0.0 }
 0x75c   : > { %v5854_v32 = vsel %vm1516_vm3, %v5726_v34, %v5780_v59  ;;  %v7695_v59 = vld [vmem:[%s7830_s14 + $0x28] sm:$0xff] }
 0x75d   : > { %6643 = vmatmul.mubr.msk.f32.gmra.mrb[80].mxu1 %vm1615_vm6, %v5854_v32 }
 0x767   : > { %v5656_v38 = vpop.f32.mrb[76].mxu0 }
 0x768   : > { %v5657_v62 = vadd.f32 %v12934_v46, %v5656_v38  ;;  %v5658_v12 = vpop.f32.mrb[77].mxu0  ;;  %v7696_v38 = vld [vmem:[%s7830_s14 + $0x20] sm:$0xff] }
 0x76a   : > { %v5727_v6 = vmax.f32 %v5657_v62, 0.0 }
 0x76c   : > { %v5855_v45 = vsel %vm1516_vm3, %v5727_v6, %v12998_v16 }
 0x76d   : > { %6645 = vmatprep.mubr.msk.f32.mxu1 %vm1615_vm6, %v5855_v45 }
 0x76f   : > { %v5661_v3 = vpop.f32.mrb[78].mxu0 }
 0x770   : > { %v5662_v10 = vadd.f32 %v12934_v46, %v5661_v3  ;;  %v5663_v20 = vpop.f32.mrb[79].mxu0 }
 0x772   : > { %v5728_v9 = vmax.f32 %v5662_v10, 0.0  ;;  %v7697_v10 = vld [vmem:[%s7830_s14 + $0x38] sm:$0xff] }
 0x774   : > { %v5856_v57 = vsel %vm1516_vm3, %v5728_v9, %v5784_v50  ;;  %v7698_v9 = vld [vmem:[%s7830_s14 + $0x30] sm:$0xff] }
 0x775   : > { %6646 = vmatmul.mubr.msk.f32.gmra.mrb[82].mxu1 %vm1615_vm6, %v5856_v57 }
 0x77f   : > { %v5666_v36 = vpop.f32.mrb[80].mxu0 }
 0x780   : > { %v5667_v48 = vadd.f32 %v12934_v46, %v5666_v36  ;;  %v5668_v14 = vpop.f32.mrb[81].mxu0 }
 0x782   : > { %v5729_v60 = vmax.f32 %v5667_v48, 0.0 }
 0x784   : > { %v5857_v16 = vsel %vm1516_vm3, %v5729_v60, %v13000_v53  ;;  %v7699_v60 = vld [vmem:[%s7830_s14 + $0x48] sm:$0xff] }
 0x785   : > { %6648 = vmatprep.mubr.msk.f32.mxu1 %vm1615_vm6, %v5857_v16 }
 0x787   : > { %v5671_v7 = vpop.f32.mrb[82].mxu0 }
 0x788   : > { %v5672_v35 = vadd.f32 %v12934_v46, %v5671_v7  ;;  %v5673_v21 = vpop.f32.mrb[83].mxu0  ;;  %v7700_v7 = vld [vmem:[%s7830_s14 + $0x40] sm:$0xff] }
 0x78a   : > { %v5730_v49 = vmax.f32 %v5672_v35, 0.0 }
 0x78c   : > { %v5858_v23 = vsel %vm1516_vm3, %v5730_v49, %v5788_v43 }
 0x78d   : > { %6649 = vmatmul.mubr.msk.f32.gmra.mrb[84].mxu1 %vm1615_vm6, %v5858_v23 }
 0x797   : > { %v5676_v39 = vpop.f32.mrb[84].mxu0 }
 0x798   : > { %v5677_v11 = vadd.f32 %v12934_v46, %v5676_v39  ;;  %v5678_v22 = vpop.f32.mrb[85].mxu0  ;;  %v7701_v39 = vld [vmem:[%s7830_s14 + $0x58] sm:$0xff] }
 0x799   : > { %v7702_v22 = vld [vmem:[%s7830_s14 + $0x50] sm:$0xff] }
 0x79a   : > { %v5731_v8 = vmax.f32 %v5677_v11, 0.0 }
 0x79c   : > { %v5859_v53 = vsel %vm1516_vm3, %v5731_v8, %v13005_v54 }
 0x79d   : > { %6651 = vmatprep.mubr.msk.f32.mxu1 %vm1615_vm6, %v5859_v53 }
 0x79f   : > { %v5681_v44 = vpop.f32.mrb[86].mxu0 }
 0x7a0   : > { %v5682_v27 = vadd.f32 %v12934_v46, %v5681_v44  ;;  %v5683_v63 = vpop.f32.mrb[87].mxu0 }
 0x7a2   : > { %v5732_v13 = vmax.f32 %v5682_v27, 0.0 }
 0x7a4   : > { %v5860_v29 = vsel %vm1516_vm3, %v5732_v13, %v5792_v52  ;;  %v7703_v13 = vld [vmem:[%s7830_s14 + $0x68] sm:$0xff] }
 0x7a5   : > { %6652 = vmatmul.mubr.msk.f32.gmra.mrb[86].mxu1 %vm1615_vm6, %v5860_v29  ;;  %v7704_v29 = vld [vmem:[%s7830_s14 + $0x60] sm:$0xff] }
 0x7af   : > { %v5686_v37 = vpop.f32.mrb[88].mxu0 }
 0x7b0   : > { %v5687_v42 = vadd.f32 %v12934_v46, %v5686_v37  ;;  %v5688_v17 = vpop.f32.mrb[89].mxu0 }
 0x7b2   : > { %v5733_v30 = vmax.f32 %v5687_v42, 0.0 }
 0x7b4   : > { %v5861_v54 = vsel %vm1516_vm3, %v5733_v30, %v5794_v25 }
 0x7b5   : > { %6654 = vmatprep.mubr.msk.f32.mxu1 %vm1615_vm6, %v5861_v54  ;;  %v7705_v54 = vld [vmem:[%s7830_s14 + $0x78] sm:$0xff] }
 0x7b7   : > { %v5691_v47 = vpop.f32.mrb[90].mxu0 }
 0x7b8   : > { %v5692_v40 = vadd.f32 %v12934_v46, %v5691_v47  ;;  %v5693_v56 = vpop.f32.mrb[91].mxu0 }
 0x7ba   : > { %v5734_v28 = vmax.f32 %v5692_v40, 0.0  ;;  %v7706_v40 = vld [vmem:[%s7830_s14 + $0x70] sm:$0xff] }
 0x7bc   : > { %v5862_v31 = vsel %vm1516_vm3, %v5734_v28, %v5796_v15 }
 0x7bd   : > { %6655 = vmatmul.mubr.msk.f32.gmra.mrb[88].mxu1 %vm1615_vm6, %v5862_v31 }
 0x7c4   : > { %v5696_v33 = vpop.f32.mrb[92].mxu0 }
 0x7c5   : > { %v5697_v2 = vadd.f32 %v12934_v46, %v5696_v33  ;;  %v5698_v51 = vpop.f32.mrb[93].mxu0 }
 0x7c7   : > { %v5735_v41 = vmax.f32 %v5697_v2, 0.0  ;;  %v7707_v2 = vld [vmem:[%s7830_s14 + $0x8] sm:$0xff] }
 0x7c9   : > { %v5863_v1 = vsel %vm1516_vm3, %v5735_v41, %v5798_v5  ;;  %v7708_v5 = vld [vmem:[%s7830_s14] sm:$0xff] }
 0x7ca   : > { %6657 = vmatprep.mubr.msk.f32.mxu1 %vm1615_vm6, %v5863_v1 }
 0x7cb   : > { %v5701_v55 = vpop.f32.mrb[94].mxu0 }
 0x7cc   : > { %v5702_v18 = vadd.f32 %v12934_v46, %v5701_v55  ;;  %v5703_v0 = vpop.f32.mrb[95].mxu0 }
 0x7ce   : > { %v5736_v61 = vmax.f32 %v5702_v18, 0.0  ;;  %v6620_v24 = vpop.f32.mrb[64].mxu1 }
 0x7cf   : > { %v6064_v19 = vadd.f32 %v6620_v24, %v13072_v58  ;;  %v6058_v4 = vpop.f32.mrb[65].mxu1 }
 0x7d0   : > { %v6059_v46 = vadd.f32 %v13072_v58, %v6058_v4  ;;  %v5864_v34 = vsel %vm1516_vm3, %v5736_v61, %v5800_v26  ;;  %v7709_v61 = vld [vmem:[%s7830_s14 + $0x88] sm:$0xff]  ;;  %v7710_v26 = vld [vmem:[%s7830_s14 + $0x80] sm:$0xff] }
 0x7d1   : > { %v6202_v32 = vadd.f32 %v7695_v59, %v6064_v19  ;;  %6658 = vmatmul.mubr.msk.f32.gmra.mrb[90].mxu1 %vm1615_vm6, %v5864_v34 }
 0x7d2   : > { %v6201_v62 = vadd.f32 %v7696_v38, %v6059_v46  ;;  %v6623_v12 = vpop.f32.mrb[66].mxu1 }
 0x7d3   : > { %6234 = vst.msk [vmem:[%s13080_s27 + $0x28] sm:$0xff] %vm1516_vm3, %v6202_v32  ;;  %v6074_v6 = vadd.f32 %v6623_v12, %v13072_v58  ;;  %v6068_v45 = vpop.f32.mrb[67].mxu1  ;;  %v7711_v32 = vld [vmem:[%s7830_s14 + $0x18] sm:$0xff] }
 0x7d4   : > { %6233 = vst.msk [vmem:[%s13080_s27 + $0x20] sm:$0xff] %vm1516_vm3, %v6201_v62  ;;  %v6069_v3 = vadd.f32 %v13072_v58, %v6068_v45  ;;  %v7712_v62 = vld [vmem:[%s7830_s14 + $0x10] sm:$0xff] }
 0x7d5   : > { %v6204_v20 = vadd.f32 %v7697_v10, %v6074_v6 }
 0x7d6   : > { %v6203_v50 = vadd.f32 %v7698_v9, %v6069_v3  ;;  %v6626_v57 = vpop.f32.mrb[68].mxu1 }
 0x7d7   : > { %6236 = vst.msk [vmem:[%s13080_s27 + $0x38] sm:$0xff] %vm1516_vm3, %v6204_v20  ;;  %v6084_v36 = vadd.f32 %v6626_v57, %v13072_v58  ;;  %v6078_v48 = vpop.f32.mrb[69].mxu1  ;;  %v7713_v20 = vld [vmem:[%s7830_s14 + $0x98] sm:$0xff] }
 0x7d8   : > { %6235 = vst.msk [vmem:[%s13080_s27 + $0x30] sm:$0xff] %vm1516_vm3, %v6203_v50  ;;  %v6079_v14 = vadd.f32 %v13072_v58, %v6078_v48  ;;  %v7714_v50 = vld [vmem:[%s7830_s14 + $0x90] sm:$0xff] }
 0x7d9   : > { %v6206_v16 = vadd.f32 %v7699_v60, %v6084_v36 }
 0x7da   : > { %v6205_v35 = vadd.f32 %v7700_v7, %v6079_v14  ;;  %v6629_v21 = vpop.f32.mrb[70].mxu1 }
 0x7db   : > { %6238 = vst.msk [vmem:[%s13080_s27 + $0x48] sm:$0xff] %vm1516_vm3, %v6206_v16  ;;  %v6094_v49 = vadd.f32 %v6629_v21, %v13072_v58  ;;  %v6088_v43 = vpop.f32.mrb[71].mxu1  ;;  %v7715_v16 = vld [vmem:[%s7830_s14 + $0xa8] sm:$0xff] }
 0x7dc   : > { %6237 = vst.msk [vmem:[%s13080_s27 + $0x40] sm:$0xff] %vm1516_vm3, %v6205_v35  ;;  %v6089_v23 = vadd.f32 %v13072_v58, %v6088_v43  ;;  %v7716_v35 = vld [vmem:[%s7830_s14 + $0xa0] sm:$0xff] }
 0x7dd   : > { %v6208_v11 = vadd.f32 %v7701_v39, %v6094_v49 }
 0x7de   : > { %v6207_v8 = vadd.f32 %v7702_v22, %v6089_v23  ;;  %v6632_v53 = vpop.f32.mrb[72].mxu1 }
 0x7df   : > { %6240 = vst.msk [vmem:[%s13080_s27 + $0x58] sm:$0xff] %vm1516_vm3, %v6208_v11  ;;  %v6104_v44 = vadd.f32 %v6632_v53, %v13072_v58  ;;  %v6098_v27 = vpop.f32.mrb[73].mxu1  ;;  %v7717_v11 = vld [vmem:[%s7830_s14 + $0xb8] sm:$0xff] }
 0x7e0   : > { %6239 = vst.msk [vmem:[%s13080_s27 + $0x50] sm:$0xff] %vm1516_vm3, %v6207_v8  ;;  %v6099_v63 = vadd.f32 %v13072_v58, %v6098_v27  ;;  %v7718_v8 = vld [vmem:[%s7830_s14 + $0xb0] sm:$0xff] }
 0x7e1   : > { %v6210_v52 = vadd.f32 %v7703_v13, %v6104_v44 }
 0x7e2   : > { %v6209_v37 = vadd.f32 %v7704_v29, %v6099_v63 }
 0x7e3   : > { %6242 = vst.msk [vmem:[%s13080_s27 + $0x68] sm:$0xff] %vm1516_vm3, %v6210_v52  ;;  %v7719_v52 = vld [vmem:[%s7830_s14 + $0xc8] sm:$0xff] }
 0x7e4   : > { %6241 = vst.msk [vmem:[%s13080_s27 + $0x60] sm:$0xff] %vm1516_vm3, %v6209_v37  ;;  %v7720_v37 = vld [vmem:[%s7830_s14 + $0xc0] sm:$0xff] }
 0x7e7   : > { %v6635_v42 = vpop.f32.mrb[74].mxu1 }
 0x7e8   : > { %v6114_v17 = vadd.f32 %v6635_v42, %v13072_v58  ;;  %v6108_v30 = vpop.f32.mrb[75].mxu1 }
 0x7e9   : > { %v6109_v25 = vadd.f32 %v13072_v58, %v6108_v30 }
 0x7ea   : > { %v6212_v47 = vadd.f32 %v7705_v54, %v6114_v17 }
 0x7eb   : > { %v6211_v56 = vadd.f32 %v7706_v40, %v6109_v25 }
 0x7ec   : > { %6244 = vst.msk [vmem:[%s13080_s27 + $0x78] sm:$0xff] %vm1516_vm3, %v6212_v47  ;;  %v7721_v47 = vld [vmem:[%s7830_s14 + $0xd8] sm:$0xff] }
 0x7ed   : > { %6243 = vst.msk [vmem:[%s13080_s27 + $0x70] sm:$0xff] %vm1516_vm3, %v6211_v56  ;;  %v7722_v56 = vld [vmem:[%s7830_s14 + $0xd0] sm:$0xff] }
 0x7fd   : > { %v6614_v28 = vpop.f32.mrb[96].mxu0 }
 0x7fe   : > { %v6044_v15 = vadd.f32 %v6614_v28, %v13072_v58  ;;  %v6038_v31 = vpop.f32.mrb[97].mxu0 }
 0x7ff   : > { %v6039_v33 = vadd.f32 %v13072_v58, %v6038_v31 }
 0x800   : > { %v6198_v51 = vadd.f32 %v7707_v2, %v6044_v15  ;;  %v6638_v41 = vpop.f32.mrb[76].mxu1 }
 0x801   : > { %v6197_v1 = vadd.f32 %v7708_v5, %v6039_v33  ;;  %v6124_v55 = vadd.f32 %v6638_v41, %v13072_v58  ;;  %v6118_v18 = vpop.f32.mrb[77].mxu1  ;;  %v7724_v5 = vld [vmem:[%s7830_s14 + $0xe0] sm:$0xff] }
 0x802   : > { %6230 = vst.msk [vmem:[%s13080_s27 + $0x8] sm:$0xff] %vm1516_vm3, %v6198_v51  ;;  %v6119_v0 = vadd.f32 %v13072_v58, %v6118_v18  ;;  %v7723_v51 = vld [vmem:[%s7830_s14 + $0xe8] sm:$0xff] }
 0x803   : > { %6229 = vst.msk [vmem:[%s13080_s27] sm:$0xff] %vm1516_vm3, %v6197_v1  ;;  %v6214_v24 = vadd.f32 %v7709_v61, %v6124_v55 }
 0x804   : > { %v6213_v19 = vadd.f32 %v7710_v26, %v6119_v0 }
 0x805   : > { %6246 = vst.msk [vmem:[%s13080_s27 + $0x88] sm:$0xff] %vm1516_vm3, %v6214_v24  ;;  %v6617_v4 = vpop.f32.mrb[98].mxu0  ;;  %v7725_v24 = vld [vmem:[%s7830_s14 + $0xf8] sm:$0xff] }
 0x806   : > { %6245 = vst.msk [vmem:[%s13080_s27 + $0x80] sm:$0xff] %vm1516_vm3, %v6213_v19  ;;  %v6054_v46 = vadd.f32 %v6617_v4, %v13072_v58  ;;  %v6048_v34 = vpop.f32.mrb[99].mxu0  ;;  %v7726_v19 = vld [vmem:[%s7830_s14 + $0xf0] sm:$0xff] }
 0x807   : > { %v6049_v59 = vadd.f32 %v13072_v58, %v6048_v34 }
 0x808   : > { %v6200_v38 = vadd.f32 %v7711_v32, %v6054_v46 }
 0x809   : > { %v6199_v12 = vadd.f32 %v7712_v62, %v6049_v59 }
 0x80a   : > { %6232 = vst.msk [vmem:[%s13080_s27 + $0x18] sm:$0xff] %vm1516_vm3, %v6200_v38 }
 0x80b   : > { %6231 = vst.msk [vmem:[%s13080_s27 + $0x10] sm:$0xff] %vm1516_vm3, %v6199_v12 }
 0x818   : > { %v6641_v6 = vpop.f32.mrb[78].mxu1 }
 0x819   : > { %v6134_v45 = vadd.f32 %v6641_v6, %v13072_v58  ;;  %v6128_v3 = vpop.f32.mrb[79].mxu1 }
 0x81a   : > { %v6129_v10 = vadd.f32 %v13072_v58, %v6128_v3 }
 0x81b   : > { %v6216_v9 = vadd.f32 %v7713_v20, %v6134_v45 }
 0x81c   : > { %v6215_v57 = vadd.f32 %v7714_v50, %v6129_v10 }
 0x81d   : > { %6248 = vst.msk [vmem:[%s13080_s27 + $0x98] sm:$0xff] %vm1516_vm3, %v6216_v9 }
 0x81e   : > { %6247 = vst.msk [vmem:[%s13080_s27 + $0x90] sm:$0xff] %vm1516_vm3, %v6215_v57 }
 0x830   : > { %v6644_v36 = vpop.f32.mrb[80].mxu1 }
 0x831   : > { %v6144_v48 = vadd.f32 %v6644_v36, %v13072_v58  ;;  %v6138_v14 = vpop.f32.mrb[81].mxu1 }
 0x832   : > { %v6139_v60 = vadd.f32 %v13072_v58, %v6138_v14 }
 0x833   : > { %v6218_v7 = vadd.f32 %v7715_v16, %v6144_v48 }
 0x834   : > { %v6217_v21 = vadd.f32 %v7716_v35, %v6139_v60 }
 0x835   : > { %6250 = vst.msk [vmem:[%s13080_s27 + $0xa8] sm:$0xff] %vm1516_vm3, %v6218_v7 }
 0x836   : > { %6249 = vst.msk [vmem:[%s13080_s27 + $0xa0] sm:$0xff] %vm1516_vm3, %v6217_v21 }
 0x848   : > { %v6647_v49 = vpop.f32.mrb[82].mxu1 }
 0x849   : > { %v6154_v43 = vadd.f32 %v6647_v49, %v13072_v58  ;;  %v6148_v23 = vpop.f32.mrb[83].mxu1 }
 0x84a   : > { %v6149_v39 = vadd.f32 %v13072_v58, %v6148_v23 }
 0x84b   : > { %v6220_v22 = vadd.f32 %v7717_v11, %v6154_v43 }
 0x84c   : > { %v6219_v53 = vadd.f32 %v7718_v8, %v6149_v39 }
 0x84d   : > { %6252 = vst.msk [vmem:[%s13080_s27 + $0xb8] sm:$0xff] %vm1516_vm3, %v6220_v22 }
 0x84e   : > { %6251 = vst.msk [vmem:[%s13080_s27 + $0xb0] sm:$0xff] %vm1516_vm3, %v6219_v53 }
 0x860   : > { %v6650_v44 = vpop.f32.mrb[84].mxu1 }
 0x861   : > { %v6164_v27 = vadd.f32 %v6650_v44, %v13072_v58  ;;  %v6158_v63 = vpop.f32.mrb[85].mxu1 }
 0x862   : > { %v6159_v13 = vadd.f32 %v13072_v58, %v6158_v63 }
 0x863   : > { %v6222_v29 = vadd.f32 %v7719_v52, %v6164_v27 }
 0x864   : > { %v6221_v42 = vadd.f32 %v7720_v37, %v6159_v13 }
 0x865   : > { %6254 = vst.msk [vmem:[%s13080_s27 + $0xc8] sm:$0xff] %vm1516_vm3, %v6222_v29 }
 0x866   : > { %6253 = vst.msk [vmem:[%s13080_s27 + $0xc0] sm:$0xff] %vm1516_vm3, %v6221_v42 }
 0x878   : > { %v6653_v17 = vpop.f32.mrb[86].mxu1 }
 0x879   : > { %v6174_v30 = vadd.f32 %v6653_v17, %v13072_v58  ;;  %v6168_v25 = vpop.f32.mrb[87].mxu1 }
 0x87a   : > { %v6169_v54 = vadd.f32 %v13072_v58, %v6168_v25 }
 0x87b   : > { %v6224_v40 = vadd.f32 %v7721_v47, %v6174_v30 }
 0x87c   : > { %v6223_v28 = vadd.f32 %v7722_v56, %v6169_v54 }
 0x87d   : > { %6256 = vst.msk [vmem:[%s13080_s27 + $0xd8] sm:$0xff] %vm1516_vm3, %v6224_v40 }
 0x87e   : > { %6255 = vst.msk [vmem:[%s13080_s27 + $0xd0] sm:$0xff] %vm1516_vm3, %v6223_v28 }
 0x890   : > { %v6656_v15 = vpop.f32.mrb[88].mxu1 }
 0x891   : > { %v6184_v31 = vadd.f32 %v6656_v15, %v13072_v58  ;;  %v6178_v33 = vpop.f32.mrb[89].mxu1 }
 0x892   : > { %v6179_v2 = vadd.f32 %v13072_v58, %v6178_v33 }
 0x893   : > { %v6226_v41 = vadd.f32 %v7723_v51, %v6184_v31 }
 0x894   : > { %v6225_v1 = vadd.f32 %v7724_v5, %v6179_v2 }
 0x895   : > { %6258 = vst.msk [vmem:[%s13080_s27 + $0xe8] sm:$0xff] %vm1516_vm3, %v6226_v41 }
 0x896   : > { %6257 = vst.msk [vmem:[%s13080_s27 + $0xe0] sm:$0xff] %vm1516_vm3, %v6225_v1 }
 0x8a4   : > { %v6659_v55 = vpop.f32.mrb[90].mxu1 }
 0x8a5   : > { %v6194_v18 = vadd.f32 %v6659_v55, %v13072_v58  ;;  %v6188_v0 = vpop.f32.mrb[91].mxu1 }
 0x8a6   : > { %v6189_v61 = vadd.f32 %v13072_v58, %v6188_v0 }
 0x8a7   : > { %v6228_v26 = vadd.f32 %v7725_v24, %v6194_v18 }
 0x8a8   : > { %v6227_v4 = vadd.f32 %v7726_v19, %v6189_v61 }
 0x8a9   : > { %6260 = vst.msk [vmem:[%s13080_s27 + $0xf8] sm:$0xff] %vm1516_vm3, %v6228_v26 }
 0x8aa   : > { %6259 = vst.msk [vmem:[%s13080_s27 + $0xf0] sm:$0xff] %vm1516_vm3, %v6227_v4 }
 0x8ab PF: > { %s19_s30 = sadd.s32 1, %s7733_s30  }
 0x8ac   : > { %p16_p4 = scmp.ge.s32.totalorder %s19_s30, 4  }
 0x8ae   :  { %18 = sbr.rel (!%p16_p4) target bundleno = 1 (0x1), region = 86 }

</bundles_post_ra>
